<compile_context>
chip_gen: v7x
topology: tpu7x:2x2x1
jax: 0.10.0
libtpu: 0.0.40
codegen_flags: <defaults>
</compile_context>

<pallas_src>
import functools

import jax
import jax.numpy as jnp
from jax.experimental import pallas as pl
from jax.experimental.pallas import tpu as pltpu

F32 = jnp.float32
BF16 = jnp.bfloat16

# Padded, lane/sublane-friendly dims (zero-filled padding => exact parity).
K_STEM = 32      # 3*3*3 = 27 -> 32 (contraction alignment)
C_STEM = 128     # 48 stem channels -> 128 lanes
C_FEAT = 1792    # efficientnet_b4 feature dim (14 * 128, already lane-dense)
H1 = 640         # 625 -> 5 * 128
H2 = 256
N_CLS = 8


# ----------------------------------------------------------------------------
# Fused kernel: stem conv + SiLU -> 1x1 feature conv + SiLU -> streamed
# global-avg-pool -> (last tile only) MLP head.
# Grid: (batch, spatial_tiles); spatial axis iterates fastest.
# ----------------------------------------------------------------------------
def _fused_kernel(n_p_last, inv_pool,
                  patches_ref, w_stem_ref, b_stem_ref, w_feat_ref, b_feat_ref,
                  w1_ref, b1_ref, w2_ref, b2_ref, w3_ref, b3_ref,
                  out_ref, pool_acc):
    p = pl.program_id(1)

    @pl.when(p == 0)
    def _init():
        pool_acc[...] = jnp.zeros_like(pool_acc)

    # ---- stem conv (im2col matmul, BN folded into weights) + SiLU -----------
    x = patches_ref[...]                                           # (TP, 32) bf16
    h = jnp.dot(x, w_stem_ref[...], preferred_element_type=F32)    # (TP, 128) f32
    h = h + b_stem_ref[...]
    h = h * jax.nn.sigmoid(h)                                      # SiLU in f32

    # ---- 1x1 feature conv (-> 1792) + SiLU, streamed into pooled sum --------
    f = jnp.dot(h.astype(BF16), w_feat_ref[...],
                preferred_element_type=F32)                        # (TP, 1792) f32
    f = f + b_feat_ref[...]
    f = f * jax.nn.sigmoid(f)
    pool_acc[...] += jnp.sum(f, axis=0, keepdims=True)             # (1, 1792) f32

    # ---- classifier head: only on the last spatial tile of this batch elem --
    @pl.when(p == n_p_last)
    def _finalize():
        feats = pool_acc[...] * inv_pool                           # global avg pool
        h1 = jnp.dot(feats.astype(BF16), w1_ref[...],
                     preferred_element_type=F32) + b1_ref[...]
        h1 = jnp.maximum(h1, 0.0)
        # Dropout(0.3): identity at inference.
        h2 = jnp.dot(h1.astype(BF16), w2_ref[...],
                     preferred_element_type=F32) + b2_ref[...]
        h2 = jnp.maximum(h2, 0.0)
        logits = jnp.dot(h2.astype(BF16), w3_ref[...],
                         preferred_element_type=F32) + b3_ref[...]
        out_ref[...] = logits.astype(out_ref.dtype)                # (1, 8)


# ----------------------------------------------------------------------------
# Parameter init (deterministic, synthetic).  Weights bf16, biases f32.
# Padding regions are zero-filled so results match the unpadded computation.
# ----------------------------------------------------------------------------
def init_params():
    key = jax.random.PRNGKey(42)
    ks = jax.random.split(key, 5)

    def lin(k, fan_in, fan_out, pad_in=0, pad_out=0):
        w = jax.random.normal(k, (fan_in, fan_out), F32) / jnp.sqrt(fan_in)
        b = jnp.zeros((1, fan_out), F32)
        w = jnp.pad(w, ((0, pad_in), (0, pad_out)))
        b = jnp.pad(b, ((0, 0), (0, pad_out)))
        return w.astype(BF16), b                       # bf16 weight, f32 bias

    # stem: Conv2d(3, 48, k=3, s=2, p=1) -> im2col weight [27,48] -> [32,128]
    w_stem, b_stem = lin(ks[0], 27, 48, pad_in=K_STEM - 27, pad_out=C_STEM - 48)
    # final 1x1 feature conv: 48 -> 1792, padded input channels to 128
    w_feat, b_feat = lin(ks[1], 48, C_FEAT, pad_in=C_STEM - 48)
    # head: 1792 -> 625 (pad 640) -> 256 -> 8
    w1, b1 = lin(ks[2], C_FEAT, 625, pad_out=H1 - 625)
    w2, b2 = lin(ks[3], 625, H2, pad_in=H1 - 625)
    w3, b3 = lin(ks[4], H2, N_CLS)
    return dict(w_stem=w_stem, b_stem=b_stem, w_feat=w_feat, b_feat=b_feat,
                w1=w1, b1=b1, w2=w2, b2=b2, w3=w3, b3=b3)


# ----------------------------------------------------------------------------
# im2col for the 3x3 / stride-2 / pad-1 stem conv (plain JAX; K padded to 32).
# ----------------------------------------------------------------------------
def _im2col_stem(x_nchw):
    x = jnp.transpose(x_nchw, (0, 2, 3, 1))            # NCHW -> NHWC
    B, H, W, C = x.shape
    Ho, Wo = H // 2, W // 2
    xp = jnp.pad(x, ((0, 0), (1, 1), (1, 1), (0, 0)))
    cols = [xp[:, di:di + 2 * Ho:2, dj:dj + 2 * Wo:2, :]
            for di in range(3) for dj in range(3)]
    patches = jnp.concatenate(cols, axis=-1)           # [B, Ho, Wo, 27]
    patches = jnp.pad(patches, ((0, 0), (0, 0), (0, 0), (0, K_STEM - 9 * C)))
    return patches.reshape(B, Ho * Wo, K_STEM).astype(BF16), B, Ho * Wo


# ----------------------------------------------------------------------------
# Forward wrapper: one fused pallas_call.
# ----------------------------------------------------------------------------
def network_forward(x_nchw, params, tile_p=128):
    # tile_p: spatial rows per grid step.  128 is plenty at toy sizes; use
    # 512-1024 at real EfficientNet-B4 resolution (budget ~TP*1792*4B f32 of
    # live activation + ~3 MB resident weights against 32 MiB scoped VMEM).
    patches, B, P = _im2col_stem(x_nchw)               # bf16 [B, P, 32]
    TP = min(tile_p, P)
    assert P % TP == 0, "spatial positions must tile evenly"
    nP = P // TP

    kernel = functools.partial(_fused_kernel, nP - 1, 1.0 / P)

    def const(shape):                                  # weight resident in VMEM
        return pl.BlockSpec(shape, lambda b, p: (0,) * len(shape))

    grid_spec = pltpu.PrefetchScalarGridSpec(
        num_scalar_prefetch=0,
        grid=(B, nP),
        in_specs=[
            pl.BlockSpec((None, TP, K_STEM), lambda b, p: (b, p, 0)),  # patches
            const((K_STEM, C_STEM)),                   # w_stem
            const((1, C_STEM)),                        # b_stem
            const((C_STEM, C_FEAT)),                   # w_feat
            const((1, C_FEAT)),                        # b_feat
            const((C_FEAT, H1)),                       # w1
            const((1, H1)),                            # b1
            const((H1, H2)),                           # w2
            const((1, H2)),                            # b2
            const((H2, N_CLS)),                        # w3
            const((1, N_CLS)),                         # b3
        ],
        out_specs=pl.BlockSpec((None, 1, N_CLS), lambda b, p: (b, 0, 0)),
        scratch_shapes=[pltpu.VMEM((1, C_FEAT), F32)],  # pooled-sum accumulator
    )

    out = pl.pallas_call(
        kernel,
        out_shape=jax.ShapeDtypeStruct((B, 1, N_CLS), F32),
        grid_spec=grid_spec,
        compiler_params=pltpu.CompilerParams(
            dimension_semantics=("parallel", "arbitrary")),
    )(patches,
      params["w_stem"], params["b_stem"], params["w_feat"], params["b_feat"],
      params["w1"], params["b1"], params["w2"], params["b2"],
      params["w3"], params["b3"])

    return out.reshape(B, N_CLS)


if __name__ == "__main__":
    key = jax.random.PRNGKey(0)
    # Small NCHW input consistent with an image classifier: [B=2, C=3, H=W=32]
    x = jax.random.normal(key, (2, 3, 32, 32), F32)
    params = init_params()

    out = jax.jit(network_forward)(x, params)
    out = jax.block_until_ready(out)
    assert out.shape == (2, 8) and out.dtype == F32
    print("KERNEL_OK")
</pallas_src>

<mosaic_0001>
module attributes {stable_mosaic.version = 11 : i64} {
  func.func @_fused_kernel(%arg0: i32, %arg1: i32, %arg2: memref<1x128x32xbf16, #tpu.memory_space<vmem>>, %arg3: memref<32x128xbf16, #tpu.memory_space<vmem>>, %arg4: memref<1x128xf32, #tpu.memory_space<vmem>>, %arg5: memref<128x1792xbf16, #tpu.memory_space<vmem>>, %arg6: memref<1x1792xf32, #tpu.memory_space<vmem>>, %arg7: memref<1792x640xbf16, #tpu.memory_space<vmem>>, %arg8: memref<1x640xf32, #tpu.memory_space<vmem>>, %arg9: memref<640x256xbf16, #tpu.memory_space<vmem>>, %arg10: memref<1x256xf32, #tpu.memory_space<vmem>>, %arg11: memref<256x8xbf16, #tpu.memory_space<vmem>>, %arg12: memref<1x8xf32, #tpu.memory_space<vmem>>, %arg13: memref<1x1x8xf32, #tpu.memory_space<vmem>>, %arg14: memref<1x1792xf32, #tpu.memory_space<vmem>>) attributes {dimension_semantics = [#tpu.dimension_semantics<parallel>, #tpu.dimension_semantics<arbitrary>], iteration_bounds = array<i64: 2, 2>, scalar_prefetch = 0 : i64, scratch_operands = 1 : i64, tpu.core_type = #tpu.core_type<tc>, window_params = [{transform_indices = @transform_0, window_bounds = array<i64: 1, 128, 32>}, {pipeline_mode = #tpu.pipeline_mode<synchronous>, transform_indices = @transform_1, window_bounds = array<i64: 32, 128>}, {pipeline_mode = #tpu.pipeline_mode<synchronous>, transform_indices = @transform_2, window_bounds = array<i64: 1, 128>}, {pipeline_mode = #tpu.pipeline_mode<synchronous>, transform_indices = @transform_3, window_bounds = array<i64: 128, 1792>}, {pipeline_mode = #tpu.pipeline_mode<synchronous>, transform_indices = @transform_4, window_bounds = array<i64: 1, 1792>}, {pipeline_mode = #tpu.pipeline_mode<synchronous>, transform_indices = @transform_5, window_bounds = array<i64: 1792, 640>}, {pipeline_mode = #tpu.pipeline_mode<synchronous>, transform_indices = @transform_6, window_bounds = array<i64: 1, 640>}, {pipeline_mode = #tpu.pipeline_mode<synchronous>, transform_indices = @transform_7, window_bounds = array<i64: 640, 256>}, {pipeline_mode = #tpu.pipeline_mode<synchronous>, transform_indices = @transform_8, window_bounds = array<i64: 1, 256>}, {pipeline_mode = #tpu.pipeline_mode<synchronous>, transform_indices = @transform_9, window_bounds = array<i64: 256, 8>}, {pipeline_mode = #tpu.pipeline_mode<synchronous>, transform_indices = @transform_10, window_bounds = array<i64: 1, 8>}, {transform_indices = @transform_11, window_bounds = array<i64: 1, 1, 8>}]} {
    %c0_i32 = arith.constant 0 : i32
    %0 = arith.cmpi eq, %arg1, %c0_i32 : i32
    %1 = arith.extui %0 : i1 to i32
    %c0_i32_0 = arith.constant 0 : i32
    %2 = arith.cmpi ne, %1, %c0_i32_0 : i32
    scf.if %2 {
      %cst_20 = arith.constant 0.000000e+00 : f32
      %36 = vector.broadcast %cst_20 : f32 to vector<1x1792xf32>
      %c0_21 = arith.constant 0 : index
      %c0_22 = arith.constant 0 : index
      %37 = vector.load %arg14[%c0_21, %c0_22] : memref<1x1792xf32, #tpu.memory_space<vmem>>, vector<1x1792xf32>
      tpu.vector_store %arg14[%c0_21, %c0_22], %36 {strides = array<i32>} : memref<1x1792xf32, #tpu.memory_space<vmem>>, vector<1x1792xf32>,
    } else {
    }
    %c0 = arith.constant 0 : index
    %c0_1 = arith.constant 0 : index
    %c0_2 = arith.constant 0 : index
    %3 = vector.load %arg2[%c0, %c0_1, %c0_2] : memref<1x128x32xbf16, #tpu.memory_space<vmem>>, vector<1x128x32xbf16>
    %4 = vector.shape_cast %3 : vector<1x128x32xbf16> to vector<128x32xbf16>
    %c0_3 = arith.constant 0 : index
    %c0_4 = arith.constant 0 : index
    %5 = vector.load %arg3[%c0_3, %c0_4] : memref<32x128xbf16, #tpu.memory_space<vmem>>, vector<32x128xbf16>
    %cst = arith.constant dense<0.000000e+00> : vector<128x128xf32>
    %6 = tpu.matmul %4, %5, %cst {dimension_numbers = #tpu.dot_dimension_numbers<[1], [0], [0], [1], [0, 0, 1, 1], [], []>} : vector<128x32xbf16>, vector<32x128xbf16>, vector<128x128xf32> -> vector<128x128xf32>
    %c0_5 = arith.constant 0 : index
    %c0_6 = arith.constant 0 : index
    %7 = vector.load %arg4[%c0_5, %c0_6] : memref<1x128xf32, #tpu.memory_space<vmem>>, vector<1x128xf32>
    %8 = vector.broadcast %7 : vector<1x128xf32> to vector<128x128xf32>
    %9 = arith.addf %6, %8 : vector<128x128xf32>
    %10 = arith.negf %9 : vector<128x128xf32>
    %11 = math.exp %10 : vector<128x128xf32>
    %cst_7 = arith.constant 1.000000e+00 : f32
    %12 = vector.broadcast %cst_7 : f32 to vector<128x128xf32>
    %13 = arith.addf %12, %11 : vector<128x128xf32>
    %14 = arith.divf %12, %13 : vector<128x128xf32>
    %15 = arith.mulf %9, %14 : vector<128x128xf32>
    %16 = arith.truncf %15 : vector<128x128xf32> to vector<128x128xbf16>
    %c0_8 = arith.constant 0 : index
    %c0_9 = arith.constant 0 : index
    %17 = vector.load %arg5[%c0_8, %c0_9] : memref<128x1792xbf16, #tpu.memory_space<vmem>>, vector<128x1792xbf16>
    %cst_10 = arith.constant dense<0.000000e+00> : vector<128x1792xf32>
    %18 = tpu.matmul %16, %17, %cst_10 {dimension_numbers = #tpu.dot_dimension_numbers<[1], [0], [0], [1], [0, 0, 1, 1], [], []>} : vector<128x128xbf16>, vector<128x1792xbf16>, vector<128x1792xf32> -> vector<128x1792xf32>
    %c0_11 = arith.constant 0 : index
    %c0_12 = arith.constant 0 : index
    %19 = vector.load %arg6[%c0_11, %c0_12] : memref<1x1792xf32, #tpu.memory_space<vmem>>, vector<1x1792xf32>
    %20 = vector.broadcast %19 : vector<1x1792xf32> to vector<128x1792xf32>
    %21 = arith.addf %18, %20 : vector<128x1792xf32>
    %22 = arith.negf %21 : vector<128x1792xf32>
    %23 = math.exp %22 : vector<128x1792xf32>
    %cst_13 = arith.constant 1.000000e+00 : f32
    %24 = vector.broadcast %cst_13 : f32 to vector<128x1792xf32>
    %25 = arith.addf %24, %23 : vector<128x1792xf32>
    %26 = arith.divf %24, %25 : vector<128x1792xf32>
    %27 = arith.mulf %21, %26 : vector<128x1792xf32>
    %c0_14 = arith.constant 0 : index
    %c0_15 = arith.constant 0 : index
    %28 = vector.load %arg14[%c0_14, %c0_15] : memref<1x1792xf32, #tpu.memory_space<vmem>>, vector<1x1792xf32>
    %cst_16 = arith.constant dense<0.000000e+00> : vector<1792xf32>
    %29 = vector.multi_reduction <add>, %27, %cst_16 [0] : vector<128x1792xf32> to vector<1792xf32>
    %30 = vector.shape_cast %29 : vector<1792xf32> to vector<1x1792xf32>
    %31 = arith.addf %28, %30 : vector<1x1792xf32>
    %c0_17 = arith.constant 0 : index
    %c0_18 = arith.constant 0 : index
    %32 = vector.load %arg14[%c0_17, %c0_18] : memref<1x1792xf32, #tpu.memory_space<vmem>>, vector<1x1792xf32>
    tpu.vector_store %arg14[%c0_17, %c0_18], %31 {strides = array<i32>} : memref<1x1792xf32, #tpu.memory_space<vmem>>, vector<1x1792xf32>,
    %c1_i32 = arith.constant 1 : i32
    %33 = arith.cmpi eq, %arg1, %c1_i32 : i32
    %34 = arith.extui %33 : i1 to i32
    %c0_i32_19 = arith.constant 0 : i32
    %35 = arith.cmpi ne, %34, %c0_i32_19 : i32
    scf.if %35 {
      %c0_20 = arith.constant 0 : index
      %c0_21 = arith.constant 0 : index
      %36 = vector.load %arg14[%c0_20, %c0_21] : memref<1x1792xf32, #tpu.memory_space<vmem>>, vector<1x1792xf32>
      %cst_22 = arith.constant 3.906250e-03 : f32
      %37 = vector.broadcast %cst_22 : f32 to vector<1x1792xf32>
      %38 = arith.mulf %36, %37 : vector<1x1792xf32>
      %39 = arith.truncf %38 : vector<1x1792xf32> to vector<1x1792xbf16>
      %c0_23 = arith.constant 0 : index
      %c0_24 = arith.constant 0 : index
      %40 = vector.load %arg7[%c0_23, %c0_24] : memref<1792x640xbf16, #tpu.memory_space<vmem>>, vector<1792x640xbf16>
      %cst_25 = arith.constant dense<0.000000e+00> : vector<1x640xf32>
      %41 = tpu.matmul %39, %40, %cst_25 {dimension_numbers = #tpu.dot_dimension_numbers<[1], [0], [0], [1], [0, 0, 1, 1], [], []>} : vector<1x1792xbf16>, vector<1792x640xbf16>, vector<1x640xf32> -> vector<1x640xf32>
      %c0_26 = arith.constant 0 : index
      %c0_27 = arith.constant 0 : index
      %42 = vector.load %arg8[%c0_26, %c0_27] : memref<1x640xf32, #tpu.memory_space<vmem>>, vector<1x640xf32>
      %43 = arith.addf %41, %42 : vector<1x640xf32>
      %cst_28 = arith.constant 0.000000e+00 : f32
      %44 = vector.broadcast %cst_28 : f32 to vector<1x640xf32>
      %45 = arith.maximumf %43, %44 : vector<1x640xf32>
      %46 = arith.truncf %45 : vector<1x640xf32> to vector<1x640xbf16>
      %c0_29 = arith.constant 0 : index
      %c0_30 = arith.constant 0 : index
      %47 = vector.load %arg9[%c0_29, %c0_30] : memref<640x256xbf16, #tpu.memory_space<vmem>>, vector<640x256xbf16>
      %cst_31 = arith.constant dense<0.000000e+00> : vector<1x256xf32>
      %48 = tpu.matmul %46, %47, %cst_31 {dimension_numbers = #tpu.dot_dimension_numbers<[1], [0], [0], [1], [0, 0, 1, 1], [], []>} : vector<1x640xbf16>, vector<640x256xbf16>, vector<1x256xf32> -> vector<1x256xf32>
      %c0_32 = arith.constant 0 : index
      %c0_33 = arith.constant 0 : index
      %49 = vector.load %arg10[%c0_32, %c0_33] : memref<1x256xf32, #tpu.memory_space<vmem>>, vector<1x256xf32>
      %50 = arith.addf %48, %49 : vector<1x256xf32>
      %cst_34 = arith.constant 0.000000e+00 : f32
      %51 = vector.broadcast %cst_34 : f32 to vector<1x256xf32>
      %52 = arith.maximumf %50, %51 : vector<1x256xf32>
      %53 = arith.truncf %52 : vector<1x256xf32> to vector<1x256xbf16>
      %c0_35 = arith.constant 0 : index
      %c0_36 = arith.constant 0 : index
      %54 = vector.load %arg11[%c0_35, %c0_36] : memref<256x8xbf16, #tpu.memory_space<vmem>>, vector<256x8xbf16>
      %cst_37 = arith.constant dense<0.000000e+00> : vector<1x8xf32>
      %55 = tpu.matmul %53, %54, %cst_37 {dimension_numbers = #tpu.dot_dimension_numbers<[1], [0], [0], [1], [0, 0, 1, 1], [], []>} : vector<1x256xbf16>, vector<256x8xbf16>, vector<1x8xf32> -> vector<1x8xf32>
      %c0_38 = arith.constant 0 : index
      %c0_39 = arith.constant 0 : index
      %56 = vector.load %arg12[%c0_38, %c0_39] : memref<1x8xf32, #tpu.memory_space<vmem>>, vector<1x8xf32>
      %57 = arith.addf %55, %56 : vector<1x8xf32>
      %c0_40 = arith.constant 0 : index
      %c0_41 = arith.constant 0 : index
      %c0_42 = arith.constant 0 : index
      %58 = vector.load %arg13[%c0_40, %c0_41, %c0_42] : memref<1x1x8xf32, #tpu.memory_space<vmem>>, vector<1x1x8xf32>
      %59 = vector.shape_cast %58 : vector<1x1x8xf32> to vector<1x8xf32>
      %60 = vector.shape_cast %57 : vector<1x8xf32> to vector<1x1x8xf32>
      tpu.vector_store %arg13[%c0_40, %c0_41, %c0_42], %60 {strides = array<i32>} : memref<1x1x8xf32, #tpu.memory_space<vmem>>, vector<1x1x8xf32>,
    } else {
    }
    return
  }
  func.func @transform_0(%arg0: i32, %arg1: i32) -> (i32, i32, i32) {
    %c0_i32 = arith.constant 0 : i32
    %c0_i32_0 = arith.constant 0 : i32
    return %arg0, %arg1, %c0_i32 : i32, i32, i32
  }
  func.func @transform_1(%arg0: i32, %arg1: i32) -> (i32, i32) {
    %c0_i32 = arith.constant 0 : i32
    %c0_i32_0 = arith.constant 0 : i32
    %c0_i32_1 = arith.constant 0 : i32
    return %c0_i32, %c0_i32_0 : i32, i32
  }
  func.func @transform_2(%arg0: i32, %arg1: i32) -> (i32, i32) {
    %c0_i32 = arith.constant 0 : i32
    %c0_i32_0 = arith.constant 0 : i32
    %c0_i32_1 = arith.constant 0 : i32
    return %c0_i32, %c0_i32_0 : i32, i32
  }
  func.func @transform_3(%arg0: i32, %arg1: i32) -> (i32, i32) {
    %c0_i32 = arith.constant 0 : i32
    %c0_i32_0 = arith.constant 0 : i32
    %c0_i32_1 = arith.constant 0 : i32
    return %c0_i32, %c0_i32_0 : i32, i32
  }
  func.func @transform_4(%arg0: i32, %arg1: i32) -> (i32, i32) {
    %c0_i32 = arith.constant 0 : i32
    %c0_i32_0 = arith.constant 0 : i32
    %c0_i32_1 = arith.constant 0 : i32
    return %c0_i32, %c0_i32_0 : i32, i32
  }
  func.func @transform_5(%arg0: i32, %arg1: i32) -> (i32, i32) {
    %c0_i32 = arith.constant 0 : i32
    %c0_i32_0 = arith.constant 0 : i32
    %c0_i32_1 = arith.constant 0 : i32
    return %c0_i32, %c0_i32_0 : i32, i32
  }
  func.func @transform_6(%arg0: i32, %arg1: i32) -> (i32, i32) {
    %c0_i32 = arith.constant 0 : i32
    %c0_i32_0 = arith.constant 0 : i32
    %c0_i32_1 = arith.constant 0 : i32
    return %c0_i32, %c0_i32_0 : i32, i32
  }
  func.func @transform_7(%arg0: i32, %arg1: i32) -> (i32, i32) {
    %c0_i32 = arith.constant 0 : i32
    %c0_i32_0 = arith.constant 0 : i32
    %c0_i32_1 = arith.constant 0 : i32
    return %c0_i32, %c0_i32_0 : i32, i32
  }
  func.func @transform_8(%arg0: i32, %arg1: i32) -> (i32, i32) {
    %c0_i32 = arith.constant 0 : i32
    %c0_i32_0 = arith.constant 0 : i32
    %c0_i32_1 = arith.constant 0 : i32
    return %c0_i32, %c0_i32_0 : i32, i32
  }
  func.func @transform_9(%arg0: i32, %arg1: i32) -> (i32, i32) {
    %c0_i32 = arith.constant 0 : i32
    %c0_i32_0 = arith.constant 0 : i32
    %c0_i32_1 = arith.constant 0 : i32
    return %c0_i32, %c0_i32_0 : i32, i32
  }
  func.func @transform_10(%arg0: i32, %arg1: i32) -> (i32, i32) {
    %c0_i32 = arith.constant 0 : i32
    %c0_i32_0 = arith.constant 0 : i32
    %c0_i32_1 = arith.constant 0 : i32
    return %c0_i32, %c0_i32_0 : i32, i32
  }
  func.func @transform_11(%arg0: i32, %arg1: i32) -> (i32, i32, i32) {
    %c0_i32 = arith.constant 0 : i32
    %c0_i32_0 = arith.constant 0 : i32
    %c0_i32_1 = arith.constant 0 : i32
    return %arg0, %c0_i32, %c0_i32_0 : i32, i32, i32
  }
}

</mosaic_0001>

<bundles_post_ra>
// kernel: network_forward.1
= control target key start
LH: loop header
LB: loop body
LE: loop exit
PB: predicated region body
PF: predicated region fallthrough
CT: control target
= control target key end

     0   :  { %s16623_s0 = inlined_call_operand.vmem [shape: bf16[2,256,32], index: 0, kind: input, shape index: {}]   ;;  %s16624_s1 = inlined_call_operand.hbm [shape: bf16[32,128], index: 1, kind: input, shape index: {}]   ;;  %s16625_s2 = inlined_call_operand.hbm [shape: f32[1,128], index: 2, kind: input, shape index: {}]   ;;  %s16626_s3 = inlined_call_operand.hbm [shape: bf16[128,1792], index: 3, kind: input, shape index: {}]   ;;  %s16627_s4 = inlined_call_operand.hbm [shape: f32[1,1792], index: 4, kind: input, shape index: {}]   ;;  %s16628_s5 = inlined_call_operand.hbm [shape: bf16[1792,640], index: 5, kind: input, shape index: {}]   ;;  %s16629_s6 = inlined_call_operand.hbm [shape: f32[1,640], index: 6, kind: input, shape index: {}]   ;;  %s16630_s7 = inlined_call_operand.hbm [shape: bf16[640,256], index: 7, kind: input, shape index: {}]   ;;  %s16631_s8 = inlined_call_operand.hbm [shape: f32[1,256], index: 8, kind: input, shape index: {}]   ;;  %s16632_s9 = inlined_call_operand.vmem [shape: bf16[256,8], index: 9, kind: input, shape index: {}]   ;;  %s16633_s10 = inlined_call_operand.hbm [shape: f32[1,8], index: 10, kind: input, shape index: {}]   ;;  %s16634_s11 = inlined_call_operand.hbm [shape: f32[2,1,8], index: 11, kind: output, shape index: {}]  }
   0x1   :  { %16665 = sst [smem:[#allocation97_spill]] %s16625_s2 }
   0x2   :  { %16666 = sst [smem:[#allocation98_spill]] %s16627_s4 }
   0x3   :  { %16667 = sst [smem:[#allocation99_spill]] %s16634_s11 }
   0x4   :  { %16 = vsyncpa [#allocation4], 0 }
   0x5   :  { %17 = vsyncpa [#allocation7], 0 }
   0x6   :  { %18 = vsyncpa [#allocation10], 0 }
   0x7   :  { %19 = vsyncpa [#allocation13], 0 }
   0x8   :  { %20 = vsyncpa [#allocation16], 0 }
   0x9   :  { %21 = vsyncpa [#allocation5], 0 }
   0xa   :  { %23 = vsyncpa [#allocation5 + $0x1], 0  ;;  %s13935_s17 = smov 0   ;;  %s13937_s18 = smov 0  }
   0xb   :  { %s13939_s19 = smov 0   ;;  %s13941_s20 = smov 0  }
   0xc   :  { %s13943_s21 = smov 0   ;;  %s13945_s22 = smov 0  }
   0xd   :  { %s13947_s23 = smov 0   ;;  %s13949_s24 = smov 0  }
   0xe LB: > { %16668 = sst [smem:[#allocation25_spill]] %s13823_s17  ;;  %s9911_s25 = sadd.s32 4294967295, %s13851_s24   ;;  %s13851_s24 = sphi %s13949_s24, %s29_s24   ;;  %s13847_s23 = sphi %s13947_s23, %s16998_s23   ;;  %s13843_s22 = sphi %s13945_s22, %s16997_s22   ;;  %s13839_s21 = sphi %s13943_s21, %s16996_s21   ;;  %s13835_s20 = sphi %s13941_s20, %s17001_s20   ;;  %s13831_s19 = sphi %s13939_s19, %s16994_s19   ;;  %s13827_s18 = sphi %s13937_s18, %s17000_s18   ;;  %s13823_s17 = sphi %s13935_s17, %s16999_s17  }
   0xf   : > { %16669 = sst [smem:[#allocation26_spill]] %s13831_s19  ;;  %s9912_s26 = sadd.s32 4294967294, %s13851_s24  }
  0x10   : > { %16670 = sst [smem:[#allocation27_spill]] %s13843_s22  ;;  %s38_s27 = sadd.s32 1, %s13843_s22 }
  0x11   : > { %16671 = sst [smem:[#allocation28_spill]] %s13847_s23  ;;  %s41_s28 = sadd.s32 1, %s13847_s23 }
  0x12   : > { %16672 = sst [smem:[#allocation29_spill]] %s13851_s24  ;;  %p39_p0 = scmp.ge.s32.totalorder %s38_s27, 2 }
  0x13   : > { %s286_s29 = sadd.s32 1, %s13831_s19  ;;  %p296_p1 = scmp.ne.s32.totalorder %s13831_s19, %s13827_s18 }
  0x14   : > { %p297_p2 = scmp.eq.s32.totalorder %s9911_s25, 3  ;;  %s17003_s27 = smov (%p39_p0, %s38_s27), 0 }
  0x15   : > { %16673 = sst [smem:[#allocation30_spill]] %s17003_s27  ;;  %s17005_s28 = smov (!%p39_p0, %s41_s28), %s13847_s23 }
  0x16   : > { %p13985_p3 = por %p297_p2, %p296_p1  ;;  %p302_p4 = scmp.ne.s32.totalorder %s13827_s18, %s13823_s17 }
  0x17   : > { %p43_p5 = scmp.ge.s32.totalorder %s17005_s28, 2  ;;  %p303_p6 = scmp.eq.s32.totalorder %s9912_s26, 3 }
  0x18   : > { %s16674_s30 = scalar_select %p13985_p3, 1, 0 }
  0x19   : > { %p9913_p7 = scmp.ge.s32.totalorder %s13851_s24, 1  ;;  %p310_p8 = scmp.lt.s32.totalorder %s13851_s24, 5 }
  0x1a   : > { %s17007_s28 = smov (%p43_p5, %s17005_s28), 0  ;;  %p13995_p9 = por %p303_p6, %p302_p4 }
  0x1b   : > { %16675 = sst [smem:[#allocation31_spill]] %s17007_s28  ;;  %p13999_p10 = pnand %p9913_p7, %p310_p8 }
  0x1c   : > { %s16676_s12 = scalar_select %p13995_p9, 1, 0 }
  0x1d   : > { %s16678_s13 = scalar_select %p13999_p10, 1, 0 }
  0x1e   : > { %16677 = sst [smem:[#allocation32_spill]] %s16676_s12  ;;  %s283_s14 = ssub.s32 %s13847_s23, %s17007_s28 }
  0x1f   : > { %p284_p11 = scmp.eq.s32.totalorder %s283_s14, 0  ;;  %p11289_p12 = pneg %p13999_p10 }
  0x20   : > { %p14007_p13 = scmp.eq.s32.totalorder %s9911_s25, 0  ;;  %s13853_s27 = smov [#allocation6]  }
  0x21   : > { %s14012_s16 = scalar_select %p284_p11, %s13831_s19, %s286_s29  }
  0x22   : > { %s16679_s15 = scalar_select %p14007_p13, 1, 0 }
  0x23   : > { %16680 = sst [smem:[#allocation33_spill]] %s14012_s16  ;;  %p14016_p0 = pnand %p14007_p13, %p11289_p12 }
  0x24   : > { %s336_s22 = sshll.u32 %s13853_s27, 4  ;;  %s13854_s28 = smov [#allocation9]   ;;  %s337_s22 = int_to_ptr.vmem [resolvable:$true] %s336_s22 }
  0x25   : > { %s360_s14 = sshll.u32 %s13854_s28, 4  ;;  %s16682_s2 = sld [smem:[#allocation97_spill]]  ;;  %s361_s14 = int_to_ptr.vmem [resolvable:$true] %s360_s14 }
  0x26   : > { %p14028_p2 = pneg %p14016_p0 }
  0x2b   : > { %s13485_s25 = scalar_lea.hbm %s16682_s2, 16 }
  0x2c   : > { %p13486_p1 = scmp.ne.s32.totalorder %s16682_s2, %s13485_s25  ;;  %p13492_p6 = scmp.lt.u32.totalorder %s13485_s25, %s16682_s2 }
  0x2e   : > { %p13488_p4 = pnand %p14028_p2, %p13486_p1 }
  0x30   : > { %p13489_p5 = pneg %p13488_p4 }
  0x32   : > { %p13494_p7 = pnand %p13492_p6, %p13489_p5 }
  0x34   : > { %13497 = shalt.err (!%p13494_p7)
}
  0x35   : > { %s13498_s23 = scalar_lea.vmem %s337_s22, 16  ;;  %s13505_s17 = scalar_lea.vmem %s337_s22, 32 }
  0x36   : > { %p13499_p8 = scmp.ne.s32.totalorder %s337_s22, %s13498_s23  ;;  %p13506_p9 = scmp.lt.s32.totalorder %s337_s22, %s337_s22 }
  0x37   : > { %p13507_p3 = scmp.lt.s32.totalorder %s13505_s17, %s13498_s23 }
  0x38   : > { %p13501_p11 = pnand %p13499_p8, %p14028_p2 }
  0x39   : > { %p13508_p13 = por %p13507_p3, %p13506_p9 }
  0x3a   : > { %p13502_p12 = pneg %p13501_p11 }
  0x3c   : > { %p13509_p10 = pnand %p13508_p13, %p13502_p12 }
  0x3e   : > { %13512 = shalt.err (!%p13509_p10)
}
  0x3f   : > { %11295 = dma.hbm_to_vmem [thread:$0]  (!%p14016_p0), %s16682_s2, 16, %s337_s22, [#allocation7]  }
  0x40   : > { %s16684_s4 = sld [smem:[#allocation98_spill]] }
  0x46   : > { %s13513_s25 = scalar_lea.hbm %s16684_s4, 224 }
  0x47   : > { %p13514_p1 = scmp.ne.s32.totalorder %s16684_s4, %s13513_s25  ;;  %p13520_p10 = scmp.lt.u32.totalorder %s13513_s25, %s16684_s4 }
  0x49   : > { %p13516_p3 = pnand %p13514_p1, %p14028_p2 }
  0x4b   : > { %p13517_p9 = pneg %p13516_p3 }
  0x4d   : > { %p13522_p13 = pnand %p13520_p10, %p13517_p9 }
  0x4f   : > { %13525 = shalt.err (!%p13522_p13)
}
  0x50   : > { %s13526_s24 = scalar_lea.vmem %s361_s14, 224  ;;  %p13534_p7 = scmp.lt.s32.totalorder %s361_s14, %s361_s14 }
  0x51   : > { %p13527_p4 = scmp.ne.s32.totalorder %s361_s14, %s13526_s24  ;;  %p13535_p8 = scmp.lt.s32.totalorder %s13526_s24, %s13526_s24 }
  0x53   : > { %p13529_p5 = pnand %p13527_p4, %p14028_p2  ;;  %p13536_p11 = por %p13535_p8, %p13534_p7 }
  0x55   : > { %p13530_p6 = pneg %p13529_p5 }
  0x57   : > { %p13537_p12 = pnand %p13536_p11, %p13530_p6 }
  0x59   : > { %13540 = shalt.err (!%p13537_p12)
}
  0x5a   : > { %11301 = dma.hbm_to_vmem [thread:$0]  (!%p14016_p0), %s16684_s4, 224, %s361_s14, [#allocation10]  }
  0x5b   : > { %s13855_s28 = smov [#allocation12]   ;;  %s13856_s16 = smov [#allocation15]  }
  0x5c   : > { %s384_s12 = sshll.u32 %s13855_s28, 4  ;;  %s408_s25 = sshll.u32 %s13856_s16, 4  ;;  %s385_s12 = int_to_ptr.vmem [resolvable:$true] %s384_s12  ;;  %s409_s25 = int_to_ptr.vmem [resolvable:$true] %s408_s25 }
  0x5d   : > { %s13541_s17 = scalar_lea.hbm %s16629_s6, 80 }
  0x5e   : > { %p13542_p1 = scmp.ne.s32.totalorder %s16629_s6, %s13541_s17  ;;  %p13548_p10 = scmp.lt.u32.totalorder %s13541_s17, %s16629_s6 }
  0x60   : > { %p13544_p3 = pnand %p13542_p1, %p14028_p2 }
  0x62   : > { %p13545_p9 = pneg %p13544_p3 }
  0x64   : > { %p13550_p13 = pnand %p13548_p10, %p13545_p9 }
  0x66   : > { %13553 = shalt.err (!%p13550_p13)
}
  0x67   : > { %s13554_s14 = scalar_lea.vmem %s385_s12, 80  ;;  %s13561_s22 = scalar_lea.vmem %s385_s12, 96 }
  0x68   : > { %p13555_p4 = scmp.ne.s32.totalorder %s385_s12, %s13554_s14  ;;  %p13562_p7 = scmp.lt.s32.totalorder %s385_s12, %s385_s12 }
  0x69   : > { %p13563_p8 = scmp.lt.s32.totalorder %s13561_s22, %s13554_s14 }
  0x6a   : > { %p13557_p5 = pnand %p13555_p4, %p14028_p2 }
  0x6b   : > { %p13564_p11 = por %p13563_p8, %p13562_p7 }
  0x6c   : > { %p13558_p6 = pneg %p13557_p5 }
  0x6e   : > { %p13565_p12 = pnand %p13564_p11, %p13558_p6 }
  0x70   : > { %13568 = shalt.err (!%p13565_p12)
}
  0x71   : > { %11307 = dma.hbm_to_vmem [thread:$0]  (!%p14016_p0), %s16629_s6, 80, %s385_s12, [#allocation13]  }
  0x72   : > { %s13569_s27 = scalar_lea.hbm %s16631_s8, 32 }
  0x73   : > { %p13570_p1 = scmp.ne.s32.totalorder %s16631_s8, %s13569_s27  ;;  %p13576_p10 = scmp.lt.u32.totalorder %s13569_s27, %s16631_s8 }
  0x75   : > { %p13572_p3 = pnand %p13570_p1, %p14028_p2 }
  0x77   : > { %p13573_p9 = pneg %p13572_p3 }
  0x79   : > { %p13578_p13 = pnand %p13576_p10, %p13573_p9 }
  0x7b   : > { %13581 = shalt.err (!%p13578_p13)
}
  0x7c   : > { %s13582_s14 = scalar_lea.vmem %s409_s25, 32  ;;  %p13590_p7 = scmp.lt.s32.totalorder %s409_s25, %s409_s25 }
  0x7d   : > { %p13583_p4 = scmp.ne.s32.totalorder %s409_s25, %s13582_s14  ;;  %p13591_p8 = scmp.lt.s32.totalorder %s13582_s14, %s13582_s14 }
  0x7f   : > { %p13585_p5 = pnand %p13583_p4, %p14028_p2  ;;  %p13592_p11 = por %p13591_p8, %p13590_p7 }
  0x81   : > { %p13586_p6 = pneg %p13585_p5 }
  0x83   : > { %p13593_p12 = pnand %p13592_p11, %p13586_p6 }
  0x85   : > { %13596 = shalt.err (!%p13593_p12)
}
  0x86   : > { %11313 = dma.hbm_to_vmem [thread:$0]  (!%p14016_p0), %s16631_s8, 32, %s409_s25, [#allocation16]  }
  0x87   : > { %s13857_s2 = smov [#allocation3]   ;;  %s13597_s27 = scalar_lea.hbm %s16624_s1, 256 }
  0x88   : > { %s322_s28 = sshll.u32 %s13857_s2, 4  ;;  %p13598_p1 = scmp.ne.s32.totalorder %s16624_s1, %s13597_s27  ;;  %s323_s28 = int_to_ptr.vmem [resolvable:$true] %s322_s28 }
  0x89   : > { %p13604_p10 = scmp.lt.u32.totalorder %s13597_s27, %s16624_s1 }
  0x8a   : > { %p13600_p3 = pnand %p13598_p1, %p14028_p2 }
  0x8c   : > { %p13601_p9 = pneg %p13600_p3 }
  0x8e   : > { %p13606_p13 = pnand %p13604_p10, %p13601_p9 }
  0x90   : > { %13609 = shalt.err (!%p13606_p13)
}
  0x91   : > { %s13610_s25 = scalar_lea.vmem %s323_s28, 256  ;;  %p13618_p7 = scmp.lt.s32.totalorder %s323_s28, %s323_s28 }
  0x92   : > { %p13611_p4 = scmp.ne.s32.totalorder %s323_s28, %s13610_s25  ;;  %p13619_p8 = scmp.lt.s32.totalorder %s13610_s25, %s13610_s25 }
  0x94   : > { %p13613_p5 = pnand %p13611_p4, %p14028_p2  ;;  %p13620_p11 = por %p13619_p8, %p13618_p7 }
  0x96   : > { %p13614_p6 = pneg %p13613_p5 }
  0x98   : > { %p13621_p12 = pnand %p13620_p11, %p13614_p6 }
  0x9a   : > { %13624 = shalt.err (!%p13621_p12)
}
  0x9b   : > { %s13858_s14 = smov 64   ;;  %s13859_s12 = smov 4  }
  0x9c   : > { %11292 = dma.hbm_to_vmem [thread:$0]  (!%p14016_p0), %s16624_s1, 256, %s323_s28, [#allocation4], %s13858_s14, %s13858_s14, %s13859_s12  }
  0x9d   : > { %s13860_s11 = smov [#allocation8]   ;;  %s13625_s17 = scalar_lea.hbm %s16626_s3, 14336 }
  0x9e   : > { %s346_s16 = sshll.u32 %s13860_s11, 4  ;;  %p13626_p1 = scmp.ne.s32.totalorder %s16626_s3, %s13625_s17  ;;  %s347_s16 = int_to_ptr.vmem [resolvable:$true] %s346_s16 }
  0x9f   : > { %p13632_p10 = scmp.lt.u32.totalorder %s13625_s17, %s16626_s3 }
  0xa0   : > { %p13628_p3 = pnand %p13626_p1, %p14028_p2 }
  0xa2   : > { %p13629_p9 = pneg %p13628_p3 }
  0xa4   : > { %p13634_p13 = pnand %p13632_p10, %p13629_p9 }
  0xa6   : > { %13637 = shalt.err (!%p13634_p13)
}
  0xa7   : > { %s13638_s28 = scalar_lea.vmem %s347_s16, 14336  ;;  %p13646_p7 = scmp.lt.s32.totalorder %s347_s16, %s347_s16 }
  0xa8   : > { %p13639_p4 = scmp.ne.s32.totalorder %s347_s16, %s13638_s28  ;;  %p13647_p8 = scmp.lt.s32.totalorder %s13638_s28, %s13638_s28 }
  0xaa   : > { %p13641_p5 = pnand %p13639_p4, %p14028_p2  ;;  %p13648_p11 = por %p13647_p8, %p13646_p7 }
  0xac   : > { %p13642_p6 = pneg %p13641_p5 }
  0xae   : > { %p13649_p12 = pnand %p13648_p11, %p13642_p6 }
  0xb0   : > { %13652 = shalt.err (!%p13649_p12)
}
  0xb1   : > { %s13861_s14 = smov 896   ;;  %s13862_s12 = smov 56  }
  0xb2   : > { %11298 = dma.hbm_to_vmem [thread:$0]  (!%p14016_p0), %s16626_s3, 14336, %s347_s16, [#allocation7], %s13861_s14, %s13861_s14, %s13862_s12  }
  0xb3   : > { %s13863_s2 = smov [#allocation11]   ;;  %s13653_s17 = scalar_lea.hbm %s16628_s5, 71680 }
  0xb4   : > { %s370_s11 = sshll.u32 %s13863_s2, 4  ;;  %p13654_p1 = scmp.ne.s32.totalorder %s16628_s5, %s13653_s17  ;;  %s371_s11 = int_to_ptr.vmem [resolvable:$true] %s370_s11 }
  0xb5   : > { %p13660_p10 = scmp.lt.u32.totalorder %s13653_s17, %s16628_s5 }
  0xb6   : > { %p13656_p3 = pnand %p13654_p1, %p14028_p2 }
  0xb8   : > { %p13657_p9 = pneg %p13656_p3 }
  0xba   : > { %p13662_p13 = pnand %p13660_p10, %p13657_p9 }
  0xbc   : > { %13665 = shalt.err (!%p13662_p13)
}
  0xbd   : > { %s13666_s16 = scalar_lea.vmem %s371_s11, 71680  ;;  %p13674_p7 = scmp.lt.s32.totalorder %s371_s11, %s371_s11 }
  0xbe   : > { %p13667_p4 = scmp.ne.s32.totalorder %s371_s11, %s13666_s16  ;;  %p13675_p8 = scmp.lt.s32.totalorder %s13666_s16, %s13666_s16 }
  0xc0   : > { %p13669_p5 = pnand %p13667_p4, %p14028_p2  ;;  %p13676_p11 = por %p13675_p8, %p13674_p7 }
  0xc2   : > { %p13670_p6 = pneg %p13669_p5 }
  0xc4   : > { %p13677_p12 = pnand %p13676_p11, %p13670_p6 }
  0xc6   : > { %13680 = shalt.err (!%p13677_p12)
}
  0xc7   : > { %s13864_s14 = smov 320   ;;  %s13865_s12 = smov 20  }
  0xc8   : > { %11304 = dma.hbm_to_vmem [thread:$0]  (!%p14016_p0), %s16628_s5, 71680, %s371_s11, [#allocation10], %s13864_s14, %s13864_s14, %s13865_s12  }
  0xc9   : > { %s13866_s2 = smov [#allocation14]   ;;  %s13681_s24 = scalar_lea.hbm %s16630_s7, 10240 }
  0xca   : > { %s394_s27 = sshll.u32 %s13866_s2, 4  ;;  %p13682_p1 = scmp.ne.s32.totalorder %s16630_s7, %s13681_s24  ;;  %s395_s27 = int_to_ptr.vmem [resolvable:$true] %s394_s27 }
  0xcb   : > { %p13688_p10 = scmp.lt.u32.totalorder %s13681_s24, %s16630_s7 }
  0xcc   : > { %p13684_p3 = pnand %p13682_p1, %p14028_p2 }
  0xce   : > { %p13685_p9 = pneg %p13684_p3 }
  0xd0   : > { %p13690_p13 = pnand %p13688_p10, %p13685_p9 }
  0xd2   : > { %13693 = shalt.err (!%p13690_p13)
}
  0xd3   : > { %s13694_s11 = scalar_lea.vmem %s395_s27, 10240  ;;  %p13702_p7 = scmp.lt.s32.totalorder %s395_s27, %s395_s27 }
  0xd4   : > { %p13695_p4 = scmp.ne.s32.totalorder %s395_s27, %s13694_s11  ;;  %p13703_p8 = scmp.lt.s32.totalorder %s13694_s11, %s13694_s11 }
  0xd6   : > { %p13697_p5 = pnand %p13695_p4, %p14028_p2  ;;  %p13704_p11 = por %p13703_p8, %p13702_p7 }
  0xd8   : > { %p13698_p6 = pneg %p13697_p5 }
  0xda   : > { %p13705_p12 = pnand %p13704_p11, %p13698_p6 }
  0xdc   : > { %13708 = shalt.err (!%p13705_p12)
}
  0xdd   : > { %s13867_s14 = smov 128   ;;  %s13868_s12 = smov 8  }
  0xde   : > { %11310 = dma.hbm_to_vmem [thread:$0]  (!%p14016_p0), %s16630_s7, 10240, %s395_s27, [#allocation13], %s13867_s14, %s13867_s14, %s13868_s12  }
  0xdf   : > { %s13869_s2 = smov [#allocation17]   ;;  %s13709_s19 = scalar_lea.hbm %s16633_s10, 16 }
  0xe0   : > { %s422_s23 = sshll.u32 %s13869_s2, 4  ;;  %p13710_p1 = scmp.ne.s32.totalorder %s16633_s10, %s13709_s19  ;;  %s423_s23 = int_to_ptr.vmem [resolvable:$true] %s422_s23 }
  0xe1   : > { %p13716_p10 = scmp.lt.u32.totalorder %s13709_s19, %s16633_s10 }
  0xe2   : > { %p13712_p3 = pnand %p13710_p1, %p14028_p2 }
  0xe4   : > { %p13713_p9 = pneg %p13712_p3 }
  0xe6   : > { %p13718_p13 = pnand %p13716_p10, %p13713_p9 }
  0xe8   : > { %13721 = shalt.err (!%p13718_p13)
}
  0xe9   : > { %s13722_s27 = scalar_lea.vmem %s423_s23, 16  ;;  %s13729_s14 = scalar_lea.vmem %s423_s23, 32 }
  0xea   : > { %p13723_p4 = scmp.ne.s32.totalorder %s423_s23, %s13722_s27  ;;  %p13730_p7 = scmp.lt.s32.totalorder %s423_s23, %s423_s23 }
  0xeb   : > { %p13731_p8 = scmp.lt.s32.totalorder %s13729_s14, %s13722_s27 }
  0xec   : > { %p13725_p5 = pnand %p13723_p4, %p14028_p2 }
  0xed   : > { %p13732_p11 = por %p13731_p8, %p13730_p7 }
  0xee   : > { %p13726_p6 = pneg %p13725_p5 }
  0xf0   : > { %p13733_p12 = pnand %p13732_p11, %p13726_p6 }
  0xf2   : > { %13736 = shalt.err (!%p13733_p12)
}
  0xf3   : > { %11316 = dma.hbm_to_vmem [thread:$0]  (!%p14016_p0), %s16633_s10, 16, %s423_s23, [#allocation16]  }
  0xf4   : > { %p16685_p1 = scmp.ne.s32.totalorder %s16678_s13, 0 }
  0xf6   : > { %448 = sbr.rel (%p16685_p1) target bundleno = 2567 (0xa07), region = 64 }
  0xfd   : > { %p16686_p3 = scmp.ne.s32.totalorder %s16679_s15, 0 }
  0xff   : > { %13798 = dma.done.wait (%p16686_p3), [#allocation4], 256  }
 0x100   : > { %13800 = vsyncadd (%p16686_p3), [#allocation4], 4294967040 }
 0x101   : > { %13802 = dma.done.wait (%p16686_p3), [#allocation7], 14352  }
 0x102   : > { %13804 = vsyncadd (%p16686_p3), [#allocation7], 4294952944 }
 0x103   : > { %13806 = dma.done.wait (%p16686_p3), [#allocation10], 71904  }
 0x104   : > { %13808 = vsyncadd (%p16686_p3), [#allocation10], 4294895392 }
 0x105   : > { %13810 = dma.done.wait (%p16686_p3), [#allocation13], 10320  }
 0x106   : > { %13812 = vsyncadd (%p16686_p3), [#allocation13], 4294956976 }
 0x107   : > { %13814 = dma.done.wait (%p16686_p3), [#allocation16], 48  }
 0x108   : > { %13816 = vsyncadd (%p16686_p3), [#allocation16], 4294967248  ;;  %s521_s13 = sand.u32 1, %s13827_s18   ;;  %s9934_s26 = sshll.u32 %s13835_s20, 4 }
 0x109   : > { %p524_p0 = scmp.lt.s32.totalorder %s13839_s21, 1  ;;  %p526_p2 = scmp.lt.s32.totalorder %s9934_s26, 31 }
 0x10a   : > { %s14221_s15 = scalar_lea.vmem [#allocation18], %s521_s13  ;;  %p9937_p9 = scmp.ne.s32.totalorder %s13835_s20, 0 }
 0x10b   : > { %s525_s29 = scalar_select %p524_p0, %s13839_s21, 1 }
 0x10c   : > { %s17009_s26 = smov (!%p526_p2, %s9934_s26), 31  ;;  %537 = sbr.rel (%p9937_p9) target bundleno = 275 (0x113), region = 104 }
 0x10d   : > { %s9935_s22 = sshll.u32 %s525_s29, 5  ;;  %v539_v0 = vlaneseq (!%p9937_p9)  ;;  %v13870_v1 = vmov (!%p9937_p9), 0.0  }
 0x10e   : > { %s529_s2 = sadd.s32 %s9935_s22, %s17009_s26  ;;  %538 = vst [vmem:[#allocation2] sm:$0xff] (!%p9937_p9), %v13870_v1 }
 0x10f   : > { %s9936_s23 = sshll.u32 %s529_s2, 2  ;;  %vm541_vm0 = vcmp.lt.s32.totalorder (!%p9937_p9), %v539_v0, 768 }
 0x110   : > { %s14217_s19 = scalar_lea.vmem %s16623_s0, %s9936_s23  ;;  %543 = vst.msk [vmem:[#allocation2 + $0x8] sm:$0x3f] (!%p9937_p9), %vm541_vm0, %v13870_v1 }
 0x113 PF: > { %v11425_v2 = vld [vmem:[#allocation3] sm:$0xff]   ;;  %v11426_v3 = vld [vmem:[#allocation3 + $0x8] sm:$0xff]   ;;  %vm623_vm1 = vcmask 261120   ;;  %v11427_v4 = vld [vmem:[%s14217_s19] sm:$0xff]   ;;  %v13871_v29 = vmov 0   ;;  %p10309_p10 = scmp.ne.s32.totalorder %s13835_s20, 1 }
 0x114   : > { %11155 = vmatprep.subr.bf16.mxu0 %v11425_v2  ;;  %11159 = vmatprep.mubr.msk.bf16.mxu0 %vm623_vm1, %v11427_v4  ;;  %v11428_v5 = vld [vmem:[%s14217_s19 + $0x8] sm:$0xff]   ;;  %v11429_v6 = vld [vmem:[%s14217_s19 + $0x10] sm:$0xff]   ;;  %v11430_v7 = vld [vmem:[%s14217_s19 + $0x18] sm:$0xff]   ;;  %vm9736_vm3 = vcmask (!%p10309_p10), 57344  }
 0x115   : > { %11156 = vmatpush3.bf16.msra.mxu0 %v11425_v2  ;;  %v11431_v8 = vld [vmem:[%s14217_s19 + $0x20] sm:$0xff]   ;;  %v11432_v9 = vld [vmem:[%s14217_s19 + $0x28] sm:$0xff]   ;;  %v11433_v10 = vld [vmem:[%s14217_s19 + $0x30] sm:$0xff]   ;;  %1683 = vmatprep.mubr.bf16.mxu1 %v13871_v29 }
 0x116   : > { %11157 = vmatprep.subr.bf16.mxu0 %v11426_v3  ;;  %v11434_v11 = vld [vmem:[%s14217_s19 + $0x38] sm:$0xff]   ;;  %v11440_v14 = vld [vmem:[#allocation8 + $0x74] ss:$56 sps:$4 sm:$0xff]   ;;  %v11438_v15 = vld [vmem:[#allocation8 + $0x70] ss:$56 sps:$4 sm:$0xff]  }
 0x117   : > { %v11437_v12 = vld [vmem:[#allocation8 + $0x4] ss:$56 sps:$4 sm:$0xff]   ;;  %v11435_v13 = vld [vmem:[#allocation8] ss:$56 sps:$4 sm:$0xff]   ;;  %v11446_v18 = vld [vmem:[#allocation8 + $0x154] ss:$56 sps:$4 sm:$0xff]  }
 0x118   : > { %11175 = vmatprep.subr.bf16.mxu1 %v11437_v12  ;;  %v11443_v16 = vld [vmem:[#allocation8 + $0xe4] ss:$56 sps:$4 sm:$0xff]   ;;  %v11441_v17 = vld [vmem:[#allocation8 + $0xe0] ss:$56 sps:$4 sm:$0xff]   ;;  %v11444_v19 = vld [vmem:[#allocation8 + $0x150] ss:$56 sps:$4 sm:$0xff]  }
 0x119   : > { %11158 = vmatpush3.bf16.msra.mxu0 %v11426_v3  ;;  %11183 = vmatpush1.bf16.msra.mxu1 %v11435_v13  ;;  %v11449_v20 = vld [vmem:[#allocation8 + $0x1c4] ss:$56 sps:$4 sm:$0xff]   ;;  %v11447_v21 = vld [vmem:[#allocation8 + $0x1c0] ss:$56 sps:$4 sm:$0xff]   ;;  %v11452_v22 = vld [vmem:[#allocation8 + $0x234] ss:$56 sps:$4 sm:$0xff]  }
 0x11a   : > { %1611 = vmatprep.subr.bf16.mxu0 %v11437_v12  ;;  %11176 = vmatprep.subr.bf16.mxu1 %v11440_v14  ;;  %v11450_v23 = vld [vmem:[#allocation8 + $0x230] ss:$56 sps:$4 sm:$0xff]   ;;  %v11455_v24 = vld [vmem:[#allocation8 + $0x2a4] ss:$56 sps:$4 sm:$0xff]   ;;  %v11453_v25 = vld [vmem:[#allocation8 + $0x2a0] ss:$56 sps:$4 sm:$0xff]  }
 0x11b   : > { %v11458_v26 = vld [vmem:[#allocation8 + $0x314] ss:$56 sps:$4 sm:$0xff]   ;;  %v11456_v27 = vld [vmem:[#allocation8 + $0x310] ss:$56 sps:$4 sm:$0xff]   ;;  %v14242_v31 = vld [vmem:[#allocation6] ss:$0 sm:$0xff] }
 0x11c   : > { %11160 = vmatmul.mubr.msk.bf16.vlgmr.msra.gmra.mrb[0].mxu0 %vm623_vm1, %v11428_v5  ;;  %v11461_v28 = vld [vmem:[#allocation8 + $0xc] ss:$56 sps:$4 sm:$0xff]  }
 0x11d   : > { %11163 = vmatprep.mubr.msk.bf16.mxu0 %vm623_vm1, %v11429_v6  ;;  %1612 = vmatpush1.bf16.msra.mxu0 %v11435_v13  ;;  %v11473_v30 = vld [vmem:[#allocation8 + $0x14] ss:$56 sps:$4 sm:$0xff]  }
 0x11e   : > { %1613 = vmatprep.subr.bf16.mxu0 %v11440_v14  ;;  %11184 = vmatpush1.bf16.msra.mxu1 %v11438_v15 }
 0x11f   : > { %11177 = vmatprep.subr.bf16.mxu1 %v11443_v16 }
 0x121   : > { %1614 = vmatpush1.bf16.msra.mxu0 %v11438_v15 }
 0x122   : > { %1615 = vmatprep.subr.bf16.mxu0 %v11443_v16  ;;  %11185 = vmatpush1.bf16.msra.mxu1 %v11441_v17 }
 0x123   : > { %11178 = vmatprep.subr.bf16.mxu1 %v11446_v18 }
 0x124   : > { %11164 = vmatmul.mubr.msk.bf16.gmra.mrb[4].mxu0 %vm623_vm1, %v11430_v7 }
 0x125   : > { %11167 = vmatprep.mubr.msk.bf16.mxu0 %vm623_vm1, %v11431_v8  ;;  %1616 = vmatpush1.bf16.msra.mxu0 %v11441_v17 }
 0x126   : > { %1617 = vmatprep.subr.bf16.mxu0 %v11446_v18  ;;  %11186 = vmatpush1.bf16.msra.mxu1 %v11444_v19 }
 0x127   : > { %11179 = vmatprep.subr.bf16.mxu1 %v11449_v20 }
 0x129   : > { %1618 = vmatpush1.bf16.msra.mxu0 %v11444_v19 }
 0x12a   : > { %1619 = vmatprep.subr.bf16.mxu0 %v11449_v20  ;;  %11187 = vmatpush1.bf16.msra.mxu1 %v11447_v21 }
 0x12b   : > { %11180 = vmatprep.subr.bf16.mxu1 %v11452_v22 }
 0x12c   : > { %11168 = vmatmul.mubr.msk.bf16.gmra.mrb[8].mxu0 %vm623_vm1, %v11432_v9 }
 0x12d   : > { %11171 = vmatprep.mubr.msk.bf16.mxu0 %vm623_vm1, %v11433_v10  ;;  %1620 = vmatpush1.bf16.msra.mxu0 %v11447_v21 }
 0x12e   : > { %1621 = vmatprep.subr.bf16.mxu0 %v11452_v22  ;;  %11188 = vmatpush1.bf16.msra.mxu1 %v11450_v23 }
 0x12f   : > { %11181 = vmatprep.subr.bf16.mxu1 %v11455_v24 }
 0x131   : > { %1622 = vmatpush1.bf16.msra.mxu0 %v11450_v23 }
 0x132   : > { %1623 = vmatprep.subr.bf16.mxu0 %v11455_v24  ;;  %11189 = vmatpush1.bf16.msra.mxu1 %v11453_v25 }
 0x133   : > { %11182 = vmatprep.subr.bf16.mxu1 %v11458_v26 }
 0x134   : > { %11172 = vmatmul.mubr.msk.bf16.gmra.mrb[12].mxu0 %vm623_vm1, %v11434_v11 }
 0x135   : > { %1624 = vmatpush1.bf16.msra.mxu0 %v11453_v25  ;;  %1643 = vmatprep.mubr.bf16.mxu0 %v13871_v29 }
 0x136   : > { %1625 = vmatprep.subr.bf16.mxu0 %v11458_v26  ;;  %11190 = vmatpush1.bf16.msra.mxu1 %v11456_v27 }
 0x137   : > { %1837 = vmatprep.subr.bf16.mxu1 %v11473_v30 }
 0x139   : > { %1626 = vmatpush1.bf16.msra.mxu0 %v11456_v27 }
 0x13a   : > { %1724 = vmatprep.subr.bf16.mxu0 %v11461_v28 }
 0x1ef   : > { %v11161_v32 = vpop.f32.mrb[0].mxu0 }
 0x1f0   : > { %v14245_v33 = vadd.f32 %v11161_v32, %v14242_v31  ;;  %v682_v34 = vpop.f32.mrb[1].mxu0 }
 0x1f1   : > { %v14248_v35 = vadd.f32 %v14242_v31, %v682_v34  ;;  %v11162_v36 = vpop.f32.mrb[2].mxu0 }
 0x1f2   : > { %v9959_v37 = vmul.f32 -1.442695, %v14245_v33  ;;  %v14252_v38 = vadd.f32 %v11162_v36, %v14242_v31  ;;  %v685_v39 = vpop.f32.mrb[3].mxu0 }
 0x1f3   : > { %v9957_v40 = vmul.f32 -1.442695, %v14248_v35  ;;  %v14256_v41 = vadd.f32 %v14242_v31, %v685_v39 }
 0x1f4   : > { %11603 = vpow2.f32 %v9959_v37  ;;  %v9960_v42 = vmul.f32 -1.442695, %v14252_v38 }
 0x1f5   : > { %11605 = vpow2.f32 %v9957_v40  ;;  %v9958_v43 = vmul.f32 -1.442695, %v14256_v41 }
 0x1f6   : > { %11607 = vpow2.f32 %v9960_v42 }
 0x1f7   : > { %11609 = vpow2.f32 %v9958_v43  ;;  %v11165_v44 = vpop.f32.mrb[4].mxu0 }
 0x1f8   : > { %v14261_v45 = vadd.f32 %v11165_v44, %v14242_v31  ;;  %v698_v46 = vpop.f32.mrb[5].mxu0 }
 0x1f9   : > { %v14264_v47 = vadd.f32 %v14242_v31, %v698_v46  ;;  %v11166_v48 = vpop.f32.mrb[6].mxu0 }
 0x1fa   : > { %v9963_v49 = vmul.f32 -1.442695, %v14261_v45  ;;  %v14268_v50 = vadd.f32 %v11166_v48, %v14242_v31  ;;  %v701_v51 = vpop.f32.mrb[7].mxu0 }
 0x1fb   : > { %v9961_v52 = vmul.f32 -1.442695, %v14264_v47  ;;  %v14272_v53 = vadd.f32 %v14242_v31, %v701_v51 }
 0x1fc   : > { %11611 = vpow2.f32 %v9963_v49  ;;  %v9964_v54 = vmul.f32 -1.442695, %v14268_v50 }
 0x1fd   : > { %11613 = vpow2.f32 %v9961_v52  ;;  %v9962_v55 = vmul.f32 -1.442695, %v14272_v53  ;;  %v11459_v52 = vld [vmem:[#allocation8 + $0x8] ss:$56 sps:$4 sm:$0xff]  }
 0x1fe   : > { %v11604_v56 = vpop.eup %11603  ;;  %11615 = vpow2.f32 %v9964_v54 }
 0x1ff   : > { %v11606_v57 = vpop.eup %11605  ;;  %v795_v58 = vadd.f32 1.0, %v11604_v56  ;;  %11617 = vpow2.f32 %v9962_v55  ;;  %v11169_v59 = vpop.f32.mrb[8].mxu0 }
 0x200   : > { %v11608_v60 = vpop.eup %11607  ;;  %v793_v61 = vadd.f32 1.0, %v11606_v57  ;;  %v14277_v62 = vadd.f32 %v11169_v59, %v14242_v31  ;;  %v714_v63 = vpop.f32.mrb[9].mxu0  ;;  %v11462_v59 = vld [vmem:[#allocation8 + $0x78] ss:$56 sps:$4 sm:$0xff]  }
 0x201   : > { %v11610_v0 = vpop.eup %11609  ;;  %11619 = vrcp.f32 %v795_v58  ;;  %v796_v1 = vadd.f32 1.0, %v11608_v60  ;;  %v14280_v2 = vadd.f32 %v14242_v31, %v714_v63  ;;  %v11170_v3 = vpop.f32.mrb[10].mxu0 }
 0x202   : > { %11621 = vrcp.f32 %v793_v61  ;;  %v794_v4 = vadd.f32 1.0, %v11610_v0  ;;  %v9967_v5 = vmul.f32 -1.442695, %v14277_v62  ;;  %v14284_v6 = vadd.f32 %v11170_v3, %v14242_v31  ;;  %v717_v7 = vpop.f32.mrb[11].mxu0  ;;  %v11467_v61 = vld [vmem:[#allocation8 + $0xec] ss:$56 sps:$4 sm:$0xff]  }
 0x203   : > { %11623 = vrcp.f32 %v796_v1  ;;  %v9965_v8 = vmul.f32 -1.442695, %v14280_v2  ;;  %v14288_v9 = vadd.f32 %v14242_v31, %v717_v7 }
 0x204   : > { %11625 = vrcp.f32 %v794_v4  ;;  %v9968_v10 = vmul.f32 -1.442695, %v14284_v6 }
 0x205   : > { %11627 = vpow2.f32 %v9967_v5  ;;  %v9966_v11 = vmul.f32 -1.442695, %v14288_v9 }
 0x206   : > { %v11612_v12 = vpop.eup %11611  ;;  %11629 = vpow2.f32 %v9965_v8 }
 0x207   : > { %v11614_v13 = vpop.eup %11613  ;;  %v799_v14 = vadd.f32 1.0, %v11612_v12  ;;  %11631 = vpow2.f32 %v9968_v10  ;;  %v11173_v15 = vpop.f32.mrb[12].mxu0 }
 0x208   : > { %v11616_v16 = vpop.eup %11615  ;;  %v797_v17 = vadd.f32 1.0, %v11614_v13  ;;  %11633 = vpow2.f32 %v9966_v11  ;;  %v14293_v18 = vadd.f32 %v11173_v15, %v14242_v31  ;;  %v730_v19 = vpop.f32.mrb[13].mxu0  ;;  %v11465_v11 = vld [vmem:[#allocation8 + $0xe8] ss:$56 sps:$4 sm:$0xff]   ;;  %v11470_v15 = vld [vmem:[#allocation8 + $0x15c] ss:$56 sps:$4 sm:$0xff]  }
 0x209   : > { %v11618_v20 = vpop.eup %11617  ;;  %11635 = vrcp.f32 %v799_v14  ;;  %v800_v21 = vadd.f32 1.0, %v11616_v16  ;;  %v14296_v22 = vadd.f32 %v14242_v31, %v730_v19  ;;  %v11174_v23 = vpop.f32.mrb[14].mxu0  ;;  %v11476_v19 = vld [vmem:[#allocation8 + $0x1cc] ss:$56 sps:$4 sm:$0xff]  }
 0x20a   : > { %11637 = vrcp.f32 %v797_v17  ;;  %v798_v24 = vadd.f32 1.0, %v11618_v20  ;;  %v9971_v25 = vmul.f32 -1.442695, %v14293_v18  ;;  %v14300_v26 = vadd.f32 %v11174_v23, %v14242_v31  ;;  %v733_v27 = vpop.f32.mrb[15].mxu0 }
 0x20b   : > { %v11620_v28 = vpop.eup %11619  ;;  %11639 = vrcp.f32 %v800_v21  ;;  %v9969_v30 = vmul.f32 -1.442695, %v14296_v22  ;;  %v14304_v32 = vadd.f32 %v14242_v31, %v733_v27 }
 0x20c   : > { %v11622_v34 = vpop.eup %11621  ;;  %11641 = vrcp.f32 %v798_v24  ;;  %v9972_v36 = vmul.f32 -1.442695, %v14300_v26  ;;  %v843_v42 = vmul.f32 %v11620_v28, %v14245_v33  ;;  %v11464_v33 = vld [vmem:[#allocation8 + $0x7c] ss:$56 sps:$4 sm:$0xff]   ;;  %v11474_v28 = vld [vmem:[#allocation8 + $0x1c8] ss:$56 sps:$4 sm:$0xff]  }
 0x20d   : > { %v11624_v37 = vpop.eup %11623  ;;  %11643 = vpow2.f32 %v9971_v25  ;;  %v9970_v39 = vmul.f32 -1.442695, %v14304_v32  ;;  %v841_v46 = vmul.f32 %v11622_v34, %v14248_v35  ;;  %v11471_v34 = vld [vmem:[#allocation8 + $0x10] ss:$56 sps:$4 sm:$0xff]  }
 0x20e   : > { %v11626_v40 = vpop.eup %11625  ;;  %v844_v43 = vmul.f32 %v11624_v37, %v14252_v38  ;;  %11645 = vpow2.f32 %v9969_v30 }
 0x20f   : > { %v11628_v44 = vpop.eup %11627  ;;  %v842_v31 = vmul.f32 %v11626_v40, %v14256_v41  ;;  %11647 = vpow2.f32 %v9972_v36  ;;  %v11482_v36 = vld [vmem:[#allocation8 + $0x23c] ss:$56 sps:$4 sm:$0xff]  }
 0x210   : > { %v11630_v48 = vpop.eup %11629  ;;  %v14312_v49 = vpack.c.bf16 %v844_v43, %v843_v42  ;;  %v803_v51 = vadd.f32 1.0, %v11628_v44  ;;  %11649 = vpow2.f32 %v9970_v39  ;;  %v11479_v39 = vld [vmem:[#allocation8 + $0x84] ss:$56 sps:$4 sm:$0xff]   ;;  %v11485_v43 = vld [vmem:[#allocation8 + $0xf4] ss:$56 sps:$4 sm:$0xff]  }
 0x211   : > { %v11632_v54 = vpop.eup %11631  ;;  %v14314_v55 = vpack.c.bf16 %v842_v31, %v841_v46  ;;  %v801_v56 = vadd.f32 1.0, %v11630_v48 }
 0x212   : > { %v11634_v57 = vpop.eup %11633  ;;  %11651 = vrcp.f32 %v803_v51  ;;  %v804_v38 = vadd.f32 1.0, %v11632_v54 }
 0x213   : > { %v11636_v58 = vpop.eup %11635  ;;  %11653 = vrcp.f32 %v801_v56  ;;  %v802_v35 = vadd.f32 1.0, %v11634_v57  ;;  %1644 = vmatmul.mubr.bf16.vlgmr.msra.gmra.mrb[16].mxu0 %v14314_v55  ;;  %v11483_v56 = vld [vmem:[#allocation8 + $0xf0] ss:$56 sps:$4 sm:$0xff]  }
 0x214   : > { %v11638_v41 = vpop.eup %11637  ;;  %11655 = vrcp.f32 %v804_v38  ;;  %1725 = vmatpush1.bf16.msra.mxu0 %v11459_v52  ;;  %1653 = vmatprep.mubr.bf16.mxu0 %v13871_v29  ;;  %v847_v0 = vmul.f32 %v11636_v58, %v14261_v45  ;;  %v11486_v52 = vld [vmem:[#allocation8 + $0x2a8] ss:$56 sps:$4 sm:$0xff]   ;;  %v11497_v38 = vld [vmem:[#allocation8 + $0x1d4] ss:$56 sps:$4 sm:$0xff]  }
 0x215   : > { %v11640_v60 = vpop.eup %11639  ;;  %11657 = vrcp.f32 %v802_v35  ;;  %1726 = vmatprep.subr.bf16.mxu0 %v11464_v33  ;;  %v845_v4 = vmul.f32 %v11638_v41, %v14264_v47  ;;  %v11494_v33 = vld [vmem:[#allocation8 + $0x31c] ss:$56 sps:$4 sm:$0xff]   ;;  %v11495_v58 = vld [vmem:[#allocation8 + $0x1d0] ss:$56 sps:$4 sm:$0xff]  }
 0x216   : > { %v11642_v63 = vpop.eup %11641  ;;  %v848_v1 = vmul.f32 %v11640_v60, %v14268_v50  ;;  %v11500_v35 = vld [vmem:[#allocation8 + $0x244] ss:$56 sps:$4 sm:$0xff]   ;;  %v11507_v41 = vld [vmem:[#allocation8 + $0x18] ss:$56 sps:$4 sm:$0xff]  }
 0x217   : > { %v11644_v3 = vpop.eup %11643  ;;  %v846_v5 = vmul.f32 %v11642_v63, %v14272_v53  ;;  %v11468_v53 = vld [vmem:[#allocation8 + $0x158] ss:$56 sps:$4 sm:$0xff]   ;;  %v11513_v63 = vld [vmem:[#allocation8 + $0x88] ss:$56 sps:$4 sm:$0xff]  }
 0x218   : > { %v11646_v7 = vpop.eup %11645  ;;  %v14322_v8 = vpack.c.bf16 %v848_v1, %v847_v0  ;;  %v807_v10 = vadd.f32 1.0, %v11644_v3  ;;  %1727 = vmatpush1.bf16.msra.mxu0 %v11462_v59  ;;  %v11515_v59 = vld [vmem:[#allocation8 + $0x8c] ss:$56 sps:$4 sm:$0xff]   ;;  %v11498_v60 = vld [vmem:[#allocation8 + $0x240] ss:$56 sps:$4 sm:$0xff]  }
 0x219   : > { %v11648_v12 = vpop.eup %11647  ;;  %v14324_v13 = vpack.c.bf16 %v846_v5, %v845_v4  ;;  %v805_v14 = vadd.f32 1.0, %v11646_v7  ;;  %1728 = vmatprep.subr.bf16.mxu0 %v11467_v61  ;;  %v11503_v61 = vld [vmem:[#allocation8 + $0x2b4] ss:$56 sps:$4 sm:$0xff]   ;;  %v11501_v1 = vld [vmem:[#allocation8 + $0x2b0] ss:$56 sps:$4 sm:$0xff]  }
 0x21a   : > { %v11650_v45 = vpop.eup %11649  ;;  %11659 = vrcp.f32 %v807_v10  ;;  %v808_v50 = vadd.f32 1.0, %v11648_v12  ;;  %v11521_v0 = vld [vmem:[#allocation8 + $0xfc] ss:$56 sps:$4 sm:$0xff]   ;;  %v11519_v4 = vld [vmem:[#allocation8 + $0xf8] ss:$56 sps:$4 sm:$0xff]  }
 0x21b   : > { %11661 = vrcp.f32 %v805_v14  ;;  %v806_v16 = vadd.f32 1.0, %v11650_v45  ;;  %1654 = vmatmul.mubr.bf16.gmra.mrb[20].mxu0 %v14312_v49  ;;  %v11506_v3 = vld [vmem:[#allocation8 + $0x324] ss:$56 sps:$4 sm:$0xff]   ;;  %v11504_v7 = vld [vmem:[#allocation8 + $0x320] ss:$56 sps:$4 sm:$0xff]  }
 0x21c   : > { %v11652_v47 = vpop.eup %11651  ;;  %11663 = vrcp.f32 %v808_v50  ;;  %1729 = vmatpush1.bf16.msra.mxu0 %v11465_v11  ;;  %1663 = vmatprep.mubr.bf16.mxu0 %v13871_v29  ;;  %v11527_v5 = vld [vmem:[#allocation8 + $0x16c] ss:$56 sps:$4 sm:$0xff]   ;;  %v11525_v11 = vld [vmem:[#allocation8 + $0x168] ss:$56 sps:$4 sm:$0xff]   ;;  %v11533_v12 = vld [vmem:[#allocation8 + $0x1dc] ss:$56 sps:$4 sm:$0xff]  }
 0x21d   : > { %v11654_v17 = vpop.eup %11653  ;;  %11665 = vrcp.f32 %v806_v16  ;;  %1730 = vmatprep.subr.bf16.mxu0 %v11470_v15  ;;  %v851_v23 = vmul.f32 %v11652_v47, %v14277_v62  ;;  %v11480_v62 = vld [vmem:[#allocation8 + $0x238] ss:$56 sps:$4 sm:$0xff]   ;;  %v11512_v10 = vld [vmem:[#allocation8 + $0x24] ss:$56 sps:$4 sm:$0xff]   ;;  %v11518_v15 = vld [vmem:[#allocation8 + $0x94] ss:$56 sps:$4 sm:$0xff]  }
 0x21e   : > { %v11656_v20 = vpop.eup %11655  ;;  %v849_v25 = vmul.f32 %v11654_v17, %v14280_v2  ;;  %v11510_v14 = vld [vmem:[#allocation8 + $0x20] ss:$56 sps:$4 sm:$0xff]   ;;  %v11539_v50 = vld [vmem:[#allocation8 + $0x24c] ss:$56 sps:$4 sm:$0xff]   ;;  %v11516_v16 = vld [vmem:[#allocation8 + $0x90] ss:$56 sps:$4 sm:$0xff]  }
 0x21f   : > { %v11658_v21 = vpop.eup %11657  ;;  %v852_v24 = vmul.f32 %v11656_v20, %v14284_v6  ;;  %v11477_v6 = vld [vmem:[#allocation8 + $0x80] ss:$56 sps:$4 sm:$0xff]   ;;  %v11524_v47 = vld [vmem:[#allocation8 + $0x104] ss:$56 sps:$4 sm:$0xff]   ;;  %v11530_v20 = vld [vmem:[#allocation8 + $0x174] ss:$56 sps:$4 sm:$0xff]  }
 0x220   : > { %v850_v27 = vmul.f32 %v11658_v21, %v14288_v9  ;;  %1731 = vmatpush1.bf16.msra.mxu0 %v11468_v53  ;;  %v11488_v9 = vld [vmem:[#allocation8 + $0x2ac] ss:$56 sps:$4 sm:$0xff]   ;;  %v11531_v45 = vld [vmem:[#allocation8 + $0x1d8] ss:$56 sps:$4 sm:$0xff]   ;;  %v11537_v53 = vld [vmem:[#allocation8 + $0x248] ss:$56 sps:$4 sm:$0xff]  }
 0x221   : > { %v14332_v30 = vpack.c.bf16 %v852_v24, %v851_v23  ;;  %1732 = vmatprep.subr.bf16.mxu0 %v11476_v19  ;;  %v11545_v17 = vld [vmem:[#allocation8 + $0x2bc] ss:$56 sps:$4 sm:$0xff]   ;;  %v11522_v19 = vld [vmem:[#allocation8 + $0x100] ss:$56 sps:$4 sm:$0xff]   ;;  %v11548_v23 = vld [vmem:[#allocation8 + $0x32c] ss:$56 sps:$4 sm:$0xff]  }
 0x222   : > { %v14334_v37 = vpack.c.bf16 %v850_v27, %v849_v25  ;;  %v11543_v21 = vld [vmem:[#allocation8 + $0x2b8] ss:$56 sps:$4 sm:$0xff]   ;;  %v11536_v25 = vld [vmem:[#allocation8 + $0x1e4] ss:$56 sps:$4 sm:$0xff]   ;;  %v11546_v27 = vld [vmem:[#allocation8 + $0x328] ss:$56 sps:$4 sm:$0xff]  }
 0x223   : > { %1664 = vmatmul.mubr.bf16.gmra.mrb[24].mxu0 %v14324_v13  ;;  %v11528_v24 = vld [vmem:[#allocation8 + $0x170] ss:$56 sps:$4 sm:$0xff]  }
 0x224   : > { %v11660_v40 = vpop.eup %11659  ;;  %1684 = vmatmul.mubr.bf16.vlgmr.msra.gmra.mrb[0].mxu1 %v14334_v37  ;;  %1733 = vmatpush1.bf16.msra.mxu0 %v11474_v28  ;;  %v11557_v28 = vld [vmem:[#allocation8 + $0x2c] ss:$56 sps:$4 sm:$0xff]  }
 0x225   : > { %v11662_v2 = vpop.eup %11661  ;;  %1838 = vmatpush1.bf16.msra.mxu1 %v11471_v34  ;;  %1734 = vmatprep.subr.bf16.mxu0 %v11482_v36  ;;  %v855_v46 = vmul.f32 %v11660_v40, %v14293_v18  ;;  %v11491_v18 = vld [vmem:[#allocation8 + $0x164] ss:$56 sps:$4 sm:$0xff]   ;;  %v11534_v34 = vld [vmem:[#allocation8 + $0x1e0] ss:$56 sps:$4 sm:$0xff]   ;;  %v11542_v36 = vld [vmem:[#allocation8 + $0x254] ss:$56 sps:$4 sm:$0xff]  }
 0x226   : > { %v11664_v42 = vpop.eup %11663  ;;  %1839 = vmatprep.subr.bf16.mxu1 %v11479_v39  ;;  %1673 = vmatprep.mubr.bf16.mxu0 %v13871_v29  ;;  %v853_v48 = vmul.f32 %v11662_v2, %v14296_v22  ;;  %v11492_v22 = vld [vmem:[#allocation8 + $0x318] ss:$56 sps:$4 sm:$0xff]   ;;  %v11551_v40 = vld [vmem:[#allocation8 + $0x2c4] ss:$56 sps:$4 sm:$0xff]   ;;  %v11554_v2 = vld [vmem:[#allocation8 + $0x334] ss:$56 sps:$4 sm:$0xff]  }
 0x227   : > { %v11666_v44 = vpop.eup %11665  ;;  %v856_v31 = vmul.f32 %v11664_v42, %v14300_v26  ;;  %1693 = vmatprep.mubr.bf16.mxu1 %v13871_v29  ;;  %v11489_v26 = vld [vmem:[#allocation8 + $0x160] ss:$56 sps:$4 sm:$0xff]   ;;  %v11540_v39 = vld [vmem:[#allocation8 + $0x250] ss:$56 sps:$4 sm:$0xff]  }
 0x228   : > { %v854_v51 = vmul.f32 %v11666_v44, %v14304_v32  ;;  %1735 = vmatpush1.bf16.msra.mxu0 %v11480_v62  ;;  %v11509_v32 = vld [vmem:[#allocation8 + $0x1c] ss:$56 sps:$4 sm:$0xff]   ;;  %v11549_v62 = vld [vmem:[#allocation8 + $0x2c0] ss:$56 sps:$4 sm:$0xff]  }
 0x229   : > { %v14344_v54 = vpack.c.bf16 %v856_v31, %v855_v46  ;;  %1840 = vmatpush1.bf16.msra.mxu1 %v11477_v6  ;;  %1736 = vmatprep.subr.bf16.mxu0 %v11488_v9  ;;  %v11552_v6 = vld [vmem:[#allocation8 + $0x330] ss:$56 sps:$4 sm:$0xff]   ;;  %v11560_v9 = vld [vmem:[#allocation8 + $0x34] ss:$56 sps:$4 sm:$0xff]  }
 0x22a   : > { %v14346_v57 = vpack.c.bf16 %v854_v51, %v853_v48  ;;  %1841 = vmatprep.subr.bf16.mxu1 %v11485_v43  ;;  %v11555_v42 = vld [vmem:[#allocation8 + $0x28] ss:$56 sps:$4 sm:$0xff]   ;;  %v11563_v43 = vld [vmem:[#allocation8 + $0x9c] ss:$56 sps:$4 sm:$0xff]   ;;  %v11561_v44 = vld [vmem:[#allocation8 + $0x98] ss:$56 sps:$4 sm:$0xff]  }
 0x22b   : > { %1674 = vmatmul.mubr.bf16.gmra.mrb[28].mxu0 %v14322_v8  ;;  %v11569_v46 = vld [vmem:[#allocation8 + $0x10c] ss:$56 sps:$4 sm:$0xff]   ;;  %v11567_v31 = vld [vmem:[#allocation8 + $0x108] ss:$56 sps:$4 sm:$0xff]   ;;  %v11575_v48 = vld [vmem:[#allocation8 + $0x17c] ss:$56 sps:$4 sm:$0xff]  }
 0x22c   : > { %1694 = vmatmul.mubr.bf16.gmra.mrb[4].mxu1 %v14332_v30  ;;  %1737 = vmatpush1.bf16.msra.mxu0 %v11486_v52  ;;  %v11573_v51 = vld [vmem:[#allocation8 + $0x178] ss:$56 sps:$4 sm:$0xff]   ;;  %v11581_v52 = vld [vmem:[#allocation8 + $0x1ec] ss:$56 sps:$4 sm:$0xff]  }
 0x22d   : > { %1842 = vmatpush1.bf16.msra.mxu1 %v11483_v56  ;;  %1738 = vmatprep.subr.bf16.mxu0 %v11494_v33  ;;  %v11558_v56 = vld [vmem:[#allocation8 + $0x30] ss:$56 sps:$4 sm:$0xff]   ;;  %v11566_v33 = vld [vmem:[#allocation8 + $0xa4] ss:$56 sps:$4 sm:$0xff]  }
 0x22e   : > { %1843 = vmatprep.subr.bf16.mxu1 %v11491_v18  ;;  %1703 = vmatprep.mubr.bf16.mxu1 %v13871_v29  ;;  %v11579_v18 = vld [vmem:[#allocation8 + $0x1e8] ss:$56 sps:$4 sm:$0xff]  }
 0x22f   : > { %1756 = vmatprep.mubr.bf16.mxu0 %v13871_v29 }
 0x230   : > { %1739 = vmatpush1.bf16.msra.mxu0 %v11492_v22  ;;  %v11587_v22 = vld [vmem:[#allocation8 + $0x25c] ss:$56 sps:$4 sm:$0xff]  }
 0x231   : > { %1844 = vmatpush1.bf16.msra.mxu1 %v11489_v26  ;;  %1950 = vmatprep.subr.bf16.mxu0 %v11509_v32  ;;  %v11564_v26 = vld [vmem:[#allocation8 + $0xa0] ss:$56 sps:$4 sm:$0xff]   ;;  %v11572_v32 = vld [vmem:[#allocation8 + $0x114] ss:$56 sps:$4 sm:$0xff]  }
 0x232   : > { %1845 = vmatprep.subr.bf16.mxu1 %v11497_v38  ;;  %v11585_v38 = vld [vmem:[#allocation8 + $0x258] ss:$56 sps:$4 sm:$0xff]  }
 0x233   : > { %1757 = vmatmul.mubr.bf16.vlgmr.msra.gmra.mrb[32].mxu0 %v14314_v55 }
 0x234   : > { %1704 = vmatmul.mubr.bf16.gmra.mrb[8].mxu1 %v14346_v57  ;;  %1766 = vmatprep.mubr.bf16.mxu0 %v13871_v29 }
 0x235   : > { %1846 = vmatpush1.bf16.msra.mxu1 %v11495_v58  ;;  %1713 = vmatprep.mubr.bf16.mxu1 %v13871_v29  ;;  %v11593_v58 = vld [vmem:[#allocation8 + $0x2cc] ss:$56 sps:$4 sm:$0xff]  }
 0x236   : > { %1847 = vmatprep.subr.bf16.mxu1 %v11500_v35  ;;  %1951 = vmatpush1.bf16.msra.mxu0 %v11507_v41  ;;  %v11570_v35 = vld [vmem:[#allocation8 + $0x110] ss:$56 sps:$4 sm:$0xff]   ;;  %v11578_v41 = vld [vmem:[#allocation8 + $0x184] ss:$56 sps:$4 sm:$0xff]  }
 0x237   : > { %1952 = vmatprep.subr.bf16.mxu0 %v11515_v59  ;;  %v11591_v59 = vld [vmem:[#allocation8 + $0x2c8] ss:$56 sps:$4 sm:$0xff]  }
 0x239   : > { %1848 = vmatpush1.bf16.msra.mxu1 %v11498_v60  ;;  %v11596_v60 = vld [vmem:[#allocation8 + $0x33c] ss:$56 sps:$4 sm:$0xff]  }
 0x23a   : > { %1849 = vmatprep.subr.bf16.mxu1 %v11503_v61  ;;  %1953 = vmatpush1.bf16.msra.mxu0 %v11513_v63  ;;  %v11576_v61 = vld [vmem:[#allocation8 + $0x180] ss:$56 sps:$4 sm:$0xff]   ;;  %v11584_v63 = vld [vmem:[#allocation8 + $0x1f4] ss:$56 sps:$4 sm:$0xff]  }
 0x23b   : > { %1767 = vmatmul.mubr.bf16.gmra.mrb[36].mxu0 %v14312_v49  ;;  %1954 = vmatprep.subr.bf16.mxu0 %v11521_v0  ;;  %v11594_v0 = vld [vmem:[#allocation8 + $0x338] ss:$56 sps:$4 sm:$0xff]  }
 0x23c   : > { %1714 = vmatmul.mubr.bf16.gmra.mrb[12].mxu1 %v14344_v54  ;;  %1776 = vmatprep.mubr.bf16.mxu0 %v13871_v29 }
 0x23d   : > { %1850 = vmatpush1.bf16.msra.mxu1 %v11501_v1  ;;  %1869 = vmatprep.mubr.bf16.mxu1 %v13871_v29  ;;  %v11582_v1 = vld [vmem:[#allocation8 + $0x1f0] ss:$56 sps:$4 sm:$0xff]  }
 0x23e   : > { %1851 = vmatprep.subr.bf16.mxu1 %v11506_v3  ;;  %1955 = vmatpush1.bf16.msra.mxu0 %v11519_v4  ;;  %v11590_v3 = vld [vmem:[#allocation8 + $0x264] ss:$56 sps:$4 sm:$0xff]   ;;  %v11588_v4 = vld [vmem:[#allocation8 + $0x260] ss:$56 sps:$4 sm:$0xff]  }
 0x23f   : > { %1956 = vmatprep.subr.bf16.mxu0 %v11527_v5  ;;  %v11599_v5 = vld [vmem:[#allocation8 + $0x2d4] ss:$56 sps:$4 sm:$0xff]  }
 0x241   : > { %1852 = vmatpush1.bf16.msra.mxu1 %v11504_v7  ;;  %v11597_v7 = vld [vmem:[#allocation8 + $0x2d0] ss:$56 sps:$4 sm:$0xff]  }
 0x242   : > { %2063 = vmatprep.subr.bf16.mxu1 %v11512_v10  ;;  %1957 = vmatpush1.bf16.msra.mxu0 %v11525_v11  ;;  %v11602_v10 = vld [vmem:[#allocation8 + $0x344] ss:$56 sps:$4 sm:$0xff]   ;;  %v11600_v11 = vld [vmem:[#allocation8 + $0x340] ss:$56 sps:$4 sm:$0xff]  }
 0x243   : > { %1777 = vmatmul.mubr.bf16.gmra.mrb[40].mxu0 %v14324_v13  ;;  %1958 = vmatprep.subr.bf16.mxu0 %v11533_v12 }
 0x244   : > { %1870 = vmatmul.mubr.bf16.vlgmr.msra.gmra.mrb[16].mxu1 %v14314_v55  ;;  %1786 = vmatprep.mubr.bf16.mxu0 %v13871_v29 }
 0x245   : > { %2064 = vmatpush1.bf16.msra.mxu1 %v11510_v14  ;;  %1879 = vmatprep.mubr.bf16.mxu1 %v13871_v29 }
 0x246   : > { %2065 = vmatprep.subr.bf16.mxu1 %v11518_v15  ;;  %1959 = vmatpush1.bf16.msra.mxu0 %v11531_v45 }
 0x247   : > { %1960 = vmatprep.subr.bf16.mxu0 %v11539_v50 }
 0x249   : > { %2066 = vmatpush1.bf16.msra.mxu1 %v11516_v16 }
 0x24a   : > { %2067 = vmatprep.subr.bf16.mxu1 %v11524_v47  ;;  %1961 = vmatpush1.bf16.msra.mxu0 %v11537_v53 }
 0x24b   : > { %1787 = vmatmul.mubr.bf16.gmra.mrb[44].mxu0 %v14322_v8  ;;  %1962 = vmatprep.subr.bf16.mxu0 %v11545_v17 }
 0x24c   : > { %1880 = vmatmul.mubr.bf16.gmra.mrb[20].mxu1 %v14312_v49  ;;  %1796 = vmatprep.mubr.bf16.mxu0 %v13871_v29 }
 0x24d   : > { %1889 = vmatprep.mubr.bf16.mxu1 %v13871_v29  ;;  %2068 = vmatpush1.bf16.msra.mxu1 %v11522_v19 }
 0x24e   : > { %2069 = vmatprep.subr.bf16.mxu1 %v11530_v20  ;;  %1963 = vmatpush1.bf16.msra.mxu0 %v11543_v21 }
 0x24f   : > { %1964 = vmatprep.subr.bf16.mxu0 %v11548_v23 }
 0x251   : > { %2070 = vmatpush1.bf16.msra.mxu1 %v11528_v24 }
 0x252   : > { %2071 = vmatprep.subr.bf16.mxu1 %v11536_v25  ;;  %1965 = vmatpush1.bf16.msra.mxu0 %v11546_v27 }
 0x253   : > { %1797 = vmatmul.mubr.bf16.gmra.mrb[48].mxu0 %v14334_v37  ;;  %2176 = vmatprep.subr.bf16.mxu0 %v11557_v28 }
 0x254   : > { %1890 = vmatmul.mubr.bf16.gmra.mrb[24].mxu1 %v14324_v13  ;;  %1806 = vmatprep.mubr.bf16.mxu0 %v13871_v29 }
 0x255   : > { %1899 = vmatprep.mubr.bf16.mxu1 %v13871_v29  ;;  %2072 = vmatpush1.bf16.msra.mxu1 %v11534_v34 }
 0x256   : > { %2073 = vmatprep.subr.bf16.mxu1 %v11542_v36 }
 0x259   : > { %2074 = vmatpush1.bf16.msra.mxu1 %v11540_v39 }
 0x25a   : > { %2075 = vmatprep.subr.bf16.mxu1 %v11551_v40 }
 0x25b   : > { %1807 = vmatmul.mubr.bf16.gmra.mrb[52].mxu0 %v14332_v30 }
 0x25c   : > { %1900 = vmatmul.mubr.bf16.gmra.mrb[28].mxu1 %v14322_v8  ;;  %1816 = vmatprep.mubr.bf16.mxu0 %v13871_v29 }
 0x25d   : > { %1909 = vmatprep.mubr.bf16.mxu1 %v13871_v29  ;;  %2076 = vmatpush1.bf16.msra.mxu1 %v11549_v62 }
 0x25e   : > { %2077 = vmatprep.subr.bf16.mxu1 %v11554_v2 }
 0x261   : > { %2078 = vmatpush1.bf16.msra.mxu1 %v11552_v6 }
 0x262   : > { %2289 = vmatprep.subr.bf16.mxu1 %v11560_v9 }
 0x263   : > { %1817 = vmatmul.mubr.bf16.gmra.mrb[56].mxu0 %v14346_v57 }
 0x264   : > { %1910 = vmatmul.mubr.bf16.gmra.mrb[32].mxu1 %v14334_v37  ;;  %1826 = vmatprep.mubr.bf16.mxu0 %v13871_v29 }
 0x265   : > { %1919 = vmatprep.mubr.bf16.mxu1 %v13871_v29 }
 0x26b   : > { %1827 = vmatmul.mubr.bf16.gmra.mrb[60].mxu0 %v14344_v54 }
 0x26c   : > { %1920 = vmatmul.mubr.bf16.gmra.mrb[36].mxu1 %v14332_v30  ;;  %1982 = vmatprep.mubr.bf16.mxu0 %v13871_v29 }
 0x26d   : > { %1929 = vmatprep.mubr.bf16.mxu1 %v13871_v29 }
 0x273   : > { %1983 = vmatmul.mubr.bf16.vlgmr.msra.gmra.mrb[64].mxu0 %v14314_v55 }
 0x274   : > { %1930 = vmatmul.mubr.bf16.gmra.mrb[40].mxu1 %v14346_v57  ;;  %1992 = vmatprep.mubr.bf16.mxu0 %v13871_v29 }
 0x275   : > { %1939 = vmatprep.mubr.bf16.mxu1 %v13871_v29  ;;  %2177 = vmatpush1.bf16.msra.mxu0 %v11555_v42 }
 0x276   : > { %2178 = vmatprep.subr.bf16.mxu0 %v11563_v43 }
 0x279   : > { %2179 = vmatpush1.bf16.msra.mxu0 %v11561_v44 }
 0x27a   : > { %2180 = vmatprep.subr.bf16.mxu0 %v11569_v46 }
 0x27b   : > { %1993 = vmatmul.mubr.bf16.gmra.mrb[68].mxu0 %v14312_v49 }
 0x27c   : > { %1940 = vmatmul.mubr.bf16.gmra.mrb[44].mxu1 %v14344_v54  ;;  %2002 = vmatprep.mubr.bf16.mxu0 %v13871_v29 }
 0x27d   : > { %2095 = vmatprep.mubr.bf16.mxu1 %v13871_v29  ;;  %2181 = vmatpush1.bf16.msra.mxu0 %v11567_v31 }
 0x27e   : > { %2182 = vmatprep.subr.bf16.mxu0 %v11575_v48 }
 0x281   : > { %2183 = vmatpush1.bf16.msra.mxu0 %v11573_v51 }
 0x282   : > { %2184 = vmatprep.subr.bf16.mxu0 %v11581_v52 }
 0x283   : > { %2003 = vmatmul.mubr.bf16.gmra.mrb[72].mxu0 %v14324_v13 }
 0x284   : > { %2096 = vmatmul.mubr.bf16.vlgmr.msra.gmra.mrb[48].mxu1 %v14314_v55  ;;  %2012 = vmatprep.mubr.bf16.mxu0 %v13871_v29 }
 0x285   : > { %2290 = vmatpush1.bf16.msra.mxu1 %v11558_v56  ;;  %2105 = vmatprep.mubr.bf16.mxu1 %v13871_v29 }
 0x286   : > { %2291 = vmatprep.subr.bf16.mxu1 %v11566_v33  ;;  %2185 = vmatpush1.bf16.msra.mxu0 %v11579_v18 }
 0x287   : > { %2186 = vmatprep.subr.bf16.mxu0 %v11587_v22 }
 0x289   : > { %2292 = vmatpush1.bf16.msra.mxu1 %v11564_v26 }
 0x28a   : > { %2293 = vmatprep.subr.bf16.mxu1 %v11572_v32  ;;  %2187 = vmatpush1.bf16.msra.mxu0 %v11585_v38 }
 0x28b   : > { %2013 = vmatmul.mubr.bf16.gmra.mrb[76].mxu0 %v14322_v8  ;;  %2188 = vmatprep.subr.bf16.mxu0 %v11593_v58 }
 0x28c   : > { %2106 = vmatmul.mubr.bf16.gmra.mrb[52].mxu1 %v14312_v49  ;;  %2022 = vmatprep.mubr.bf16.mxu0 %v13871_v29 }
 0x28d   : > { %2115 = vmatprep.mubr.bf16.mxu1 %v13871_v29  ;;  %2294 = vmatpush1.bf16.msra.mxu1 %v11570_v35 }
 0x28e   : > { %2295 = vmatprep.subr.bf16.mxu1 %v11578_v41  ;;  %2189 = vmatpush1.bf16.msra.mxu0 %v11591_v59 }
 0x28f   : > { %2190 = vmatprep.subr.bf16.mxu0 %v11596_v60 }
 0x291   : > { %2296 = vmatpush1.bf16.msra.mxu1 %v11576_v61 }
 0x292   : > { %2297 = vmatprep.subr.bf16.mxu1 %v11584_v63  ;;  %2191 = vmatpush1.bf16.msra.mxu0 %v11594_v0 }
 0x293   : > { %2023 = vmatmul.mubr.bf16.gmra.mrb[80].mxu0 %v14334_v37 }
 0x294   : > { %2116 = vmatmul.mubr.bf16.gmra.mrb[56].mxu1 %v14324_v13  ;;  %2032 = vmatprep.mubr.bf16.mxu0 %v13871_v29 }
 0x295   : > { %2125 = vmatprep.mubr.bf16.mxu1 %v13871_v29  ;;  %2298 = vmatpush1.bf16.msra.mxu1 %v11582_v1 }
 0x296   : > { %2299 = vmatprep.subr.bf16.mxu1 %v11590_v3 }
 0x299   : > { %2300 = vmatpush1.bf16.msra.mxu1 %v11588_v4 }
 0x29a   : > { %2301 = vmatprep.subr.bf16.mxu1 %v11599_v5 }
 0x29b   : > { %2033 = vmatmul.mubr.bf16.gmra.mrb[84].mxu0 %v14332_v30 }
 0x29c   : > { %2126 = vmatmul.mubr.bf16.gmra.mrb[60].mxu1 %v14322_v8  ;;  %2042 = vmatprep.mubr.bf16.mxu0 %v13871_v29 }
 0x29d   : > { %2135 = vmatprep.mubr.bf16.mxu1 %v13871_v29  ;;  %2302 = vmatpush1.bf16.msra.mxu1 %v11597_v7 }
 0x29e   : > { %2303 = vmatprep.subr.bf16.mxu1 %v11602_v10 }
 0x2a1   : > { %2304 = vmatpush1.bf16.msra.mxu1 %v11600_v11 }
 0x2a3   : > { %2043 = vmatmul.mubr.bf16.gmra.mrb[88].mxu0 %v14346_v57 }
 0x2a4   : > { %2136 = vmatmul.mubr.bf16.gmra.mrb[64].mxu1 %v14334_v37  ;;  %2052 = vmatprep.mubr.bf16.mxu0 %v13871_v29 }
 0x2a5   : > { %2145 = vmatprep.mubr.bf16.mxu1 %v13871_v29 }
 0x2ab   : > { %2053 = vmatmul.mubr.bf16.gmra.mrb[92].mxu0 %v14344_v54 }
 0x2ac   : > { %2146 = vmatmul.mubr.bf16.gmra.mrb[68].mxu1 %v14332_v30  ;;  %2208 = vmatprep.mubr.bf16.mxu0 %v13871_v29 }
 0x2ad   : > { %2155 = vmatprep.mubr.bf16.mxu1 %v13871_v29 }
 0x2b3   : > { %2209 = vmatmul.mubr.bf16.vlgmr.msra.gmra.mrb[96].mxu0 %v14314_v55 }
 0x2b4   : > { %2156 = vmatmul.mubr.bf16.gmra.mrb[72].mxu1 %v14346_v57  ;;  %2218 = vmatprep.mubr.bf16.mxu0 %v13871_v29 }
 0x2b5   : > { %2165 = vmatprep.mubr.bf16.mxu1 %v13871_v29 }
 0x2bb   : > { %2219 = vmatmul.mubr.bf16.gmra.mrb[100].mxu0 %v14312_v49 }
 0x2bc   : > { %2166 = vmatmul.mubr.bf16.gmra.mrb[76].mxu1 %v14344_v54  ;;  %2228 = vmatprep.mubr.bf16.mxu0 %v13871_v29 }
 0x2bd   : > { %2321 = vmatprep.mubr.bf16.mxu1 %v13871_v29 }
 0x2c3   : > { %2229 = vmatmul.mubr.bf16.gmra.mrb[104].mxu0 %v14324_v13 }
 0x2c4   : > { %2322 = vmatmul.mubr.bf16.vlgmr.msra.gmra.mrb[80].mxu1 %v14314_v55  ;;  %2238 = vmatprep.mubr.bf16.mxu0 %v13871_v29  ;;  %v16648_v55 = vlaneseq }
 0x2c5   : > { %2331 = vmatprep.mubr.bf16.mxu1 %v13871_v29 }
 0x2c6   : > { %v14438_v12 = vshrl.u32 %v16648_v55, 7 }
 0x2c8   : > { %16687 = vst [vmem:[#allocation34_spill] sm:$0xff] %v14438_v12  ;;  %v14449_v14 = vsub.s32 1, %v14438_v12 }
 0x2ca   : > { %16689 = vst [vmem:[#allocation36_spill] sm:$0xff] %v14449_v14 }
 0x2cb   : > { %2239 = vmatmul.mubr.bf16.gmra.mrb[108].mxu0 %v14322_v8 }
 0x2cc   : > { %2332 = vmatmul.mubr.bf16.gmra.mrb[84].mxu1 %v14312_v49  ;;  %2248 = vmatprep.mubr.bf16.mxu0 %v13871_v29  ;;  %v14444_v49 = vsub.s32 0, %v14438_v12 }
 0x2cd   : > { %2341 = vmatprep.mubr.bf16.mxu1 %v13871_v29 }
 0x2ce   : > { %16688 = vst [vmem:[#allocation35_spill] sm:$0xff] %v14444_v49 }
 0x2d3   : > { %2249 = vmatmul.mubr.bf16.gmra.mrb[112].mxu0 %v14334_v37 }
 0x2d4   : > { %2342 = vmatmul.mubr.bf16.gmra.mrb[88].mxu1 %v14324_v13  ;;  %2258 = vmatprep.mubr.bf16.mxu0 %v13871_v29  ;;  %v14446_v13 = vld [vmem:[#allocation9] sm:$0xff] }
 0x2d5   : > { %2351 = vmatprep.mubr.bf16.mxu1 %v13871_v29  ;;  %v14454_v15 = vrot.slane %v14446_v13, %v14444_v49 }
 0x2db   : > { %2259 = vmatmul.mubr.bf16.gmra.mrb[116].mxu0 %v14332_v30 }
 0x2dc   : > { %2352 = vmatmul.mubr.bf16.gmra.mrb[92].mxu1 %v14322_v8  ;;  %2268 = vmatprep.mubr.bf16.mxu0 %v13871_v29  ;;  %v14459_v8 = vrot.slane %v14446_v13, %v14449_v14 }
 0x2dd   : > { %2361 = vmatprep.mubr.bf16.mxu1 %v13871_v29 }
 0x2e3   : > { %2269 = vmatmul.mubr.bf16.gmra.mrb[120].mxu0 %v14346_v57 }
 0x2e4   : > { %2362 = vmatmul.mubr.bf16.gmra.mrb[96].mxu1 %v14334_v37  ;;  %2278 = vmatprep.mubr.bf16.mxu0 %v13871_v29 }
 0x2e5   : > { %2371 = vmatprep.mubr.bf16.mxu1 %v13871_v29 }
 0x2e6   : > { %v1645_v45 = vpop.f32.mrb[16].mxu0 }
 0x2e7   : > { %v14464_v50 = vadd.f32 %v1645_v45, %v14454_v15  ;;  %v1647_v16 = vpop.f32.mrb[17].mxu0 }
 0x2e8   : > { %v14467_v47 = vadd.f32 %v1647_v16, %v14459_v8  ;;  %v1649_v53 = vpop.f32.mrb[18].mxu0 }
 0x2e9   : > { %v10085_v17 = vmul.f32 -1.442695, %v14464_v50  ;;  %v14471_v37 = vadd.f32 %v1649_v53, %v14454_v15  ;;  %v1651_v19 = vpop.f32.mrb[19].mxu0 }
 0x2ea   : > { %v10086_v20 = vmul.f32 -1.442695, %v14467_v47  ;;  %v14475_v21 = vadd.f32 %v1651_v19, %v14459_v8 }
 0x2eb   : > { %11667 = vpow2.f32 %v10085_v17  ;;  %v10099_v23 = vmul.f32 -1.442695, %v14471_v37  ;;  %2279 = vmatmul.mubr.bf16.gmra.mrb[124].mxu0 %v14344_v54 }
 0x2ec   : > { %11669 = vpow2.f32 %v10086_v20  ;;  %v10100_v24 = vmul.f32 -1.442695, %v14475_v21  ;;  %2372 = vmatmul.mubr.bf16.gmra.mrb[100].mxu1 %v14332_v30 }
 0x2ed   : > { %11671 = vpow2.f32 %v10099_v23  ;;  %2381 = vmatprep.mubr.bf16.mxu1 %v13871_v29 }
 0x2ee   : > { %11673 = vpow2.f32 %v10100_v24  ;;  %v1655_v25 = vpop.f32.mrb[20].mxu0 }
 0x2ef   : > { %v14483_v27 = vadd.f32 %v1655_v25, %v14454_v15  ;;  %v1657_v28 = vpop.f32.mrb[21].mxu0 }
 0x2f0   : > { %v14486_v34 = vadd.f32 %v1657_v28, %v14459_v8  ;;  %v1659_v36 = vpop.f32.mrb[22].mxu0 }
 0x2f1   : > { %v10113_v39 = vmul.f32 -1.442695, %v14483_v27  ;;  %v14490_v40 = vadd.f32 %v1659_v36, %v14454_v15  ;;  %v1661_v62 = vpop.f32.mrb[23].mxu0 }
 0x2f2   : > { %v10114_v30 = vmul.f32 -1.442695, %v14486_v34  ;;  %v14494_v2 = vadd.f32 %v1661_v62, %v14459_v8 }
 0x2f3   : > { %11675 = vpow2.f32 %v10113_v39  ;;  %v10127_v6 = vmul.f32 -1.442695, %v14490_v40 }
 0x2f4   : > { %11677 = vpow2.f32 %v10114_v30  ;;  %v10128_v9 = vmul.f32 -1.442695, %v14494_v2  ;;  %2382 = vmatmul.mubr.bf16.gmra.mrb[104].mxu1 %v14346_v57 }
 0x2f5   : > { %v11668_v42 = vpop.eup %11667  ;;  %11679 = vpow2.f32 %v10127_v6  ;;  %2391 = vmatprep.mubr.bf16.mxu1 %v13871_v29 }
 0x2f6   : > { %v11670_v43 = vpop.eup %11669  ;;  %v3074_v44 = vadd.f32 1.0, %v11668_v42  ;;  %11681 = vpow2.f32 %v10128_v9  ;;  %v1665_v46 = vpop.f32.mrb[24].mxu0 }
 0x2f7   : > { %v11672_v31 = vpop.eup %11671  ;;  %v3075_v48 = vadd.f32 1.0, %v11670_v43  ;;  %v14501_v51 = vadd.f32 %v1665_v46, %v14454_v15  ;;  %v1685_v52 = vpop.f32.mrb[0].mxu1 }
 0x2f8   : > { %v1667_v56 = vpop.f32.mrb[25].mxu0  ;;  %v11674_v33 = vpop.eup %11673  ;;  %11683 = vrcp.f32 %v3074_v44  ;;  %v3088_v18 = vadd.f32 1.0, %v11672_v31  ;;  %v14504_v57 = vadd.f32 %v1685_v52, %v14454_v15 }
 0x2f9   : > { %v14507_v22 = vadd.f32 %v1667_v56, %v14459_v8  ;;  %v1687_v29 = vpop.f32.mrb[1].mxu1  ;;  %v1669_v26 = vpop.f32.mrb[26].mxu0  ;;  %11685 = vrcp.f32 %v3075_v48  ;;  %v3089_v32 = vadd.f32 1.0, %v11674_v33  ;;  %v10141_v38 = vmul.f32 -1.442695, %v14501_v51 }
 0x2fa   : > { %v14511_v58 = vadd.f32 %v1687_v29, %v14459_v8  ;;  %v1689_v35 = vpop.f32.mrb[2].mxu1  ;;  %v1671_v41 = vpop.f32.mrb[27].mxu0  ;;  %11687 = vrcp.f32 %v3088_v18  ;;  %v10197_v59 = vmul.f32 -1.442695, %v14504_v57  ;;  %v14517_v0 = vadd.f32 %v1669_v26, %v14454_v15 }
 0x2fb   : > { %v10142_v60 = vmul.f32 -1.442695, %v14507_v22  ;;  %v1691_v61 = vpop.f32.mrb[3].mxu1  ;;  %11689 = vrcp.f32 %v3089_v32  ;;  %v14521_v3 = vadd.f32 %v1689_v35, %v14454_v15  ;;  %v14524_v7 = vadd.f32 %v1671_v41, %v14459_v8 }
 0x2fc   : > { %v10198_v63 = vmul.f32 -1.442695, %v14511_v58  ;;  %11691 = vpow2.f32 %v10141_v38  ;;  %2392 = vmatmul.mubr.bf16.gmra.mrb[108].mxu1 %v14344_v54  ;;  %v14527_v16 = vadd.f32 %v1691_v61, %v14459_v8  ;;  %v10155_v20 = vmul.f32 -1.442695, %v14517_v0 }
 0x2fd   : > { %v11676_v1 = vpop.eup %11675  ;;  %11693 = vpow2.f32 %v10197_v59  ;;  %v10211_v36 = vmul.f32 -1.442695, %v14521_v3  ;;  %v10156_v6 = vmul.f32 -1.442695, %v14524_v7 }
 0x2fe   : > { %v11678_v4 = vpop.eup %11677  ;;  %v3102_v5 = vadd.f32 1.0, %v11676_v1  ;;  %11695 = vpow2.f32 %v10142_v60  ;;  %v1675_v10 = vpop.f32.mrb[28].mxu0  ;;  %v10212_v43 = vmul.f32 -1.442695, %v14527_v16 }
 0x2ff   : > { %v11680_v11 = vpop.eup %11679  ;;  %v3103_v45 = vadd.f32 1.0, %v11678_v4  ;;  %11697 = vpow2.f32 %v10198_v63  ;;  %v1695_v53 = vpop.f32.mrb[4].mxu1  ;;  %v14531_v23 = vadd.f32 %v1675_v10, %v14454_v15 }
 0x300   : > { %v1677_v54 = vpop.f32.mrb[29].mxu0  ;;  %v11682_v17 = vpop.eup %11681  ;;  %11699 = vrcp.f32 %v3102_v5  ;;  %v3116_v19 = vadd.f32 1.0, %v11680_v11  ;;  %v14546_v56 = vadd.f32 %v1695_v53, %v14454_v15 }
 0x301   : > { %v1697_v24 = vpop.f32.mrb[5].mxu1  ;;  %v1679_v25 = vpop.f32.mrb[30].mxu0  ;;  %11701 = vrcp.f32 %v3103_v45  ;;  %v3117_v28 = vadd.f32 1.0, %v11682_v17  ;;  %v10169_v46 = vmul.f32 -1.442695, %v14531_v23  ;;  %v14551_v26 = vadd.f32 %v1677_v54, %v14459_v8 }
 0x302   : > { %v14534_v39 = vpop.f32.mrb[6].mxu1  ;;  %v14536_v62 = vpop.f32.mrb[31].mxu0  ;;  %11703 = vrcp.f32 %v3116_v19  ;;  %v10225_v10 = vmul.f32 -1.442695, %v14546_v56 }
 0x303   : > { %v11684_v30 = vpop.eup %11683  ;;  %v14539_v9 = vpop.f32.mrb[7].mxu1  ;;  %11705 = vrcp.f32 %v3117_v28  ;;  %v10170_v17 = vmul.f32 -1.442695, %v14551_v26 }
 0x304   : > { %v11686_v42 = vpop.eup %11685  ;;  %11707 = vpow2.f32 %v10155_v20  ;;  %v3746_v48 = vmul.f32 %v11684_v30, %v14464_v50 }
 0x305   : > { %v11688_v44 = vpop.eup %11687  ;;  %11709 = vpow2.f32 %v10211_v36  ;;  %v3747_v18 = vmul.f32 %v11686_v42, %v14467_v47 }
 0x306   : > { %v11690_v31 = vpop.eup %11689  ;;  %v3760_v52 = vmul.f32 %v11688_v44, %v14471_v37  ;;  %11711 = vpow2.f32 %v10156_v6  ;;  %v14553_v32 = vpop.f32.mrb[32].mxu0  ;;  %v14556_v37 = vadd.f32 %v1697_v24, %v14459_v8  ;;  %v14580_v6 = vsub.s32 2, %v14438_v12 }
 0x307   : > { %v11692_v33 = vpop.eup %11691  ;;  %v3761_v29 = vmul.f32 %v11690_v31, %v14475_v21  ;;  %11713 = vpow2.f32 %v10212_v43  ;;  %v1705_v41 = vpop.f32.mrb[8].mxu1  ;;  %v14561_v21 = vadd.f32 %v1679_v25, %v14454_v15 }
 0x308   : > { %v11694_v38 = vpop.eup %11693  ;;  %v3972_v35 = vadd.f32 %v3760_v52, %v3746_v48  ;;  %v3130_v50 = vadd.f32 1.0, %v11692_v33  ;;  %v14558_v59 = vpop.f32.mrb[33].mxu0  ;;  %11715 = vpow2.f32 %v10169_v46  ;;  %v10226_v25 = vmul.f32 -1.442695, %v14556_v37  ;;  %16690 = vst [vmem:[#allocation37_spill] sm:$0xff] %v14580_v6 }
 0x309   : > { %v11696_v60 = vpop.eup %11695  ;;  %v3993_v47 = vadd.f32 %v3761_v29, %v3747_v18  ;;  %v3186_v61 = vadd.f32 1.0, %v11694_v38  ;;  %v14563_v63 = vpop.f32.mrb[9].mxu1  ;;  %v10183_v30 = vmul.f32 -1.442695, %v14561_v21  ;;  %v14584_v46 = vsub.s32 3, %v14438_v12 }
 0x30a   : > { %v14565_v1 = vpop.f32.mrb[34].mxu0  ;;  %v11698_v4 = vpop.eup %11697  ;;  %11717 = vrcp.f32 %v3130_v50  ;;  %v3131_v5 = vadd.f32 1.0, %v11696_v60 }
 0x30b   : > { %v14568_v11 = vpop.f32.mrb[10].mxu1  ;;  %v14570_v45 = vpop.f32.mrb[35].mxu0  ;;  %11719 = vrcp.f32 %v3186_v61  ;;  %v3187_v54 = vadd.f32 1.0, %v11698_v4  ;;  %16691 = vst [vmem:[#allocation38_spill] sm:$0xff] %v14584_v46 }
 0x30c   : > { %v11700_v53 = vpop.eup %11699  ;;  %v14573_v19 = vpop.f32.mrb[11].mxu1  ;;  %11721 = vrcp.f32 %v3131_v5  ;;  %v14610_v5 = vadd.f32 %v1705_v41, %v14454_v15 }
 0x30d   : > { %v11702_v20 = vpop.eup %11701  ;;  %v3774_v24 = vmul.f32 %v11700_v53, %v14483_v27  ;;  %11723 = vrcp.f32 %v3187_v54 }
 0x30e   : > { %v11704_v28 = vpop.eup %11703  ;;  %v3775_v36 = vmul.f32 %v11702_v20, %v14486_v34  ;;  %11725 = vpow2.f32 %v10225_v10  ;;  %v14589_v34 = vadd.f32 %v14534_v39, %v14454_v15  ;;  %v14591_v52 = vpop.f32.mrb[36].mxu0  ;;  %v14603_v39 = vadd.f32 %v14539_v9, %v14459_v8 }
 0x30f   : > { %v11706_v42 = vpop.eup %11705  ;;  %v3973_v43 = vadd.f32 %v3972_v35, %v3774_v24  ;;  %v3788_v44 = vmul.f32 %v11704_v28, %v14490_v40  ;;  %11727 = vpow2.f32 %v10170_v17  ;;  %v14595_v40 = vadd.f32 %v14536_v62, %v14459_v8  ;;  %v14597_v38 = vpop.f32.mrb[12].mxu1 }
 0x310   : > { %v11708_v27 = vpop.eup %11707  ;;  %v3994_v31 = vadd.f32 %v3993_v47, %v3775_v36  ;;  %v3789_v48 = vmul.f32 %v11706_v42, %v14494_v2  ;;  %11729 = vpow2.f32 %v10226_v25  ;;  %v14599_v35 = vpop.f32.mrb[37].mxu0  ;;  %v10239_v9 = vmul.f32 -1.442695, %v14589_v34 }
 0x311   : > { %v11710_v33 = vpop.eup %11709  ;;  %v3974_v18 = vadd.f32 %v3973_v43, %v3788_v44  ;;  %v3144_v29 = vadd.f32 1.0, %v11708_v27  ;;  %11731 = vpow2.f32 %v10183_v30  ;;  %v14605_v47 = vpop.f32.mrb[13].mxu1  ;;  %v14619_v20 = vrot.slane %v14446_v13, %v14580_v6 }
 0x312   : > { %v11712_v2 = vpop.eup %11711  ;;  %v3995_v50 = vadd.f32 %v3994_v31, %v3789_v48  ;;  %v3200_v60 = vadd.f32 1.0, %v11710_v33  ;;  %v14607_v61 = vpop.f32.mrb[38].mxu0  ;;  %v10184_v41 = vmul.f32 -1.442695, %v14595_v40  ;;  %v10240_v42 = vmul.f32 -1.442695, %v14603_v39 }
 0x313   : > { %v11714_v4 = vpop.eup %11713  ;;  %11733 = vrcp.f32 %v3144_v29  ;;  %v3145_v62 = vadd.f32 1.0, %v11712_v2  ;;  %v14612_v10 = vpop.f32.mrb[14].mxu1  ;;  %v14630_v43 = vrot.slane %v14446_v13, %v14584_v46  ;;  %v10253_v27 = vmul.f32 -1.442695, %v14610_v5 }
 0x314   : > { %v14614_v53 = vpop.f32.mrb[39].mxu0  ;;  %v11716_v54 = vpop.eup %11715  ;;  %11735 = vrcp.f32 %v3200_v60  ;;  %v3201_v17 = vadd.f32 1.0, %v11714_v4  ;;  %v14644_v60 = vadd.f32 %v14563_v63, %v14459_v8  ;;  %v14660_v63 = vadd.f32 %v14568_v11, %v14454_v15 }
 0x315   : > { %v14621_v24 = vpop.f32.mrb[15].mxu1  ;;  %v11718_v25 = vpop.eup %11717  ;;  %11737 = vrcp.f32 %v3145_v62  ;;  %v3158_v28 = vadd.f32 1.0, %v11716_v54 }
 0x316   : > { %v14624_v36 = vpop.eup %11719  ;;  %v3802_v30 = vmul.f32 %v11718_v25, %v14501_v51  ;;  %11739 = vrcp.f32 %v3201_v17  ;;  %v14638_v51 = vadd.f32 %v14553_v32, %v14619_v20  ;;  %v14640_v29 = vpop.f32.mrb[40].mxu0  ;;  %v14652_v32 = vadd.f32 %v14558_v59, %v14630_v43 }
 0x317   : > { %v11722_v44 = vpop.eup %11721  ;;  %11741 = vrcp.f32 %v3158_v28  ;;  %v14646_v4 = vpop.f32.mrb[16].mxu1  ;;  %v10254_v11 = vmul.f32 -1.442695, %v14644_v60  ;;  %v10267_v46 = vmul.f32 -1.442695, %v14660_v63 }
 0x318   : > { %v14633_v31 = vpop.eup %11723  ;;  %v3975_v48 = vadd.f32 %v3974_v18, %v3802_v30  ;;  %v3803_v33 = vmul.f32 %v11722_v44, %v14507_v22  ;;  %11743 = vpow2.f32 %v10239_v9  ;;  %v14648_v62 = vpop.f32.mrb[41].mxu0  ;;  %v10087_v59 = vmul.f32 -1.442695, %v14638_v51 }
 0x319   : > { %v11726_v2 = vpop.eup %11725  ;;  %11745 = vpow2.f32 %v10184_v41  ;;  %v14654_v17 = vpop.f32.mrb[17].mxu1  ;;  %v14669_v44 = vadd.f32 %v14565_v1, %v14619_v20 }
 0x31a   : > { %v11728_v18 = vpop.eup %11727  ;;  %v3996_v54 = vadd.f32 %v3995_v50, %v3803_v33  ;;  %v3214_v22 = vadd.f32 1.0, %v11726_v2  ;;  %11747 = vpow2.f32 %v10240_v42  ;;  %v14656_v9 = vpop.f32.mrb[42].mxu0 }
 0x31b   : > { %v11730_v25 = vpop.eup %11729  ;;  %v3159_v28 = vadd.f32 1.0, %v11728_v18  ;;  %11749 = vpow2.f32 %v10253_v27  ;;  %v14662_v41 = vpop.f32.mrb[18].mxu1 }
 0x31c   : > { %v14664_v50 = vpop.f32.mrb[43].mxu0  ;;  %v11732_v30 = vpop.eup %11731  ;;  %11751 = vrcp.f32 %v3214_v22  ;;  %v3215_v42 = vadd.f32 1.0, %v11730_v25  ;;  %v10088_v22 = vmul.f32 -1.442695, %v14652_v32 }
 0x31d   : > { %v14671_v33 = vpop.f32.mrb[19].mxu1  ;;  %v11734_v27 = vpop.eup %11733  ;;  %11753 = vrcp.f32 %v3159_v28  ;;  %v3172_v2 = vadd.f32 1.0, %v11732_v30  ;;  %v10101_v28 = vmul.f32 -1.442695, %v14669_v44 }
 0x31e   : > { %16692 = vst [vmem:[#allocation39_spill] sm:$0xff] %v14671_v33  ;;  %v14674_v18 = vpop.eup %11735  ;;  %v3816_v55 = vmul.f32 %v11734_v27, %v14517_v0  ;;  %11755 = vrcp.f32 %v3215_v42  ;;  %v14683_v30 = vpop.f32.mrb[44].mxu0  ;;  %v14687_v0 = vadd.f32 %v14573_v19, %v14459_v8 }
 0x31f   : > { %v11738_v25 = vpop.eup %11737  ;;  %11757 = vrcp.f32 %v3172_v2  ;;  %v14689_v42 = vpop.f32.mrb[20].mxu1 }
 0x320   : > { %v14679_v1 = vpop.eup %11739  ;;  %v3976_v6 = vadd.f32 %v3975_v48, %v3816_v55  ;;  %v3817_v14 = vmul.f32 %v11738_v25, %v14524_v7  ;;  %11759 = vpow2.f32 %v10087_v59  ;;  %v14691_v27 = vpop.f32.mrb[45].mxu0  ;;  %v14696_v7 = vadd.f32 %v14570_v45, %v14630_v43 }
 0x321   : > { %v11742_v49 = vpop.eup %11741  ;;  %11761 = vpow2.f32 %v10254_v11  ;;  %16693 = vst [vmem:[#allocation40_spill] sm:$0xff] %v14691_v27  ;;  %v14698_v48 = vpop.f32.mrb[21].mxu1  ;;  %v14704_v25 = vadd.f32 %v14597_v38, %v14454_v15  ;;  %v14721_v27 = vsub.s32 5, %v14438_v12 }
 0x322   : > { %v11744_v2 = vpop.eup %11743  ;;  %v3997_v33 = vadd.f32 %v3996_v54, %v3817_v14  ;;  %v3830_v55 = vmul.f32 %v11742_v49, %v14531_v23  ;;  %11763 = vpow2.f32 %v10088_v22  ;;  %16694 = vst [vmem:[#allocation41_spill] sm:$0xff] %v14698_v48  ;;  %v14700_v59 = vpop.f32.mrb[46].mxu0  ;;  %v14707_v14 = vsub.s32 4, %v14438_v12 }
 0x323   : > { %16695 = vst [vmem:[#allocation42_spill] sm:$0xff] %v14700_v59  ;;  %v11746_v11 = vpop.eup %11745  ;;  %v3228_v19 = vadd.f32 1.0, %v11744_v2  ;;  %11765 = vpow2.f32 %v10267_v46  ;;  %v14709_v49 = vpop.f32.mrb[22].mxu1  ;;  %v14715_v59 = vadd.f32 %v14591_v52, %v14619_v20  ;;  %v10268_v48 = vmul.f32 -1.442695, %v14687_v0  ;;  %16700 = vst [vmem:[#allocation47_spill] sm:$0xff] %v14721_v27 }
 0x324   : > { %16696 = vst [vmem:[#allocation43_spill] sm:$0xff] %v14707_v14  ;;  %16697 = vst [vmem:[#allocation44_spill] sm:$0xff] %v14709_v49  ;;  %v14711_v23 = vpop.f32.mrb[47].mxu0  ;;  %v11748_v45 = vpop.eup %11747  ;;  %v3977_v54 = vadd.f32 %v3976_v6, %v3830_v55  ;;  %v3173_v22 = vadd.f32 1.0, %v11746_v11  ;;  %11767 = vpow2.f32 %v10101_v28  ;;  %v10102_v6 = vmul.f32 -1.442695, %v14696_v7 }
 0x325   : > { %16698 = vst [vmem:[#allocation45_spill] sm:$0xff] %v14711_v23  ;;  %v14717_v46 = vpop.f32.mrb[23].mxu1  ;;  %v11750_v2 = vpop.eup %11749  ;;  %11769 = vrcp.f32 %v3228_v19  ;;  %v3229_v38 = vadd.f32 1.0, %v11748_v45  ;;  %v10281_v52 = vmul.f32 -1.442695, %v14704_v25  ;;  %v14727_v55 = vadd.f32 %v14605_v47, %v14459_v8 }
 0x326   : > { %16699 = vst [vmem:[#allocation46_spill] sm:$0xff] %v14717_v46  ;;  %v11752_v49 = vpop.eup %11751  ;;  %11771 = vrcp.f32 %v3173_v22  ;;  %v3242_v23 = vadd.f32 1.0, %v11750_v2  ;;  %v10115_v45 = vmul.f32 -1.442695, %v14715_v59  ;;  %v14733_v12 = vpop.f32.mrb[48].mxu0  ;;  %v3858_v2 = vmul.f32 %v14624_v36, %v14504_v57 }
 0x327   : > { %v11754_v28 = vpop.eup %11753  ;;  %11773 = vrcp.f32 %v3229_v38  ;;  %16701 = vst [vmem:[#allocation48_spill] sm:$0xff] %v14733_v12  ;;  %v14739_v38 = vrot.slane %v14446_v13, %v14707_v14  ;;  %v14743_v47 = vrot.slane %v14446_v13, %v14721_v27  ;;  %v14745_v46 = vpop.f32.mrb[24].mxu1  ;;  %v14752_v57 = vadd.f32 %v14599_v35, %v14630_v43 }
 0x328   : > { %v14729_v11 = vpop.eup %11755  ;;  %v3831_v19 = vmul.f32 %v11754_v28, %v14551_v26  ;;  %11775 = vrcp.f32 %v3242_v23  ;;  %v14747_v26 = vpop.f32.mrb[49].mxu0  ;;  %v10282_v27 = vmul.f32 -1.442695, %v14727_v55  ;;  %v3859_v35 = vmul.f32 %v14633_v31, %v14511_v58 }
 0x329   : > { %v11758_v22 = vpop.eup %11757  ;;  %11777 = vpow2.f32 %v10268_v48  ;;  %16702 = vst [vmem:[#allocation49_spill] sm:$0xff] %v14747_v26  ;;  %v14754_v36 = vpop.f32.mrb[25].mxu1  ;;  %v14761_v26 = vadd.f32 %v14612_v10, %v14454_v15  ;;  %v14773_v15 = vadd.f32 %v14607_v61, %v14619_v20  ;;  %v14777_v10 = vadd.f32 %v14621_v24, %v14459_v8 }
 0x32a   : > { %v11760_v23 = vpop.eup %11759  ;;  %v3998_v28 = vadd.f32 %v3997_v33, %v3831_v19  ;;  %v3844_v12 = vmul.f32 %v11758_v22, %v14561_v21  ;;  %11779 = vpow2.f32 %v10102_v6  ;;  %v14756_v48 = vpop.f32.mrb[50].mxu0  ;;  %v3872_v58 = vmul.f32 %v14674_v18, %v14521_v3 }
 0x32b   : > { %16703 = vst [vmem:[#allocation50_spill] sm:$0xff] %v14756_v48  ;;  %v11762_v14 = vpop.eup %11761  ;;  %v3076_v13 = vadd.f32 1.0, %v11760_v23  ;;  %11781 = vpow2.f32 %v10281_v52  ;;  %v14763_v33 = vpop.f32.mrb[26].mxu1  ;;  %v14784_v61 = vadd.f32 %v14614_v53, %v14630_v43  ;;  %v3886_v8 = vmul.f32 %v11752_v49, %v14546_v56 }
 0x32c   : > { %v14765_v21 = vpop.f32.mrb[51].mxu0  ;;  %v11764_v6 = vpop.eup %11763  ;;  %v3978_v19 = vadd.f32 %v3977_v54, %v3844_v12  ;;  %v3243_v22 = vadd.f32 1.0, %v11762_v14  ;;  %11783 = vpow2.f32 %v10115_v45  ;;  %v10116_v45 = vmul.f32 -1.442695, %v14752_v57 }
 0x32d   : > { %16704 = vst [vmem:[#allocation51_spill] sm:$0xff] %v14765_v21  ;;  %v14769_v48 = vpop.f32.mrb[27].mxu1  ;;  %v11766_v52 = vpop.eup %11765  ;;  %11785 = vrcp.f32 %v3076_v13  ;;  %v3077_v23 = vadd.f32 1.0, %v11764_v6  ;;  %v10295_v6 = vmul.f32 -1.442695, %v14761_v26 }
 0x32e   : > { %v11768_v21 = vpop.eup %11767  ;;  %v3979_v12 = vadd.f32 %v3978_v19, %v3858_v2  ;;  %11787 = vrcp.f32 %v3243_v22  ;;  %v3256_v31 = vadd.f32 1.0, %v11766_v52  ;;  %v14788_v3 = vpop.f32.mrb[52].mxu0  ;;  %v14794_v19 = vadd.f32 %v14640_v29, %v14619_v20 }
 0x32f   : > { %v11770_v14 = vpop.eup %11769  ;;  %11789 = vrcp.f32 %v3077_v23  ;;  %v3090_v54 = vadd.f32 1.0, %v11768_v21  ;;  %v10129_v21 = vmul.f32 -1.442695, %v14773_v15  ;;  %v14796_v53 = vpop.f32.mrb[28].mxu1  ;;  %v10296_v23 = vmul.f32 -1.442695, %v14777_v10 }
 0x330   : > { %v11772_v13 = vpop.eup %11771  ;;  %v3980_v24 = vadd.f32 %v3979_v12, %v3872_v58  ;;  %11791 = vrcp.f32 %v3256_v31  ;;  %v14798_v22 = vpop.f32.mrb[53].mxu0  ;;  %v3900_v49 = vmul.f32 %v11770_v14, %v14589_v34  ;;  %v10130_v29 = vmul.f32 -1.442695, %v14784_v61 }
 0x331   : > { %v11774_v18 = vpop.eup %11773  ;;  %v3845_v2 = vmul.f32 %v11772_v13, %v14595_v40  ;;  %11793 = vrcp.f32 %v3090_v54  ;;  %16705 = vst [vmem:[#allocation52_spill] sm:$0xff] %v14798_v22  ;;  %v14802_v58 = vpop.f32.mrb[29].mxu1  ;;  %v14809_v54 = vadd.f32 %v14646_v4, %v14739_v38 }
 0x332   : > { %v11776_v56 = vpop.eup %11775  ;;  %v3981_v52 = vadd.f32 %v3980_v24, %v3886_v8  ;;  %11795 = vpow2.f32 %v10282_v27  ;;  %16706 = vst [vmem:[#allocation53_spill] sm:$0xff] %v14802_v58  ;;  %v14804_v40 = vpop.f32.mrb[54].mxu0 }
 0x333   : > { %16707 = vst [vmem:[#allocation54_spill] sm:$0xff] %v14804_v40  ;;  %v11778_v12 = vpop.eup %11777  ;;  %v3999_v31 = vadd.f32 %v3998_v28, %v3845_v2  ;;  %11797 = vpow2.f32 %v10116_v45  ;;  %v14811_v13 = vpop.f32.mrb[30].mxu1  ;;  %v3914_v8 = vmul.f32 %v11776_v56, %v14610_v5  ;;  %v3873_v45 = vmul.f32 %v14679_v1, %v14527_v16 }
 0x334   : > { %16708 = vst [vmem:[#allocation55_spill] sm:$0xff] %v14811_v13  ;;  %v14813_v34 = vpop.f32.mrb[55].mxu0  ;;  %v11780_v27 = vpop.eup %11779  ;;  %v3982_v14 = vadd.f32 %v3981_v52, %v3900_v49  ;;  %v3257_v24 = vadd.f32 1.0, %v11778_v12  ;;  %11799 = vpow2.f32 %v10295_v6  ;;  %v14822_v49 = vadd.f32 %v14648_v62, %v14630_v43 }
 0x335   : > { %v14816_v40 = vpop.f32.mrb[31].mxu1  ;;  %v11782_v28 = vpop.eup %11781  ;;  %v4000_v2 = vadd.f32 %v3999_v31, %v3859_v35  ;;  %v3091_v58 = vadd.f32 1.0, %v11780_v27  ;;  %11801 = vpow2.f32 %v10129_v21  ;;  %v3887_v6 = vmul.f32 %v14729_v11, %v14556_v37 }
 0x336   : > { %v11784_v4 = vpop.eup %11783  ;;  %v3983_v22 = vadd.f32 %v3982_v14, %v3914_v8  ;;  %11803 = vrcp.f32 %v3257_v24  ;;  %v3270_v13 = vadd.f32 1.0, %v11782_v28  ;;  %v10143_v16 = vmul.f32 -1.442695, %v14794_v19  ;;  %v14827_v1 = vpop.f32.mrb[56].mxu0 }
 0x337   : > { %v11786_v5 = vpop.eup %11785  ;;  %v4001_v56 = vadd.f32 %v4000_v2, %v3873_v45  ;;  %11805 = vrcp.f32 %v3091_v58  ;;  %v3104_v52 = vadd.f32 1.0, %v11784_v4  ;;  %v3901_v21 = vmul.f32 %v11774_v18, %v14603_v39  ;;  %v14831_v27 = vpop.f32.mrb[32].mxu1 }
 0x338   : > { %v11788_v12 = vpop.eup %11787  ;;  %11807 = vrcp.f32 %v3270_v13  ;;  %v10089_v62 = vmul.f32 -1.442695, %v14809_v54  ;;  %v14833_v14 = vpop.f32.mrb[57].mxu0  ;;  %v10144_v11 = vmul.f32 -1.442695, %v14822_v49  ;;  %v14838_v58 = vadd.f32 %v14654_v17, %v14743_v47 }
 0x339   : > { %v11790_v35 = vpop.eup %11789  ;;  %v4002_v31 = vadd.f32 %v4001_v56, %v3887_v6  ;;  %11809 = vrcp.f32 %v3104_v52  ;;  %v14842_v13 = vadd.f32 %v14656_v9, %v14619_v20  ;;  %v14844_v39 = vpop.f32.mrb[33].mxu1  ;;  %v3915_v28 = vmul.f32 %v11788_v12, %v14644_v60 }
 0x33a   : > { %v11792_v37 = vpop.eup %11791  ;;  %11811 = vpow2.f32 %v10296_v23  ;;  %v14846_v18 = vpop.f32.mrb[58].mxu0  ;;  %v3748_v4 = vmul.f32 %v11786_v5, %v14638_v51  ;;  %v14858_v6 = vadd.f32 %v14662_v41, %v14739_v38  ;;  %v14864_v51 = vadd.f32 %v14664_v50, %v14630_v43 }
 0x33b   : > { %v11794_v8 = vpop.eup %11793  ;;  %v4003_v24 = vadd.f32 %v4002_v31, %v3901_v21  ;;  %v3928_v23 = vmul.f32 %v11792_v37, %v14660_v63  ;;  %11813 = vpow2.f32 %v10130_v29  ;;  %v14850_v45 = vpop.f32.mrb[34].mxu1  ;;  %v10090_v41 = vmul.f32 -1.442695, %v14838_v58 }
 0x33c   : > { %v14852_v2 = vpop.f32.mrb[59].mxu0  ;;  %v11796_v17 = vpop.eup %11795  ;;  %v3762_v9 = vmul.f32 %v11794_v8, %v14669_v44  ;;  %11815 = vpow2.f32 %v10143_v16 }
 0x33d   : > { %v14860_v56 = vpop.f32.mrb[35].mxu1  ;;  %v11798_v60 = vpop.eup %11797  ;;  %v4004_v52 = vadd.f32 %v4003_v24, %v3915_v28  ;;  %v3984_v63 = vadd.f32 %v3983_v22, %v3928_v23  ;;  %v3271_v29 = vadd.f32 1.0, %v11796_v17  ;;  %11817 = vpow2.f32 %v10089_v62 }
 0x33e   : > { %v11800_v12 = vpop.eup %11799  ;;  %v4014_v21 = vadd.f32 %v3762_v9, %v3748_v4  ;;  %v3105_v31 = vadd.f32 1.0, %v11798_v60  ;;  %11819 = vpow2.f32 %v10144_v11  ;;  %v10157_v22 = vmul.f32 -1.442695, %v14842_v13  ;;  %v14868_v8 = vpop.f32.mrb[60].mxu0 }
 0x33f   : > { %v11802_v44 = vpop.eup %11801  ;;  %11821 = vrcp.f32 %v3271_v29  ;;  %v3284_v5 = vadd.f32 1.0, %v11800_v12  ;;  %v10103_v11 = vmul.f32 -1.442695, %v14858_v6  ;;  %v14872_v50 = vpop.f32.mrb[36].mxu1  ;;  %v3749_v17 = vmul.f32 %v11790_v35, %v14652_v32  ;;  %v16715_v35 = vld [vmem:[#allocation39_spill] sm:$0xff] }
 0x340   : > { %v11804_v16 = vpop.eup %11803  ;;  %11823 = vrcp.f32 %v3105_v31  ;;  %v3118_v37 = vadd.f32 1.0, %v11802_v44  ;;  %16709 = vst [vmem:[#allocation56_spill] sm:$0xff] %v14872_v50  ;;  %v14874_v28 = vpop.f32.mrb[61].mxu0  ;;  %v10158_v9 = vmul.f32 -1.442695, %v14864_v51 }
 0x341   : > { %v11806_v62 = vpop.eup %11805  ;;  %v3929_v24 = vmul.f32 %v11804_v16, %v14687_v0  ;;  %11825 = vrcp.f32 %v3284_v5  ;;  %16710 = vst [vmem:[#allocation57_spill] sm:$0xff] %v14874_v28  ;;  %v14879_v60 = vpop.f32.mrb[37].mxu1 }
 0x342   : > { %v11808_v23 = vpop.eup %11807  ;;  %v3763_v4 = vmul.f32 %v11806_v62, %v14696_v7  ;;  %11827 = vrcp.f32 %v3118_v37  ;;  %16711 = vst [vmem:[#allocation58_spill] sm:$0xff] %v14879_v60  ;;  %v14881_v29 = vpop.f32.mrb[62].mxu0  ;;  %v14891_v37 = vadd.f32 %v16715_v35, %v14743_v47 }
 0x343   : > { %16712 = vst [vmem:[#allocation59_spill] sm:$0xff] %v14881_v29  ;;  %v11810_v0 = vpop.eup %11809  ;;  %v4005_v12 = vadd.f32 %v4004_v52, %v3929_v24  ;;  %v3942_v31 = vmul.f32 %v11808_v23, %v14704_v25  ;;  %11829 = vpow2.f32 %v10090_v41  ;;  %v14884_v44 = vpop.f32.mrb[38].mxu1  ;;  %v14897_v25 = vadd.f32 %v14683_v30, %v14619_v20 }
 0x344   : > { %16713 = vst [vmem:[#allocation60_spill] sm:$0xff] %v14884_v44  ;;  %v14886_v5 = vpop.f32.mrb[63].mxu0  ;;  %v11812_v16 = vpop.eup %11811  ;;  %v4035_v32 = vadd.f32 %v3763_v4, %v3749_v17  ;;  %v3776_v7 = vmul.f32 %v11810_v0, %v14715_v59  ;;  %11831 = vpow2.f32 %v10157_v22  ;;  %v14901_v59 = vadd.f32 %v14689_v42, %v14739_v38  ;;  %v16717_v0 = vld [vmem:[#allocation40_spill] sm:$0xff] }
 0x345   : > { %16714 = vst [vmem:[#allocation61_spill] sm:$0xff] %v14886_v5  ;;  %v14893_v62 = vpop.f32.mrb[39].mxu1  ;;  %v11814_v29 = vpop.eup %11813  ;;  %v3985_v52 = vadd.f32 %v3984_v63, %v3942_v31  ;;  %v3285_v24 = vadd.f32 1.0, %v11812_v16  ;;  %11833 = vpow2.f32 %v10103_v11  ;;  %v14905_v63 = vadd.f32 %v16717_v0, %v14630_v43 }
 0x346   : > { %16716 = vst [vmem:[#allocation39_spill] sm:$0xff] %v14893_v62  ;;  %v11816_v41 = vpop.eup %11815  ;;  %v4015_v23 = vadd.f32 %v4014_v21, %v3776_v7  ;;  %v3119_v17 = vadd.f32 1.0, %v11814_v29  ;;  %11835 = vpow2.f32 %v10158_v9  ;;  %v10104_v30 = vmul.f32 -1.442695, %v14891_v37  ;;  %v14908_v16 = vpop.f32.mrb[64].mxu0 }
 0x347   : > { %v11818_v22 = vpop.eup %11817  ;;  %11837 = vrcp.f32 %v3285_v24  ;;  %v3132_v4 = vadd.f32 1.0, %v11816_v41  ;;  %16718 = vst [vmem:[#allocation40_spill] sm:$0xff] %v14908_v16  ;;  %v10171_v42 = vmul.f32 -1.442695, %v14897_v25  ;;  %v14911_v29 = vpop.f32.mrb[40].mxu1 }
 0x348   : > { %v11820_v11 = vpop.eup %11819  ;;  %11839 = vrcp.f32 %v3119_v17  ;;  %v3078_v31 = vadd.f32 1.0, %v11818_v22  ;;  %16719 = vst [vmem:[#allocation62_spill] sm:$0xff] %v14911_v29  ;;  %v14913_v7 = vpop.f32.mrb[65].mxu0  ;;  %v10117_v41 = vmul.f32 -1.442695, %v14901_v59 }
 0x349   : > { %v11822_v21 = vpop.eup %11821  ;;  %11841 = vrcp.f32 %v3132_v4  ;;  %v3133_v9 = vadd.f32 1.0, %v11820_v11  ;;  %16720 = vst [vmem:[#allocation63_spill] sm:$0xff] %v14913_v7  ;;  %v14917_v17 = vpop.f32.mrb[41].mxu1  ;;  %v10172_v11 = vmul.f32 -1.442695, %v14905_v63 }
 0x34a   : > { %v11824_v35 = vpop.eup %11823  ;;  %v3943_v24 = vmul.f32 %v11822_v21, %v14727_v55  ;;  %11843 = vrcp.f32 %v3078_v31  ;;  %16721 = vst [vmem:[#allocation64_spill] sm:$0xff] %v14917_v17  ;;  %v14919_v22 = vpop.f32.mrb[66].mxu0  ;;  %v16725_v31 = vld [vmem:[#allocation41_spill] sm:$0xff] }
 0x34b   : > { %16722 = vst [vmem:[#allocation65_spill] sm:$0xff] %v14919_v22  ;;  %v11826_v0 = vpop.eup %11825  ;;  %v3777_v4 = vmul.f32 %v11824_v35, %v14752_v57  ;;  %11845 = vrcp.f32 %v3133_v9  ;;  %v14923_v16 = vpop.f32.mrb[42].mxu1  ;;  %v14930_v21 = vadd.f32 %v16725_v31, %v14743_v47  ;;  %v16727_v35 = vld [vmem:[#allocation42_spill] sm:$0xff] }
 0x34c   : > { %16723 = vst [vmem:[#allocation66_spill] sm:$0xff] %v14923_v16  ;;  %v14925_v29 = vpop.f32.mrb[67].mxu0  ;;  %v11828_v7 = vpop.eup %11827  ;;  %v4006_v62 = vadd.f32 %v4005_v12, %v3943_v24  ;;  %v3956_v55 = vmul.f32 %v11826_v0, %v14761_v26  ;;  %11847 = vpow2.f32 %v10104_v30  ;;  %v14937_v16 = vadd.f32 %v16727_v35, %v14619_v20  ;;  %v16728_v26 = vld [vmem:[#allocation44_spill] sm:$0xff] }
 0x34d   : > { %16724 = vst [vmem:[#allocation67_spill] sm:$0xff] %v14925_v29  ;;  %v14932_v22 = vpop.f32.mrb[43].mxu1  ;;  %v11830_v17 = vpop.eup %11829  ;;  %v4036_v57 = vadd.f32 %v4035_v32, %v3777_v4  ;;  %v3790_v9 = vmul.f32 %v11828_v7, %v14773_v15  ;;  %11849 = vpow2.f32 %v10171_v42  ;;  %v14941_v30 = vadd.f32 %v16728_v26, %v14739_v38 }
 0x34e   : > { %16726 = vst [vmem:[#allocation41_spill] sm:$0xff] %v14932_v22  ;;  %v11832_v29 = vpop.eup %11831  ;;  %v3986_v12 = vadd.f32 %v3985_v52, %v3956_v55  ;;  %v3079_v24 = vadd.f32 1.0, %v11830_v17  ;;  %11851 = vpow2.f32 %v10117_v41  ;;  %v10118_v42 = vmul.f32 -1.442695, %v14930_v21  ;;  %v14944_v7 = vpop.f32.mrb[68].mxu0 }
 0x34f   : > { %v11834_v0 = vpop.eup %11833  ;;  %v4016_v31 = vadd.f32 %v4015_v23, %v3790_v9  ;;  %v3146_v22 = vadd.f32 1.0, %v11832_v29  ;;  %11853 = vpow2.f32 %v10172_v11  ;;  %16729 = vst [vmem:[#allocation42_spill] sm:$0xff] %v14944_v7  ;;  %v10185_v41 = vmul.f32 -1.442695, %v14937_v16  ;;  %v14947_v17 = vpop.f32.mrb[44].mxu1 }
 0x350   : > { %v11836_v32 = vpop.eup %11835  ;;  %v3987_v4 = vrot.slane %v3986_v12, 4  ;;  %11855 = vrcp.f32 %v3079_v24  ;;  %v3092_v15 = vadd.f32 1.0, %v11834_v0  ;;  %16730 = vst [vmem:[#allocation44_spill] sm:$0xff] %v14947_v17  ;;  %v14949_v55 = vpop.f32.mrb[69].mxu0  ;;  %v10131_v9 = vmul.f32 -1.442695, %v14941_v30 }
 0x351   : > { %v11838_v35 = vpop.eup %11837  ;;  %11857 = vrcp.f32 %v3146_v22  ;;  %v3147_v52 = vadd.f32 1.0, %v11836_v32  ;;  %16731 = vst [vmem:[#allocation68_spill] sm:$0xff] %v14949_v55  ;;  %v14953_v24 = vpop.f32.mrb[45].mxu1  ;;  %v16734_v32 = vld [vmem:[#allocation45_spill] sm:$0xff]  ;;  %v16735_v55 = vld [vmem:[#allocation46_spill] sm:$0xff] }
 0x352   : > { %v11840_v23 = vpop.eup %11839  ;;  %v3988_v29 = vadd.f32 %v3987_v4, %v3986_v12  ;;  %v3957_v11 = vmul.f32 %v11838_v35, %v14777_v10  ;;  %11859 = vrcp.f32 %v3092_v15  ;;  %16732 = vst [vmem:[#allocation69_spill] sm:$0xff] %v14953_v24  ;;  %v14955_v26 = vpop.f32.mrb[70].mxu0  ;;  %v14960_v7 = vadd.f32 %v16734_v32, %v14630_v43  ;;  %v16739_v32 = vld [vmem:[#allocation48_spill] sm:$0xff] }
 0x353   : > { %16733 = vst [vmem:[#allocation70_spill] sm:$0xff] %v14955_v26  ;;  %v11842_v0 = vpop.eup %11841  ;;  %v3791_v22 = vmul.f32 %v11840_v23, %v14784_v61  ;;  %11861 = vrcp.f32 %v3147_v52  ;;  %v14964_v12 = vadd.f32 %v16735_v55, %v14743_v47  ;;  %v14966_v10 = vpop.f32.mrb[46].mxu1  ;;  %v14975_v17 = vadd.f32 %v16739_v32, %v14619_v20 }
 0x354   : > { %16736 = vst [vmem:[#allocation45_spill] sm:$0xff] %v14966_v10  ;;  %v14968_v4 = vpop.f32.mrb[71].mxu0  ;;  %v11844_v15 = vpop.eup %11843  ;;  %v3989_v35 = vrot.slane %v3988_v29, 2  ;;  %v4007_v24 = vadd.f32 %v4006_v62, %v3957_v11  ;;  %v3804_v26 = vmul.f32 %v11842_v0, %v14794_v19  ;;  %11863 = vpow2.f32 %v10118_v42 }
 0x355   : > { %16737 = vst [vmem:[#allocation46_spill] sm:$0xff] %v14968_v4  ;;  %v14971_v61 = vpop.f32.mrb[47].mxu1  ;;  %v11846_v52 = vpop.eup %11845  ;;  %v4037_v23 = vadd.f32 %v4036_v57, %v3791_v22  ;;  %11865 = vpow2.f32 %v10185_v41  ;;  %v14979_v55 = vadd.f32 %v14745_v46, %v14739_v38  ;;  %v10186_v57 = vmul.f32 -1.442695, %v14960_v7  ;;  %v16740_v41 = vld [vmem:[#allocation49_spill] sm:$0xff] }
 0x356   : > { %16738 = vst [vmem:[#allocation71_spill] sm:$0xff] %v14971_v61  ;;  %v11848_v4 = vpop.eup %11847  ;;  %v3990_v10 = vadd.f32 %v3989_v35, %v3988_v29  ;;  %v4008_v5 = vrot.slane %v4007_v24, 4  ;;  %v4017_v62 = vadd.f32 %v4016_v31, %v3804_v26  ;;  %v3805_v19 = vmul.f32 %v11846_v52, %v14822_v49  ;;  %v14988_v29 = vpop.f32.mrb[72].mxu0 }
 0x357   : > { %v11850_v42 = vpop.eup %11849  ;;  %v3093_v11 = vadd.f32 1.0, %v11848_v4  ;;  %11867 = vpow2.f32 %v10131_v9  ;;  %v14985_v0 = vadd.f32 %v16740_v41, %v14630_v43  ;;  %v10132_v44 = vmul.f32 -1.442695, %v14964_v12  ;;  %16741 = vst [vmem:[#allocation48_spill] sm:$0xff] %v14988_v29  ;;  %v14991_v4 = vpop.f32.mrb[48].mxu1 }
 0x358   : > { %v11852_v22 = vpop.eup %11851  ;;  %v4009_v32 = vadd.f32 %v4008_v5, %v4007_v24  ;;  %v4038_v61 = vadd.f32 %v4037_v23, %v3805_v19  ;;  %v3160_v46 = vadd.f32 1.0, %v11850_v42  ;;  %v3991_v26 = vrot.slane %v3990_v10, 1  ;;  %16742 = vst [vmem:[#allocation49_spill] sm:$0xff] %v14991_v4  ;;  %v14994_v24 = vpop.f32.mrb[73].mxu0 }
 0x359   : > { %v11854_v31 = vpop.eup %11853  ;;  %11869 = vrcp.f32 %v3093_v11  ;;  %v3106_v49 = vadd.f32 1.0, %v11852_v22  ;;  %v10199_v9 = vmul.f32 -1.442695, %v14975_v17  ;;  %v10145_v5 = vmul.f32 -1.442695, %v14979_v55  ;;  %16743 = vst [vmem:[#allocation72_spill] sm:$0xff] %v14994_v24 }
 0x35a   : > { %v11856_v35 = vpop.eup %11855  ;;  %v4010_v52 = vrot.slane %v4009_v32, 2  ;;  %11871 = vrcp.f32 %v3160_v46  ;;  %v3161_v41 = vadd.f32 1.0, %v11854_v31  ;;  %v14996_v23 = vpop.f32.mrb[49].mxu1  ;;  %v10200_v42 = vmul.f32 -1.442695, %v14985_v0  ;;  %v16745_v22 = vld [vmem:[#allocation50_spill] sm:$0xff] }
 0x35b   : > { %16744 = vst [vmem:[#allocation73_spill] sm:$0xff] %v14996_v23  ;;  %v11858_v19 = vpop.eup %11857  ;;  %11873 = vrcp.f32 %v3106_v49  ;;  %v15001_v11 = vadd.f32 %v14754_v36, %v14743_v47  ;;  %v15005_v4 = vadd.f32 %v16745_v22, %v14619_v20  ;;  %v15007_v46 = vpop.f32.mrb[74].mxu0  ;;  %v15014_v49 = vadd.f32 %v14763_v33, %v14739_v38 }
 0x35c   : > { %16746 = vst [vmem:[#allocation50_spill] sm:$0xff] %v15007_v46  ;;  %v15009_v31 = vpop.f32.mrb[50].mxu1  ;;  %v11860_v29 = vpop.eup %11859  ;;  %v4011_v24 = vadd.f32 %v4010_v52, %v4009_v32  ;;  %v3818_v23 = vmul.f32 %v11858_v19, %v14842_v13  ;;  %11875 = vrcp.f32 %v3161_v41  ;;  %v15020_v22 = vadd.f32 %v3991_v26, %v3990_v10 }
 0x35d   : > { %16747 = vst [vmem:[#allocation74_spill] sm:$0xff] %v15009_v31  ;;  %v15016_v60 = vpop.f32.mrb[75].mxu0  ;;  %v15018_v36 = vpop.f32.mrb[51].mxu1  ;;  %v3750_v46 = vmul.f32 %v11844_v15, %v14809_v54  ;;  %v3764_v31 = vmul.f32 %v11860_v29, %v14858_v6  ;;  %11877 = vpow2.f32 %v10186_v57  ;;  %v10213_v26 = vmul.f32 -1.442695, %v15005_v4 }
 0x35e   : > { %16748 = vst [vmem:[#allocation75_spill] sm:$0xff] %v15016_v60  ;;  %16749 = vst [vmem:[#allocation76_spill] sm:$0xff] %v15018_v36  ;;  %v11862_v28 = vpop.eup %11861  ;;  %v4012_v52 = vrot.slane %v4011_v24, 1  ;;  %v4018_v13 = vadd.f32 %v4017_v62, %v3818_v23  ;;  %11879 = vpow2.f32 %v10132_v44  ;;  %v16750_v36 = vld [vmem:[#allocation51_spill] sm:$0xff]  ;;  %v15031_v6 = vpop.f32.mrb[76].mxu0  ;;  %v3751_v23 = vmul.f32 %v11856_v35, %v14838_v58 }
 0x35f   : > { %v11864_v32 = vpop.eup %11863  ;;  %v3819_v41 = vmul.f32 %v11862_v28, %v14864_v51  ;;  %v4056_v19 = vadd.f32 %v3764_v31, %v3750_v46  ;;  %11881 = vpow2.f32 %v10199_v9  ;;  %v15027_v60 = vadd.f32 %v16750_v36, %v14630_v43  ;;  %v15038_v44 = vpop.f32.mrb[52].mxu1 }
 0x360   : > { %v11866_v33 = vpop.eup %11865  ;;  %v3107_v50 = vadd.f32 1.0, %v11864_v32  ;;  %v15029_v10 = vadd.f32 %v4012_v52, %v4011_v24  ;;  %11883 = vpow2.f32 %v10145_v5  ;;  %v10146_v51 = vmul.f32 -1.442695, %v15001_v11  ;;  %v15040_v62 = vpop.f32.mrb[77].mxu0 }
 0x361   : > { %v4039_v54 = vadd.f32 %v4038_v61, %v3819_v41  ;;  %v3174_v15 = vadd.f32 1.0, %v11866_v33  ;;  %v11868_v57 = vpop.eup %11867  ;;  %v15036_v28 = vadd.f32 %v14769_v48, %v14743_v47  ;;  %v15045_v9 = vpop.f32.mrb[53].mxu1  ;;  %v10159_v48 = vmul.f32 -1.442695, %v15014_v49 }
 0x362   : > { %11885 = vrcp.f32 %v3107_v50  ;;  %v3120_v61 = vadd.f32 1.0, %v11868_v57  ;;  %v15047_v50 = vpop.f32.mrb[78].mxu0  ;;  %v10214_v31 = vmul.f32 -1.442695, %v15027_v60  ;;  %v15053_v36 = vpop.f32.mrb[54].mxu1 }
 0x363   : > { %11887 = vrcp.f32 %v3174_v15  ;;  %v11870_v5 = vpop.eup %11869  ;;  %v15055_v32 = vpop.f32.mrb[79].mxu0 }
 0x364   : > { %11889 = vpow2.f32 %v10200_v42  ;;  %v11872_v24 = vpop.eup %11871  ;;  %v3765_v46 = vmul.f32 %v11870_v5, %v14891_v37  ;;  %v10160_v42 = vmul.f32 -1.442695, %v15036_v28  ;;  %v15059_v33 = vpop.f32.mrb[55].mxu1  ;;  %v15064_v37 = vadd.f32 %v14788_v3, %v14619_v20 }
 0x365   : > { %11891 = vrcp.f32 %v3120_v61  ;;  %v11874_v52 = vpop.eup %11873  ;;  %v3832_v41 = vmul.f32 %v11872_v24, %v14897_v25  ;;  %v15069_v25 = vadd.f32 %v14796_v53, %v14739_v38 }
 0x366   : > { %11893 = vpow2.f32 %v10146_v51  ;;  %v11876_v15 = vpop.eup %11875  ;;  %v4077_v57 = vadd.f32 %v3765_v46, %v3751_v23  ;;  %v3778_v58 = vmul.f32 %v11874_v52, %v14901_v59  ;;  %v15071_v23 = vpop.f32.mrb[80].mxu0 }
 0x367   : > { %11895 = vpow2.f32 %v10213_v26  ;;  %v11878_v35 = vpop.eup %11877  ;;  %v4019_v61 = vadd.f32 %v4018_v13, %v3832_v41  ;;  %v3833_v5 = vmul.f32 %v11876_v15, %v14905_v63  ;;  %v16751_v13 = vld [vmem:[#allocation52_spill] sm:$0xff]  ;;  %v15079_v63 = vpop.f32.mrb[56].mxu1  ;;  %v10173_v15 = vmul.f32 -1.442695, %v15069_v25 }
 0x368   : > { %11897 = vpow2.f32 %v10159_v48  ;;  %v11880_v51 = vpop.eup %11879  ;;  %v4057_v24 = vadd.f32 %v4056_v19, %v3778_v58  ;;  %v3175_v29 = vadd.f32 1.0, %v11878_v35  ;;  %v15077_v46 = vadd.f32 %v16751_v13, %v14630_v43  ;;  %v15081_v48 = vpop.f32.mrb[81].mxu0 }
 0x369   : > { %11899 = vpow2.f32 %v10214_v31  ;;  %v11882_v59 = vpop.eup %11881  ;;  %v15073_v26 = vadd.f32 %v4039_v54, %v3833_v5  ;;  %v3121_v3 = vadd.f32 1.0, %v11880_v51  ;;  %16752 = vst [vmem:[#allocation51_spill] sm:$0xff] %v15081_v48  ;;  %v10227_v31 = vmul.f32 -1.442695, %v15064_v37  ;;  %v15084_v52 = vpop.f32.mrb[57].mxu1 }
 0x36a   : > { %11901 = vpow2.f32 %v10160_v42  ;;  %v11884_v53 = vpop.eup %11883  ;;  %v3188_v19 = vadd.f32 1.0, %v11882_v59  ;;  %16753 = vst [vmem:[#allocation52_spill] sm:$0xff] %v15084_v52  ;;  %v15086_v41 = vpop.f32.mrb[82].mxu0 }
 0x36b   : > { %11903 = vrcp.f32 %v3175_v29  ;;  %16754 = vst [vmem:[#allocation77_spill] sm:$0xff] %v15086_v41  ;;  %v3134_v42 = vadd.f32 1.0, %v11884_v53  ;;  %v15089_v58 = vpop.f32.mrb[58].mxu1  ;;  %v15091_v35 = vpop.f32.mrb[83].mxu0  ;;  %v10228_v41 = vmul.f32 -1.442695, %v15077_v46 }
 0x36c   : > { %v11886_v54 = vpop.eup %11885  ;;  %11905 = vrcp.f32 %v3121_v3  ;;  %16755 = vst [vmem:[#allocation78_spill] sm:$0xff] %v15089_v58  ;;  %16756 = vst [vmem:[#allocation79_spill] sm:$0xff] %v15091_v35  ;;  %v15094_v29 = vpop.f32.mrb[59].mxu1 }
 0x36d   : > { %v11888_v5 = vpop.eup %11887  ;;  %v3779_v51 = vmul.f32 %v11886_v54, %v14930_v21  ;;  %11907 = vrcp.f32 %v3188_v19  ;;  %16757 = vst [vmem:[#allocation80_spill] sm:$0xff] %v15094_v29  ;;  %v16758_v21 = vld [vmem:[#allocation53_spill] sm:$0xff] }
 0x36e   : > { %v11890_v59 = vpop.eup %11889  ;;  %v3846_v13 = vmul.f32 %v11888_v5, %v14937_v16  ;;  %11909 = vrcp.f32 %v3134_v42  ;;  %v15101_v19 = vadd.f32 %v16758_v21, %v14743_v47  ;;  %v16759_v16 = vld [vmem:[#allocation54_spill] sm:$0xff]  ;;  %v15107_v5 = vpop.f32.mrb[84].mxu0 }
 0x36f   : > { %v11892_v3 = vpop.eup %11891  ;;  %v4078_v53 = vadd.f32 %v4077_v57, %v3779_v51  ;;  %v3189_v52 = vadd.f32 1.0, %v11890_v59  ;;  %11911 = vpow2.f32 %v10227_v31  ;;  %v15105_v42 = vadd.f32 %v16759_v16, %v14619_v20  ;;  %v15115_v59 = vpop.f32.mrb[85].mxu0 }
 0x370   : > { %v11894_v48 = vpop.eup %11893  ;;  %v4020_v58 = vadd.f32 %v4019_v61, %v3846_v13  ;;  %v3792_v35 = vmul.f32 %v11892_v3, %v14941_v30  ;;  %11913 = vpow2.f32 %v10173_v15  ;;  %v16760_v30 = vld [vmem:[#allocation55_spill] sm:$0xff]  ;;  %v15113_v15 = vpop.f32.mrb[60].mxu1  ;;  %16762 = vst [vmem:[#allocation54_spill] sm:$0xff] %v15115_v59  ;;  %v15119_v13 = vadd.f32 %v14813_v34, %v14630_v43 }
 0x371   : > { %v11896_v54 = vpop.eup %11895  ;;  %11915 = vrcp.f32 %v3189_v52  ;;  %v3135_v29 = vadd.f32 1.0, %v11894_v48  ;;  %v15111_v61 = vadd.f32 %v16760_v30, %v14739_v38  ;;  %16761 = vst [vmem:[#allocation53_spill] sm:$0xff] %v15113_v15  ;;  %v15121_v3 = vpop.f32.mrb[61].mxu1  ;;  %v10241_v16 = vmul.f32 -1.442695, %v15105_v42 }
 0x372   : > { %v11898_v57 = vpop.eup %11897  ;;  %v4058_v31 = vadd.f32 %v4057_v24, %v3792_v35  ;;  %v3202_v51 = vadd.f32 1.0, %v11896_v54  ;;  %11917 = vpow2.f32 %v10228_v41  ;;  %16763 = vst [vmem:[#allocation55_spill] sm:$0xff] %v15121_v3  ;;  %v10174_v35 = vmul.f32 -1.442695, %v15101_v19  ;;  %v15131_v3 = vpop.f32.mrb[86].mxu0 }
 0x373   : > { %v11900_v52 = vpop.eup %11899  ;;  %11919 = vrcp.f32 %v3135_v29  ;;  %v3148_v48 = vadd.f32 1.0, %v11898_v57  ;;  %v15127_v29 = vadd.f32 %v14816_v40, %v14743_v47  ;;  %v10187_v30 = vmul.f32 -1.442695, %v15111_v61  ;;  %16764 = vst [vmem:[#allocation81_spill] sm:$0xff] %v15131_v3 }
 0x374   : > { %v11902_v24 = vpop.eup %11901  ;;  %11921 = vrcp.f32 %v3202_v51  ;;  %v3203_v41 = vadd.f32 1.0, %v11900_v52  ;;  %v15133_v51 = vpop.f32.mrb[62].mxu1  ;;  %v15139_v40 = vadd.f32 %v14827_v1, %v14619_v20 }
 0x375   : > { %v11904_v21 = vpop.eup %11903  ;;  %11923 = vrcp.f32 %v3148_v48  ;;  %v3149_v54 = vadd.f32 1.0, %v11902_v24  ;;  %16765 = vst [vmem:[#allocation82_spill] sm:$0xff] %v15133_v51  ;;  %v10242_v24 = vmul.f32 -1.442695, %v15119_v13  ;;  %v15147_v51 = vpop.f32.mrb[87].mxu0 }
 0x376   : > { %v11906_v57 = vpop.eup %11905  ;;  %v3847_v34 = vmul.f32 %v11904_v21, %v14960_v7  ;;  %11925 = vrcp.f32 %v3203_v41  ;;  %v15145_v21 = vadd.f32 %v14831_v27, %v14739_v38  ;;  %v10188_v1 = vmul.f32 -1.442695, %v15127_v29 }
 0x377   : > { %v11908_v52 = vpop.eup %11907  ;;  %v3793_v48 = vmul.f32 %v11906_v57, %v14964_v12  ;;  %11927 = vrcp.f32 %v3149_v54  ;;  %v15149_v12 = vpop.f32.mrb[63].mxu1 }
 0x378   : > { %v11910_v59 = vpop.eup %11909  ;;  %v4041_v7 = vadd.f32 %v15073_v26, %v3847_v34  ;;  %v3860_v41 = vmul.f32 %v11908_v52, %v14975_v17  ;;  %11929 = vpow2.f32 %v10174_v35  ;;  %v15155_v17 = vadd.f32 %v14833_v14, %v14630_v43 }
 0x379   : > { %v11912_v54 = vpop.eup %11911  ;;  %v4079_v57 = vadd.f32 %v4078_v53, %v3793_v48  ;;  %v3806_v3 = vmul.f32 %v11910_v59, %v14979_v55  ;;  %11931 = vpow2.f32 %v10241_v16  ;;  %v15159_v53 = vadd.f32 %v14844_v39, %v14743_v47 }
 0x37a   : > { %v11914_v15 = vpop.eup %11913  ;;  %v4021_v26 = vadd.f32 %v4020_v58, %v3860_v41  ;;  %v3216_v34 = vadd.f32 1.0, %v11912_v54  ;;  %11933 = vpow2.f32 %v10187_v30  ;;  %v10255_v58 = vmul.f32 -1.442695, %v15139_v40  ;;  %v15174_v54 = vpop.f32.mrb[64].mxu1 }
 0x37b   : > { %v11916_v27 = vpop.eup %11915  ;;  %v4059_v35 = vadd.f32 %v4058_v31, %v3806_v3  ;;  %v3162_v52 = vadd.f32 1.0, %v11914_v15  ;;  %11935 = vpow2.f32 %v10242_v24  ;;  %v15165_v16 = vadd.f32 %v14846_v18, %v14619_v20  ;;  %v15172_v18 = vpop.f32.mrb[88].mxu0  ;;  %16767 = vst [vmem:[#allocation84_spill] sm:$0xff] %v15174_v54 }
 0x37c   : > { %v11918_v55 = vpop.eup %11917  ;;  %v3861_v59 = vmul.f32 %v11916_v27, %v14985_v0  ;;  %11937 = vrcp.f32 %v3216_v34  ;;  %v10201_v31 = vmul.f32 -1.442695, %v15145_v21  ;;  %v10256_v48 = vmul.f32 -1.442695, %v15155_v17  ;;  %16766 = vst [vmem:[#allocation83_spill] sm:$0xff] %v15172_v18 }
 0x37d   : > { %v11920_v14 = vpop.eup %11919  ;;  %11939 = vrcp.f32 %v3162_v52  ;;  %v3217_v30 = vadd.f32 1.0, %v11918_v55  ;;  %v10202_v41 = vmul.f32 -1.442695, %v15159_v53 }
 0x37e   : > { %v11922_v15 = vpop.eup %11921  ;;  %v4042_v3 = vadd.f32 %v4041_v7, %v3861_v59  ;;  %v3807_v39 = vmul.f32 %v11920_v14, %v15001_v11  ;;  %11941 = vpow2.f32 %v10188_v1  ;;  %v10269_v11 = vmul.f32 -1.442695, %v15165_v16  ;;  %v15178_v7 = vpop.f32.mrb[89].mxu0 }
 0x37f   : > { %v11924_v0 = vpop.eup %11923  ;;  %v3874_v24 = vmul.f32 %v11922_v15, %v15005_v4  ;;  %11943 = vrcp.f32 %v3217_v30  ;;  %16768 = vst [vmem:[#allocation85_spill] sm:$0xff] %v15178_v7  ;;  %v15180_v1 = vpop.f32.mrb[65].mxu1  ;;  %v15185_v14 = vadd.f32 %v14850_v45, %v14739_v38 }
 0x380   : > { %v11926_v34 = vpop.eup %11925  ;;  %v4080_v27 = vadd.f32 %v4079_v57, %v3807_v39  ;;  %v3820_v52 = vmul.f32 %v11924_v0, %v15014_v49  ;;  %11945 = vpow2.f32 %v10255_v58  ;;  %16769 = vst [vmem:[#allocation86_spill] sm:$0xff] %v15180_v1  ;;  %v15187_v30 = vpop.f32.mrb[90].mxu0  ;;  %v15194_v39 = vadd.f32 %v14852_v2, %v14630_v43 }
 0x381   : > { %v11928_v55 = vpop.eup %11927  ;;  %v4022_v4 = vadd.f32 %v4021_v26, %v3874_v24  ;;  %v3875_v59 = vmul.f32 %v11926_v34, %v15027_v60  ;;  %11947 = vpow2.f32 %v10201_v31  ;;  %16770 = vst [vmem:[#allocation87_spill] sm:$0xff] %v15187_v30  ;;  %v15189_v57 = vpop.f32.mrb[66].mxu1  ;;  %v10215_v2 = vmul.f32 -1.442695, %v15185_v14 }
 0x382   : > { %16771 = vst [vmem:[#allocation88_spill] sm:$0xff] %v15189_v57  ;;  %v11930_v49 = vpop.eup %11929  ;;  %v4060_v58 = vadd.f32 %v4059_v35, %v3820_v52  ;;  %v3821_v15 = vmul.f32 %v11928_v55, %v15036_v28  ;;  %11949 = vpow2.f32 %v10256_v48  ;;  %v15196_v26 = vpop.f32.mrb[91].mxu0  ;;  %v15202_v35 = vadd.f32 %v14860_v56, %v14743_v47  ;;  %v12563_v57 = vld [vmem:[#allocation9] sm:$0xff] }
 0x383   : > { %16772 = vst [vmem:[#allocation89_spill] sm:$0xff] %v15196_v26  ;;  %v11932_v60 = vpop.eup %11931  ;;  %v4043_v31 = vadd.f32 %v4042_v3, %v3875_v59  ;;  %v3163_v0 = vadd.f32 1.0, %v11930_v49  ;;  %11951 = vpow2.f32 %v10202_v41  ;;  %v10270_v3 = vmul.f32 -1.442695, %v15194_v39  ;;  %v15206_v41 = vpop.f32.mrb[67].mxu1 }
 0x384   : > { %v11934_v45 = vpop.eup %11933  ;;  %v15198_v24 = vadd.f32 %v4080_v27, %v3821_v15  ;;  %v3230_v34 = vadd.f32 1.0, %v11932_v60  ;;  %11953 = vpow2.f32 %v10269_v11  ;;  %16773 = vst [vmem:[#allocation90_spill] sm:$0xff] %v15206_v41  ;;  %v10216_v49 = vmul.f32 -1.442695, %v15202_v35 }
 0x385   : > { %v11936_v28 = vpop.eup %11935  ;;  %11955 = vrcp.f32 %v3163_v0  ;;  %v3176_v48 = vadd.f32 1.0, %v11934_v45  ;;  %v15214_v41 = vadd.f32 %v14868_v8, %v14619_v20 }
 0x386   : > { %v11938_v52 = vpop.eup %11937  ;;  %11957 = vrcp.f32 %v3230_v34  ;;  %v3231_v55 = vadd.f32 1.0, %v11936_v28 }
 0x387   : > { %v11940_v27 = vpop.eup %11939  ;;  %v3888_v59 = vmul.f32 %v11938_v52, %v15064_v37  ;;  %11959 = vrcp.f32 %v3176_v48 }
 0x388   : > { %v11942_v11 = vpop.eup %11941  ;;  %v3834_v56 = vmul.f32 %v11940_v27, %v15069_v25  ;;  %11961 = vrcp.f32 %v3231_v55  ;;  %v16774_v25 = vld [vmem:[#allocation56_spill] sm:$0xff] }
 0x389   : > { %v11944_v15 = vpop.eup %11943  ;;  %v4023_v60 = vadd.f32 %v4022_v4, %v3888_v59  ;;  %v3177_v0 = vadd.f32 1.0, %v11942_v11  ;;  %11963 = vpow2.f32 %v10215_v2  ;;  %v15218_v52 = vadd.f32 %v16774_v25, %v14739_v38  ;;  %v16775_v4 = vld [vmem:[#allocation57_spill] sm:$0xff]  ;;  %v16777_v11 = vld [vmem:[#allocation59_spill] sm:$0xff]  ;;  %v16778_v25 = vld [vmem:[#allocation34_spill] sm:$0xff] }
 0x38a   : > { %v11946_v45 = vpop.eup %11945  ;;  %v4061_v34 = vadd.f32 %v4060_v58, %v3834_v56  ;;  %v3889_v28 = vmul.f32 %v11944_v15, %v15077_v46  ;;  %11965 = vpow2.f32 %v10270_v3  ;;  %v15222_v55 = vadd.f32 %v16775_v4, %v14630_v43  ;;  %v16776_v46 = vld [vmem:[#allocation58_spill] sm:$0xff] }
 0x38b   : > { %v11948_v37 = vpop.eup %11947  ;;  %11967 = vrcp.f32 %v3177_v0  ;;  %v3244_v48 = vadd.f32 1.0, %v11946_v45  ;;  %v15226_v3 = vadd.f32 %v16776_v46, %v14743_v47  ;;  %v15230_v56 = vadd.f32 %v16777_v11, %v14619_v20 }
 0x38c   : > { %v11950_v2 = vpop.eup %11949  ;;  %v4044_v58 = vadd.f32 %v4043_v31, %v3889_v28  ;;  %v3190_v27 = vadd.f32 1.0, %v11948_v37  ;;  %11969 = vpow2.f32 %v10216_v49  ;;  %v10283_v45 = vmul.f32 -1.442695, %v15214_v41  ;;  %v15234_v28 = vpop.f32.mrb[92].mxu0 }
 0x38d   : > { %v11952_v8 = vpop.eup %11951  ;;  %11971 = vrcp.f32 %v3244_v48  ;;  %v3245_v59 = vadd.f32 1.0, %v11950_v2  ;;  %16779 = vst [vmem:[#allocation56_spill] sm:$0xff] %v15234_v28  ;;  %v10229_v4 = vmul.f32 -1.442695, %v15218_v52  ;;  %v10284_v48 = vmul.f32 -1.442695, %v15222_v55 }
 0x38e   : > { %v11954_v15 = vpop.eup %11953  ;;  %11973 = vrcp.f32 %v3190_v27  ;;  %v3191_v0 = vadd.f32 1.0, %v11952_v8  ;;  %v15238_v2 = vpop.f32.mrb[68].mxu1  ;;  %v10230_v27 = vmul.f32 -1.442695, %v15226_v3  ;;  %v16781_v8 = vld [vmem:[#allocation60_spill] sm:$0xff]  ;;  %v16782_v28 = vld [vmem:[#allocation61_spill] sm:$0xff] }
 0x38f   : > { %v11956_v49 = vpop.eup %11955  ;;  %11975 = vrcp.f32 %v3245_v59  ;;  %v3258_v37 = vadd.f32 1.0, %v11954_v15  ;;  %16780 = vst [vmem:[#allocation57_spill] sm:$0xff] %v15238_v2  ;;  %v15244_v11 = vadd.f32 %v16781_v8, %v14739_v38  ;;  %v10297_v15 = vmul.f32 -1.442695, %v15230_v56  ;;  %v15252_v2 = vpop.f32.mrb[93].mxu0 }
 0x390   : > { %v11958_v20 = vpop.eup %11957  ;;  %v3835_v46 = vmul.f32 %v11956_v49, %v15101_v19  ;;  %11977 = vrcp.f32 %v3191_v0  ;;  %v15250_v26 = vadd.f32 %v16782_v28, %v14630_v43  ;;  %16783 = vst [vmem:[#allocation58_spill] sm:$0xff] %v15252_v2  ;;  %v15254_v19 = vpop.f32.mrb[69].mxu1  ;;  %v16786_v28 = vld [vmem:[#allocation39_spill] sm:$0xff] }
 0x391   : > { %v11960_v31 = vpop.eup %11959  ;;  %v3902_v59 = vmul.f32 %v11958_v20, %v15105_v42  ;;  %11979 = vrcp.f32 %v3258_v37  ;;  %16784 = vst [vmem:[#allocation59_spill] sm:$0xff] %v15254_v19  ;;  %v16785_v42 = vsub.s32 6, %v16778_v25  ;;  %v15265_v2 = vadd.f32 %v16786_v28, %v14743_v47  ;;  %v15267_v19 = vpop.f32.mrb[94].mxu0 }
 0x392   : > { %v11962_v0 = vpop.eup %11961  ;;  %v4082_v49 = vadd.f32 %v15198_v24, %v3835_v46  ;;  %v3848_v8 = vmul.f32 %v11960_v31, %v15111_v61  ;;  %11981 = vpow2.f32 %v10283_v45  ;;  %16787 = vst [vmem:[#allocation60_spill] sm:$0xff] %v15267_v19  ;;  %v16664_v45 = vsub.s32 7, %v16778_v25  ;;  %v15270_v31 = vpop.f32.mrb[70].mxu1 }
 0x393   : > { %v15260_v37 = vrot.slane %v12563_v57, %v16785_v42  ;;  %v11964_v20 = vpop.eup %11963  ;;  %v4024_v30 = vadd.f32 %v4023_v60, %v3902_v59  ;;  %v3903_v43 = vmul.f32 %v11962_v0, %v15119_v13  ;;  %11983 = vpow2.f32 %v10229_v4  ;;  %16788 = vst [vmem:[#allocation61_spill] sm:$0xff] %v15270_v31  ;;  %v16789_v13 = vld [vmem:[#allocation62_spill] sm:$0xff] }
 0x394   : > { %v11966_v24 = vpop.eup %11965  ;;  %v4062_v46 = vadd.f32 %v4061_v34, %v3848_v8  ;;  %v3204_v61 = vadd.f32 1.0, %v11964_v20  ;;  %11985 = vpow2.f32 %v10284_v48  ;;  %v15274_v4 = vadd.f32 %v16789_v13, %v14739_v38  ;;  %v16790_v48 = vld [vmem:[#allocation40_spill] sm:$0xff]  ;;  %v15282_v20 = vpop.f32.mrb[95].mxu0 }
 0x395   : > { %v11968_v42 = vpop.eup %11967  ;;  %v4045_v1 = vadd.f32 %v4044_v58, %v3903_v43  ;;  %v3259_v60 = vadd.f32 1.0, %v11966_v24  ;;  %11987 = vpow2.f32 %v10230_v27  ;;  %v10243_v34 = vmul.f32 -1.442695, %v15244_v11  ;;  %16791 = vst [vmem:[#allocation39_spill] sm:$0xff] %v15282_v20  ;;  %v15286_v24 = vpop.f32.mrb[71].mxu1 }
 0x396   : > { %v11970_v59 = vpop.eup %11969  ;;  %v3849_v0 = vmul.f32 %v11968_v42, %v15127_v29  ;;  %11989 = vrcp.f32 %v3204_v61  ;;  %v15280_v8 = vadd.f32 %v16790_v48, %v15260_v37  ;;  %v10298_v27 = vmul.f32 -1.442695, %v15250_v26  ;;  %16792 = vst [vmem:[#allocation62_spill] sm:$0xff] %v15286_v24 }
 0x397   : > { %v11972_v28 = vpop.eup %11971  ;;  %11991 = vrcp.f32 %v3259_v60  ;;  %v3205_v58 = vadd.f32 1.0, %v11970_v59  ;;  %v10244_v43 = vmul.f32 -1.442695, %v15265_v2  ;;  %v15291_v42 = vrot.slane %v12563_v57, %v16664_v45 }
 0x398   : > { %v11974_v13 = vpop.eup %11973  ;;  %v4083_v29 = vadd.f32 %v4082_v49, %v3849_v0  ;;  %v3916_v61 = vmul.f32 %v11972_v28, %v15139_v40  ;;  %11993 = vpow2.f32 %v10297_v15  ;;  %v13872_v20 = vmov 1966171168   ;;  %v16793_v0 = vld [vmem:[#allocation64_spill] sm:$0xff] }
 0x399   : > { %v11976_v48 = vpop.eup %11975  ;;  %v4285_v31 = vunpack.c.l.s4 %v13872_v20  ;;  %v3862_v60 = vmul.f32 %v11974_v13, %v15145_v21  ;;  %11995 = vrcp.f32 %v3205_v58  ;;  %v10257_v59 = vmul.f32 -1.442695, %v15274_v4 }
 0x39a   : > { %v11978_v19 = vpop.eup %11977  ;;  %v4025_v7 = vadd.f32 %v4024_v30, %v3916_v61  ;;  %v3917_v24 = vmul.f32 %v11976_v48, %v15155_v17  ;;  %11997 = vpow2.f32 %v10243_v34  ;;  %v10091_v40 = vmul.f32 -1.442695, %v15280_v8  ;;  %v16794_v30 = vld [vmem:[#allocation63_spill] sm:$0xff] }
 0x39b   : > { %v11980_v15 = vpop.eup %11979  ;;  %v4063_v49 = vadd.f32 %v4062_v46, %v3862_v60  ;;  %v3863_v57 = vmul.f32 %v11978_v19, %v15159_v53  ;;  %11999 = vpow2.f32 %v10298_v27  ;;  %v15300_v20 = vadd.f32 %v16793_v0, %v14743_v47  ;;  %v15307_v53 = vpop.f32.mrb[72].mxu1 }
 0x39c   : > { %v11982_v21 = vpop.eup %11981  ;;  %v4046_v28 = vadd.f32 %v4045_v1, %v3917_v24  ;;  %v3930_v58 = vmul.f32 %v11980_v15, %v15165_v16  ;;  %12001 = vpow2.f32 %v10244_v43  ;;  %v15305_v17 = vadd.f32 %v16794_v30, %v15291_v42  ;;  %16795 = vst [vmem:[#allocation40_spill] sm:$0xff] %v15307_v53  ;;  %v15309_v19 = vpop.f32.mrb[96].mxu0  ;;  %v16797_v16 = vld [vmem:[#allocation66_spill] sm:$0xff] }
 0x39d   : > { %v11984_v34 = vpop.eup %11983  ;;  %v4286_v13 = vunpack.c.0.s8 %v4285_v31  ;;  %v4084_v61 = vadd.f32 %v4083_v29, %v3863_v57  ;;  %v3272_v46 = vadd.f32 1.0, %v11982_v21  ;;  %12003 = vpow2.f32 %v10257_v59  ;;  %16796 = vst [vmem:[#allocation64_spill] sm:$0xff] %v15309_v19  ;;  %v15317_v24 = vpop.f32.mrb[73].mxu1 }
 0x39e   : > { %v11986_v27 = vpop.eup %11985  ;;  %v15311_v48 = vadd.f32 %v4025_v7, %v3930_v58  ;;  %v3218_v1 = vadd.f32 1.0, %v11984_v34  ;;  %12005 = vpow2.f32 %v10091_v40  ;;  %v15315_v43 = vadd.f32 %v16797_v16, %v14739_v38  ;;  %16798 = vst [vmem:[#allocation63_spill] sm:$0xff] %v15317_v24  ;;  %v15319_v60 = vpop.f32.mrb[97].mxu0 }
 0x39f   : > { %16799 = vst [vmem:[#allocation66_spill] sm:$0xff] %v15319_v60  ;;  %v11988_v31 = vpop.eup %11987  ;;  %12007 = vrcp.f32 %v3272_v46  ;;  %v3273_v29 = vadd.f32 1.0, %v11986_v27  ;;  %v10258_v59 = vmul.f32 -1.442695, %v15300_v20  ;;  %v10092_v7 = vmul.f32 -1.442695, %v15305_v17 }
 0x3a0   : > { %v11990_v15 = vpop.eup %11989  ;;  %12009 = vrcp.f32 %v3218_v1  ;;  %v3219_v57 = vadd.f32 1.0, %v11988_v31  ;;  %v15324_v21 = vpop.f32.mrb[74].mxu1  ;;  %v15327_v30 = vsub.s32 %v4286_v13, %v16778_v25  ;;  %v10271_v46 = vmul.f32 -1.442695, %v15315_v43  ;;  %v16801_v31 = vld [vmem:[#allocation65_spill] sm:$0xff] }
 0x3a1   : > { %v11992_v0 = vpop.eup %11991  ;;  %v3876_v40 = vmul.f32 %v11990_v15, %v15185_v14  ;;  %12011 = vrcp.f32 %v3273_v29  ;;  %16800 = vst [vmem:[#allocation91_spill] sm:$0xff] %v15324_v21  ;;  %v15333_v45 = vadd.f32 %v16801_v31, %v15260_v37  ;;  %v15335_v14 = vpop.f32.mrb[98].mxu0  ;;  %v16811_v21 = vld [vmem:[#allocation68_spill] sm:$0xff] }
 0x3a2   : > { %v11994_v58 = vpop.eup %11993  ;;  %v3931_v34 = vmul.f32 %v11992_v0, %v15194_v39  ;;  %12013 = vrcp.f32 %v3219_v57  ;;  %16802 = vst [vmem:[#allocation65_spill] sm:$0xff] %v15335_v14  ;;  %v16803_v39 = vld [vmem:[#allocation41_spill] sm:$0xff] }
 0x3a3   : > { %v11996_v27 = vpop.eup %11995  ;;  %v4064_v1 = vadd.f32 %v4063_v49, %v3876_v40  ;;  %v3286_v16 = vadd.f32 1.0, %v11994_v58  ;;  %12015 = vpow2.f32 %v10258_v59  ;;  %v15340_v13 = vadd.f32 %v16803_v39, %v14743_v47  ;;  %v16804_v59 = vld [vmem:[#allocation67_spill] sm:$0xff]  ;;  %v16805_v40 = vld [vmem:[#allocation44_spill] sm:$0xff] }
 0x3a4   : > { %v11998_v29 = vpop.eup %11997  ;;  %v4047_v15 = vadd.f32 %v4046_v28, %v3931_v34  ;;  %v3877_v25 = vmul.f32 %v11996_v27, %v15202_v35  ;;  %12017 = vpow2.f32 %v10092_v7  ;;  %v15344_v0 = vadd.f32 %v16804_v59, %v15291_v42  ;;  %v16806_v35 = vld [vmem:[#allocation42_spill] sm:$0xff] }
 0x3a5   : > { %v12000_v57 = vpop.eup %11999  ;;  %12019 = vrcp.f32 %v3286_v16  ;;  %v3232_v49 = vadd.f32 1.0, %v11998_v29  ;;  %v15348_v58 = vadd.f32 %v16805_v40, %v14739_v38  ;;  %v15352_v7 = vadd.f32 %v16806_v35, %v15260_v37 }
 0x3a6   : > { %v12002_v31 = vpop.eup %12001  ;;  %v4085_v28 = vadd.f32 %v4084_v61, %v3877_v25  ;;  %v3287_v34 = vadd.f32 1.0, %v12000_v57  ;;  %12021 = vpow2.f32 %v10271_v46  ;;  %v16807_v39 = vcombine.low %v15020_v22, %v15029_v10  ;;  %v15366_v10 = vpop.f32.mrb[75].mxu1 }
 0x3a7   : > { %v12004_v27 = vpop.eup %12003  ;;  %12023 = vrcp.f32 %v3232_v49  ;;  %v3233_v16 = vadd.f32 1.0, %v12002_v31  ;;  %v10105_v61 = vmul.f32 -1.442695, %v15333_v45  ;;  %v10272_v57 = vmul.f32 -1.442695, %v15340_v13  ;;  %16808 = vst [vmem:[#allocation41_spill] sm:$0xff] %v15366_v10 }
 0x3a8   : > { %v12006_v29 = vpop.eup %12005  ;;  %v15358_v59 = vrot.slane %v16807_v39, %v15327_v30  ;;  %12025 = vrcp.f32 %v3287_v34  ;;  %v3246_v40 = vadd.f32 1.0, %v12004_v27  ;;  %v10106_v35 = vmul.f32 -1.442695, %v15344_v0  ;;  %v15368_v34 = vpop.f32.mrb[99].mxu0 }
 0x3a9   : > { %v12008_v25 = vpop.eup %12007  ;;  %12027 = vrcp.f32 %v3233_v16  ;;  %v3080_v46 = vadd.f32 1.0, %v12006_v29  ;;  %v10285_v14 = vmul.f32 -1.442695, %v15348_v58  ;;  %v10119_v22 = vmul.f32 -1.442695, %v15352_v7  ;;  %16809 = vst [vmem:[#allocation67_spill] sm:$0xff] %v15368_v34 }
 0x3aa   : > { %v12010_v49 = vpop.eup %12009  ;;  %v3944_v31 = vmul.f32 %v12008_v25, %v15214_v41  ;;  %12029 = vrcp.f32 %v3246_v40  ;;  %v16810_v29 = vld [vmem:[#allocation69_spill] sm:$0xff]  ;;  %v15377_v41 = vadd.f32 %v16811_v21, %v15291_v42 }
 0x3ab   : > { %v12012_v27 = vpop.eup %12011  ;;  %v3890_v16 = vmul.f32 %v12010_v49, %v15218_v52  ;;  %12031 = vrcp.f32 %v3080_v46  ;;  %v15373_v39 = vadd.f32 %v16810_v29, %v14743_v47  ;;  %v16812_v34 = vld [vmem:[#allocation45_spill] sm:$0xff]  ;;  %v16813_v29 = vld [vmem:[#allocation70_spill] sm:$0xff] }
 0x3ac   : > { %v12014_v40 = vpop.eup %12013  ;;  %v4027_v25 = vadd.f32 %v15311_v48, %v3944_v31  ;;  %v3945_v60 = vmul.f32 %v12012_v27, %v15222_v55  ;;  %12033 = vpow2.f32 %v10105_v61  ;;  %v15383_v10 = vadd.f32 %v16812_v34, %v14739_v38  ;;  %v16814_v55 = vld [vmem:[#allocation71_spill] sm:$0xff] }
 0x3ad   : > { %v12016_v52 = vpop.eup %12015  ;;  %v4065_v46 = vadd.f32 %v4064_v1, %v3890_v16  ;;  %v3891_v49 = vmul.f32 %v12014_v40, %v15226_v3  ;;  %12035 = vpow2.f32 %v10272_v57  ;;  %v15388_v24 = vadd.f32 %v16813_v29, %v15260_v37  ;;  %v978_v3 = vld [vmem:[#allocation9 + $0x8] sm:$0x3f]  ;;  %v16817_v16 = vld [vmem:[#allocation46_spill] sm:$0xff] }
 0x3ae   : > { %v12018_v21 = vpop.eup %12017  ;;  %v4048_v19 = vadd.f32 %v4047_v15, %v3945_v60  ;;  %v3247_v53 = vadd.f32 1.0, %v12016_v52  ;;  %12037 = vpow2.f32 %v10106_v35  ;;  %v15392_v48 = vadd.f32 %v16814_v55, %v14743_v47  ;;  %v15398_v15 = vpop.f32.mrb[76].mxu1 }
 0x3af   : > { %v12020_v61 = vpop.eup %12019  ;;  %v4086_v38 = vadd.f32 %v4085_v28, %v3891_v49  ;;  %v3081_v31 = vadd.f32 1.0, %v12018_v21  ;;  %12039 = vpow2.f32 %v10285_v14  ;;  %v10286_v1 = vmul.f32 -1.442695, %v15373_v39  ;;  %16815 = vst [vmem:[#allocation44_spill] sm:$0xff] %v15398_v15  ;;  %v15400_v35 = vpop.f32.mrb[100].mxu0 }
 0x3b0   : > { %v12022_v57 = vpop.eup %12021  ;;  %v3958_v34 = vmul.f32 %v12020_v61, %v15230_v56  ;;  %12041 = vrcp.f32 %v3247_v53  ;;  %v10120_v27 = vmul.f32 -1.442695, %v15377_v41  ;;  %v10299_v60 = vmul.f32 -1.442695, %v15383_v10  ;;  %16816 = vst [vmem:[#allocation42_spill] sm:$0xff] %v15400_v35  ;;  %v15407_v52 = vpop.f32.mrb[77].mxu1 }
 0x3b1   : > { %v12024_v47 = vpop.eup %12023  ;;  %12043 = vrcp.f32 %v3081_v31  ;;  %v3260_v28 = vadd.f32 1.0, %v12022_v57  ;;  %v10133_v14 = vmul.f32 -1.442695, %v15388_v24  ;;  %v15405_v40 = vadd.f32 %v16817_v16, %v15291_v42  ;;  %16818 = vst [vmem:[#allocation69_spill] sm:$0xff] %v15407_v52  ;;  %v15409_v56 = vpop.f32.mrb[101].mxu0  ;;  %v16822_v16 = vld [vmem:[#allocation48_spill] sm:$0xff] }
 0x3b2   : > { %16819 = vst [vmem:[#allocation68_spill] sm:$0xff] %v15409_v56  ;;  %v12026_v53 = vpop.eup %12025  ;;  %v4028_v49 = vadd.f32 %v4027_v25, %v3958_v34  ;;  %v3904_v29 = vmul.f32 %v12024_v47, %v15244_v11  ;;  %12045 = vpow2.f32 %v10119_v22  ;;  %v10300_v21 = vmul.f32 -1.442695, %v15392_v48  ;;  %v15413_v55 = vpop.f32.mrb[78].mxu1  ;;  %v16823_v56 = vld [vmem:[#allocation35_spill] sm:$0xff] }
 0x3b3   : > { %16820 = vst [vmem:[#allocation45_spill] sm:$0xff] %v15413_v55  ;;  %v15415_v61 = vpop.f32.mrb[102].mxu0  ;;  %v12028_v31 = vpop.eup %12027  ;;  %v3959_v57 = vmul.f32 %v12026_v53, %v15250_v26  ;;  %12047 = vrcp.f32 %v3260_v28  ;;  %v15420_v52 = vadd.f32 %v16822_v16, %v15260_v37  ;;  %v15423_v35 = vrot.slane %v978_v3, %v16823_v56  ;;  %v16826_v53 = vld [vmem:[#allocation72_spill] sm:$0xff] }
 0x3b4   : > { %16821 = vst [vmem:[#allocation70_spill] sm:$0xff] %v15415_v61  ;;  %v12030_v25 = vpop.eup %12029  ;;  %v4029_v11 = vrot.slane %v4028_v49, 4  ;;  %v4066_v22 = vadd.f32 %v4065_v46, %v3904_v29  ;;  %v3905_v34 = vmul.f32 %v12028_v31, %v15265_v2  ;;  %12049 = vpow2.f32 %v10286_v1  ;;  %v15426_v47 = vpop.f32.mrb[79].mxu1  ;;  %v16827_v2 = vld [vmem:[#allocation36_spill] sm:$0xff] }
 0x3b5   : > { %16824 = vst [vmem:[#allocation71_spill] sm:$0xff] %v15426_v47  ;;  %v15428_v61 = vpop.f32.mrb[103].mxu0  ;;  %v15430_v55 = vpop.eup %12031  ;;  %v4049_v26 = vadd.f32 %v4048_v19, %v3959_v57  ;;  %v3918_v28 = vmul.f32 %v12030_v25, %v15274_v4  ;;  %12051 = vpow2.f32 %v10120_v27  ;;  %v15435_v56 = vadd.f32 %v16826_v53, %v15291_v42  ;;  %v16828_v27 = vld [vmem:[#allocation49_spill] sm:$0xff] }
 0x3b6   : > { %16825 = vst [vmem:[#allocation46_spill] sm:$0xff] %v15428_v61  ;;  %v12034_v16 = vpop.eup %12033  ;;  %v4030_v15 = vadd.f32 %v4029_v11, %v4028_v49  ;;  %v4087_v46 = vadd.f32 %v4086_v38, %v3905_v34  ;;  %12053 = vpow2.f32 %v10299_v60  ;;  %v15438_v1 = vrot.slane %v978_v3, %v16827_v2  ;;  %v15446_v34 = vpop.f32.mrb[104].mxu0 }
 0x3b7   : > { %v12036_v29 = vpop.eup %12035  ;;  %v4050_v31 = vrot.slane %v4049_v26, 4  ;;  %v4067_v61 = vadd.f32 %v4066_v22, %v3918_v28  ;;  %v3094_v47 = vadd.f32 1.0, %v12034_v16  ;;  %12055 = vpow2.f32 %v10133_v14  ;;  %16829 = vst [vmem:[#allocation48_spill] sm:$0xff] %v15446_v34  ;;  %v15448_v28 = vpop.f32.mrb[80].mxu1 }
 0x3b8   : > { %v12038_v19 = vpop.eup %12037  ;;  %v4031_v57 = vrot.slane %v4030_v15, 2  ;;  %v3261_v4 = vadd.f32 1.0, %v12036_v29  ;;  %12057 = vpow2.f32 %v10300_v21  ;;  %v15442_v25 = vadd.f32 %v16828_v27, %v15423_v35  ;;  %16830 = vst [vmem:[#allocation72_spill] sm:$0xff] %v15448_v28  ;;  %v15466_v54 = vpop.f32.mrb[105].mxu0 }
 0x3b9   : > { %v12040_v53 = vpop.eup %12039  ;;  %v4051_v49 = vadd.f32 %v4050_v31, %v4049_v26  ;;  %12059 = vrcp.f32 %v3094_v47  ;;  %v3095_v38 = vadd.f32 1.0, %v12038_v19  ;;  %v10134_v3 = vmul.f32 -1.442695, %v15405_v40  ;;  %v16831_v31 = vld [vmem:[#allocation73_spill] sm:$0xff]  ;;  %16834 = vst [vmem:[#allocation49_spill] sm:$0xff] %v15466_v54 }
 0x3ba   : > { %v12042_v60 = vpop.eup %12041  ;;  %v4032_v11 = vadd.f32 %v4031_v57, %v4030_v15  ;;  %12061 = vrcp.f32 %v3261_v4  ;;  %v3274_v22 = vadd.f32 1.0, %v12040_v53  ;;  %v10147_v14 = vmul.f32 -1.442695, %v15420_v52 }
 0x3bb   : > { %v12044_v21 = vpop.eup %12043  ;;  %v4052_v16 = vrot.slane %v4051_v49, 2  ;;  %v3919_v2 = vmul.f32 %v12042_v60, %v15300_v20  ;;  %12063 = vrcp.f32 %v3095_v38  ;;  %v10148_v47 = vmul.f32 -1.442695, %v15435_v56  ;;  %v16832_v38 = vld [vmem:[#allocation50_spill] sm:$0xff] }
 0x3bc   : > { %v12046_v26 = vpop.eup %12045  ;;  %v4033_v29 = vrot.slane %v4032_v11, 1  ;;  %12065 = vrcp.f32 %v3274_v22  ;;  %v10093_v15 = vmul.f32 -1.442695, %v15442_v25  ;;  %v15455_v19 = vadd.f32 %v16831_v31, %v15438_v1  ;;  %v16833_v22 = vld [vmem:[#allocation74_spill] sm:$0xff] }
 0x3bd   : > { %v12048_v57 = vpop.eup %12047  ;;  %v4053_v4 = vadd.f32 %v4052_v16, %v4051_v49  ;;  %v4088_v27 = vadd.f32 %v4087_v46, %v3919_v2  ;;  %v3108_v53 = vadd.f32 1.0, %v12046_v26  ;;  %12067 = vpow2.f32 %v10134_v3 }
 0x3be   : > { %v12050_v28 = vpop.eup %12049  ;;  %v3932_v20 = vmul.f32 %v12048_v57, %v15315_v43  ;;  %12069 = vpow2.f32 %v10147_v14  ;;  %v15460_v60 = vadd.f32 %v16832_v38, %v15260_v37  ;;  %v15464_v34 = vadd.f32 %v16833_v22, %v15423_v35  ;;  %v16835_v38 = vld [vmem:[#allocation75_spill] sm:$0xff] }
 0x3bf   : > { %v12052_v31 = vpop.eup %12051  ;;  %v4034_v18 = vadd.f32 %v4033_v29, %v4032_v11  ;;  %v4054_v49 = vrot.slane %v4053_v4, 1  ;;  %12071 = vrcp.f32 %v3108_v53  ;;  %v3275_v46 = vadd.f32 1.0, %v12050_v28 }
 0x3c0   : > { %v12054_v3 = vpop.eup %12053  ;;  %v4068_v16 = vadd.f32 %v4067_v61, %v3932_v20  ;;  %v3109_v2 = vadd.f32 1.0, %v12052_v31  ;;  %12073 = vpow2.f32 %v10093_v15  ;;  %v10094_v43 = vmul.f32 -1.442695, %v15455_v19  ;;  %v16836_v20 = vld [vmem:[#allocation76_spill] sm:$0xff]  ;;  %v15479_v31 = vpop.f32.mrb[81].mxu1 }
 0x3c1   : > { %v12056_v14 = vpop.eup %12055  ;;  %v4055_v26 = vadd.f32 %v4054_v49, %v4053_v4  ;;  %12075 = vrcp.f32 %v3275_v46  ;;  %v3288_v57 = vadd.f32 1.0, %v12054_v3  ;;  %v15471_v22 = vadd.f32 %v16835_v38, %v15291_v42  ;;  %v15495_v38 = vpop.f32.mrb[82].mxu1 }
 0x3c2   : > { %v12058_v54 = vpop.eup %12057  ;;  %12077 = vrcp.f32 %v3109_v2  ;;  %v3122_v11 = vadd.f32 1.0, %v12056_v14  ;;  %v10161_v29 = vmul.f32 -1.442695, %v15460_v60  ;;  %v10107_v28 = vmul.f32 -1.442695, %v15464_v34  ;;  %16837 = vst [vmem:[#allocation73_spill] sm:$0xff] %v15495_v38 }
 0x3c3   : > { %v12060_v61 = vpop.eup %12059  ;;  %v4281_v53 = vcombine.low %v4034_v18, %v4055_v26  ;;  %12079 = vrcp.f32 %v3288_v57  ;;  %v3289_v15 = vadd.f32 1.0, %v12058_v54  ;;  %v15477_v4 = vadd.f32 %v16836_v20, %v15438_v1  ;;  %v15493_v57 = vpop.f32.mrb[106].mxu0 }
 0x3c4   : > { %v12062_v49 = vpop.eup %12061  ;;  %v3752_v46 = vmul.f32 %v15430_v55, %v15280_v8  ;;  %v3766_v3 = vmul.f32 %v12060_v61, %v15333_v45  ;;  %12081 = vrcp.f32 %v3122_v11  ;;  %v15486_v2 = vadd.f32 %v15031_v6, %v15260_v37 }
 0x3c5   : > { %v12064_v18 = vpop.eup %12063  ;;  %v15489_v54 = vrot.slane %v4281_v53, %v15327_v30  ;;  %v3933_v14 = vmul.f32 %v12062_v49, %v15340_v13  ;;  %12083 = vrcp.f32 %v3289_v15  ;;  %v10162_v26 = vmul.f32 -1.442695, %v15471_v22  ;;  %v15502_v15 = vpop.f32.mrb[107].mxu0 }
 0x3c6   : > { %v12066_v8 = vpop.eup %12065  ;;  %v3753_v45 = vmul.f32 %v12044_v21, %v15305_v17  ;;  %v4098_v55 = vadd.f32 %v3766_v3, %v3752_v46  ;;  %v3767_v6 = vmul.f32 %v12064_v18, %v15344_v0  ;;  %12085 = vpow2.f32 %v10148_v47  ;;  %v15508_v0 = vpop.f32.mrb[83].mxu1 }
 0x3c7   : > { %v12068_v11 = vpop.eup %12067  ;;  %v4089_v53 = vadd.f32 %v4088_v27, %v3933_v14  ;;  %v3946_v13 = vmul.f32 %v12066_v8, %v15348_v58  ;;  %12087 = vpow2.f32 %v10094_v43  ;;  %v15506_v17 = vadd.f32 %v15038_v44, %v15423_v35 }
 0x3c8   : > { %v12070_v20 = vpop.eup %12069  ;;  %v4119_v49 = vadd.f32 %v3767_v6, %v3753_v45  ;;  %v3123_v38 = vadd.f32 1.0, %v12068_v11  ;;  %12089 = vpow2.f32 %v10161_v29  ;;  %v15512_v58 = vadd.f32 %v15040_v62, %v15291_v42 }
 0x3c9   : > { %v12072_v21 = vpop.eup %12071  ;;  %v4069_v47 = vadd.f32 %v4068_v16, %v3946_v13  ;;  %v3136_v46 = vadd.f32 1.0, %v12070_v20  ;;  %12091 = vpow2.f32 %v10107_v28  ;;  %v10108_v29 = vmul.f32 -1.442695, %v15477_v4  ;;  %v15527_v20 = vpop.f32.mrb[108].mxu0 }
 0x3ca   : > { %v12074_v27 = vpop.eup %12073  ;;  %v3780_v43 = vmul.f32 %v12072_v21, %v15352_v7  ;;  %12093 = vrcp.f32 %v3123_v38  ;;  %v15518_v44 = vadd.f32 %v15045_v9, %v15438_v1  ;;  %v10175_v16 = vmul.f32 -1.442695, %v15486_v2 }
 0x3cb   : > { %v12076_v3 = vpop.eup %12075  ;;  %12095 = vrcp.f32 %v3136_v46  ;;  %v3082_v18 = vadd.f32 1.0, %v12074_v27  ;;  %v10121_v8 = vmul.f32 -1.442695, %v15506_v17  ;;  %v10176_v45 = vmul.f32 -1.442695, %v15512_v58  ;;  %v15536_v46 = vpop.f32.mrb[109].mxu0 }
 0x3cc   : > { %v12078_v28 = vpop.eup %12077  ;;  %v4099_v14 = vadd.f32 %v4098_v55, %v3780_v43  ;;  %v3947_v62 = vmul.f32 %v12076_v3, %v15373_v39  ;;  %12097 = vpow2.f32 %v10162_v26  ;;  %v10122_v13 = vmul.f32 -1.442695, %v15518_v44  ;;  %v15529_v55 = vpop.f32.mrb[84].mxu1 }
 0x3cd   : > { %v12080_v7 = vpop.eup %12079  ;;  %v3781_v38 = vmul.f32 %v12078_v28, %v15377_v41  ;;  %12099 = vrcp.f32 %v3082_v18  ;;  %v15534_v41 = vadd.f32 %v15047_v50, %v15260_v37  ;;  %v15547_v50 = vadd.f32 %v15053_v36, %v15423_v35 }
 0x3ce   : > { %v12082_v9 = vpop.eup %12081  ;;  %v4090_v6 = vadd.f32 %v4089_v53, %v3947_v62  ;;  %v3960_v11 = vmul.f32 %v12080_v7, %v15383_v10  ;;  %12101 = vpow2.f32 %v10108_v29  ;;  %v15538_v53 = vpop.f32.mrb[85].mxu1  ;;  %v15552_v7 = vadd.f32 %v15055_v32, %v15291_v42 }
 0x3cf   : > { %v12084_v39 = vpop.eup %12083  ;;  %v4120_v26 = vadd.f32 %v4119_v49, %v3781_v38  ;;  %v3794_v21 = vmul.f32 %v12082_v9, %v15388_v24  ;;  %12103 = vpow2.f32 %v10175_v16  ;;  %v15541_v29 = vpop.f32.mrb[110].mxu0 }
 0x3d0   : > { %v12086_v10 = vpop.eup %12085  ;;  %v4070_v27 = vadd.f32 %v4069_v47, %v3960_v11  ;;  %v3961_v43 = vmul.f32 %v12084_v39, %v15392_v48  ;;  %12105 = vpow2.f32 %v10121_v8  ;;  %v15543_v3 = vpop.f32.mrb[86].mxu1  ;;  %v10189_v8 = vmul.f32 -1.442695, %v15534_v41 }
 0x3d1   : > { %16838 = vst [vmem:[#allocation50_spill] sm:$0xff] %v15543_v3  ;;  %v12088_v49 = vpop.eup %12087  ;;  %v4100_v24 = vadd.f32 %v4099_v14, %v3794_v21  ;;  %v3137_v18 = vadd.f32 1.0, %v12086_v10  ;;  %12107 = vpow2.f32 %v10176_v45 }
 0x3d2   : > { %v12090_v16 = vpop.eup %12089  ;;  %v4071_v28 = vrot.slane %v4070_v27, 4  ;;  %v4091_v62 = vadd.f32 %v4090_v6, %v3961_v43  ;;  %12109 = vpow2.f32 %v10122_v13  ;;  %v3083_v9 = vadd.f32 1.0, %v12088_v49 }
 0x3d3   : > { %v12092_v47 = vpop.eup %12091  ;;  %12111 = vrcp.f32 %v3137_v18  ;;  %v3150_v48 = vadd.f32 1.0, %v12090_v16  ;;  %v10135_v6 = vmul.f32 -1.442695, %v15547_v50  ;;  %v15558_v13 = vadd.f32 %v15059_v33, %v15438_v1  ;;  %v15565_v33 = vpop.f32.mrb[111].mxu0 }
 0x3d4   : > { %v12094_v14 = vpop.eup %12093  ;;  %v4072_v38 = vadd.f32 %v4071_v28, %v4070_v27  ;;  %v4092_v45 = vrot.slane %v4091_v62, 4  ;;  %v3096_v11 = vadd.f32 1.0, %v12092_v47  ;;  %16839 = vst [vmem:[#allocation74_spill] sm:$0xff] %v15565_v33 }
 0x3d5   : > { %v12096_v36 = vpop.eup %12095  ;;  %v3795_v39 = vmul.f32 %v12094_v14, %v15405_v40  ;;  %12113 = vrcp.f32 %v3150_v48  ;;  %v15563_v40 = vadd.f32 %v15071_v23, %v15260_v37 }
 0x3d6   : > { %v12098_v21 = vpop.eup %12097  ;;  %v4073_v10 = vrot.slane %v4072_v38, 2  ;;  %v4093_v43 = vadd.f32 %v4092_v45, %v4091_v62  ;;  %v3808_v32 = vmul.f32 %v12096_v36, %v15420_v52  ;;  %12115 = vrcp.f32 %v3096_v11  ;;  %v16840_v36 = vld [vmem:[#allocation51_spill] sm:$0xff] }
 0x3d7   : > { %v12100_v27 = vpop.eup %12099  ;;  %v4121_v18 = vadd.f32 %v4120_v26, %v3795_v39  ;;  %v3151_v49 = vadd.f32 1.0, %v12098_v21  ;;  %12117 = vpow2.f32 %v10189_v8  ;;  %v10190_v52 = vmul.f32 -1.442695, %v15552_v7 }
 0x3d8   : > { %v12102_v16 = vpop.eup %12101  ;;  %v4074_v28 = vadd.f32 %v4073_v10, %v4072_v38  ;;  %v4094_v47 = vrot.slane %v4093_v43, 2  ;;  %v4101_v48 = vadd.f32 %v4100_v24, %v3808_v32  ;;  %12119 = vrcp.f32 %v3083_v9 }
 0x3d9   : > { %v12104_v14 = vpop.eup %12103  ;;  %12121 = vrcp.f32 %v3151_v49  ;;  %v3097_v62 = vadd.f32 1.0, %v12102_v16  ;;  %v15570_v26 = vadd.f32 %v15079_v63, %v15423_v35  ;;  %v10136_v9 = vmul.f32 -1.442695, %v15558_v13 }
 0x3da   : > { %v12106_v8 = vpop.eup %12105  ;;  %v4075_v45 = vrot.slane %v4074_v28, 1  ;;  %v4095_v23 = vadd.f32 %v4094_v47, %v4093_v43  ;;  %v3164_v11 = vadd.f32 1.0, %v12104_v14  ;;  %12123 = vpow2.f32 %v10135_v6  ;;  %v15581_v47 = vpop.f32.mrb[87].mxu1 }
 0x3db   : > { %v12108_v38 = vpop.eup %12107  ;;  %12125 = vrcp.f32 %v3097_v62  ;;  %v3110_v24 = vadd.f32 1.0, %v12106_v8  ;;  %v15575_v39 = vadd.f32 %v16840_v36, %v15291_v42  ;;  %v10203_v6 = vmul.f32 -1.442695, %v15563_v40  ;;  %16841 = vst [vmem:[#allocation75_spill] sm:$0xff] %v15581_v47  ;;  %v16844_v36 = vld [vmem:[#allocation78_spill] sm:$0xff] }
 0x3dc   : > { %v12110_v21 = vpop.eup %12109  ;;  %v15577_v10 = vadd.f32 %v4075_v45, %v4074_v28  ;;  %v4096_v32 = vrot.slane %v4095_v23, 1  ;;  %12127 = vrcp.f32 %v3164_v11  ;;  %v3165_v63 = vadd.f32 1.0, %v12108_v38  ;;  %v16842_v28 = vld [vmem:[#allocation52_spill] sm:$0xff]  ;;  %v16843_v38 = vld [vmem:[#allocation77_spill] sm:$0xff] }
 0x3dd   : > { %v12112_v49 = vpop.eup %12111  ;;  %12129 = vrcp.f32 %v3110_v24  ;;  %v3111_v43 = vadd.f32 1.0, %v12110_v21  ;;  %v10149_v16 = vmul.f32 -1.442695, %v15570_v26  ;;  %v15588_v8 = vadd.f32 %v16842_v28, %v15438_v1 }
 0x3de   : > { %v15583_v14 = vadd.f32 %v4096_v32, %v4095_v23  ;;  %v3809_v62 = vmul.f32 %v12112_v49, %v15435_v56  ;;  %12131 = vrcp.f32 %v3165_v63  ;;  %v10204_v11 = vmul.f32 -1.442695, %v15575_v39 }
 0x3df   : > { %v12114_v45 = vpop.eup %12113  ;;  %12133 = vrcp.f32 %v3111_v43  ;;  %v15593_v24 = vadd.f32 %v16843_v38, %v15260_v37  ;;  %v15597_v21 = vadd.f32 %v16844_v36, %v15423_v35  ;;  %v3754_v43 = vmul.f32 %v12100_v27, %v15442_v25  ;;  %v16845_v38 = vld [vmem:[#allocation79_spill] sm:$0xff]  ;;  %v16846_v25 = vld [vmem:[#allocation80_spill] sm:$0xff] }
 0x3e0   : > { %v12116_v23 = vpop.eup %12115  ;;  %v4122_v32 = vadd.f32 %v4121_v18, %v3809_v62  ;;  %v3822_v63 = vmul.f32 %v12114_v45, %v15460_v60  ;;  %12135 = vpow2.f32 %v10190_v52  ;;  %v15606_v61 = vadd.f32 %v16845_v38, %v15291_v42  ;;  %v15616_v52 = vpop.f32.mrb[88].mxu1 }
 0x3e1   : > { %v12118_v49 = vpop.eup %12117  ;;  %v3768_v28 = vmul.f32 %v12116_v23, %v15464_v34  ;;  %12137 = vpow2.f32 %v10136_v9  ;;  %v10150_v56 = vmul.f32 -1.442695, %v15588_v8  ;;  %v10217_v60 = vmul.f32 -1.442695, %v15593_v24  ;;  %v15614_v34 = vpop.f32.mrb[112].mxu0  ;;  %16848 = vst [vmem:[#allocation51_spill] sm:$0xff] %v15616_v52 }
 0x3e2   : > { %v12120_v36 = vpop.eup %12119  ;;  %v4102_v47 = vadd.f32 %v4101_v48, %v3822_v63  ;;  %v3178_v33 = vadd.f32 1.0, %v12118_v49  ;;  %12139 = vpow2.f32 %v10203_v6  ;;  %v15612_v27 = vadd.f32 %v16846_v25, %v15438_v1  ;;  %16847 = vst [vmem:[#allocation76_spill] sm:$0xff] %v15614_v34  ;;  %v15626_v23 = vpop.f32.mrb[89].mxu1 }
 0x3e3   : > { %v12122_v18 = vpop.eup %12121  ;;  %v4140_v62 = vadd.f32 %v3768_v28, %v3754_v43  ;;  %12141 = vpow2.f32 %v10149_v16  ;;  %v10163_v6 = vmul.f32 -1.442695, %v15597_v21  ;;  %v15622_v45 = vadd.f32 %v15107_v5, %v15260_v37  ;;  %v15624_v16 = vpop.f32.mrb[113].mxu0  ;;  %16850 = vst [vmem:[#allocation77_spill] sm:$0xff] %v15626_v23 }
 0x3e4   : > { %v12124_v9 = vpop.eup %12123  ;;  %v3823_v48 = vmul.f32 %v12122_v18, %v15471_v22  ;;  %12143 = vrcp.f32 %v3178_v33  ;;  %16849 = vst [vmem:[#allocation52_spill] sm:$0xff] %v15624_v16  ;;  %v10218_v43 = vmul.f32 -1.442695, %v15606_v61  ;;  %v15629_v28 = vpop.f32.mrb[114].mxu0  ;;  %v3755_v33 = vmul.f32 %v12120_v36, %v15455_v19  ;;  %v16855_v36 = vld [vmem:[#allocation53_spill] sm:$0xff] }
 0x3e5   : > { %v12126_v63 = vpop.eup %12125  ;;  %v3124_v49 = vadd.f32 1.0, %v12124_v9  ;;  %12145 = vpow2.f32 %v10204_v11  ;;  %16851 = vst [vmem:[#allocation78_spill] sm:$0xff] %v15629_v28  ;;  %v15631_v38 = vpop.f32.mrb[90].mxu1  ;;  %v10164_v9 = vmul.f32 -1.442695, %v15612_v27 }
 0x3e6   : > { %16852 = vst [vmem:[#allocation79_spill] sm:$0xff] %v15631_v38  ;;  %v12128_v22 = vpop.eup %12127  ;;  %v4123_v18 = vadd.f32 %v4122_v32, %v3823_v48  ;;  %v3769_v5 = vmul.f32 %v12126_v63, %v15477_v4  ;;  %12147 = vpow2.f32 %v10150_v56  ;;  %v15635_v25 = vpop.f32.mrb[115].mxu0  ;;  %v10231_v19 = vmul.f32 -1.442695, %v15622_v45 }
 0x3e7   : > { %16853 = vst [vmem:[#allocation80_spill] sm:$0xff] %v15635_v25  ;;  %v15637_v16 = vpop.f32.mrb[91].mxu1  ;;  %v12130_v23 = vpop.eup %12129  ;;  %v3836_v11 = vmul.f32 %v12128_v22, %v15486_v2  ;;  %12149 = vrcp.f32 %v3124_v49  ;;  %v15646_v48 = vadd.f32 %v16855_v36, %v15423_v35 }
 0x3e8   : > { %16854 = vst [vmem:[#allocation92_spill] sm:$0xff] %v15637_v16  ;;  %v12132_v28 = vpop.eup %12131  ;;  %v4161_v52 = vadd.f32 %v3769_v5, %v3755_v33  ;;  %v3782_v38 = vmul.f32 %v12130_v23, %v15506_v17  ;;  %12151 = vpow2.f32 %v10217_v60 }
 0x3e9   : > { %v12134_v32 = vpop.eup %12133  ;;  %v4103_v4 = vadd.f32 %v4102_v47, %v3836_v11  ;;  %v3837_v56 = vmul.f32 %v12132_v28, %v15512_v58  ;;  %12153 = vpow2.f32 %v10163_v6  ;;  %v16856_v58 = vld [vmem:[#allocation54_spill] sm:$0xff]  ;;  %v15657_v28 = vpop.f32.mrb[116].mxu0 }
 0x3ea   : > { %v12136_v2 = vpop.eup %12135  ;;  %v4141_v63 = vadd.f32 %v4140_v62, %v3782_v38  ;;  %v3783_v49 = vmul.f32 %v12134_v32, %v15518_v44  ;;  %12155 = vpow2.f32 %v10218_v43  ;;  %v15655_v6 = vadd.f32 %v16856_v58, %v15291_v42  ;;  %16857 = vst [vmem:[#allocation53_spill] sm:$0xff] %v15657_v28  ;;  %v15659_v62 = vpop.f32.mrb[92].mxu1 }
 0x3eb   : > { %v12138_v22 = vpop.eup %12137  ;;  %v15649_v33 = vadd.f32 %v4123_v18, %v3837_v56  ;;  %v3179_v17 = vadd.f32 1.0, %v12136_v2  ;;  %12157 = vpow2.f32 %v10164_v9  ;;  %16858 = vst [vmem:[#allocation54_spill] sm:$0xff] %v15659_v62  ;;  %v10177_v38 = vmul.f32 -1.442695, %v15646_v48  ;;  %v15662_v18 = vpop.f32.mrb[117].mxu0 }
 0x3ec   : > { %v12140_v60 = vpop.eup %12139  ;;  %v15651_v23 = vadd.f32 %v4161_v52, %v3783_v49  ;;  %v3125_v47 = vadd.f32 1.0, %v12138_v22  ;;  %12159 = vpow2.f32 %v10231_v19  ;;  %16859 = vst [vmem:[#allocation93_spill] sm:$0xff] %v15662_v18  ;;  %v10232_v56 = vmul.f32 -1.442695, %v15655_v6  ;;  %v15666_v22 = vpop.f32.mrb[93].mxu1 }
 0x3ed   : > { %v12142_v44 = vpop.eup %12141  ;;  %12161 = vrcp.f32 %v3179_v17  ;;  %v3192_v43 = vadd.f32 1.0, %v12140_v60  ;;  %16860 = vst [vmem:[#allocation94_spill] sm:$0xff] %v15666_v22 }
 0x3ee   : > { %v12144_v5 = vpop.eup %12143  ;;  %12163 = vrcp.f32 %v3125_v47  ;;  %v3138_v52 = vadd.f32 1.0, %v12142_v44  ;;  %v16861_v47 = vld [vmem:[#allocation55_spill] sm:$0xff] }
 0x3ef   : > { %v12146_v11 = vpop.eup %12145  ;;  %v3850_v9 = vmul.f32 %v12144_v5, %v15534_v41  ;;  %12165 = vrcp.f32 %v3192_v43  ;;  %v15671_v58 = vadd.f32 %v16861_v47, %v15438_v1  ;;  %v16862_v43 = vld [vmem:[#allocation81_spill] sm:$0xff] }
 0x3f0   : > { %v12148_v19 = vpop.eup %12147  ;;  %12167 = vrcp.f32 %v3138_v52  ;;  %v3193_v32 = vadd.f32 1.0, %v12146_v11  ;;  %v15675_v5 = vadd.f32 %v16862_v43, %v15260_v37 }
 0x3f1   : > { %v12150_v36 = vpop.eup %12149  ;;  %v4104_v2 = vadd.f32 %v4103_v4, %v3850_v9  ;;  %v3139_v49 = vadd.f32 1.0, %v12148_v19  ;;  %12169 = vpow2.f32 %v10177_v38  ;;  %v16863_v4 = vld [vmem:[#allocation82_spill] sm:$0xff]  ;;  %v10178_v47 = vmul.f32 -1.442695, %v15671_v58 }
 0x3f2   : > { %v12152_v17 = vpop.eup %12151  ;;  %v3796_v60 = vmul.f32 %v12150_v36, %v15547_v50  ;;  %12171 = vrcp.f32 %v3193_v32  ;;  %v15679_v38 = vadd.f32 %v16863_v4, %v15423_v35  ;;  %v15683_v50 = vadd.f32 %v15147_v51, %v15291_v42  ;;  %v16864_v51 = vld [vmem:[#allocation83_spill] sm:$0xff] }
 0x3f3   : > { %v12154_v41 = vpop.eup %12153  ;;  %12173 = vrcp.f32 %v3139_v49  ;;  %v3206_v44 = vadd.f32 1.0, %v12152_v17  ;;  %v15687_v36 = vadd.f32 %v15149_v12, %v15438_v1 }
 0x3f4   : > { %v12156_v52 = vpop.eup %12155  ;;  %v4142_v11 = vadd.f32 %v4141_v63, %v3796_v60  ;;  %v3152_v9 = vadd.f32 1.0, %v12154_v41  ;;  %12175 = vpow2.f32 %v10232_v56  ;;  %v10245_v56 = vmul.f32 -1.442695, %v15675_v5 }
 0x3f5   : > { %v12158_v19 = vpop.eup %12157  ;;  %12177 = vrcp.f32 %v3206_v44  ;;  %v3207_v32 = vadd.f32 1.0, %v12156_v52  ;;  %v15693_v60 = vadd.f32 %v16864_v51, %v15260_v37  ;;  %v10191_v12 = vmul.f32 -1.442695, %v15679_v38  ;;  %v15698_v52 = vpop.f32.mrb[118].mxu0  ;;  %v16867_v51 = vld [vmem:[#allocation84_spill] sm:$0xff] }
 0x3f6   : > { %v12160_v49 = vpop.eup %12159  ;;  %12179 = vrcp.f32 %v3152_v9  ;;  %v3153_v17 = vadd.f32 1.0, %v12158_v19  ;;  %v10246_v4 = vmul.f32 -1.442695, %v15683_v50  ;;  %16865 = vst [vmem:[#allocation55_spill] sm:$0xff] %v15698_v52  ;;  %v15700_v9 = vpop.f32.mrb[94].mxu1  ;;  %v15706_v22 = vadd.f32 %v16867_v51, %v15423_v35  ;;  %v16868_v52 = vld [vmem:[#allocation85_spill] sm:$0xff] }
 0x3f7   : > { %v12162_v43 = vpop.eup %12161  ;;  %12181 = vrcp.f32 %v3207_v32  ;;  %v3220_v63 = vadd.f32 1.0, %v12160_v49  ;;  %16866 = vst [vmem:[#allocation81_spill] sm:$0xff] %v15700_v9  ;;  %v10192_v49 = vmul.f32 -1.442695, %v15687_v36  ;;  %v15712_v18 = vadd.f32 %v16868_v52, %v15291_v42  ;;  %v15714_v9 = vpop.f32.mrb[119].mxu0 }
 0x3f8   : > { %v12164_v41 = vpop.eup %12163  ;;  %v3851_v44 = vmul.f32 %v12162_v43, %v15552_v7  ;;  %12183 = vrcp.f32 %v3153_v17  ;;  %16869 = vst [vmem:[#allocation82_spill] sm:$0xff] %v15714_v9  ;;  %v10259_v62 = vmul.f32 -1.442695, %v15693_v60 }
 0x3f9   : > { %v12166_v19 = vpop.eup %12165  ;;  %v3797_v32 = vmul.f32 %v12164_v41, %v15558_v13  ;;  %12185 = vrcp.f32 %v3220_v63  ;;  %v15716_v13 = vpop.f32.mrb[95].mxu1 }
 0x3fa   : > { %v12168_v7 = vpop.eup %12167  ;;  %v4125_v17 = vadd.f32 %v15649_v33, %v3851_v44  ;;  %v3864_v43 = vmul.f32 %v12166_v19, %v15563_v40  ;;  %12187 = vpow2.f32 %v10178_v47  ;;  %16870 = vst [vmem:[#allocation83_spill] sm:$0xff] %v15716_v13  ;;  %v16871_v47 = vld [vmem:[#allocation86_spill] sm:$0xff] }
 0x3fb   : > { %v12170_v63 = vpop.eup %12169  ;;  %v4163_v41 = vadd.f32 %v15651_v23, %v3797_v32  ;;  %v3810_v51 = vmul.f32 %v12168_v7, %v15570_v26  ;;  %12189 = vpow2.f32 %v10245_v56  ;;  %v15723_v52 = vadd.f32 %v16871_v47, %v15438_v1  ;;  %v16872_v23 = vld [vmem:[#allocation87_spill] sm:$0xff]  ;;  %v15741_v47 = vpop.f32.mrb[96].mxu1 }
 0x3fc   : > { %v12172_v33 = vpop.eup %12171  ;;  %v4105_v44 = vadd.f32 %v4104_v2, %v3864_v43  ;;  %v3166_v40 = vadd.f32 1.0, %v12170_v63  ;;  %12191 = vpow2.f32 %v10191_v12  ;;  %v15728_v32 = vadd.f32 %v16872_v23, %v15260_v37  ;;  %v16873_v12 = vld [vmem:[#allocation88_spill] sm:$0xff]  ;;  %16875 = vst [vmem:[#allocation85_spill] sm:$0xff] %v15741_v47 }
 0x3fd   : > { %v12174_v19 = vpop.eup %12173  ;;  %v4143_v9 = vadd.f32 %v4142_v11, %v3810_v51  ;;  %v3865_v13 = vmul.f32 %v12172_v33, %v15575_v39  ;;  %12193 = vpow2.f32 %v10246_v4  ;;  %v10205_v2 = vmul.f32 -1.442695, %v15706_v22 }
 0x3fe   : > { %v12176_v26 = vpop.eup %12175  ;;  %v3811_v56 = vmul.f32 %v12174_v19, %v15588_v8  ;;  %12195 = vrcp.f32 %v3166_v40  ;;  %v15734_v7 = vadd.f32 %v16873_v12, %v15423_v35  ;;  %v10260_v39 = vmul.f32 -1.442695, %v15712_v18  ;;  %v15739_v40 = vpop.f32.mrb[120].mxu0 }
 0x3ff   : > { %v12178_v43 = vpop.eup %12177  ;;  %v4126_v63 = vadd.f32 %v4125_v17, %v3865_v13  ;;  %v3221_v11 = vadd.f32 1.0, %v12176_v26  ;;  %12197 = vpow2.f32 %v10192_v49  ;;  %v10206_v8 = vmul.f32 -1.442695, %v15723_v52  ;;  %16874 = vst [vmem:[#allocation84_spill] sm:$0xff] %v15739_v40  ;;  %v15745_v49 = vpop.f32.mrb[121].mxu0 }
 0x400   : > { %v12180_v4 = vpop.eup %12179  ;;  %v4164_v51 = vadd.f32 %v4163_v41, %v3811_v56  ;;  %v3878_v33 = vmul.f32 %v12178_v43, %v15593_v24  ;;  %12199 = vpow2.f32 %v10259_v62  ;;  %v10273_v17 = vmul.f32 -1.442695, %v15728_v32  ;;  %16876 = vst [vmem:[#allocation86_spill] sm:$0xff] %v15745_v49  ;;  %v15747_v13 = vpop.f32.mrb[97].mxu1 }
 0x401   : > { %v12182_v19 = vpop.eup %12181  ;;  %v3824_v23 = vmul.f32 %v12180_v4, %v15597_v21  ;;  %12201 = vrcp.f32 %v3221_v11  ;;  %16877 = vst [vmem:[#allocation87_spill] sm:$0xff] %v15747_v13  ;;  %v10219_v62 = vmul.f32 -1.442695, %v15734_v7  ;;  %v15751_v56 = vpop.f32.mrb[122].mxu0  ;;  %v16880_v4 = vld [vmem:[#allocation89_spill] sm:$0xff] }
 0x402   : > { %v12184_v41 = vpop.eup %12183  ;;  %v4106_v26 = vadd.f32 %v4105_v44, %v3878_v33  ;;  %v3879_v24 = vmul.f32 %v12182_v19, %v15606_v61  ;;  %12203 = vpow2.f32 %v10205_v2  ;;  %16878 = vst [vmem:[#allocation88_spill] sm:$0xff] %v15751_v56  ;;  %v15753_v12 = vpop.f32.mrb[98].mxu1  ;;  %v15758_v49 = vadd.f32 %v16880_v4, %v15291_v42  ;;  %v15817_v56 = vld [vmem:[#allocation9 + $0x8] sm:$0x3f] }
 0x403   : > { %16879 = vst [vmem:[#allocation95_spill] sm:$0xff] %v15753_v12  ;;  %v12186_v43 = vpop.eup %12185  ;;  %v4144_v21 = vadd.f32 %v4143_v9, %v3824_v23  ;;  %v3825_v11 = vmul.f32 %v12184_v41, %v15612_v27  ;;  %12205 = vpow2.f32 %v10260_v39  ;;  %v15760_v13 = vpop.f32.mrb[123].mxu0  ;;  %v16883_v41 = vld [vmem:[#allocation90_spill] sm:$0xff] }
 0x404   : > { %16881 = vst [vmem:[#allocation89_spill] sm:$0xff] %v15760_v13  ;;  %v15762_v44 = vpop.f32.mrb[99].mxu1  ;;  %v12188_v61 = vpop.eup %12187  ;;  %v4127_v2 = vadd.f32 %v4126_v63, %v3879_v24  ;;  %v3892_v33 = vmul.f32 %v12186_v43, %v15622_v45  ;;  %12207 = vpow2.f32 %v10206_v8  ;;  %v15771_v4 = vadd.f32 %v16883_v41, %v15438_v1 }
 0x405   : > { %16882 = vst [vmem:[#allocation96_spill] sm:$0xff] %v15762_v44  ;;  %v12190_v19 = vpop.eup %12189  ;;  %v15765_v12 = vadd.f32 %v4164_v51, %v3825_v11  ;;  %v3167_v9 = vadd.f32 1.0, %v12188_v61  ;;  %12209 = vpow2.f32 %v10273_v17  ;;  %v10274_v45 = vmul.f32 -1.442695, %v15758_v49 }
 0x406   : > { %v12192_v27 = vpop.eup %12191  ;;  %v15767_v39 = vadd.f32 %v4106_v26, %v3892_v33  ;;  %v3234_v23 = vadd.f32 1.0, %v12190_v19  ;;  %12211 = vpow2.f32 %v10219_v62  ;;  %v10220_v62 = vmul.f32 -1.442695, %v15771_v4 }
 0x407   : > { %v12194_v44 = vpop.eup %12193  ;;  %12213 = vrcp.f32 %v3167_v9  ;;  %v3180_v63 = vadd.f32 1.0, %v12192_v27  ;;  %v16884_v27 = vld [vmem:[#allocation56_spill] sm:$0xff] }
 0x408   : > { %v12196_v8 = vpop.eup %12195  ;;  %12215 = vrcp.f32 %v3234_v23  ;;  %v3235_v51 = vadd.f32 1.0, %v12194_v44  ;;  %v15779_v44 = vadd.f32 %v16884_v27, %v15260_v37 }
 0x409   : > { %v12198_v24 = vpop.eup %12197  ;;  %v3838_v17 = vmul.f32 %v12196_v8, %v15646_v48  ;;  %12217 = vrcp.f32 %v3180_v63  ;;  %v16885_v48 = vld [vmem:[#allocation57_spill] sm:$0xff]  ;;  %v16886_v8 = vld [vmem:[#allocation58_spill] sm:$0xff] }
 0x40a   : > { %v12200_v26 = vpop.eup %12199  ;;  %12219 = vrcp.f32 %v3235_v51  ;;  %v3181_v43 = vadd.f32 1.0, %v12198_v24  ;;  %v15783_v23 = vadd.f32 %v16885_v48, %v15423_v35 }
 0x40b   : > { %v12202_v11 = vpop.eup %12201  ;;  %v4145_v61 = vadd.f32 %v4144_v21, %v3838_v17  ;;  %v3248_v33 = vadd.f32 1.0, %v12200_v26  ;;  %12221 = vpow2.f32 %v10274_v45  ;;  %v15787_v21 = vadd.f32 %v16886_v8, %v15291_v42  ;;  %v16887_v45 = vld [vmem:[#allocation59_spill] sm:$0xff]  ;;  %v16888_v26 = vld [vmem:[#allocation60_spill] sm:$0xff] }
 0x40c   : > { %v12204_v19 = vpop.eup %12203  ;;  %v3893_v9 = vmul.f32 %v12202_v11, %v15655_v6  ;;  %12223 = vrcp.f32 %v3181_v43  ;;  %v15791_v51 = vadd.f32 %v16887_v45, %v15438_v1  ;;  %v15795_v43 = vadd.f32 %v16888_v26, %v15260_v37  ;;  %v15810_v26 = vpop.f32.mrb[100].mxu1 }
 0x40d   : > { %v12206_v41 = vpop.eup %12205  ;;  %12225 = vrcp.f32 %v3248_v33  ;;  %v3194_v63 = vadd.f32 1.0, %v12204_v19  ;;  %v16889_v19 = vld [vmem:[#allocation61_spill] sm:$0xff]  ;;  %v10287_v45 = vmul.f32 -1.442695, %v15779_v44  ;;  %16892 = vst [vmem:[#allocation56_spill] sm:$0xff] %v15810_v26 }
 0x40e   : > { %v12208_v6 = vpop.eup %12207  ;;  %v4128_v24 = vadd.f32 %v4127_v2, %v3893_v9  ;;  %v3249_v17 = vadd.f32 1.0, %v12206_v41  ;;  %12227 = vpow2.f32 %v10220_v62  ;;  %v15799_v27 = vadd.f32 %v16889_v19, %v15423_v35  ;;  %v15803_v9 = vpop.f32.mrb[124].mxu0 }
 0x40f   : > { %v12210_v11 = vpop.eup %12209  ;;  %12229 = vrcp.f32 %v3194_v63  ;;  %v3195_v33 = vadd.f32 1.0, %v12208_v6  ;;  %v10233_v2 = vmul.f32 -1.442695, %v15783_v23  ;;  %16890 = vst [vmem:[#allocation90_spill] sm:$0xff] %v15803_v9  ;;  %v10288_v41 = vmul.f32 -1.442695, %v15787_v21 }
 0x410   : > { %v12212_v48 = vpop.eup %12211  ;;  %12231 = vrcp.f32 %v3249_v17  ;;  %v3262_v8 = vadd.f32 1.0, %v12210_v11  ;;  %v16891_v63 = vld [vmem:[#allocation39_spill] sm:$0xff]  ;;  %v10234_v11 = vmul.f32 -1.442695, %v15791_v51  ;;  %v10301_v13 = vmul.f32 -1.442695, %v15795_v43 }
 0x411   : > { %v12214_v62 = vpop.eup %12213  ;;  %12233 = vrcp.f32 %v3195_v33  ;;  %v3208_v37 = vadd.f32 1.0, %v12212_v48  ;;  %v15808_v6 = vadd.f32 %v16891_v63, %v15291_v42  ;;  %v10247_v48 = vmul.f32 -1.442695, %v15799_v27  ;;  %v16893_v42 = vld [vmem:[#allocation37_spill] sm:$0xff]  ;;  %v15823_v26 = vpop.f32.mrb[125].mxu0 }
 0x412   : > { %v12216_v19 = vpop.eup %12215  ;;  %v3839_v17 = vmul.f32 %v12214_v62, %v15671_v58  ;;  %12235 = vrcp.f32 %v3262_v8  ;;  %v15821_v63 = vrot.slane %v15817_v56, %v16893_v42  ;;  %16894 = vst [vmem:[#allocation57_spill] sm:$0xff] %v15823_v26  ;;  %v15825_v58 = vpop.f32.mrb[101].mxu1 }
 0x413   : > { %v12218_v9 = vpop.eup %12217  ;;  %v3906_v33 = vmul.f32 %v12216_v19, %v15675_v5  ;;  %12237 = vrcp.f32 %v3208_v37  ;;  %16895 = vst [vmem:[#allocation58_spill] sm:$0xff] %v15825_v58  ;;  %v16896_v5 = vld [vmem:[#allocation62_spill] sm:$0xff]  ;;  %v10302_v26 = vmul.f32 -1.442695, %v15808_v6  ;;  %v15836_v28 = vpop.f32.mrb[126].mxu0 }
 0x414   : > { %v12220_v8 = vpop.eup %12219  ;;  %v4166_v62 = vadd.f32 %v15765_v12, %v3839_v17  ;;  %v3852_v47 = vmul.f32 %v12218_v9, %v15679_v38  ;;  %12239 = vpow2.f32 %v10287_v45  ;;  %v15831_v37 = vadd.f32 %v16896_v5, %v15438_v1  ;;  %16897 = vst [vmem:[#allocation59_spill] sm:$0xff] %v15836_v28  ;;  %v15838_v58 = vpop.f32.mrb[102].mxu1  ;;  %v16899_v45 = vld [vmem:[#allocation40_spill] sm:$0xff] }
 0x415   : > { %v12222_v19 = vpop.eup %12221  ;;  %v4108_v40 = vadd.f32 %v15767_v39, %v3906_v33  ;;  %v3907_v42 = vmul.f32 %v12220_v8, %v15683_v50  ;;  %12241 = vpow2.f32 %v10233_v2  ;;  %16898 = vst [vmem:[#allocation60_spill] sm:$0xff] %v15838_v58  ;;  %v15842_v9 = vadd.f32 %v16899_v45, %v15423_v35  ;;  %v16900_v50 = vld [vmem:[#allocation64_spill] sm:$0xff]  ;;  %v15849_v33 = vpop.f32.mrb[127].mxu0 }
 0x416   : > { %v12224_v12 = vpop.eup %12223  ;;  %v4146_v17 = vadd.f32 %v4145_v61, %v3852_v47  ;;  %v3263_v38 = vadd.f32 1.0, %v12222_v19  ;;  %12243 = vpow2.f32 %v10288_v41  ;;  %v15847_v2 = vadd.f32 %v16900_v50, %v15821_v63  ;;  %16901 = vst [vmem:[#allocation61_spill] sm:$0xff] %v15849_v33  ;;  %v15851_v8 = vpop.f32.mrb[103].mxu1  ;;  %v16903_v19 = vld [vmem:[#allocation63_spill] sm:$0xff] }
 0x417   : > { %v12226_v5 = vpop.eup %12225  ;;  %v4129_v16 = vadd.f32 %v4128_v24, %v3907_v42  ;;  %v3853_v39 = vmul.f32 %v12224_v12, %v15687_v36  ;;  %12245 = vpow2.f32 %v10234_v11  ;;  %16902 = vst [vmem:[#allocation39_spill] sm:$0xff] %v15851_v8  ;;  %v10248_v41 = vmul.f32 -1.442695, %v15831_v37  ;;  %v16904_v12 = vld [vmem:[#allocation38_spill] sm:$0xff] }
 0x418   : > { %v12228_v47 = vpop.eup %12227  ;;  %v3920_v61 = vmul.f32 %v12226_v5, %v15693_v60  ;;  %12247 = vrcp.f32 %v3263_v38  ;;  %v15857_v24 = vadd.f32 %v16903_v19, %v15438_v1  ;;  %v15861_v45 = vrot.slane %v15817_v56, %v16904_v12 }
 0x419   : > { %v12230_v36 = vpop.eup %12229  ;;  %v4167_v11 = vadd.f32 %v4166_v62, %v3853_v39  ;;  %v3209_v42 = vadd.f32 1.0, %v12228_v47  ;;  %12249 = vpow2.f32 %v10301_v13  ;;  %v10261_v60 = vmul.f32 -1.442695, %v15842_v9 }
 0x41a   : > { %v12232_v50 = vpop.eup %12231  ;;  %v4109_v8 = vadd.f32 %v4108_v40, %v3920_v61  ;;  %v3866_v33 = vmul.f32 %v12230_v36, %v15706_v22  ;;  %12251 = vpow2.f32 %v10247_v48  ;;  %v10095_v19 = vmul.f32 -1.442695, %v15847_v2  ;;  %v16905_v48 = vld [vmem:[#allocation66_spill] sm:$0xff] }
 0x41b   : > { %v12234_v38 = vpop.eup %12233  ;;  %v3921_v5 = vmul.f32 %v12232_v50, %v15712_v18  ;;  %12253 = vrcp.f32 %v3209_v42  ;;  %v10262_v47 = vmul.f32 -1.442695, %v15857_v24  ;;  %v15872_v61 = vadd.f32 %v16905_v48, %v15861_v45  ;;  %v16912_v48 = vld [vmem:[#allocation41_spill] sm:$0xff] }
 0x41c   : > { %v12236_v62 = vpop.eup %12235  ;;  %v4147_v39 = vadd.f32 %v4146_v17, %v3866_v33  ;;  %v3867_v13 = vmul.f32 %v12234_v38, %v15723_v52  ;;  %12255 = vpow2.f32 %v10302_v26  ;;  %v15875_v17 = vpop.f32.mrb[104].mxu1  ;;  %v16908_v38 = vld [vmem:[#allocation91_spill] sm:$0xff] }
 0x41d   : > { %v12238_v12 = vpop.eup %12237  ;;  %v4130_v40 = vadd.f32 %v4129_v16, %v3921_v5  ;;  %v3934_v22 = vmul.f32 %v12236_v62, %v15728_v32  ;;  %12257 = vpow2.f32 %v10248_v41  ;;  %16906 = vst [vmem:[#allocation62_spill] sm:$0xff] %v15875_v17  ;;  %v15879_v16 = vpop.f32.mrb[105].mxu1 }
 0x41e   : > { %v12240_v18 = vpop.eup %12239  ;;  %v4168_v36 = vadd.f32 %v4167_v11, %v3867_v13  ;;  %v3880_v42 = vmul.f32 %v12238_v12, %v15734_v7  ;;  %12259 = vpow2.f32 %v10261_v60  ;;  %16907 = vst [vmem:[#allocation40_spill] sm:$0xff] %v15879_v16  ;;  %v15885_v11 = vadd.f32 %v16908_v38, %v15423_v35  ;;  %v15887_v7 = vpop.f32.mrb[106].mxu1 }
 0x41f   : > { %v12242_v52 = vpop.eup %12241  ;;  %v15877_v26 = vadd.f32 %v4109_v8, %v3934_v22  ;;  %v3276_v33 = vadd.f32 1.0, %v12240_v18  ;;  %12261 = vpow2.f32 %v10095_v19  ;;  %16909 = vst [vmem:[#allocation64_spill] sm:$0xff] %v15887_v7  ;;  %v10096_v8 = vmul.f32 -1.442695, %v15872_v61  ;;  %v16910_v19 = vld [vmem:[#allocation65_spill] sm:$0xff]  ;;  %v15894_v13 = vpop.f32.mrb[107].mxu1 }
 0x420   : > { %v12244_v32 = vpop.eup %12243  ;;  %v15881_v41 = vadd.f32 %v4147_v39, %v3880_v42  ;;  %v3222_v50 = vadd.f32 1.0, %v12242_v52  ;;  %12263 = vpow2.f32 %v10262_v47  ;;  %v15892_v62 = vadd.f32 %v16910_v19, %v15821_v63  ;;  %16911 = vst [vmem:[#allocation63_spill] sm:$0xff] %v15894_v13 }
 0x421   : > { %v12246_v60 = vpop.eup %12245  ;;  %12265 = vrcp.f32 %v3276_v33  ;;  %v3277_v5 = vadd.f32 1.0, %v12244_v32  ;;  %v15899_v18 = vadd.f32 %v16912_v48, %v15438_v1  ;;  %v16913_v52 = vcombine.low %v15358_v59, %v15489_v54  ;;  %v16914_v48 = vld [vmem:[#allocation67_spill] sm:$0xff]  ;;  %v16915_v59 = vld [vmem:[#allocation44_spill] sm:$0xff] }
 0x422   : > { %v12248_v39 = vpop.eup %12247  ;;  %12267 = vrcp.f32 %v3222_v50  ;;  %v3223_v47 = vadd.f32 1.0, %v12246_v60  ;;  %v10275_v50 = vmul.f32 -1.442695, %v15885_v11  ;;  %v15912_v13 = vadd.f32 %v16914_v48, %v15861_v45  ;;  %v16919_v48 = vld [vmem:[#allocation69_spill] sm:$0xff] }
 0x423   : > { %v12250_v12 = vpop.eup %12249  ;;  %v3935_v22 = vmul.f32 %v12248_v39, %v15758_v49  ;;  %12269 = vrcp.f32 %v3277_v5  ;;  %v15905_v33 = vrot.slane %v16913_v52, %v15327_v30  ;;  %v10109_v49 = vmul.f32 -1.442695, %v15892_v62 }
 0x424   : > { %v12252_v42 = vpop.eup %12251  ;;  %12271 = vrcp.f32 %v3223_v47  ;;  %v3290_v32 = vadd.f32 1.0, %v12250_v12  ;;  %v15916_v54 = vadd.f32 %v16915_v59, %v15423_v35  ;;  %v15918_v47 = vpop.f32.mrb[108].mxu1  ;;  %v15929_v59 = vadd.f32 %v16919_v48, %v15438_v1 }
 0x425   : > { %v12254_v38 = vpop.eup %12253  ;;  %v4131_v60 = vadd.f32 %v4130_v40, %v3935_v22  ;;  %v3236_v19 = vadd.f32 1.0, %v12252_v42  ;;  %12273 = vpow2.f32 %v10096_v8  ;;  %16916 = vst [vmem:[#allocation66_spill] sm:$0xff] %v15918_v47  ;;  %v10276_v8 = vmul.f32 -1.442695, %v15899_v18  ;;  %v16917_v22 = vld [vmem:[#allocation42_spill] sm:$0xff] }
 0x426   : > { %v12256_v5 = vpop.eup %12255  ;;  %v3881_v39 = vmul.f32 %v12254_v38, %v15771_v4  ;;  %12275 = vrcp.f32 %v3290_v32  ;;  %v15923_v42 = vadd.f32 %v16917_v22, %v15821_v63  ;;  %v15925_v4 = vpop.f32.mrb[109].mxu1  ;;  %v16921_v22 = vld [vmem:[#allocation45_spill] sm:$0xff] }
 0x427   : > { %v12258_v12 = vpop.eup %12257  ;;  %12277 = vrcp.f32 %v3236_v19  ;;  %v3291_v40 = vadd.f32 1.0, %v12256_v5  ;;  %16918 = vst [vmem:[#allocation91_spill] sm:$0xff] %v15925_v4  ;;  %v16920_v5 = vld [vmem:[#allocation68_spill] sm:$0xff]  ;;  %v15937_v16 = vadd.f32 %v16921_v22, %v15423_v35  ;;  %v15952_v58 = vpop.f32.mrb[110].mxu1 }
 0x428   : > { %v12260_v52 = vpop.eup %12259  ;;  %v4169_v32 = vadd.f32 %v4168_v36, %v3881_v39  ;;  %v3237_v38 = vadd.f32 1.0, %v12258_v12  ;;  %12279 = vpow2.f32 %v10275_v50  ;;  %v15933_v7 = vadd.f32 %v16920_v5, %v15861_v45  ;;  %16924 = vst [vmem:[#allocation65_spill] sm:$0xff] %v15952_v58  ;;  %v15957_v25 = vpop.f32.mrb[111].mxu1 }
 0x429   : > { %v12262_v47 = vpop.eup %12261  ;;  %12281 = vrcp.f32 %v3291_v40  ;;  %v3250_v19 = vadd.f32 1.0, %v12260_v52  ;;  %v10110_v50 = vmul.f32 -1.442695, %v15912_v13  ;;  %v10289_v39 = vmul.f32 -1.442695, %v15916_v54  ;;  %v16922_v52 = vld [vmem:[#allocation70_spill] sm:$0xff] }
 0x42a   : > { %v12264_v4 = vpop.eup %12263  ;;  %12283 = vrcp.f32 %v3237_v38  ;;  %v3084_v36 = vadd.f32 1.0, %v12262_v47  ;;  %v10123_v40 = vmul.f32 -1.442695, %v15923_v42  ;;  %v15944_v5 = vadd.f32 %v16922_v52, %v15821_v63  ;;  %v16923_v47 = vld [vmem:[#allocation71_spill] sm:$0xff]  ;;  %16925 = vst [vmem:[#allocation41_spill] sm:$0xff] %v15957_v25 }
 0x42b   : > { %v12266_v12 = vpop.eup %12265  ;;  %12285 = vrcp.f32 %v3250_v19  ;;  %v3251_v48 = vadd.f32 1.0, %v12264_v4  ;;  %v10290_v38 = vmul.f32 -1.442695, %v15929_v59  ;;  %v15950_v22 = vadd.f32 %v16923_v47, %v15438_v1  ;;  %v16926_v1 = vld [vmem:[#allocation46_spill] sm:$0xff] }
 0x42c   : > { %v12268_v17 = vpop.eup %12267  ;;  %v3948_v35 = vmul.f32 %v12266_v12, %v15779_v44  ;;  %12287 = vrcp.f32 %v3084_v36  ;;  %v10124_v28 = vmul.f32 -1.442695, %v15933_v7  ;;  %v10303_v52 = vmul.f32 -1.442695, %v15937_v16 }
 0x42d   : > { %v12270_v19 = vpop.eup %12269  ;;  %v3894_v4 = vmul.f32 %v12268_v17, %v15783_v23  ;;  %12289 = vrcp.f32 %v3251_v48  ;;  %v15963_v47 = vadd.f32 %v16926_v1, %v15861_v45  ;;  %v10137_v48 = vmul.f32 -1.442695, %v15944_v5 }
 0x42e   : > { %v12272_v44 = vpop.eup %12271  ;;  %v4111_v36 = vadd.f32 %v15877_v26, %v3948_v35  ;;  %v3949_v12 = vmul.f32 %v12270_v19, %v15787_v21  ;;  %12291 = vpow2.f32 %v10109_v49  ;;  %v10304_v26 = vmul.f32 -1.442695, %v15950_v22 }
 0x42f   : > { %v12274_v58 = vpop.eup %12273  ;;  %v4149_v23 = vadd.f32 %v15881_v41, %v3894_v4  ;;  %v3895_v17 = vmul.f32 %v12272_v44, %v15791_v51  ;;  %12293 = vpow2.f32 %v10276_v8  ;;  %v16927_v49 = vcombine.low %v15577_v10, %v15583_v14  ;;  %v16929_v10 = vld [vmem:[#allocation43_spill] sm:$0xff] }
 0x430   : > { %v12276_v34 = vpop.eup %12275  ;;  %v4132_v25 = vadd.f32 %v4131_v60, %v3949_v12  ;;  %v3085_v3 = vadd.f32 1.0, %v12274_v58  ;;  %12295 = vpow2.f32 %v10110_v50  ;;  %v10138_v58 = vmul.f32 -1.442695, %v15963_v47  ;;  %v16928_v60 = vld [vmem:[#allocation48_spill] sm:$0xff] }
 0x431   : > { %v12278_v21 = vpop.eup %12277  ;;  %v15973_v35 = vrot.slane %v16927_v49, %v15327_v30  ;;  %v4170_v19 = vadd.f32 %v4169_v32, %v3895_v17  ;;  %v3962_v41 = vmul.f32 %v12276_v34, %v15795_v43  ;;  %12297 = vpow2.f32 %v10289_v39 }
 0x432   : > { %v12280_v51 = vpop.eup %12279  ;;  %v3908_v8 = vmul.f32 %v12278_v21, %v15799_v27  ;;  %12299 = vrcp.f32 %v3085_v3  ;;  %v15980_v50 = vadd.f32 %v16928_v60, %v15821_v63  ;;  %v15984_v14 = vrot.slane %v15817_v56, %v16929_v10  ;;  %v16930_v3 = vld [vmem:[#allocation49_spill] sm:$0xff] }
 0x433   : > { %v12282_v4 = vpop.eup %12281  ;;  %v4112_v44 = vadd.f32 %v4111_v36, %v3962_v41  ;;  %v3264_v12 = vadd.f32 1.0, %v12280_v51  ;;  %12301 = vpow2.f32 %v10123_v40  ;;  %v15989_v27 = vadd.f32 %v16930_v3, %v15861_v45  ;;  %v16931_v36 = vld [vmem:[#allocation47_spill] sm:$0xff] }
 0x434   : > { %v12284_v34 = vpop.eup %12283  ;;  %v4150_v43 = vadd.f32 %v4149_v23, %v3908_v8  ;;  %v3963_v32 = vmul.f32 %v12282_v4, %v15808_v6  ;;  %12303 = vpow2.f32 %v10290_v38  ;;  %v15994_v40 = vrot.slane %v15817_v56, %v16931_v36  ;;  %v16932_v8 = vld [vmem:[#allocation72_spill] sm:$0xff] }
 0x435   : > { %v12286_v39 = vpop.eup %12285  ;;  %v4113_v1 = vrot.slane %v4112_v44, 4  ;;  %v3909_v17 = vmul.f32 %v12284_v34, %v15831_v37  ;;  %12305 = vrcp.f32 %v3264_v12  ;;  %v10151_v6 = vmul.f32 -1.442695, %v15980_v50 }
 0x436   : > { %v15996_v21 = vpop.eup %12287  ;;  %v4133_v49 = vadd.f32 %v4132_v25, %v3963_v32  ;;  %v3922_v23 = vmul.f32 %v12286_v39, %v15842_v9  ;;  %12307 = vpow2.f32 %v10124_v28  ;;  %v16002_v37 = vadd.f32 %v16932_v8, %v15984_v14 }
 0x437   : > { %v12290_v38 = vpop.eup %12289  ;;  %v4114_v41 = vadd.f32 %v4113_v1, %v4112_v44  ;;  %v4171_v51 = vadd.f32 %v4170_v19, %v3909_v17  ;;  %12309 = vpow2.f32 %v10303_v52  ;;  %v16007_v28 = vadd.f32 %v15479_v31, %v15994_v40 }
 0x438   : > { %v12292_v60 = vpop.eup %12291  ;;  %v4134_v4 = vrot.slane %v4133_v49, 4  ;;  %v4151_v56 = vadd.f32 %v4150_v43, %v3922_v23  ;;  %v3923_v12 = vmul.f32 %v12290_v38, %v15857_v24  ;;  %12311 = vpow2.f32 %v10137_v48 }
 0x439   : > { %v12294_v25 = vpop.eup %12293  ;;  %v4115_v10 = vrot.slane %v4114_v41, 2  ;;  %v3098_v9 = vadd.f32 1.0, %v12292_v60  ;;  %12313 = vpow2.f32 %v10304_v26  ;;  %v16013_v24 = vadd.f32 %v15493_v57, %v15821_v63  ;;  %v16933_v57 = vld [vmem:[#allocation73_spill] sm:$0xff] }
 0x43a   : > { %v12296_v19 = vpop.eup %12295  ;;  %v4135_v52 = vadd.f32 %v4134_v4, %v4133_v49  ;;  %v16009_v44 = vadd.f32 %v4171_v51, %v3923_v12  ;;  %v3265_v34 = vadd.f32 1.0, %v12294_v25  ;;  %12315 = vpow2.f32 %v10138_v58 }
 0x43b   : > { %v12298_v32 = vpop.eup %12297  ;;  %v4116_v3 = vadd.f32 %v4115_v10, %v4114_v41  ;;  %12317 = vrcp.f32 %v3098_v9  ;;  %v3099_v43 = vadd.f32 1.0, %v12296_v19  ;;  %v10152_v31 = vmul.f32 -1.442695, %v15989_v27 }
 0x43c   : > { %v12300_v48 = vpop.eup %12299  ;;  %v4136_v26 = vrot.slane %v4135_v52, 2  ;;  %12319 = vrcp.f32 %v3265_v34  ;;  %v3278_v39 = vadd.f32 1.0, %v12298_v32  ;;  %v10097_v36 = vmul.f32 -1.442695, %v16002_v37 }
 0x43d   : > { %v12302_v1 = vpop.eup %12301  ;;  %v4117_v17 = vrot.slane %v4116_v3, 1  ;;  %12321 = vrcp.f32 %v3099_v43  ;;  %v10098_v58 = vmul.f32 -1.442695, %v16007_v28  ;;  %v16020_v41 = vadd.f32 %v16933_v57, %v15984_v14 }
 0x43e   : > { %v12304_v49 = vpop.eup %12303  ;;  %v4137_v23 = vadd.f32 %v4136_v26, %v4135_v52  ;;  %12323 = vrcp.f32 %v3278_v39  ;;  %v3112_v38 = vadd.f32 1.0, %v12302_v1  ;;  %v10165_v60 = vmul.f32 -1.442695, %v16013_v24 }
 0x43f   : > { %v12306_v51 = vpop.eup %12305  ;;  %v3279_v8 = vadd.f32 1.0, %v12304_v49  ;;  %12325 = vpow2.f32 %v10151_v6  ;;  %v16025_v4 = vadd.f32 %v15502_v15, %v15861_v45  ;;  %v4118_v25 = vadd.f32 %v4117_v17, %v4116_v3 }
 0x440   : > { %v12308_v12 = vpop.eup %12307  ;;  %v4138_v10 = vrot.slane %v4137_v23, 1  ;;  %v3936_v9 = vmul.f32 %v12306_v51, %v15885_v11  ;;  %12327 = vrcp.f32 %v3112_v38  ;;  %v16030_v34 = vadd.f32 %v15508_v0, %v15994_v40 }
 0x441   : > { %v12310_v19 = vpop.eup %12309  ;;  %12329 = vrcp.f32 %v3279_v8  ;;  %v3113_v52 = vadd.f32 1.0, %v12308_v12  ;;  %v16034_v6 = vadd.f32 %v15527_v20, %v15821_v63  ;;  %v10111_v39 = vmul.f32 -1.442695, %v16020_v41 }
 0x442   : > { %v12312_v32 = vpop.eup %12311  ;;  %v4139_v15 = vadd.f32 %v4138_v10, %v4137_v23  ;;  %v4152_v43 = vadd.f32 %v4151_v56, %v3936_v9  ;;  %v3292_v26 = vadd.f32 1.0, %v12310_v19  ;;  %12331 = vpow2.f32 %v10097_v36 }
 0x443   : > { %v12314_v3 = vpop.eup %12313  ;;  %12333 = vrcp.f32 %v3113_v52  ;;  %v3126_v11 = vadd.f32 1.0, %v12312_v32  ;;  %v16039_v1 = vadd.f32 %v15529_v55, %v15984_v14  ;;  %v10166_v20 = vmul.f32 -1.442695, %v16025_v4 }
 0x444   : > { %v12316_v0 = vpop.eup %12315  ;;  %v4283_v17 = vcombine.low %v4118_v25, %v4139_v15  ;;  %12335 = vrcp.f32 %v3292_v26  ;;  %v3293_v49 = vadd.f32 1.0, %v12314_v3  ;;  %v10112_v36 = vmul.f32 -1.442695, %v16030_v34 }
 0x445   : > { %v12318_v38 = vpop.eup %12317  ;;  %12337 = vrcp.f32 %v3126_v11  ;;  %v3127_v56 = vadd.f32 1.0, %v12316_v0  ;;  %v10179_v23 = vmul.f32 -1.442695, %v16034_v6  ;;  %v3756_v55 = vmul.f32 %v15996_v21, %v15847_v2  ;;  %v3970_v11 = vld [vmem:[#allocation2] sm:$0xff] }
 0x446   : > { %v12320_v57 = vpop.eup %12319  ;;  %v4311_v51 = vrot.slane %v4283_v17, %v15327_v30  ;;  %v3770_v8 = vmul.f32 %v12318_v38, %v15892_v62  ;;  %12339 = vrcp.f32 %v3293_v49  ;;  %v3757_v25 = vmul.f32 %v12300_v48, %v15872_v61 }
 0x447   : > { %v12322_v12 = vpop.eup %12321  ;;  %v3937_v10 = vmul.f32 %v12320_v57, %v15899_v18  ;;  %12341 = vrcp.f32 %v3127_v56  ;;  %v10125_v9 = vmul.f32 -1.442695, %v16039_v1  ;;  %v16057_v61 = vadd.f32 %v15536_v46, %v15861_v45 }
 0x448   : > { %v12324_v19 = vpop.eup %12323  ;;  %v4313_v52 = vcombine.low %v15973_v35, %v4311_v51  ;;  %v4182_v32 = vadd.f32 %v3770_v8, %v3756_v55  ;;  %v3771_v15 = vmul.f32 %v12322_v12, %v15912_v13  ;;  %12343 = vpow2.f32 %v10152_v31 }
 0x449   : > { %v12326_v26 = vpop.eup %12325  ;;  %v4173_v2 = vadd.f32 %v16009_v44, %v3937_v10  ;;  %v3950_v62 = vmul.f32 %v12324_v19, %v15916_v54  ;;  %12345 = vpow2.f32 %v10098_v58  ;;  %v16063_v54 = vadd.f32 %v15538_v53, %v15994_v40 }
 0x44a   : > { %v12328_v18 = vpop.eup %12327  ;;  %v4327_v21 = vrot.slane %v4313_v52, %v15327_v30  ;;  %v4203_v48 = vadd.f32 %v3771_v15, %v3757_v25  ;;  %v3140_v3 = vadd.f32 1.0, %v12326_v26  ;;  %12347 = vpow2.f32 %v10165_v60  ;;  %v16934_v15 = vld [vmem:[#allocation50_spill] sm:$0xff] }
 0x44b   : > { %v12330_v35 = vpop.eup %12329  ;;  %v4153_v13 = vadd.f32 %v4152_v43, %v3950_v62  ;;  %v3784_v31 = vmul.f32 %v12328_v18, %v15923_v42  ;;  %12349 = vpow2.f32 %v10111_v39  ;;  %v16069_v0 = vadd.f32 %v15541_v29, %v15821_v63 }
 0x44c   : > { %v12332_v44 = vpop.eup %12331  ;;  %v4328_v46 = vcombine.low %v15905_v33, %v4327_v21  ;;  %v3951_v58 = vmul.f32 %v12330_v35, %v15929_v59  ;;  %12351 = vrcp.f32 %v3140_v3  ;;  %v10180_v42 = vmul.f32 -1.442695, %v16057_v61  ;;  %v16935_v21 = vld [vmem:[#allocation74_spill] sm:$0xff] }
 0x44d   : > { %v12334_v60 = vpop.eup %12333  ;;  %v4183_v17 = vadd.f32 %v4182_v32, %v3784_v31  ;;  %v3086_v43 = vadd.f32 1.0, %v12332_v44  ;;  %12353 = vpow2.f32 %v10166_v20  ;;  %v10126_v56 = vmul.f32 -1.442695, %v16063_v54 }
 0x44e   : > { %v12336_v39 = vpop.eup %12335  ;;  %v4371_v49 = vadd.f32 %v4328_v46, %v3970_v11  ;;  %v4174_v53 = vadd.f32 %v4173_v2, %v3951_v58  ;;  %v3785_v38 = vmul.f32 %v12334_v60, %v15933_v7  ;;  %12355 = vpow2.f32 %v10112_v36  ;;  %v16936_v58 = vld [vmem:[#allocation75_spill] sm:$0xff] }
 0x44f   : > { %v12338_v33 = vpop.eup %12337  ;;  %v3964_v59 = vmul.f32 %v12336_v39, %v15937_v16  ;;  %12357 = vrcp.f32 %v3086_v43  ;;  %v10193_v20 = vmul.f32 -1.442695, %v16069_v0  ;;  %v16083_v26 = vadd.f32 %v16934_v15, %v15984_v14 }
 0x450   : > { %v12340_v29 = vpop.eup %12339  ;;  %4373 = vst [vmem:[#allocation2] sm:$0xff] %v4371_v49  ;;  %v4204_v57 = vadd.f32 %v4203_v48, %v3785_v38  ;;  %v3798_v51 = vmul.f32 %v12338_v33, %v15944_v5  ;;  %12359 = vpow2.f32 %v10179_v23  ;;  %v16087_v48 = vadd.f32 %v16935_v21, %v15861_v45 }
 0x451   : > { %v12342_v55 = vpop.eup %12341  ;;  %v4154_v8 = vadd.f32 %v4153_v13, %v3964_v59  ;;  %v3965_v12 = vmul.f32 %v12340_v29, %v15950_v22  ;;  %12361 = vpow2.f32 %v10125_v9  ;;  %v10139_v46 = vmul.f32 -1.442695, %v16083_v26  ;;  %v16938_v59 = vld [vmem:[#allocation51_spill] sm:$0xff] }
 0x452   : > { %v12344_v7 = vpop.eup %12343  ;;  %v4184_v36 = vadd.f32 %v4183_v17, %v3798_v51  ;;  %v3799_v16 = vmul.f32 %v12342_v55, %v15963_v47  ;;  %12363 = vpow2.f32 %v10180_v42  ;;  %v16093_v60 = vadd.f32 %v16936_v58, %v15994_v40 }
 0x453   : > { %v12346_v25 = vpop.eup %12345  ;;  %v4155_v10 = vrot.slane %v4154_v8, 4  ;;  %v4175_v19 = vadd.f32 %v4174_v53, %v3965_v12  ;;  %v3141_v52 = vadd.f32 1.0, %v12344_v7  ;;  %12365 = vpow2.f32 %v10126_v56  ;;  %v16939_v12 = vld [vmem:[#allocation52_spill] sm:$0xff] }
 0x454   : > { %v12348_v32 = vpop.eup %12347  ;;  %v16079_v5 = vadd.f32 %v4204_v57, %v3799_v16  ;;  %v3087_v23 = vadd.f32 1.0, %v12346_v25  ;;  %12367 = vpow2.f32 %v10193_v20  ;;  %v10194_v38 = vmul.f32 -1.442695, %v16087_v48 }
 0x455   : > { %v12350_v22 = vpop.eup %12349  ;;  %v4156_v9 = vadd.f32 %v4155_v10, %v4154_v8  ;;  %v4176_v2 = vrot.slane %v4175_v19, 4  ;;  %12369 = vrcp.f32 %v3141_v52  ;;  %v3154_v47 = vadd.f32 1.0, %v12348_v32 }
 0x456   : > { %v12352_v62 = vpop.eup %12351  ;;  %12371 = vrcp.f32 %v3087_v23  ;;  %v3100_v18 = vadd.f32 1.0, %v12350_v22  ;;  %v16102_v56 = vadd.f32 %v16938_v59, %v15984_v14  ;;  %v16106_v7 = vadd.f32 %v16939_v12, %v15861_v45  ;;  %v16941_v22 = vld [vmem:[#allocation78_spill] sm:$0xff]  ;;  %v16943_v59 = vld [vmem:[#allocation80_spill] sm:$0xff] }
 0x457   : > { %v12354_v3 = vpop.eup %12353  ;;  %v4157_v35 = vrot.slane %v4156_v9, 2  ;;  %v4177_v11 = vadd.f32 %v4176_v2, %v4175_v19  ;;  %v3812_v13 = vmul.f32 %v12352_v62, %v15980_v50  ;;  %12373 = vrcp.f32 %v3154_v47  ;;  %v16937_v50 = vld [vmem:[#allocation76_spill] sm:$0xff] }
 0x458   : > { %v12356_v31 = vpop.eup %12355  ;;  %12375 = vrcp.f32 %v3100_v18  ;;  %v3155_v44 = vadd.f32 1.0, %v12354_v3  ;;  %v16098_v33 = vadd.f32 %v16937_v50, %v15821_v63  ;;  %v10140_v15 = vmul.f32 -1.442695, %v16093_v60 }
 0x459   : > { %v12358_v17 = vpop.eup %12357  ;;  %v4158_v43 = vadd.f32 %v4157_v35, %v4156_v9  ;;  %v4178_v42 = vrot.slane %v4177_v11, 2  ;;  %v4185_v39 = vadd.f32 %v4184_v36, %v3812_v13  ;;  %v3101_v49 = vadd.f32 1.0, %v12356_v31  ;;  %v16940_v36 = vld [vmem:[#allocation77_spill] sm:$0xff] }
 0x45a   : > { %v12360_v53 = vpop.eup %12359  ;;  %12377 = vrcp.f32 %v3155_v44  ;;  %v16110_v16 = vadd.f32 %v16940_v36, %v15994_v40  ;;  %v16117_v9 = vadd.f32 %v16941_v22, %v15821_v63  ;;  %v10207_v18 = vmul.f32 -1.442695, %v16098_v33  ;;  %v16946_v36 = vld [vmem:[#allocation54_spill] sm:$0xff] }
 0x45b   : > { %v12362_v29 = vpop.eup %12361  ;;  %v4159_v57 = vrot.slane %v4158_v43, 1  ;;  %v4179_v51 = vadd.f32 %v4178_v42, %v4177_v11  ;;  %12379 = vrcp.f32 %v3101_v49  ;;  %v3168_v20 = vadd.f32 1.0, %v12360_v53  ;;  %v16942_v11 = vld [vmem:[#allocation79_spill] sm:$0xff] }
 0x45c   : > { %v12364_v55 = vpop.eup %12363  ;;  %v3114_v8 = vadd.f32 1.0, %v12362_v29  ;;  %12381 = vpow2.f32 %v10139_v46  ;;  %v10153_v35 = vmul.f32 -1.442695, %v16102_v56  ;;  %v16126_v13 = vadd.f32 %v16942_v11, %v15984_v14 }
 0x45d   : > { %v12366_v25 = vpop.eup %12365  ;;  %v16112_v10 = vadd.f32 %v4159_v57, %v4158_v43  ;;  %v4180_v19 = vrot.slane %v4179_v51, 1  ;;  %12383 = vrcp.f32 %v3168_v20  ;;  %v3169_v52 = vadd.f32 1.0, %v12364_v55 }
 0x45e   : > { %v12368_v32 = vpop.eup %12367  ;;  %12385 = vrcp.f32 %v3114_v8  ;;  %v3115_v23 = vadd.f32 1.0, %v12366_v25  ;;  %v10208_v46 = vmul.f32 -1.442695, %v16106_v7  ;;  %v10154_v58 = vmul.f32 -1.442695, %v16110_v16 }
 0x45f   : > { %v12370_v2 = vpop.eup %12369  ;;  %v16119_v47 = vadd.f32 %v4180_v19, %v4179_v51  ;;  %12387 = vrcp.f32 %v3169_v52  ;;  %v3182_v62 = vadd.f32 1.0, %v12368_v32  ;;  %v10221_v49 = vmul.f32 -1.442695, %v16117_v9 }
 0x460   : > { %v12372_v21 = vpop.eup %12371  ;;  %v3813_v3 = vmul.f32 %v12370_v2, %v15989_v27  ;;  %12389 = vrcp.f32 %v3115_v23  ;;  %v3758_v53 = vmul.f32 %v12358_v17, %v16002_v37  ;;  %v16139_v29 = vadd.f32 %v16943_v59, %v15861_v45 }
 0x461   : > { %v12374_v31 = vpop.eup %12373  ;;  %v4329_v44 = vcombine.low %v16112_v10, %v16119_v47  ;;  %12391 = vrcp.f32 %v3182_v62  ;;  %v10167_v20 = vmul.f32 -1.442695, %v16126_v13  ;;  %v3759_v12 = vmul.f32 %v12372_v21, %v16007_v28 }
 0x462   : > { %v12376_v43 = vpop.eup %12375  ;;  %v4206_v42 = vadd.f32 %v16079_v5, %v3813_v3  ;;  %v3826_v27 = vmul.f32 %v12374_v31, %v16013_v24  ;;  %12393 = vpow2.f32 %v10194_v38  ;;  %v16944_v5 = vld [vmem:[#allocation92_spill] sm:$0xff]  ;;  %v16155_v25 = vadd.f32 %v16946_v36, %v15984_v14 }
 0x463   : > { %v3772_v50 = vmul.f32 %v12376_v43, %v16020_v41  ;;  %12395 = vpow2.f32 %v10140_v15  ;;  %v16144_v24 = vadd.f32 %v16944_v5, %v15994_v40  ;;  %v16945_v41 = vld [vmem:[#allocation53_spill] sm:$0xff] }
 0x464   : > { %v12378_v57 = vpop.eup %12377  ;;  %v4186_v51 = vadd.f32 %v4185_v39, %v3826_v27  ;;  %12397 = vpow2.f32 %v10207_v18  ;;  %v16149_v17 = vadd.f32 %v16945_v41, %v15821_v63 }
 0x465   : > { %v12380_v38 = vpop.eup %12379  ;;  %v4224_v55 = vadd.f32 %v3772_v50, %v3758_v53  ;;  %v3827_v37 = vmul.f32 %v12378_v57, %v16025_v4  ;;  %12399 = vpow2.f32 %v10153_v35  ;;  %v10222_v4 = vmul.f32 -1.442695, %v16139_v29  ;;  %v16947_v50 = vld [vmem:[#allocation93_spill] sm:$0xff] }
 0x466   : > { %v12382_v8 = vpop.eup %12381  ;;  %v3773_v39 = vmul.f32 %v12380_v38, %v16030_v34  ;;  %12401 = vpow2.f32 %v10208_v46  ;;  %v10168_v28 = vmul.f32 -1.442695, %v16144_v24  ;;  %v10235_v62 = vmul.f32 -1.442695, %v16149_v17 }
 0x467   : > { %v12384_v19 = vpop.eup %12383  ;;  %v4207_v52 = vadd.f32 %v4206_v42, %v3827_v37  ;;  %v3128_v32 = vadd.f32 1.0, %v12382_v8  ;;  %12403 = vpow2.f32 %v10154_v58  ;;  %v10181_v35 = vmul.f32 -1.442695, %v16155_v25 }
 0x468   : > { %v12386_v23 = vpop.eup %12385  ;;  %v4245_v15 = vadd.f32 %v3773_v39, %v3759_v12  ;;  %v3840_v22 = vmul.f32 %v12384_v19, %v16034_v6  ;;  %12405 = vpow2.f32 %v10221_v49  ;;  %v16948_v12 = vld [vmem:[#allocation94_spill] sm:$0xff] }
 0x469   : > { %v12388_v2 = vpop.eup %12387  ;;  %v3786_v34 = vmul.f32 %v12386_v23, %v16039_v1  ;;  %12407 = vrcp.f32 %v3128_v32  ;;  %v16179_v39 = vadd.f32 %v16948_v12, %v15994_v40 }
 0x46a   : > { %v12390_v18 = vpop.eup %12389  ;;  %v4187_v21 = vadd.f32 %v4186_v51, %v3840_v22  ;;  %v3841_v3 = vmul.f32 %v12388_v2, %v16057_v61  ;;  %12409 = vpow2.f32 %v10167_v20 }
 0x46b   : > { %v12392_v11 = vpop.eup %12391  ;;  %v4225_v31 = vadd.f32 %v4224_v55, %v3786_v34  ;;  %v3787_v6 = vmul.f32 %v12390_v18, %v16063_v54  ;;  %12411 = vpow2.f32 %v10222_v4  ;;  %v16174_v54 = vadd.f32 %v16947_v50, %v15861_v45  ;;  %v16950_v4 = vld [vmem:[#allocation81_spill] sm:$0xff] }
 0x46c   : > { %v12394_v46 = vpop.eup %12393  ;;  %v16165_v58 = vadd.f32 %v4207_v52, %v3841_v3  ;;  %v3854_v1 = vmul.f32 %v12392_v11, %v16069_v0  ;;  %12413 = vpow2.f32 %v10168_v28  ;;  %v16949_v52 = vld [vmem:[#allocation55_spill] sm:$0xff]  ;;  %v16188_v23 = vadd.f32 %v16950_v4, %v15984_v14  ;;  %v16951_v28 = vld [vmem:[#allocation82_spill] sm:$0xff] }
 0x46d   : > { %v12396_v43 = vpop.eup %12395  ;;  %v16168_v42 = vadd.f32 %v4245_v15, %v3787_v6  ;;  %v3183_v27 = vadd.f32 1.0, %v12394_v46  ;;  %12415 = vpow2.f32 %v10235_v62  ;;  %v10236_v37 = vmul.f32 -1.442695, %v16174_v54  ;;  %v16953_v6 = vld [vmem:[#allocation84_spill] sm:$0xff] }
 0x46e   : > { %v12398_v61 = vpop.eup %12397  ;;  %v16170_v49 = vadd.f32 %v4187_v21, %v3854_v1  ;;  %v3129_v53 = vadd.f32 1.0, %v12396_v43  ;;  %12417 = vpow2.f32 %v10181_v35  ;;  %v16184_v32 = vadd.f32 %v16949_v52, %v15821_v63  ;;  %v16957_v52 = vld [vmem:[#allocation88_spill] sm:$0xff] }
 0x46f   : > { %v12400_v59 = vpop.eup %12399  ;;  %12419 = vrcp.f32 %v3183_v27  ;;  %v3196_v57 = vadd.f32 1.0, %v12398_v61  ;;  %v16192_v2 = vadd.f32 %v16951_v28, %v15861_v45  ;;  %v10182_v11 = vmul.f32 -1.442695, %v16179_v39 }
 0x470   : > { %v12402_v51 = vpop.eup %12401  ;;  %12421 = vrcp.f32 %v3129_v53  ;;  %v3142_v0 = vadd.f32 1.0, %v12400_v59  ;;  %v16201_v46 = vadd.f32 %v16953_v6, %v15821_v63  ;;  %v10195_v27 = vmul.f32 -1.442695, %v16188_v23  ;;  %v16954_v59 = vld [vmem:[#allocation85_spill] sm:$0xff] }
 0x471   : > { %v12404_v20 = vpop.eup %12403  ;;  %12423 = vrcp.f32 %v3196_v57  ;;  %v3197_v5 = vadd.f32 1.0, %v12402_v51  ;;  %v10250_v50 = vmul.f32 -1.442695, %v16192_v2  ;;  %v16208_v57 = vadd.f32 %v16954_v59, %v15984_v14 }
 0x472   : > { %v12406_v38 = vpop.eup %12405  ;;  %12425 = vrcp.f32 %v3142_v0  ;;  %v3143_v55 = vadd.f32 1.0, %v12404_v20  ;;  %v16226_v4 = vadd.f32 %v16957_v52, %v15821_v63 }
 0x473   : > { %v12408_v41 = vpop.eup %12407  ;;  %12427 = vrcp.f32 %v3197_v5  ;;  %v3210_v8 = vadd.f32 1.0, %v12406_v38  ;;  %v16955_v5 = vld [vmem:[#allocation86_spill] sm:$0xff]  ;;  %v10209_v28 = vmul.f32 -1.442695, %v16208_v57 }
 0x474   : > { %v12410_v36 = vpop.eup %12409  ;;  %v3800_v19 = vmul.f32 %v12408_v41, %v16083_v26  ;;  %12429 = vrcp.f32 %v3143_v55  ;;  %v16952_v26 = vld [vmem:[#allocation83_spill] sm:$0xff]  ;;  %v16214_v38 = vadd.f32 %v16955_v5, %v15861_v45  ;;  %v10263_v41 = vmul.f32 -1.442695, %v16201_v46 }
 0x475   : > { %v12412_v15 = vpop.eup %12411  ;;  %12431 = vrcp.f32 %v3210_v8  ;;  %v3156_v22 = vadd.f32 1.0, %v12410_v36  ;;  %v16196_v21 = vadd.f32 %v16952_v26, %v15994_v40  ;;  %v16956_v8 = vld [vmem:[#allocation87_spill] sm:$0xff] }
 0x476   : > { %v12414_v34 = vpop.eup %12413  ;;  %v4226_v62 = vadd.f32 %v4225_v31, %v3800_v19  ;;  %v3211_v18 = vadd.f32 1.0, %v12412_v15  ;;  %12433 = vpow2.f32 %v10236_v37  ;;  %v10249_v31 = vmul.f32 -1.442695, %v16184_v32 }
 0x477   : > { %v12416_v3 = vpop.eup %12415  ;;  %12435 = vrcp.f32 %v3156_v22  ;;  %v3157_v35 = vadd.f32 1.0, %v12414_v34  ;;  %v10196_v20 = vmul.f32 -1.442695, %v16196_v21  ;;  %v16220_v12 = vadd.f32 %v16956_v8, %v15994_v40 }
 0x478   : > { %v12418_v1 = vpop.eup %12417  ;;  %12437 = vrcp.f32 %v3211_v18  ;;  %v3224_v43 = vadd.f32 1.0, %v12416_v3 }
 0x479   : > { %v12420_v61 = vpop.eup %12419  ;;  %12439 = vrcp.f32 %v3157_v35  ;;  %v3170_v53 = vadd.f32 1.0, %v12418_v1 }
 0x47a   : > { %v12422_v51 = vpop.eup %12421  ;;  %v3855_v0 = vmul.f32 %v12420_v61, %v16087_v48  ;;  %12441 = vrcp.f32 %v3224_v43 }
 0x47b   : > { %v12424_v55 = vpop.eup %12423  ;;  %v3801_v37 = vmul.f32 %v12422_v51, %v16093_v60  ;;  %12443 = vrcp.f32 %v3170_v53 }
 0x47c   : > { %v12426_v36 = vpop.eup %12425  ;;  %v4209_v48 = vadd.f32 %v16165_v58, %v3855_v0  ;;  %v3868_v19 = vmul.f32 %v12424_v55, %v16098_v33  ;;  %12445 = vpow2.f32 %v10182_v11  ;;  %v10264_v33 = vmul.f32 -1.442695, %v16214_v38 }
 0x47d   : > { %v12428_v15 = vpop.eup %12427  ;;  %v4247_v60 = vadd.f32 %v16168_v42, %v3801_v37  ;;  %v3814_v22 = vmul.f32 %v12426_v36, %v16102_v56  ;;  %12447 = vpow2.f32 %v10249_v31  ;;  %v16958_v42 = vld [vmem:[#allocation95_spill] sm:$0xff] }
 0x47e   : > { %v12430_v34 = vpop.eup %12429  ;;  %v4189_v18 = vadd.f32 %v16170_v49, %v3868_v19  ;;  %v3869_v58 = vmul.f32 %v12428_v15, %v16106_v7  ;;  %12449 = vpow2.f32 %v10195_v27  ;;  %v16237_v11 = vadd.f32 %v16958_v42, %v15984_v14  ;;  %v16959_v49 = vld [vmem:[#allocation89_spill] sm:$0xff] }
 0x47f   : > { %v12432_v26 = vpop.eup %12431  ;;  %v4227_v3 = vadd.f32 %v4226_v62, %v3814_v22  ;;  %v3815_v35 = vmul.f32 %v12430_v34, %v16110_v16  ;;  %12451 = vpow2.f32 %v10250_v50  ;;  %v16242_v7 = vadd.f32 %v16959_v49, %v15861_v45  ;;  %v16960_v22 = vld [vmem:[#allocation96_spill] sm:$0xff]  ;;  %v16961_v49 = vld [vmem:[#allocation90_spill] sm:$0xff] }
 0x480   : > { %v12434_v56 = vpop.eup %12433  ;;  %v4210_v6 = vadd.f32 %v4209_v48, %v3869_v58  ;;  %v3882_v1 = vmul.f32 %v12432_v26, %v16117_v9  ;;  %12453 = vpow2.f32 %v10196_v20  ;;  %v10210_v16 = vmul.f32 -1.442695, %v16220_v12 }
 0x481   : > { %v12436_v43 = vpop.eup %12435  ;;  %v4248_v31 = vadd.f32 %v4247_v60, %v3815_v35  ;;  %v3225_v27 = vadd.f32 1.0, %v12434_v56  ;;  %12455 = vpow2.f32 %v10263_v41  ;;  %v10277_v50 = vmul.f32 -1.442695, %v16226_v4 }
 0x482   : > { %v12438_v62 = vpop.eup %12437  ;;  %v4190_v61 = vadd.f32 %v4189_v18, %v3882_v1  ;;  %v3828_v53 = vmul.f32 %v12436_v43, %v16126_v13  ;;  %12457 = vpow2.f32 %v10209_v28  ;;  %v10223_v51 = vmul.f32 -1.442695, %v16237_v11 }
 0x483   : > { %v12440_v59 = vpop.eup %12439  ;;  %v3883_v9 = vmul.f32 %v12438_v62, %v16139_v29  ;;  %12459 = vrcp.f32 %v3225_v27  ;;  %v10278_v55 = vmul.f32 -1.442695, %v16242_v7  ;;  %v16267_v43 = vadd.f32 %v16961_v49, %v15821_v63 }
 0x484   : > { %v12442_v0 = vpop.eup %12441  ;;  %v4228_v20 = vadd.f32 %v4227_v3, %v3828_v53  ;;  %v3829_v5 = vmul.f32 %v12440_v59, %v16144_v24  ;;  %12461 = vpow2.f32 %v10264_v33 }
 0x485   : > { %v12444_v37 = vpop.eup %12443  ;;  %v4211_v41 = vadd.f32 %v4210_v6, %v3883_v9  ;;  %v3896_v13 = vmul.f32 %v12442_v0, %v16149_v17  ;;  %12463 = vpow2.f32 %v10210_v16  ;;  %v16261_v17 = vadd.f32 %v16960_v22, %v15994_v40  ;;  %v16965_v0 = vld [vmem:[#allocation59_spill] sm:$0xff] }
 0x486   : > { %v12446_v8 = vpop.eup %12445  ;;  %v16252_v36 = vadd.f32 %v4248_v31, %v3829_v5  ;;  %v3842_v29 = vmul.f32 %v12444_v37, %v16155_v25  ;;  %12465 = vpow2.f32 %v10277_v50  ;;  %v16962_v31 = vld [vmem:[#allocation56_spill] sm:$0xff]  ;;  %v16964_v50 = vld [vmem:[#allocation58_spill] sm:$0xff] }
 0x487   : > { %v12448_v48 = vpop.eup %12447  ;;  %v16255_v19 = vadd.f32 %v4190_v61, %v3896_v13  ;;  %v3171_v52 = vadd.f32 1.0, %v12446_v8  ;;  %12467 = vpow2.f32 %v10223_v51  ;;  %v10224_v35 = vmul.f32 -1.442695, %v16261_v17  ;;  %v16963_v61 = vld [vmem:[#allocation57_spill] sm:$0xff]  ;;  %v16966_v37 = vld [vmem:[#allocation60_spill] sm:$0xff] }
 0x488   : > { %v12450_v24 = vpop.eup %12449  ;;  %v16257_v15 = vadd.f32 %v4228_v20, %v3842_v29  ;;  %v3238_v60 = vadd.f32 1.0, %v12448_v48  ;;  %12469 = vpow2.f32 %v10278_v55  ;;  %v16271_v27 = vadd.f32 %v16962_v31, %v15984_v14  ;;  %v16967_v8 = vld [vmem:[#allocation61_spill] sm:$0xff] }
 0x489   : > { %v12452_v28 = vpop.eup %12451  ;;  %12471 = vrcp.f32 %v3171_v52  ;;  %v3184_v34 = vadd.f32 1.0, %v12450_v24  ;;  %v16275_v53 = vadd.f32 %v16963_v61, %v15861_v45  ;;  %v16279_v59 = vadd.f32 %v16964_v50, %v15994_v40  ;;  %v16968_v24 = vld [vmem:[#allocation39_spill] sm:$0xff] }
 0x48a   : > { %v12454_v18 = vpop.eup %12453  ;;  %12473 = vrcp.f32 %v3238_v60  ;;  %v3239_v25 = vadd.f32 1.0, %v12452_v28  ;;  %v16283_v20 = vadd.f32 %v16965_v0, %v15821_v63  ;;  %v16287_v13 = vadd.f32 %v16966_v37, %v15984_v14 }
 0x48b   : > { %v12456_v58 = vpop.eup %12455  ;;  %12475 = vrcp.f32 %v3184_v34  ;;  %v3185_v33 = vadd.f32 1.0, %v12454_v18  ;;  %v16291_v29 = vadd.f32 %v16967_v8, %v15861_v45  ;;  %v10291_v52 = vmul.f32 -1.442695, %v16267_v43 }
 0x48c   : > { %v12458_v26 = vpop.eup %12457  ;;  %12477 = vrcp.f32 %v3239_v25  ;;  %v3252_v3 = vadd.f32 1.0, %v12456_v58  ;;  %v16296_v63 = vadd.f32 %v16968_v24, %v15994_v40  ;;  %v10237_v28 = vmul.f32 -1.442695, %v16271_v27 }
 0x48d   : > { %v12460_v42 = vpop.eup %12459  ;;  %12479 = vrcp.f32 %v3185_v33  ;;  %v3198_v56 = vadd.f32 1.0, %v12458_v26  ;;  %v10292_v34 = vmul.f32 -1.442695, %v16275_v53  ;;  %v10238_v25 = vmul.f32 -1.442695, %v16279_v59 }
 0x48e   : > { %v12462_v6 = vpop.eup %12461  ;;  %v3897_v1 = vmul.f32 %v12460_v42, %v16174_v54  ;;  %12481 = vrcp.f32 %v3252_v3  ;;  %v10305_v58 = vmul.f32 -1.442695, %v16283_v20  ;;  %v10251_v3 = vmul.f32 -1.442695, %v16287_v13 }
 0x48f   : > { %v12464_v16 = vpop.eup %12463  ;;  %12483 = vrcp.f32 %v3198_v56  ;;  %v3253_v62 = vadd.f32 1.0, %v12462_v6 }
 0x490   : > { %v12466_v54 = vpop.eup %12465  ;;  %v4212_v9 = vadd.f32 %v4211_v41, %v3897_v1  ;;  %v3199_v51 = vadd.f32 1.0, %v12464_v16  ;;  %12485 = vpow2.f32 %v10224_v35  ;;  %v10306_v35 = vmul.f32 -1.442695, %v16291_v29 }
 0x491   : > { %v12468_v5 = vpop.eup %12467  ;;  %12487 = vrcp.f32 %v3253_v62  ;;  %v3266_v55 = vadd.f32 1.0, %v12466_v54 }
 0x492   : > { %v12470_v48 = vpop.eup %12469  ;;  %12489 = vrcp.f32 %v3199_v51  ;;  %v3212_v41 = vadd.f32 1.0, %v12468_v5 }
 0x493   : > { %v12472_v60 = vpop.eup %12471  ;;  %12491 = vrcp.f32 %v3266_v55  ;;  %v3267_v22 = vadd.f32 1.0, %v12470_v48 }
 0x494   : > { %v12474_v18 = vpop.eup %12473  ;;  %v3843_v45 = vmul.f32 %v12472_v60, %v16179_v39  ;;  %12493 = vrcp.f32 %v3212_v41  ;;  %v10252_v39 = vmul.f32 -1.442695, %v16296_v63 }
 0x495   : > { %v12476_v33 = vpop.eup %12475  ;;  %v3910_v26 = vmul.f32 %v12474_v18, %v16184_v32  ;;  %12495 = vrcp.f32 %v3267_v22  ;;  %v16969_v32 = vld [vmem:[#allocation62_spill] sm:$0xff] }
 0x496   : > { %v12478_v42 = vpop.eup %12477  ;;  %v4250_v56 = vadd.f32 %v16252_v36, %v3843_v45  ;;  %v3856_v6 = vmul.f32 %v12476_v33, %v16188_v23  ;;  %12497 = vpow2.f32 %v10291_v52  ;;  %v16313_v16 = vadd.f32 %v16969_v32, %v15984_v14  ;;  %v16970_v23 = vld [vmem:[#allocation40_spill] sm:$0xff] }
 0x497   : > { %v12480_v1 = vpop.eup %12479  ;;  %v4192_v49 = vadd.f32 %v16255_v19, %v3910_v26  ;;  %v3911_v31 = vmul.f32 %v12478_v42, %v16192_v2  ;;  %12499 = vpow2.f32 %v10237_v28  ;;  %v16319_v50 = vadd.f32 %v16970_v23, %v15994_v40  ;;  %v16971_v2 = vld [vmem:[#allocation64_spill] sm:$0xff] }
 0x498   : > { %v12482_v62 = vpop.eup %12481  ;;  %v4230_v61 = vadd.f32 %v16257_v15, %v3856_v6  ;;  %v3857_v36 = vmul.f32 %v12480_v1, %v16196_v21  ;;  %12501 = vpow2.f32 %v10292_v34  ;;  %v16324_v0 = vadd.f32 %v16971_v2, %v15984_v14  ;;  %v16972_v21 = vld [vmem:[#allocation63_spill] sm:$0xff] }
 0x499   : > { %v12484_v54 = vpop.eup %12483  ;;  %v4213_v51 = vadd.f32 %v4212_v9, %v3911_v31  ;;  %v3924_v19 = vmul.f32 %v12482_v62, %v16201_v46  ;;  %12503 = vpow2.f32 %v10238_v25  ;;  %v16329_v37 = vadd.f32 %v16972_v21, %v15994_v40 }
 0x49a   : > { %v12486_v5 = vpop.eup %12485  ;;  %v4251_v55 = vadd.f32 %v4250_v56, %v3857_v36  ;;  %v3870_v15 = vmul.f32 %v12484_v54, %v16208_v57  ;;  %12505 = vpow2.f32 %v10305_v58  ;;  %v10265_v46 = vmul.f32 -1.442695, %v16313_v16 }
 0x49b   : > { %v12488_v8 = vpop.eup %12487  ;;  %v4193_v48 = vadd.f32 %v4192_v49, %v3924_v19  ;;  %v3213_v41 = vadd.f32 1.0, %v12486_v5  ;;  %12507 = vpow2.f32 %v10251_v3  ;;  %v10266_v60 = vmul.f32 -1.442695, %v16319_v50 }
 0x49c   : > { %v12490_v9 = vpop.eup %12489  ;;  %v4231_v52 = vadd.f32 %v4230_v61, %v3870_v15  ;;  %v3925_v24 = vmul.f32 %v12488_v8, %v16214_v38  ;;  %12509 = vpow2.f32 %v10306_v35  ;;  %v10279_v28 = vmul.f32 -1.442695, %v16324_v0 }
 0x49d   : > { %v12492_v22 = vpop.eup %12491  ;;  %v3871_v57 = vmul.f32 %v12490_v9, %v16220_v12  ;;  %12511 = vrcp.f32 %v3213_v41  ;;  %v10280_v25 = vmul.f32 -1.442695, %v16329_v37 }
 0x49e   : > { %v12494_v34 = vpop.eup %12493  ;;  %v4214_v18 = vadd.f32 %v4213_v51, %v3925_v24  ;;  %v3938_v45 = vmul.f32 %v12492_v22, %v16226_v4  ;;  %12513 = vpow2.f32 %v10252_v39  ;;  %v16973_v39 = vld [vmem:[#allocation66_spill] sm:$0xff]  ;;  %v16976_v24 = vld [vmem:[#allocation41_spill] sm:$0xff] }
 0x49f   : > { %v12496_v58 = vpop.eup %12495  ;;  %v4252_v33 = vadd.f32 %v4251_v55, %v3871_v57  ;;  %v3884_v38 = vmul.f32 %v12494_v34, %v16237_v11  ;;  %12515 = vpow2.f32 %v10265_v46  ;;  %v16342_v49 = vadd.f32 %v16973_v39, %v15984_v14  ;;  %v16974_v55 = vld [vmem:[#allocation91_spill] sm:$0xff] }
 0x4a0   : > { %v12498_v26 = vpop.eup %12497  ;;  %v4194_v3 = vadd.f32 %v4193_v48, %v3938_v45  ;;  %v3939_v35 = vmul.f32 %v12496_v58, %v16242_v7  ;;  %12517 = vpow2.f32 %v10266_v60  ;;  %v16348_v15 = vadd.f32 %v16974_v55, %v15994_v40  ;;  %v16975_v48 = vld [vmem:[#allocation65_spill] sm:$0xff] }
 0x4a1   : > { %v12500_v12 = vpop.eup %12499  ;;  %v4232_v42 = vadd.f32 %v4231_v52, %v3884_v38  ;;  %v3280_v56 = vadd.f32 1.0, %v12498_v26  ;;  %12519 = vpow2.f32 %v10279_v28  ;;  %v10293_v54 = vmul.f32 -1.442695, %v16342_v49 }
 0x4a2   : > { %v12502_v6 = vpop.eup %12501  ;;  %v4215_v1 = vadd.f32 %v4214_v18, %v3939_v35  ;;  %v3226_v4 = vadd.f32 1.0, %v12500_v12  ;;  %12521 = vpow2.f32 %v10280_v25  ;;  %v16352_v41 = vadd.f32 %v16975_v48, %v15984_v14 }
 0x4a3   : > { %v12504_v31 = vpop.eup %12503  ;;  %12523 = vrcp.f32 %v3280_v56  ;;  %v3281_v11 = vadd.f32 1.0, %v12502_v6  ;;  %v16356_v60 = vadd.f32 %v16976_v24, %v15994_v40  ;;  %v10294_v34 = vmul.f32 -1.442695, %v16348_v15 }
 0x4a4   : > { %v12506_v32 = vpop.eup %12505  ;;  %12525 = vrcp.f32 %v3226_v4  ;;  %v3227_v62 = vadd.f32 1.0, %v12504_v31  ;;  %v10307_v45 = vmul.f32 -1.442695, %v16352_v41 }
 0x4a5   : > { %v12508_v7 = vpop.eup %12507  ;;  %12527 = vrcp.f32 %v3281_v11  ;;  %v3294_v61 = vadd.f32 1.0, %v12506_v32  ;;  %v10308_v40 = vmul.f32 -1.442695, %v16356_v60 }
 0x4a6   : > { %v12510_v36 = vpop.eup %12509  ;;  %12529 = vrcp.f32 %v3227_v62  ;;  %v3240_v23 = vadd.f32 1.0, %v12508_v7 }
 0x4a7   : > { %v12512_v51 = vpop.eup %12511  ;;  %12531 = vrcp.f32 %v3294_v61  ;;  %v3295_v19 = vadd.f32 1.0, %v12510_v36 }
 0x4a8   : > { %v12514_v2 = vpop.eup %12513  ;;  %v3885_v5 = vmul.f32 %v12512_v51, %v16261_v17  ;;  %12533 = vrcp.f32 %v3240_v23 }
 0x4a9   : > { %v12516_v21 = vpop.eup %12515  ;;  %12535 = vrcp.f32 %v3295_v19  ;;  %v3241_v8 = vadd.f32 1.0, %v12514_v2 }
 0x4aa   : > { %v12518_v46 = vpop.eup %12517  ;;  %v4253_v9 = vadd.f32 %v4252_v33, %v3885_v5  ;;  %v3254_v52 = vadd.f32 1.0, %v12516_v21  ;;  %12537 = vpow2.f32 %v10293_v54 }
 0x4ab   : > { %v12520_v17 = vpop.eup %12519  ;;  %12539 = vrcp.f32 %v3241_v8  ;;  %v3255_v22 = vadd.f32 1.0, %v12518_v46 }
 0x4ac   : > { %v12522_v57 = vpop.eup %12521  ;;  %12541 = vrcp.f32 %v3254_v52  ;;  %v3268_v28 = vadd.f32 1.0, %v12520_v17 }
 0x4ad   : > { %v12524_v18 = vpop.eup %12523  ;;  %12543 = vrcp.f32 %v3255_v22  ;;  %v3269_v14 = vadd.f32 1.0, %v12522_v57 }
 0x4ae   : > { %v12526_v25 = vpop.eup %12525  ;;  %v3952_v58 = vmul.f32 %v12524_v18, %v16267_v43  ;;  %12545 = vrcp.f32 %v3268_v28 }
 0x4af   : > { %v12528_v33 = vpop.eup %12527  ;;  %v3898_v38 = vmul.f32 %v12526_v25, %v16271_v27  ;;  %12547 = vrcp.f32 %v3269_v14 }
 0x4b0   : > { %v12530_v26 = vpop.eup %12529  ;;  %v4195_v35 = vadd.f32 %v4194_v3, %v3952_v58  ;;  %v3953_v12 = vmul.f32 %v12528_v33, %v16275_v53  ;;  %12549 = vpow2.f32 %v10294_v34 }
 0x4b1   : > { %v12532_v56 = vpop.eup %12531  ;;  %v4233_v6 = vadd.f32 %v4232_v42, %v3898_v38  ;;  %v3899_v4 = vmul.f32 %v12530_v26, %v16279_v59  ;;  %12551 = vpow2.f32 %v10307_v45  ;;  %v4338_v38 = vrot.slane %v4329_v44, %v15327_v30 }
 0x4b2   : > { %v12534_v39 = vpop.eup %12533  ;;  %v4216_v31 = vadd.f32 %v4215_v1, %v3953_v12  ;;  %v3966_v43 = vmul.f32 %v12532_v56, %v16283_v20  ;;  %12553 = vpow2.f32 %v10308_v40 }
 0x4b3   : > { %v12536_v11 = vpop.eup %12535  ;;  %v4254_v32 = vadd.f32 %v4253_v9, %v3899_v4  ;;  %v3912_v27 = vmul.f32 %v12534_v39, %v16287_v13 }
 0x4b4   : > { %v12538_v62 = vpop.eup %12537  ;;  %v4196_v7 = vadd.f32 %v4195_v35, %v3966_v43  ;;  %v3967_v3 = vmul.f32 %v12536_v11, %v16291_v29 }
 0x4b5   : > { %v12540_v53 = vpop.eup %12539  ;;  %v4234_v61 = vadd.f32 %v4233_v6, %v3912_v27  ;;  %v3282_v36 = vadd.f32 1.0, %v12538_v62 }
 0x4b6   : > { %v12542_v42 = vpop.eup %12541  ;;  %v4197_v23 = vrot.slane %v4196_v7, 4  ;;  %v4217_v59 = vadd.f32 %v4216_v31, %v3967_v3  ;;  %v3913_v54 = vmul.f32 %v12540_v53, %v16296_v63 }
 0x4b7   : > { %v12544_v1 = vpop.eup %12543  ;;  %v3926_v20 = vmul.f32 %v12542_v42, %v16313_v16  ;;  %12555 = vrcp.f32 %v3282_v36 }
 0x4b8   : > { %v12546_v51 = vpop.eup %12545  ;;  %v4198_v19 = vadd.f32 %v4197_v23, %v4196_v7  ;;  %v4218_v2 = vrot.slane %v4217_v59, 4  ;;  %v4255_v13 = vadd.f32 %v4254_v32, %v3913_v54  ;;  %v3927_v5 = vmul.f32 %v12544_v1, %v16319_v50 }
 0x4b9   : > { %v12548_v55 = vpop.eup %12547  ;;  %v4235_v29 = vadd.f32 %v4234_v61, %v3926_v20  ;;  %v3940_v21 = vmul.f32 %v12546_v51, %v16324_v0  ;;  %v16977_v1 = vlaneseq  ;;  %v12565_v51 = vld [vmem:[#allocation11 + $0x4] ss:$20 sps:$4 sm:$0xff] (!%p10309_p10)  }
 0x4ba   : > { %v12550_v8 = vpop.eup %12549  ;;  %v4199_v48 = vrot.slane %v4198_v19, 2  ;;  %v4219_v46 = vadd.f32 %v4218_v2, %v4217_v59  ;;  %v4256_v9 = vadd.f32 %v4255_v13, %v3927_v5  ;;  %v3941_v63 = vmul.f32 %v12548_v55, %v16329_v37  ;;  %v3971_v59 = vld [vmem:[#allocation2 + $0x8] sm:$0x3f]  ;;  %8084 = vmatprep.subr.bf16.mxu0 (!%p10309_p10), %v12565_v51  ;;  %v12569_v2 = vld [vmem:[#allocation11] ss:$20 sps:$4 sm:$0xff] (!%p10309_p10)  }
 0x4bb   : > { %v12552_v52 = vpop.eup %12551  ;;  %v4236_v24 = vadd.f32 %v4235_v29, %v3940_v21  ;;  %v3283_v16 = vadd.f32 1.0, %v12550_v8  ;;  %vm4376_vm2 = vcmp.lt.s32.totalorder %v16977_v1, 768  ;;  %v12570_v13 = vld [vmem:[#allocation11 + $0x288] ss:$20 sps:$4 sm:$0xff] (!%p10309_p10)   ;;  %v12571_v5 = vld [vmem:[#allocation11 + $0x2c] ss:$20 sps:$4 sm:$0xff] (!%p10309_p10)   ;;  %8085 = vmatpush1.bf16.msra.mxu0 (!%p10309_p10), %v12569_v2 }
 0x4bc   : > { %v12554_v17 = vpop.eup %12553  ;;  %v4200_v22 = vadd.f32 %v4199_v48, %v4198_v19  ;;  %v4220_v57 = vrot.slane %v4219_v46, 2  ;;  %v4257_v28 = vadd.f32 %v4256_v9, %v3941_v63  ;;  %v3296_v34 = vadd.f32 1.0, %v12552_v52  ;;  %v12567_v19 = vld [vmem:[#allocation11 + $0x28c] ss:$20 sps:$4 sm:$0xff] (!%p10309_p10)   ;;  %v12573_v55 = vld [vmem:[#allocation11 + $0x2b4] ss:$20 sps:$4 sm:$0xff] (!%p10309_p10)   ;;  %8086 = vmatprep.subr.bf16.mxu0 (!%p10309_p10), %v12571_v5 }
 0x4bd   : > { %12557 = vrcp.f32 %v3283_v16  ;;  %v3297_v50 = vadd.f32 1.0, %v12554_v17  ;;  %8412 = vmatprep.subr.bf16.mxu1 (!%p10309_p10), %v12567_v19  ;;  %v12576_v29 = vld [vmem:[#allocation11 + $0x2b0] ss:$20 sps:$4 sm:$0xff] (!%p10309_p10)   ;;  %v12577_v21 = vld [vmem:[#allocation11 + $0x54] ss:$20 sps:$4 sm:$0xff] (!%p10309_p10)  }
 0x4be   : > { %v4201_v18 = vrot.slane %v4200_v22, 1  ;;  %v4221_v14 = vadd.f32 %v4220_v57, %v4219_v46  ;;  %12559 = vrcp.f32 %v3296_v34  ;;  %8413 = vmatpush1.bf16.msra.mxu1 (!%p10309_p10), %v12570_v13  ;;  %v12579_v8 = vld [vmem:[#allocation11 + $0x2dc] ss:$20 sps:$4 sm:$0xff] (!%p10309_p10)   ;;  %v12582_v46 = vld [vmem:[#allocation11 + $0x2d8] ss:$20 sps:$4 sm:$0xff] (!%p10309_p10)  }
 0x4bf   : > { %12561 = vrcp.f32 %v3297_v50  ;;  %8414 = vmatprep.subr.bf16.mxu1 (!%p10309_p10), %v12573_v55  ;;  %v12581_v48 = vld [vmem:[#allocation11 + $0x50] ss:$20 sps:$4 sm:$0xff] (!%p10309_p10)   ;;  %v12587_v52 = vld [vmem:[#allocation11 + $0x78] ss:$20 sps:$4 sm:$0xff] (!%p10309_p10)   ;;  %v12594_v57 = vld [vmem:[#allocation11 + $0x328] ss:$20 sps:$4 sm:$0xff] (!%p10309_p10)  }
 0x4c0   : > { %v4202_v0 = vadd.f32 %v4201_v18, %v4200_v22  ;;  %v4222_v45 = vrot.slane %v4221_v14, 1  ;;  %v12583_v9 = vld [vmem:[#allocation11 + $0x7c] ss:$20 sps:$4 sm:$0xff] (!%p10309_p10)   ;;  %v12585_v63 = vld [vmem:[#allocation11 + $0x304] ss:$20 sps:$4 sm:$0xff] (!%p10309_p10)  }
 0x4c1   : > { %v12556_v25 = vpop.eup %12555  ;;  %v12589_v16 = vld [vmem:[#allocation11 + $0xa4] ss:$20 sps:$4 sm:$0xff] (!%p10309_p10)   ;;  %v12591_v17 = vld [vmem:[#allocation11 + $0x32c] ss:$20 sps:$4 sm:$0xff] (!%p10309_p10)   ;;  %v12597_v34 = vld [vmem:[#allocation11 + $0x354] ss:$20 sps:$4 sm:$0xff] (!%p10309_p10)  }
 0x4c2   : > { %v4223_v58 = vadd.f32 %v4222_v45, %v4221_v14  ;;  %v3954_v37 = vmul.f32 %v12556_v25, %v16342_v49  ;;  %8415 = vmatpush1.bf16.msra.mxu1 (!%p10309_p10), %v12576_v29  ;;  %v12593_v22 = vld [vmem:[#allocation11 + $0xa0] ss:$20 sps:$4 sm:$0xff] (!%p10309_p10)   ;;  %v12599_v50 = vld [vmem:[#allocation11 + $0xc8] ss:$20 sps:$4 sm:$0xff] (!%p10309_p10)   ;;  %v12600_v18 = vld [vmem:[#allocation11 + $0x350] ss:$20 sps:$4 sm:$0xff] (!%p10309_p10)  }
 0x4c3   : > { %8416 = vmatprep.subr.bf16.mxu1 (!%p10309_p10), %v12579_v8  ;;  %v12601_v14 = vld [vmem:[#allocation11 + $0xf4] ss:$20 sps:$4 sm:$0xff] (!%p10309_p10)   ;;  %v12605_v45 = vld [vmem:[#allocation11 + $0xf0] ss:$20 sps:$4 sm:$0xff] (!%p10309_p10)   ;;  %v12606_v25 = vld [vmem:[#allocation11 + $0x378] ss:$20 sps:$4 sm:$0xff] (!%p10309_p10)  }
 0x4c4   : > { %v4330_v40 = vcombine.low %v4202_v0, %v4223_v58  ;;  %v4237_v33 = vadd.f32 %v4236_v24, %v3954_v37  ;;  %v12588_v24 = vld [vmem:[#allocation11 + $0x300] ss:$20 sps:$4 sm:$0xff] (!%p10309_p10)   ;;  %v12603_v0 = vld [vmem:[#allocation11 + $0x37c] ss:$20 sps:$4 sm:$0xff] (!%p10309_p10)   ;;  %v12609_v37 = vld [vmem:[#allocation11 + $0x3a4] ss:$20 sps:$4 sm:$0xff] (!%p10309_p10)  }
 0x4c5   : > { %v12607_v58 = vld [vmem:[#allocation11 + $0x11c] ss:$20 sps:$4 sm:$0xff] (!%p10309_p10)   ;;  %v12649_v51 = vld [vmem:[#allocation11 + $0x234] ss:$20 sps:$4 sm:$0xff] (!%p10309_p10)   ;;  %v12654_v13 = vld [vmem:[#allocation11 + $0x4b8] ss:$20 sps:$4 sm:$0xff] (!%p10309_p10)  }
 0x4c6   : > { %v4345_v26 = vrot.slane %v4330_v40, %v15327_v30  ;;  %8417 = vmatpush1.bf16.msra.mxu1 (!%p10309_p10), %v12582_v46  ;;  %v12611_v40 = vld [vmem:[#allocation11 + $0x118] ss:$20 sps:$4 sm:$0xff] (!%p10309_p10)   ;;  %v12647_v1 = vld [vmem:[#allocation11 + $0x208] ss:$20 sps:$4 sm:$0xff] (!%p10309_p10)   ;;  %v12653_v2 = vld [vmem:[#allocation11 + $0x230] ss:$20 sps:$4 sm:$0xff] (!%p10309_p10)  }
 0x4c7   : > { %v12558_v35 = vpop.eup %12557  ;;  %8418 = vmatprep.subr.bf16.mxu1 (!%p10309_p10), %v12585_v63  ;;  %v12651_v19 = vld [vmem:[#allocation11 + $0x4bc] ss:$20 sps:$4 sm:$0xff] (!%p10309_p10)   ;;  %v12657_v55 = vld [vmem:[#allocation11 + $0x4e4] ss:$20 sps:$4 sm:$0xff] (!%p10309_p10)   ;;  %v12660_v46 = vld [vmem:[#allocation11 + $0x4e0] ss:$20 sps:$4 sm:$0xff] (!%p10309_p10)  }
 0x4c8   : > { %v12560_v12 = vpop.eup %12559  ;;  %v4353_v56 = vcombine.low %v4338_v38, %v4345_v26  ;;  %v3955_v6 = vmul.f32 %v12558_v35, %v16348_v15  ;;  %v12613_v38 = vld [vmem:[#allocation11 + $0x144] ss:$20 sps:$4 sm:$0xff] (!%p10309_p10)   ;;  %v12615_v26 = vld [vmem:[#allocation11 + $0x3cc] ss:$20 sps:$4 sm:$0xff] (!%p10309_p10)   ;;  %v12655_v5 = vld [vmem:[#allocation11 + $0x25c] ss:$20 sps:$4 sm:$0xff] (!%p10309_p10)  }
 0x4c9   : > { %v12562_v4 = vpop.eup %12561  ;;  %v3968_v39 = vmul.f32 %v12560_v12, %v16352_v41  ;;  %v12617_v35 = vld [vmem:[#allocation11 + $0x140] ss:$20 sps:$4 sm:$0xff] (!%p10309_p10)   ;;  %v12618_v12 = vld [vmem:[#allocation11 + $0x3c8] ss:$20 sps:$4 sm:$0xff] (!%p10309_p10)  }
 0x4ca   : > { %v4258_v31 = vadd.f32 %v4257_v28, %v3955_v6  ;;  %v3969_v49 = vmul.f32 %v12562_v4, %v16356_v60  ;;  %v4360_v23 = vrot.slane %v4353_v56, %v15327_v30  ;;  %8419 = vmatpush1.bf16.msra.mxu1 (!%p10309_p10), %v12588_v24  ;;  %v12595_v28 = vld [vmem:[#allocation11 + $0xcc] ss:$20 sps:$4 sm:$0xff] (!%p10309_p10)   ;;  %v12621_v6 = vld [vmem:[#allocation11 + $0x3f4] ss:$20 sps:$4 sm:$0xff] (!%p10309_p10)  }
 0x4cb   : > { %v4238_v43 = vadd.f32 %v4237_v33, %v3968_v39  ;;  %8420 = vmatprep.subr.bf16.mxu1 (!%p10309_p10), %v12591_v17  ;;  %v12612_v33 = vld [vmem:[#allocation11 + $0x3a0] ss:$20 sps:$4 sm:$0xff] (!%p10309_p10)   ;;  %v12623_v4 = vld [vmem:[#allocation11 + $0x168] ss:$20 sps:$4 sm:$0xff] (!%p10309_p10)   ;;  %v12624_v39 = vld [vmem:[#allocation11 + $0x3f0] ss:$20 sps:$4 sm:$0xff] (!%p10309_p10)  }
 0x4cc   : > { %v4259_v11 = vadd.f32 %v4258_v31, %v3969_v49  ;;  %v12619_v56 = vld [vmem:[#allocation11 + $0x16c] ss:$20 sps:$4 sm:$0xff] (!%p10309_p10)   ;;  %v12625_v31 = vld [vmem:[#allocation11 + $0x194] ss:$20 sps:$4 sm:$0xff] (!%p10309_p10)   ;;  %v12627_v49 = vld [vmem:[#allocation11 + $0x41c] ss:$20 sps:$4 sm:$0xff] (!%p10309_p10)  }
 0x4cd   : > { %v4239_v32 = vrot.slane %v4238_v43, 4  ;;  %v16980_v29 = vld [vmem:[#allocation35_spill] sm:$0xff] (!%p10309_p10)  ;;  %v16981_v8 = vld [vmem:[#allocation37_spill] sm:$0xff] (!%p10309_p10)  ;;  %v12666_v63 = vld [vmem:[#allocation11 + $0x50c] ss:$20 sps:$4 sm:$0xff] (!%p10309_p10)  }
 0x4ce   : > { %v4260_v27 = vrot.slane %v4259_v11, 4  ;;  %8421 = vmatpush1.bf16.msra.mxu1 (!%p10309_p10), %v12594_v57  ;;  %v12664_v57 = vld [vmem:[#allocation11 + $0x508] ss:$20 sps:$4 sm:$0xff] (!%p10309_p10)  }
 0x4cf   : > { %v4240_v62 = vadd.f32 %v4239_v32, %v4238_v43  ;;  %8422 = vmatprep.subr.bf16.mxu1 (!%p10309_p10), %v12597_v34  ;;  %v12629_v43 = vld [vmem:[#allocation11 + $0x190] ss:$20 sps:$4 sm:$0xff] (!%p10309_p10)   ;;  %v12672_v34 = vld [vmem:[#allocation11 + $0x534] ss:$20 sps:$4 sm:$0xff] (!%p10309_p10)  }
 0x4d0   : > { %v4261_v10 = vadd.f32 %v4260_v27, %v4259_v11  ;;  %v12630_v11 = vld [vmem:[#allocation11 + $0x418] ss:$20 sps:$4 sm:$0xff] (!%p10309_p10)   ;;  %v12631_v32 = vld [vmem:[#allocation11 + $0x1bc] ss:$20 sps:$4 sm:$0xff] (!%p10309_p10)  }
 0x4d1   : > { %v4241_v47 = vrot.slane %v4240_v62, 2  ;;  %v12633_v27 = vld [vmem:[#allocation11 + $0x444] ss:$20 sps:$4 sm:$0xff] (!%p10309_p10)  }
 0x4d2   : > { %v4262_v44 = vrot.slane %v4261_v10, 2  ;;  %8423 = vmatpush1.bf16.msra.mxu1 (!%p10309_p10), %v12600_v18  ;;  %v12667_v18 = vld [vmem:[#allocation11 + $0x2a8] ss:$20 sps:$4 sm:$0xff] (!%p10309_p10)  }
 0x4d3   : > { %v4242_v7 = vadd.f32 %v4241_v47, %v4240_v62  ;;  %8424 = vmatprep.subr.bf16.mxu1 (!%p10309_p10), %v12603_v0  ;;  %v4383_v62 = vld [vmem:[#allocation2] sm:$0xff] (!%p10309_p10) }
 0x4d4   : > { %v4263_v3 = vadd.f32 %v4262_v44, %v4261_v10  ;;  %v12635_v10 = vld [vmem:[#allocation11 + $0x1b8] ss:$20 sps:$4 sm:$0xff] (!%p10309_p10)   ;;  %v16387_v47 = vmul.f32 (!%p10309_p10), 0.00390625, %v4383_v62  ;;  %v12636_v44 = vld [vmem:[#allocation11 + $0x440] ss:$20 sps:$4 sm:$0xff] (!%p10309_p10)  }
 0x4d5   : > { %v4243_v53 = vrot.slane %v4242_v7, 1  ;;  %v12675_v0 = vld [vmem:[#allocation11 + $0x2d4] ss:$20 sps:$4 sm:$0xff] (!%p10309_p10)   ;;  %v12708_v62 = vld [vmem:[#allocation11 + $0x624] ss:$20 sps:$4 sm:$0xff] (!%p10309_p10)  }
 0x4d6   : > { %v4264_v61 = vrot.slane %v4263_v3, 1  ;;  %8425 = vmatpush1.bf16.msra.mxu1 (!%p10309_p10), %v12606_v25  ;;  %v12673_v25 = vld [vmem:[#allocation11 + $0x2d0] ss:$20 sps:$4 sm:$0xff] (!%p10309_p10)  }
 0x4d7   : > { %v4244_v36 = vadd.f32 %v4243_v53, %v4242_v7  ;;  %8426 = vmatprep.subr.bf16.mxu1 (!%p10309_p10), %v12609_v37  ;;  %v12637_v7 = vld [vmem:[#allocation11 + $0x1e4] ss:$20 sps:$4 sm:$0xff] (!%p10309_p10)   ;;  %v16978_v53 = vld [vmem:[#allocation36_spill] sm:$0xff] (!%p10309_p10) }
 0x4d8   : > { %v4265_v15 = vadd.f32 %v4264_v61, %v4263_v3  ;;  %v12639_v3 = vld [vmem:[#allocation11 + $0x46c] ss:$20 sps:$4 sm:$0xff] (!%p10309_p10)   ;;  %v4396_v61 = vrot.slane (!%p10309_p10), %v16387_v47, %v16978_v53  ;;  %v12681_v37 = vld [vmem:[#allocation11 + $0x2fc] ss:$20 sps:$4 sm:$0xff] (!%p10309_p10)  }
 0x4da   : > { %v4331_v42 = vcombine.low %v4244_v36, %v4265_v15  ;;  %8427 = vmatpush1.bf16.msra.mxu1 (!%p10309_p10), %v12612_v33  ;;  %v16979_v36 = vld [vmem:[#allocation38_spill] sm:$0xff] (!%p10309_p10) }
 0x4db   : > { %8428 = vmatprep.subr.bf16.mxu1 (!%p10309_p10), %v12615_v26  ;;  %v4404_v15 = vrot.slane (!%p10309_p10), %v16387_v47, %v16979_v36  ;;  %v12679_v33 = vld [vmem:[#allocation11 + $0x2f8] ss:$20 sps:$4 sm:$0xff] (!%p10309_p10)  }
 0x4dc   : > { %v4352_v41 = vrot.slane %v4331_v42, %v15327_v30  ;;  %v12641_v42 = vld [vmem:[#allocation11 + $0x1e0] ss:$20 sps:$4 sm:$0xff] (!%p10309_p10)   ;;  %v12687_v26 = vld [vmem:[#allocation11 + $0x324] ss:$20 sps:$4 sm:$0xff] (!%p10309_p10)  }
 0x4de   : > { %v4367_v60 = vrot.slane %v4352_v41, %v15327_v30  ;;  %4382 = sbr.rel (%p10309_p10) target bundleno = 2541 (0x9ed), region = 108  ;;  %v12575_v30 = vld [vmem:[#allocation11 + $0x28] ss:$20 sps:$4 sm:$0xff] (!%p10309_p10)   ;;  %8429 = vmatpush1.bf16.msra.mxu1 (!%p10309_p10), %v12618_v12  ;;  %v16393_v41 = vpack.c.bf16 (!%p10309_p10), %v4396_v61, %v4396_v61  ;;  %v12685_v12 = vld [vmem:[#allocation11 + $0x320] ss:$20 sps:$4 sm:$0xff] (!%p10309_p10)  }
 0x4df   : > { %8087 = vmatpush1.bf16.msra.mxu0 (!%p10309_p10), %v12575_v30  ;;  %8430 = vmatprep.subr.bf16.mxu1 (!%p10309_p10), %v12621_v6  ;;  %v12659_v30 = vld [vmem:[#allocation11 + $0x258] ss:$20 sps:$4 sm:$0xff] (!%p10309_p10)   ;;  %v12709_v61 = vld [vmem:[#allocation11 + $0x3c0] ss:$20 sps:$4 sm:$0xff] (!%p10309_p10)  }
 0x4e0   : > { %v4368_v54 = vcombine.low %v4360_v23, %v4367_v60  ;;  %8088 = vmatprep.subr.bf16.mxu0 (!%p10309_p10), %v12577_v21  ;;  %v16395_v23 = vpack.c.bf16 (!%p10309_p10), %v4404_v15, %v4404_v15  ;;  %v12642_v60 = vld [vmem:[#allocation11 + $0x468] ss:$20 sps:$4 sm:$0xff] (!%p10309_p10)   ;;  %8116 = vmatprep.mubr.bf16.mxu0 (!%p10309_p10), %v16393_v41  ;;  %v4392_v21 = vrot.slane (!%p10309_p10), %v16387_v47, %v16980_v29  ;;  %v12693_v6 = vld [vmem:[#allocation11 + $0x34c] ss:$20 sps:$4 sm:$0xff] (!%p10309_p10)  }
 0x4e1   : > { %v12712_v15 = vld [vmem:[#allocation11 + $0x648] ss:$20 sps:$4 sm:$0xff] (!%p10309_p10)  }
 0x4e2   : > { %v4372_v20 = vadd.f32 %v4368_v54, %v3971_v59  ;;  %8431 = vmatpush1.bf16.msra.mxu1 (!%p10309_p10), %v12624_v39  ;;  %v12643_v59 = vld [vmem:[#allocation11 + $0x20c] ss:$20 sps:$4 sm:$0xff] (!%p10309_p10)   ;;  %v12645_v54 = vld [vmem:[#allocation11 + $0x494] ss:$20 sps:$4 sm:$0xff] (!%p10309_p10)   ;;  %8444 = vmatprep.mubr.bf16.mxu1 (!%p10309_p10), %v16395_v23  ;;  %v16405_v17 = vpack.c.bf16 (!%p10309_p10), %v4392_v21, %v4392_v21 }
 0x4e3   : > { %8089 = vmatpush1.bf16.msra.mxu0 (!%p10309_p10), %v12581_v48  ;;  %8432 = vmatprep.subr.bf16.mxu1 (!%p10309_p10), %v12627_v49  ;;  %v4400_v48 = vrot.slane (!%p10309_p10), %v16387_v47, %v16981_v8  ;;  %v12691_v39 = vld [vmem:[#allocation11 + $0x348] ss:$20 sps:$4 sm:$0xff] (!%p10309_p10)   ;;  %v12738_v21 = vld [vmem:[#allocation11 + $0x6ec] ss:$20 sps:$4 sm:$0xff] (!%p10309_p10)  }
 0x4e4   : > { %4378 = vst.msk [vmem:[#allocation2 + $0x8] sm:$0x3f] %vm4376_vm2, %v4372_v20  ;;  %8090 = vmatprep.subr.bf16.mxu0 (!%p10309_p10), %v12583_v9  ;;  %v12648_v20 = vld [vmem:[#allocation11 + $0x490] ss:$20 sps:$4 sm:$0xff] (!%p10309_p10)   ;;  %v12699_v49 = vld [vmem:[#allocation11 + $0x374] ss:$20 sps:$4 sm:$0xff] (!%p10309_p10)  }
 0x4e5   : > { %v12663_v9 = vld [vmem:[#allocation11 + $0x284] ss:$20 sps:$4 sm:$0xff]  }
 0x4e6   : > { %8433 = vmatpush1.bf16.msra.mxu1 %v12630_v11  ;;  %v12697_v11 = vld [vmem:[#allocation11 + $0x370] ss:$20 sps:$4 sm:$0xff]  }
 0x4e7   : > { %8091 = vmatpush1.bf16.msra.mxu0 %v12587_v52  ;;  %8434 = vmatprep.subr.bf16.mxu1 %v12633_v27  ;;  %v16982_v52 = vld [vmem:[#allocation47_spill] sm:$0xff]  ;;  %v12705_v27 = vld [vmem:[#allocation11 + $0x39c] ss:$20 sps:$4 sm:$0xff]  }
 0x4e8   : > { %8092 = vmatprep.subr.bf16.mxu0 %v12589_v16  ;;  %v4412_v24 = vrot.slane %v16387_v47, %v16982_v52  ;;  %v12661_v16 = vld [vmem:[#allocation11 + $0x280] ss:$20 sps:$4 sm:$0xff]  }
 0x4ea   : > { %8435 = vmatpush1.bf16.msra.mxu1 %v12636_v44  ;;  %v12706_v44 = vld [vmem:[#allocation11 + $0x620] ss:$20 sps:$4 sm:$0xff]  }
 0x4eb   : > { %8093 = vmatpush1.bf16.msra.mxu0 %v12593_v22  ;;  %8436 = vmatprep.subr.bf16.mxu1 %v12639_v3  ;;  %v16407_v22 = vpack.c.bf16 %v4400_v48, %v4400_v48  ;;  %v12714_v3 = vld [vmem:[#allocation11 + $0x64c] ss:$20 sps:$4 sm:$0xff]  }
 0x4ec   : > { %8094 = vmatprep.subr.bf16.mxu0 %v12595_v28  ;;  %v12669_v28 = vld [vmem:[#allocation11 + $0x2ac] ss:$20 sps:$4 sm:$0xff]  }
 0x4ed   : > { %v12733_v48 = vld [vmem:[#allocation11 + $0x460] ss:$20 sps:$4 sm:$0xff]  }
 0x4ee   : > { %8437 = vmatpush1.bf16.msra.mxu1 %v12642_v60  ;;  %v12720_v60 = vld [vmem:[#allocation11 + $0x674] ss:$20 sps:$4 sm:$0xff]  }
 0x4ef   : > { %8095 = vmatpush1.bf16.msra.mxu0 %v12599_v50  ;;  %8438 = vmatprep.subr.bf16.mxu1 %v12645_v54  ;;  %v16409_v50 = vpack.c.bf16 %v4412_v24, %v4412_v24  ;;  %v12718_v54 = vld [vmem:[#allocation11 + $0x670] ss:$20 sps:$4 sm:$0xff]   ;;  %v12739_v24 = vld [vmem:[#allocation11 + $0x488] ss:$20 sps:$4 sm:$0xff]  }
 0x4f0   : > { %8096 = vmatprep.subr.bf16.mxu0 %v12601_v14  ;;  %v12670_v14 = vld [vmem:[#allocation11 + $0x530] ss:$20 sps:$4 sm:$0xff]  }
 0x4f2   : > { %8439 = vmatpush1.bf16.msra.mxu1 %v12648_v20  ;;  %v12726_v20 = vld [vmem:[#allocation11 + $0x69c] ss:$20 sps:$4 sm:$0xff]  }
 0x4f3   : > { %8097 = vmatpush1.bf16.msra.mxu0 %v12605_v45  ;;  %8440 = vmatprep.subr.bf16.mxu1 %v12651_v19  ;;  %v12678_v45 = vld [vmem:[#allocation11 + $0x55c] ss:$20 sps:$4 sm:$0xff]   ;;  %v12724_v19 = vld [vmem:[#allocation11 + $0x698] ss:$20 sps:$4 sm:$0xff]  }
 0x4f4   : > { %8098 = vmatprep.subr.bf16.mxu0 %v12607_v58  ;;  %v12676_v58 = vld [vmem:[#allocation11 + $0x558] ss:$20 sps:$4 sm:$0xff]  }
 0x4f6   : > { %8441 = vmatpush1.bf16.msra.mxu1 %v12654_v13  ;;  %v12732_v13 = vld [vmem:[#allocation11 + $0x6c4] ss:$20 sps:$4 sm:$0xff]  }
 0x4f7   : > { %8099 = vmatpush1.bf16.msra.mxu0 %v12611_v40  ;;  %8442 = vmatprep.subr.bf16.mxu1 %v12657_v55  ;;  %v12684_v40 = vld [vmem:[#allocation11 + $0x584] ss:$20 sps:$4 sm:$0xff]   ;;  %v12730_v55 = vld [vmem:[#allocation11 + $0x6c0] ss:$20 sps:$4 sm:$0xff]  }
 0x4f8   : > { %8100 = vmatprep.subr.bf16.mxu0 %v12613_v38  ;;  %v12682_v38 = vld [vmem:[#allocation11 + $0x580] ss:$20 sps:$4 sm:$0xff]  }
 0x4fa   : > { %8443 = vmatpush1.bf16.msra.mxu1 %v12660_v46  ;;  %v12736_v46 = vld [vmem:[#allocation11 + $0x6e8] ss:$20 sps:$4 sm:$0xff]  }
 0x4fb   : > { %8101 = vmatpush1.bf16.msra.mxu0 %v12617_v35  ;;  %8453 = vmatprep.subr.bf16.mxu1 %v12666_v63  ;;  %v12690_v35 = vld [vmem:[#allocation11 + $0x5ac] ss:$20 sps:$4 sm:$0xff]   ;;  %v12744_v63 = vld [vmem:[#allocation11 + $0x714] ss:$20 sps:$4 sm:$0xff]  }
 0x4fc   : > { %8102 = vmatprep.subr.bf16.mxu0 %v12619_v56  ;;  %v12688_v56 = vld [vmem:[#allocation11 + $0x5a8] ss:$20 sps:$4 sm:$0xff]  }
 0x4fd   : > { %8445 = vmatmul.mubr.bf16.vlgmr.msra.gmra.mrb[0].mxu1 %v16407_v22 }
 0x4fe   : > { %8454 = vmatpush1.bf16.msra.mxu1 %v12664_v57  ;;  %8485 = vmatprep.mubr.bf16.mxu1 %v16409_v50  ;;  %v12747_v57 = vld [vmem:[#allocation11 + $0x4b4] ss:$20 sps:$4 sm:$0xff]  }
 0x4ff   : > { %8103 = vmatpush1.bf16.msra.mxu0 %v12623_v4  ;;  %8455 = vmatprep.subr.bf16.mxu1 %v12672_v34  ;;  %v12696_v4 = vld [vmem:[#allocation11 + $0x5d4] ss:$20 sps:$4 sm:$0xff]   ;;  %v12745_v34 = vld [vmem:[#allocation11 + $0x4b0] ss:$20 sps:$4 sm:$0xff]  }
 0x500   : > { %8104 = vmatprep.subr.bf16.mxu0 %v12625_v31  ;;  %v12694_v31 = vld [vmem:[#allocation11 + $0x5d0] ss:$20 sps:$4 sm:$0xff]  }
 0x502   : > { %8456 = vmatpush1.bf16.msra.mxu1 %v12670_v14  ;;  %v12753_v14 = vld [vmem:[#allocation11 + $0x4dc] ss:$20 sps:$4 sm:$0xff]  }
 0x503   : > { %8105 = vmatpush1.bf16.msra.mxu0 %v12629_v43  ;;  %8457 = vmatprep.subr.bf16.mxu1 %v12678_v45  ;;  %v12702_v43 = vld [vmem:[#allocation11 + $0x5fc] ss:$20 sps:$4 sm:$0xff]   ;;  %v12751_v45 = vld [vmem:[#allocation11 + $0x4d8] ss:$20 sps:$4 sm:$0xff]  }
 0x504   : > { %8106 = vmatprep.subr.bf16.mxu0 %v12631_v32  ;;  %v12700_v32 = vld [vmem:[#allocation11 + $0x5f8] ss:$20 sps:$4 sm:$0xff]  }
 0x506   : > { %8458 = vmatpush1.bf16.msra.mxu1 %v12676_v58 }
 0x507   : > { %8107 = vmatpush1.bf16.msra.mxu0 %v12635_v10  ;;  %8459 = vmatprep.subr.bf16.mxu1 %v12684_v40  ;;  %v12703_v10 = vld [vmem:[#allocation11 + $0x398] ss:$20 sps:$4 sm:$0xff]  }
 0x508   : > { %8108 = vmatprep.subr.bf16.mxu0 %v12637_v7  ;;  %v12711_v7 = vld [vmem:[#allocation11 + $0x3c4] ss:$20 sps:$4 sm:$0xff]  }
 0x509   : > { %v12759_v40 = vld [vmem:[#allocation11 + $0x504] ss:$20 sps:$4 sm:$0xff]  }
 0x50a   : > { %8460 = vmatpush1.bf16.msra.mxu1 %v12682_v38  ;;  %v16984_v38 = vld [vmem:[#allocation34_spill] sm:$0xff] }
 0x50b   : > { %8109 = vmatpush1.bf16.msra.mxu0 %v12641_v42  ;;  %8461 = vmatprep.subr.bf16.mxu1 %v12690_v35  ;;  %v12717_v42 = vld [vmem:[#allocation11 + $0x3ec] ss:$20 sps:$4 sm:$0xff]  }
 0x50c   : > { %8110 = vmatprep.subr.bf16.mxu0 %v12643_v59  ;;  %v12715_v59 = vld [vmem:[#allocation11 + $0x3e8] ss:$20 sps:$4 sm:$0xff]  }
 0x50e   : > { %8462 = vmatpush1.bf16.msra.mxu1 %v12688_v56 }
 0x50f   : > { %8111 = vmatpush1.bf16.msra.mxu0 %v12647_v1  ;;  %8463 = vmatprep.subr.bf16.mxu1 %v12696_v4  ;;  %v12723_v1 = vld [vmem:[#allocation11 + $0x414] ss:$20 sps:$4 sm:$0xff]   ;;  %v12765_v4 = vld [vmem:[#allocation11 + $0x52c] ss:$20 sps:$4 sm:$0xff]  }
 0x510   : > { %8112 = vmatprep.subr.bf16.mxu0 %v12649_v51  ;;  %v12721_v51 = vld [vmem:[#allocation11 + $0x410] ss:$20 sps:$4 sm:$0xff]  }
 0x512   : > { %8464 = vmatpush1.bf16.msra.mxu1 %v12694_v31 }
 0x513   : > { %8113 = vmatpush1.bf16.msra.mxu0 %v12653_v2  ;;  %8465 = vmatprep.subr.bf16.mxu1 %v12702_v43  ;;  %v12729_v2 = vld [vmem:[#allocation11 + $0x43c] ss:$20 sps:$4 sm:$0xff]  }
 0x514   : > { %8114 = vmatprep.subr.bf16.mxu0 %v12655_v5  ;;  %v12727_v5 = vld [vmem:[#allocation11 + $0x438] ss:$20 sps:$4 sm:$0xff]   ;;  %v12766_v43 = vld [vmem:[#allocation11 + $0x7b0] ss:$20 sps:$4 sm:$0xff]  }
 0x516   : > { %8466 = vmatpush1.bf16.msra.mxu1 %v12700_v32  ;;  %v12774_v32 = vld [vmem:[#allocation11 + $0x7dc] ss:$20 sps:$4 sm:$0xff]  }
 0x517   : > { %8115 = vmatpush1.bf16.msra.mxu0 %v12659_v30  ;;  %8467 = vmatprep.subr.bf16.mxu1 %v12708_v62  ;;  %v12735_v30 = vld [vmem:[#allocation11 + $0x464] ss:$20 sps:$4 sm:$0xff]  }
 0x518   : > { %8125 = vmatprep.subr.bf16.mxu0 %v12663_v9  ;;  %v12741_v9 = vld [vmem:[#allocation11 + $0x48c] ss:$20 sps:$4 sm:$0xff]  }
 0x519   : > { %v12772_v62 = vld [vmem:[#allocation11 + $0x7d8] ss:$20 sps:$4 sm:$0xff]  }
 0x51a   : > { %8117 = vmatmul.mubr.bf16.vlgmr.msra.gmra.mrb[0].mxu0 %v16405_v17  ;;  %8468 = vmatpush1.bf16.msra.mxu1 %v12706_v44  ;;  %v12780_v44 = vld [vmem:[#allocation11 + $0x804] ss:$20 sps:$4 sm:$0xff]  }
 0x51b   : > { %8126 = vmatpush1.bf16.msra.mxu0 %v12661_v16  ;;  %8157 = vmatprep.mubr.bf16.mxu0 %v16395_v23  ;;  %v12742_v16 = vld [vmem:[#allocation11 + $0x710] ss:$20 sps:$4 sm:$0xff]  }
 0x51c   : > { %8127 = vmatprep.subr.bf16.mxu0 %v12669_v28  ;;  %8469 = vmatprep.subr.bf16.mxu1 %v12714_v3  ;;  %v12750_v28 = vld [vmem:[#allocation11 + $0x73c] ss:$20 sps:$4 sm:$0xff]   ;;  %v12778_v3 = vld [vmem:[#allocation11 + $0x800] ss:$20 sps:$4 sm:$0xff]  }
 0x51e   : > { %8470 = vmatpush1.bf16.msra.mxu1 %v12712_v15  ;;  %v12786_v15 = vld [vmem:[#allocation11 + $0x82c] ss:$20 sps:$4 sm:$0xff]  }
 0x51f   : > { %8128 = vmatpush1.bf16.msra.mxu0 %v12667_v18  ;;  %8471 = vmatprep.subr.bf16.mxu1 %v12720_v60  ;;  %v12748_v18 = vld [vmem:[#allocation11 + $0x738] ss:$20 sps:$4 sm:$0xff]   ;;  %v12784_v60 = vld [vmem:[#allocation11 + $0x828] ss:$20 sps:$4 sm:$0xff]  }
 0x520   : > { %8129 = vmatprep.subr.bf16.mxu0 %v12675_v0  ;;  %v12756_v0 = vld [vmem:[#allocation11 + $0x764] ss:$20 sps:$4 sm:$0xff]  }
 0x522   : > { %8472 = vmatpush1.bf16.msra.mxu1 %v12718_v54  ;;  %v12792_v54 = vld [vmem:[#allocation11 + $0x854] ss:$20 sps:$4 sm:$0xff]  }
 0x523   : > { %8130 = vmatpush1.bf16.msra.mxu0 %v12673_v25  ;;  %8473 = vmatprep.subr.bf16.mxu1 %v12726_v20  ;;  %v16983_v25 = vld [vmem:[#allocation43_spill] sm:$0xff]  ;;  %v12790_v20 = vld [vmem:[#allocation11 + $0x850] ss:$20 sps:$4 sm:$0xff]  }
 0x524   : > { %8131 = vmatprep.subr.bf16.mxu0 %v12681_v37  ;;  %v4408_v58 = vrot.slane %v16387_v47, %v16983_v25  ;;  %v12754_v37 = vld [vmem:[#allocation11 + $0x760] ss:$20 sps:$4 sm:$0xff]  }
 0x526   : > { %8474 = vmatpush1.bf16.msra.mxu1 %v12724_v19  ;;  %v16420_v56 = vpack.c.bf16 %v4408_v58, %v4408_v58  ;;  %v12798_v19 = vld [vmem:[#allocation11 + $0x87c] ss:$20 sps:$4 sm:$0xff]   ;;  %v12828_v58 = vld [vmem:[#allocation11 + $0x944] ss:$20 sps:$4 sm:$0xff]  }
 0x527   : > { %8132 = vmatpush1.bf16.msra.mxu0 %v12679_v33  ;;  %8475 = vmatprep.subr.bf16.mxu1 %v12732_v13  ;;  %v12762_v33 = vld [vmem:[#allocation11 + $0x78c] ss:$20 sps:$4 sm:$0xff]  }
 0x528   : > { %8133 = vmatprep.subr.bf16.mxu0 %v12687_v26  ;;  %v16985_v26 = vsub.s32 7, %v16984_v38  ;;  %v12796_v13 = vld [vmem:[#allocation11 + $0x878] ss:$20 sps:$4 sm:$0xff]  }
 0x52a   : > { %8476 = vmatpush1.bf16.msra.mxu1 %v12730_v55  ;;  %v4420_v35 = vrot.slane %v16387_v47, %v16985_v26  ;;  %v12804_v55 = vld [vmem:[#allocation11 + $0x8a4] ss:$20 sps:$4 sm:$0xff]   ;;  %v12834_v26 = vld [vmem:[#allocation11 + $0x96c] ss:$20 sps:$4 sm:$0xff]  }
 0x52b   : > { %8134 = vmatpush1.bf16.msra.mxu0 %v12685_v12  ;;  %8477 = vmatprep.subr.bf16.mxu1 %v12738_v21  ;;  %v12757_v12 = vld [vmem:[#allocation11 + $0x500] ss:$20 sps:$4 sm:$0xff]  }
 0x52c   : > { %8135 = vmatprep.subr.bf16.mxu0 %v12693_v6  ;;  %v12760_v6 = vld [vmem:[#allocation11 + $0x788] ss:$20 sps:$4 sm:$0xff]   ;;  %v16422_v31 = vpack.c.bf16 %v4420_v35, %v4420_v35  ;;  %v12802_v21 = vld [vmem:[#allocation11 + $0x8a0] ss:$20 sps:$4 sm:$0xff]  }
 0x52d   : > { %v12829_v35 = vld [vmem:[#allocation11 + $0x6e0] ss:$20 sps:$4 sm:$0xff]  }
 0x52e   : > { %8478 = vmatpush1.bf16.msra.mxu1 %v12736_v46  ;;  %v12810_v46 = vld [vmem:[#allocation11 + $0x8cc] ss:$20 sps:$4 sm:$0xff]  }
 0x52f   : > { %8136 = vmatpush1.bf16.msra.mxu0 %v12691_v39  ;;  %8479 = vmatprep.subr.bf16.mxu1 %v12744_v63  ;;  %v12768_v39 = vld [vmem:[#allocation11 + $0x7b4] ss:$20 sps:$4 sm:$0xff]  }
 0x530   : > { %8137 = vmatprep.subr.bf16.mxu0 %v12699_v49  ;;  %v12763_v49 = vld [vmem:[#allocation11 + $0x528] ss:$20 sps:$4 sm:$0xff]  }
 0x531   : > { %v12808_v63 = vld [vmem:[#allocation11 + $0x8c8] ss:$20 sps:$4 sm:$0xff]  }
 0x532   : > { %8480 = vmatpush1.bf16.msra.mxu1 %v12742_v16  ;;  %v12816_v16 = vld [vmem:[#allocation11 + $0x8f4] ss:$20 sps:$4 sm:$0xff]  }
 0x533   : > { %8138 = vmatpush1.bf16.msra.mxu0 %v12697_v11  ;;  %8481 = vmatprep.subr.bf16.mxu1 %v12750_v28  ;;  %v12771_v11 = vld [vmem:[#allocation11 + $0x554] ss:$20 sps:$4 sm:$0xff]   ;;  %v12814_v28 = vld [vmem:[#allocation11 + $0x8f0] ss:$20 sps:$4 sm:$0xff]  }
 0x534   : > { %8139 = vmatprep.subr.bf16.mxu0 %v12705_v27  ;;  %v12769_v27 = vld [vmem:[#allocation11 + $0x550] ss:$20 sps:$4 sm:$0xff]  }
 0x536   : > { %8482 = vmatpush1.bf16.msra.mxu1 %v12748_v18  ;;  %v12822_v18 = vld [vmem:[#allocation11 + $0x91c] ss:$20 sps:$4 sm:$0xff]  }
 0x537   : > { %8140 = vmatpush1.bf16.msra.mxu0 %v12703_v10  ;;  %8483 = vmatprep.subr.bf16.mxu1 %v12756_v0  ;;  %v12777_v10 = vld [vmem:[#allocation11 + $0x57c] ss:$20 sps:$4 sm:$0xff]   ;;  %v12820_v0 = vld [vmem:[#allocation11 + $0x918] ss:$20 sps:$4 sm:$0xff]  }
 0x538   : > { %8141 = vmatprep.subr.bf16.mxu0 %v12711_v7  ;;  %v12775_v7 = vld [vmem:[#allocation11 + $0x578] ss:$20 sps:$4 sm:$0xff]  }
 0x53a   : > { %8484 = vmatpush1.bf16.msra.mxu1 %v12754_v37  ;;  %v12823_v37 = vld [vmem:[#allocation11 + $0x6b8] ss:$20 sps:$4 sm:$0xff]  }
 0x53b   : > { %8142 = vmatpush1.bf16.msra.mxu0 %v12709_v61  ;;  %8494 = vmatprep.subr.bf16.mxu1 %v12762_v33  ;;  %v12783_v61 = vld [vmem:[#allocation11 + $0x5a4] ss:$20 sps:$4 sm:$0xff]  }
 0x53c   : > { %8143 = vmatprep.subr.bf16.mxu0 %v12717_v42  ;;  %v12781_v42 = vld [vmem:[#allocation11 + $0x5a0] ss:$20 sps:$4 sm:$0xff]   ;;  %v12831_v33 = vld [vmem:[#allocation11 + $0x6e4] ss:$20 sps:$4 sm:$0xff]  }
 0x53d   : > { %8486 = vmatmul.mubr.bf16.vlgmr.msra.gmra.mrb[0].mxu1 %v16420_v56 }
 0x53e   : > { %8495 = vmatpush1.bf16.msra.mxu1 %v12760_v6  ;;  %8526 = vmatprep.mubr.bf16.mxu1 %v16422_v31  ;;  %v12837_v6 = vld [vmem:[#allocation11 + $0x70c] ss:$20 sps:$4 sm:$0xff]  }
 0x53f   : > { %8144 = vmatpush1.bf16.msra.mxu0 %v12715_v59  ;;  %8496 = vmatprep.subr.bf16.mxu1 %v12768_v39  ;;  %v12789_v59 = vld [vmem:[#allocation11 + $0x5cc] ss:$20 sps:$4 sm:$0xff]   ;;  %v12835_v39 = vld [vmem:[#allocation11 + $0x708] ss:$20 sps:$4 sm:$0xff]  }
 0x540   : > { %8145 = vmatprep.subr.bf16.mxu0 %v12723_v1  ;;  %v12787_v1 = vld [vmem:[#allocation11 + $0x5c8] ss:$20 sps:$4 sm:$0xff]  }
 0x542   : > { %8497 = vmatpush1.bf16.msra.mxu1 %v12766_v43  ;;  %v12843_v43 = vld [vmem:[#allocation11 + $0x734] ss:$20 sps:$4 sm:$0xff]  }
 0x543   : > { %8146 = vmatpush1.bf16.msra.mxu0 %v12721_v51  ;;  %8498 = vmatprep.subr.bf16.mxu1 %v12774_v32  ;;  %v12795_v51 = vld [vmem:[#allocation11 + $0x5f4] ss:$20 sps:$4 sm:$0xff]   ;;  %v4384_v32 = vld [vmem:[#allocation2 + $0x8] sm:$0x3f] }
 0x544   : > { %8147 = vmatprep.subr.bf16.mxu0 %v12729_v2  ;;  %v12793_v2 = vld [vmem:[#allocation11 + $0x5f0] ss:$20 sps:$4 sm:$0xff]  }
 0x546   : > { %8499 = vmatpush1.bf16.msra.mxu1 %v12772_v62  ;;  %v12844_v62 = vld [vmem:[#allocation11 + $0x9b8] ss:$20 sps:$4 sm:$0xff]  }
 0x547   : > { %8148 = vmatpush1.bf16.msra.mxu0 %v12727_v5  ;;  %8500 = vmatprep.subr.bf16.mxu1 %v12780_v44  ;;  %v12801_v5 = vld [vmem:[#allocation11 + $0x61c] ss:$20 sps:$4 sm:$0xff]   ;;  %v12852_v44 = vld [vmem:[#allocation11 + $0x9e4] ss:$20 sps:$4 sm:$0xff]  }
 0x548   : > { %8149 = vmatprep.subr.bf16.mxu0 %v12735_v30  ;;  %v12799_v30 = vld [vmem:[#allocation11 + $0x618] ss:$20 sps:$4 sm:$0xff]  }
 0x54a   : > { %8501 = vmatpush1.bf16.msra.mxu1 %v12778_v3  ;;  %v16986_v3 = vsub.s32 6, %v16984_v38  ;;  %v12864_v38 = vld [vmem:[#allocation11 + $0xa34] ss:$20 sps:$4 sm:$0xff]  }
 0x54b   : > { %8150 = vmatpush1.bf16.msra.mxu0 %v12733_v48  ;;  %8502 = vmatprep.subr.bf16.mxu1 %v12786_v15  ;;  %v12807_v48 = vld [vmem:[#allocation11 + $0x644] ss:$20 sps:$4 sm:$0xff]  }
 0x54c   : > { %8151 = vmatprep.subr.bf16.mxu0 %v12741_v9  ;;  %v12805_v9 = vld [vmem:[#allocation11 + $0x640] ss:$20 sps:$4 sm:$0xff]   ;;  %v12847_v15 = vld [vmem:[#allocation11 + $0x758] ss:$20 sps:$4 sm:$0xff]  }
 0x54e   : > { %8503 = vmatpush1.bf16.msra.mxu1 %v12784_v60  ;;  %v12855_v60 = vld [vmem:[#allocation11 + $0x784] ss:$20 sps:$4 sm:$0xff]  }
 0x54f   : > { %8152 = vmatpush1.bf16.msra.mxu0 %v12739_v24  ;;  %8504 = vmatprep.subr.bf16.mxu1 %v12792_v54  ;;  %v12813_v24 = vld [vmem:[#allocation11 + $0x66c] ss:$20 sps:$4 sm:$0xff]  }
 0x550   : > { %8153 = vmatprep.subr.bf16.mxu0 %v12747_v57  ;;  %v12811_v57 = vld [vmem:[#allocation11 + $0x668] ss:$20 sps:$4 sm:$0xff]  }
 0x552   : > { %8505 = vmatpush1.bf16.msra.mxu1 %v12790_v20  ;;  %v12853_v20 = vld [vmem:[#allocation11 + $0x780] ss:$20 sps:$4 sm:$0xff]  }
 0x553   : > { %8154 = vmatpush1.bf16.msra.mxu0 %v12745_v34  ;;  %8506 = vmatprep.subr.bf16.mxu1 %v12798_v19  ;;  %v12819_v34 = vld [vmem:[#allocation11 + $0x694] ss:$20 sps:$4 sm:$0xff]  }
 0x554   : > { %8155 = vmatprep.subr.bf16.mxu0 %v12753_v14  ;;  %v12817_v14 = vld [vmem:[#allocation11 + $0x690] ss:$20 sps:$4 sm:$0xff]  }
 0x556   : > { %8507 = vmatpush1.bf16.msra.mxu1 %v12796_v13  ;;  %v12862_v13 = vld [vmem:[#allocation11 + $0xa30] ss:$20 sps:$4 sm:$0xff]  }
 0x557   : > { %8156 = vmatpush1.bf16.msra.mxu0 %v12751_v45  ;;  %8508 = vmatprep.subr.bf16.mxu1 %v12804_v55  ;;  %v12825_v45 = vld [vmem:[#allocation11 + $0x6bc] ss:$20 sps:$4 sm:$0xff]  }
 0x558   : > { %8166 = vmatprep.subr.bf16.mxu0 %v12759_v40  ;;  %v12826_v40 = vld [vmem:[#allocation11 + $0x940] ss:$20 sps:$4 sm:$0xff]   ;;  %v12870_v55 = vld [vmem:[#allocation11 + $0xa5c] ss:$20 sps:$4 sm:$0xff]  }
 0x55a   : > { %8158 = vmatmul.mubr.bf16.vlgmr.msra.gmra.mrb[0].mxu0 %v16407_v22  ;;  %8509 = vmatpush1.bf16.msra.mxu1 %v12802_v21  ;;  %v12868_v21 = vld [vmem:[#allocation11 + $0xa58] ss:$20 sps:$4 sm:$0xff]  }
 0x55b   : > { %8167 = vmatpush1.bf16.msra.mxu0 %v12757_v12  ;;  %8198 = vmatprep.mubr.bf16.mxu0 %v16409_v50  ;;  %v12832_v12 = vld [vmem:[#allocation11 + $0x968] ss:$20 sps:$4 sm:$0xff]  }
 0x55c   : > { %8168 = vmatprep.subr.bf16.mxu0 %v12765_v4  ;;  %8510 = vmatprep.subr.bf16.mxu1 %v12810_v46  ;;  %v12840_v4 = vld [vmem:[#allocation11 + $0x994] ss:$20 sps:$4 sm:$0xff]   ;;  %v12876_v46 = vld [vmem:[#allocation11 + $0xa84] ss:$20 sps:$4 sm:$0xff]  }
 0x55e   : > { %8511 = vmatpush1.bf16.msra.mxu1 %v12808_v63  ;;  %v12874_v63 = vld [vmem:[#allocation11 + $0xa80] ss:$20 sps:$4 sm:$0xff]  }
 0x55f   : > { %8169 = vmatpush1.bf16.msra.mxu0 %v12763_v49  ;;  %8512 = vmatprep.subr.bf16.mxu1 %v12816_v16  ;;  %v12838_v49 = vld [vmem:[#allocation11 + $0x990] ss:$20 sps:$4 sm:$0xff]   ;;  %v12882_v16 = vld [vmem:[#allocation11 + $0xaac] ss:$20 sps:$4 sm:$0xff]  }
 0x560   : > { %8170 = vmatprep.subr.bf16.mxu0 %v12771_v11  ;;  %v12846_v11 = vld [vmem:[#allocation11 + $0x9bc] ss:$20 sps:$4 sm:$0xff]  }
 0x562   : > { %8513 = vmatpush1.bf16.msra.mxu1 %v12814_v28  ;;  %v12880_v28 = vld [vmem:[#allocation11 + $0xaa8] ss:$20 sps:$4 sm:$0xff]  }
 0x563   : > { %8171 = vmatpush1.bf16.msra.mxu0 %v12769_v27  ;;  %8514 = vmatprep.subr.bf16.mxu1 %v12822_v18  ;;  %v12841_v27 = vld [vmem:[#allocation11 + $0x730] ss:$20 sps:$4 sm:$0xff]   ;;  %v12888_v18 = vld [vmem:[#allocation11 + $0xad4] ss:$20 sps:$4 sm:$0xff]  }
 0x564   : > { %8172 = vmatprep.subr.bf16.mxu0 %v12777_v10  ;;  %v12849_v10 = vld [vmem:[#allocation11 + $0x75c] ss:$20 sps:$4 sm:$0xff]  }
 0x566   : > { %8515 = vmatpush1.bf16.msra.mxu1 %v12820_v0  ;;  %v12886_v0 = vld [vmem:[#allocation11 + $0xad0] ss:$20 sps:$4 sm:$0xff]  }
 0x567   : > { %8173 = vmatpush1.bf16.msra.mxu0 %v12775_v7  ;;  %8516 = vmatprep.subr.bf16.mxu1 %v12828_v58  ;;  %v16428_v7 = vmul.f32 0.00390625, %v4384_v32  ;;  %v12894_v58 = vld [vmem:[#allocation11 + $0xafc] ss:$20 sps:$4 sm:$0xff]  }
 0x568   : > { %8174 = vmatprep.subr.bf16.mxu0 %v12783_v61  ;;  %v4416_v61 = vrot.slane %v16387_v47, %v16986_v3  ;;  %v12861_v47 = vld [vmem:[#allocation11 + $0x7ac] ss:$20 sps:$4 sm:$0xff]   ;;  %v12907_v32 = vld [vmem:[#allocation11 + $0x8e8] ss:$20 sps:$4 sm:$0xff]  }
 0x569   : > { %v4428_v54 = vrot.slane %v16428_v7, %v16978_v53  ;;  %v12916_v3 = vld [vmem:[#allocation11 + $0xb98] ss:$20 sps:$4 sm:$0xff]  }
 0x56a   : > { %8517 = vmatpush1.bf16.msra.mxu1 %v12826_v40  ;;  %v12892_v40 = vld [vmem:[#allocation11 + $0xaf8] ss:$20 sps:$4 sm:$0xff]  }
 0x56b   : > { %8175 = vmatpush1.bf16.msra.mxu0 %v12781_v42  ;;  %8518 = vmatprep.subr.bf16.mxu1 %v12834_v26  ;;  %v12850_v42 = vld [vmem:[#allocation11 + $0x9e0] ss:$20 sps:$4 sm:$0xff]   ;;  %v16437_v19 = vpack.c.bf16 %v4428_v54, %v4428_v54  ;;  %v12900_v26 = vld [vmem:[#allocation11 + $0xb24] ss:$20 sps:$4 sm:$0xff]  }
 0x56c   : > { %8176 = vmatprep.subr.bf16.mxu0 %v12789_v59  ;;  %v12858_v59 = vld [vmem:[#allocation11 + $0xa0c] ss:$20 sps:$4 sm:$0xff]  }
 0x56d   : > { %v12930_v54 = vld [vmem:[#allocation11 + $0xbec] ss:$20 sps:$4 sm:$0xff]  }
 0x56e   : > { %8519 = vmatpush1.bf16.msra.mxu1 %v12832_v12  ;;  %v12898_v12 = vld [vmem:[#allocation11 + $0xb20] ss:$20 sps:$4 sm:$0xff]  }
 0x56f   : > { %8177 = vmatpush1.bf16.msra.mxu0 %v12787_v1  ;;  %8520 = vmatprep.subr.bf16.mxu1 %v12840_v4  ;;  %v16435_v1 = vpack.c.bf16 %v4416_v61, %v4416_v61  ;;  %v12906_v4 = vld [vmem:[#allocation11 + $0xb4c] ss:$20 sps:$4 sm:$0xff]   ;;  %v12921_v61 = vld [vmem:[#allocation11 + $0x93c] ss:$20 sps:$4 sm:$0xff]  }
 0x570   : > { %8178 = vmatprep.subr.bf16.mxu0 %v12795_v51  ;;  %v12856_v51 = vld [vmem:[#allocation11 + $0xa08] ss:$20 sps:$4 sm:$0xff]  }
 0x572   : > { %8521 = vmatpush1.bf16.msra.mxu1 %v12838_v49  ;;  %v12904_v49 = vld [vmem:[#allocation11 + $0xb48] ss:$20 sps:$4 sm:$0xff]  }
 0x573   : > { %8179 = vmatpush1.bf16.msra.mxu0 %v12793_v2  ;;  %8522 = vmatprep.subr.bf16.mxu1 %v12846_v11  ;;  %v12859_v2 = vld [vmem:[#allocation11 + $0x7a8] ss:$20 sps:$4 sm:$0xff]  }
 0x574   : > { %8180 = vmatprep.subr.bf16.mxu0 %v12801_v5  ;;  %v12867_v5 = vld [vmem:[#allocation11 + $0x7d4] ss:$20 sps:$4 sm:$0xff]  }
 0x575   : > { %v12912_v11 = vld [vmem:[#allocation11 + $0xb74] ss:$20 sps:$4 sm:$0xff]  }
 0x576   : > { %8523 = vmatpush1.bf16.msra.mxu1 %v12844_v62  ;;  %v12915_v62 = vld [vmem:[#allocation11 + $0x914] ss:$20 sps:$4 sm:$0xff]  }
 0x577   : > { %8181 = vmatpush1.bf16.msra.mxu0 %v12799_v30  ;;  %8524 = vmatprep.subr.bf16.mxu1 %v12852_v44  ;;  %v12865_v30 = vld [vmem:[#allocation11 + $0x7d0] ss:$20 sps:$4 sm:$0xff]  }
 0x578   : > { %8182 = vmatprep.subr.bf16.mxu0 %v12807_v48  ;;  %v12873_v48 = vld [vmem:[#allocation11 + $0x7fc] ss:$20 sps:$4 sm:$0xff]  }
 0x579   : > { %v12913_v44 = vld [vmem:[#allocation11 + $0x910] ss:$20 sps:$4 sm:$0xff]  }
 0x57a   : > { %8525 = vmatpush1.bf16.msra.mxu1 %v12850_v42  ;;  %v12919_v42 = vld [vmem:[#allocation11 + $0x938] ss:$20 sps:$4 sm:$0xff]  }
 0x57b   : > { %8183 = vmatpush1.bf16.msra.mxu0 %v12805_v9  ;;  %8535 = vmatprep.subr.bf16.mxu1 %v12858_v59  ;;  %v12871_v9 = vld [vmem:[#allocation11 + $0x7f8] ss:$20 sps:$4 sm:$0xff]  }
 0x57c   : > { %8184 = vmatprep.subr.bf16.mxu0 %v12813_v24  ;;  %v12879_v24 = vld [vmem:[#allocation11 + $0x824] ss:$20 sps:$4 sm:$0xff]  }
 0x57d   : > { %8527 = vmatmul.mubr.bf16.vlgmr.msra.gmra.mrb[0].mxu1 %v16435_v1  ;;  %v12927_v59 = vld [vmem:[#allocation11 + $0x964] ss:$20 sps:$4 sm:$0xff]  }
 0x57e   : > { %8536 = vmatpush1.bf16.msra.mxu1 %v12856_v51  ;;  %8567 = vmatprep.mubr.bf16.mxu1 %v16437_v19  ;;  %v12928_v51 = vld [vmem:[#allocation11 + $0xbe8] ss:$20 sps:$4 sm:$0xff]  }
 0x57f   : > { %8185 = vmatpush1.bf16.msra.mxu0 %v12811_v57  ;;  %8537 = vmatprep.subr.bf16.mxu1 %v12864_v38  ;;  %v12877_v57 = vld [vmem:[#allocation11 + $0x820] ss:$20 sps:$4 sm:$0xff]  }
 0x580   : > { %8186 = vmatprep.subr.bf16.mxu0 %v12819_v34  ;;  %v12885_v34 = vld [vmem:[#allocation11 + $0x84c] ss:$20 sps:$4 sm:$0xff]   ;;  %v12936_v38 = vld [vmem:[#allocation11 + $0xc14] ss:$20 sps:$4 sm:$0xff]  }
 0x582   : > { %8538 = vmatpush1.bf16.msra.mxu1 %v12862_v13  ;;  %v12934_v13 = vld [vmem:[#allocation11 + $0xc10] ss:$20 sps:$4 sm:$0xff]  }
 0x583   : > { %8187 = vmatpush1.bf16.msra.mxu0 %v12817_v14  ;;  %8539 = vmatprep.subr.bf16.mxu1 %v12870_v55  ;;  %v12883_v14 = vld [vmem:[#allocation11 + $0x848] ss:$20 sps:$4 sm:$0xff]  }
 0x584   : > { %8188 = vmatprep.subr.bf16.mxu0 %v12825_v45  ;;  %v12891_v45 = vld [vmem:[#allocation11 + $0x874] ss:$20 sps:$4 sm:$0xff]   ;;  %v12942_v55 = vld [vmem:[#allocation11 + $0xc3c] ss:$20 sps:$4 sm:$0xff]  }
 0x586   : > { %8540 = vmatpush1.bf16.msra.mxu1 %v12868_v21  ;;  %v12940_v21 = vld [vmem:[#allocation11 + $0xc38] ss:$20 sps:$4 sm:$0xff]  }
 0x587   : > { %8189 = vmatpush1.bf16.msra.mxu0 %v12823_v37  ;;  %8541 = vmatprep.subr.bf16.mxu1 %v12876_v46  ;;  %v12889_v37 = vld [vmem:[#allocation11 + $0x870] ss:$20 sps:$4 sm:$0xff]  }
 0x588   : > { %8190 = vmatprep.subr.bf16.mxu0 %v12831_v33  ;;  %v12897_v33 = vld [vmem:[#allocation11 + $0x89c] ss:$20 sps:$4 sm:$0xff]   ;;  %v12948_v46 = vld [vmem:[#allocation11 + $0xc64] ss:$20 sps:$4 sm:$0xff]  }
 0x58a   : > { %8542 = vmatpush1.bf16.msra.mxu1 %v12874_v63  ;;  %v12943_v63 = vld [vmem:[#allocation11 + $0x9d8] ss:$20 sps:$4 sm:$0xff]  }
 0x58b   : > { %8191 = vmatpush1.bf16.msra.mxu0 %v12829_v35  ;;  %8543 = vmatprep.subr.bf16.mxu1 %v12882_v16  ;;  %v12895_v35 = vld [vmem:[#allocation11 + $0x898] ss:$20 sps:$4 sm:$0xff]  }
 0x58c   : > { %8192 = vmatprep.subr.bf16.mxu0 %v12837_v6  ;;  %v12903_v6 = vld [vmem:[#allocation11 + $0x8c4] ss:$20 sps:$4 sm:$0xff]  }
 0x58d   : > { %v12951_v16 = vld [vmem:[#allocation11 + $0xa04] ss:$20 sps:$4 sm:$0xff]  }
 0x58e   : > { %8544 = vmatpush1.bf16.msra.mxu1 %v12880_v28  ;;  %v4436_v28 = vrot.slane %v16428_v7, %v16979_v36 }
 0x58f   : > { %8193 = vmatpush1.bf16.msra.mxu0 %v12835_v39  ;;  %8545 = vmatprep.subr.bf16.mxu1 %v12888_v18  ;;  %v12901_v39 = vld [vmem:[#allocation11 + $0x8c0] ss:$20 sps:$4 sm:$0xff]  }
 0x590   : > { %8194 = vmatprep.subr.bf16.mxu0 %v12843_v43  ;;  %v12909_v43 = vld [vmem:[#allocation11 + $0x8ec] ss:$20 sps:$4 sm:$0xff]  }
 0x591   : > { %v12949_v18 = vld [vmem:[#allocation11 + $0xa00] ss:$20 sps:$4 sm:$0xff]  }
 0x592   : > { %8546 = vmatpush1.bf16.msra.mxu1 %v12886_v0  ;;  %v12957_v0 = vld [vmem:[#allocation11 + $0xa2c] ss:$20 sps:$4 sm:$0xff]  }
 0x593   : > { %8195 = vmatpush1.bf16.msra.mxu0 %v12841_v27  ;;  %8547 = vmatprep.subr.bf16.mxu1 %v12894_v58  ;;  %v12910_v27 = vld [vmem:[#allocation11 + $0xb70] ss:$20 sps:$4 sm:$0xff]   ;;  %v12955_v58 = vld [vmem:[#allocation11 + $0xa28] ss:$20 sps:$4 sm:$0xff]  }
 0x594   : > { %8196 = vmatprep.subr.bf16.mxu0 %v12849_v10  ;;  %v12918_v10 = vld [vmem:[#allocation11 + $0xb9c] ss:$20 sps:$4 sm:$0xff]  }
 0x596   : > { %8548 = vmatpush1.bf16.msra.mxu1 %v12892_v40  ;;  %v16449_v40 = vpack.c.bf16 %v4436_v28, %v4436_v28  ;;  %v13018_v28 = vld [vmem:[#allocation11 + $0xe40] ss:$20 sps:$4 sm:$0xff]  }
 0x597   : > { %8197 = vmatpush1.bf16.msra.mxu0 %v12847_v15  ;;  %8549 = vmatprep.subr.bf16.mxu1 %v12900_v26  ;;  %v12924_v15 = vld [vmem:[#allocation11 + $0xbc4] ss:$20 sps:$4 sm:$0xff]   ;;  %v12966_v26 = vld [vmem:[#allocation11 + $0xcdc] ss:$20 sps:$4 sm:$0xff]  }
 0x598   : > { %8207 = vmatprep.subr.bf16.mxu0 %v12855_v60  ;;  %v12922_v60 = vld [vmem:[#allocation11 + $0xbc0] ss:$20 sps:$4 sm:$0xff]  }
 0x59a   : > { %8199 = vmatmul.mubr.bf16.vlgmr.msra.gmra.mrb[0].mxu0 %v16420_v56  ;;  %8550 = vmatpush1.bf16.msra.mxu1 %v12898_v12  ;;  %v12964_v12 = vld [vmem:[#allocation11 + $0xcd8] ss:$20 sps:$4 sm:$0xff]  }
 0x59b   : > { %8208 = vmatpush1.bf16.msra.mxu0 %v12853_v20  ;;  %8239 = vmatprep.mubr.bf16.mxu0 %v16422_v31  ;;  %v12925_v20 = vld [vmem:[#allocation11 + $0x960] ss:$20 sps:$4 sm:$0xff]  }
 0x59c   : > { %8209 = vmatprep.subr.bf16.mxu0 %v12861_v47  ;;  %8551 = vmatprep.subr.bf16.mxu1 %v12906_v4  ;;  %v12933_v47 = vld [vmem:[#allocation11 + $0x98c] ss:$20 sps:$4 sm:$0xff]   ;;  %v12972_v4 = vld [vmem:[#allocation11 + $0xd04] ss:$20 sps:$4 sm:$0xff]  }
 0x59e   : > { %8552 = vmatpush1.bf16.msra.mxu1 %v12904_v49  ;;  %v12970_v49 = vld [vmem:[#allocation11 + $0xd00] ss:$20 sps:$4 sm:$0xff]  }
 0x59f   : > { %8210 = vmatpush1.bf16.msra.mxu0 %v12859_v2  ;;  %8553 = vmatprep.subr.bf16.mxu1 %v12912_v11  ;;  %v12931_v2 = vld [vmem:[#allocation11 + $0x988] ss:$20 sps:$4 sm:$0xff]   ;;  %v12978_v11 = vld [vmem:[#allocation11 + $0xd2c] ss:$20 sps:$4 sm:$0xff]  }
 0x5a0   : > { %8211 = vmatprep.subr.bf16.mxu0 %v12867_v5  ;;  %v12939_v5 = vld [vmem:[#allocation11 + $0x9b4] ss:$20 sps:$4 sm:$0xff]  }
 0x5a2   : > { %8554 = vmatpush1.bf16.msra.mxu1 %v12910_v27  ;;  %v12976_v27 = vld [vmem:[#allocation11 + $0xd28] ss:$20 sps:$4 sm:$0xff]  }
 0x5a3   : > { %8212 = vmatpush1.bf16.msra.mxu0 %v12865_v30  ;;  %8555 = vmatprep.subr.bf16.mxu1 %v12918_v10  ;;  %v12937_v30 = vld [vmem:[#allocation11 + $0x9b0] ss:$20 sps:$4 sm:$0xff]   ;;  %v12984_v10 = vld [vmem:[#allocation11 + $0xd54] ss:$20 sps:$4 sm:$0xff]  }
 0x5a4   : > { %8213 = vmatprep.subr.bf16.mxu0 %v12873_v48  ;;  %v12945_v48 = vld [vmem:[#allocation11 + $0x9dc] ss:$20 sps:$4 sm:$0xff]  }
 0x5a6   : > { %8556 = vmatpush1.bf16.msra.mxu1 %v12916_v3  ;;  %v12982_v3 = vld [vmem:[#allocation11 + $0xd50] ss:$20 sps:$4 sm:$0xff]  }
 0x5a7   : > { %8214 = vmatpush1.bf16.msra.mxu0 %v12871_v9  ;;  %8557 = vmatprep.subr.bf16.mxu1 %v12924_v15  ;;  %v4424_v9 = vrot.slane %v16428_v7, %v16980_v29  ;;  %v12990_v15 = vld [vmem:[#allocation11 + $0xd7c] ss:$20 sps:$4 sm:$0xff]  }
 0x5a8   : > { %8215 = vmatprep.subr.bf16.mxu0 %v12879_v24  ;;  %v12946_v24 = vld [vmem:[#allocation11 + $0xc60] ss:$20 sps:$4 sm:$0xff]  }
 0x5aa   : > { %8558 = vmatpush1.bf16.msra.mxu1 %v12922_v60  ;;  %v12988_v60 = vld [vmem:[#allocation11 + $0xd78] ss:$20 sps:$4 sm:$0xff]  }
 0x5ab   : > { %8216 = vmatpush1.bf16.msra.mxu0 %v12877_v57  ;;  %8559 = vmatprep.subr.bf16.mxu1 %v12930_v54  ;;  %v12954_v57 = vld [vmem:[#allocation11 + $0xc8c] ss:$20 sps:$4 sm:$0xff]   ;;  %v12996_v54 = vld [vmem:[#allocation11 + $0xda4] ss:$20 sps:$4 sm:$0xff]  }
 0x5ac   : > { %8217 = vmatprep.subr.bf16.mxu0 %v12885_v34  ;;  %v16447_v34 = vpack.c.bf16 %v4424_v9, %v4424_v9  ;;  %v13009_v9 = vld [vmem:[#allocation11 + $0xb90] ss:$20 sps:$4 sm:$0xff]  }
 0x5ae   : > { %8560 = vmatpush1.bf16.msra.mxu1 %v12928_v51  ;;  %v12994_v51 = vld [vmem:[#allocation11 + $0xda0] ss:$20 sps:$4 sm:$0xff]  }
 0x5af   : > { %8218 = vmatpush1.bf16.msra.mxu0 %v12883_v14  ;;  %8561 = vmatprep.subr.bf16.mxu1 %v12936_v38  ;;  %v12952_v14 = vld [vmem:[#allocation11 + $0xc88] ss:$20 sps:$4 sm:$0xff]   ;;  %v13002_v38 = vld [vmem:[#allocation11 + $0xdcc] ss:$20 sps:$4 sm:$0xff]  }
 0x5b0   : > { %8219 = vmatprep.subr.bf16.mxu0 %v12891_v45  ;;  %v12960_v45 = vld [vmem:[#allocation11 + $0xcb4] ss:$20 sps:$4 sm:$0xff]  }
 0x5b2   : > { %8562 = vmatpush1.bf16.msra.mxu1 %v12934_v13  ;;  %v13000_v13 = vld [vmem:[#allocation11 + $0xdc8] ss:$20 sps:$4 sm:$0xff]  }
 0x5b3   : > { %8220 = vmatpush1.bf16.msra.mxu0 %v12889_v37  ;;  %8563 = vmatprep.subr.bf16.mxu1 %v12942_v55  ;;  %v12958_v37 = vld [vmem:[#allocation11 + $0xcb0] ss:$20 sps:$4 sm:$0xff]   ;;  %v13008_v55 = vld [vmem:[#allocation11 + $0xdf4] ss:$20 sps:$4 sm:$0xff]  }
 0x5b4   : > { %8221 = vmatprep.subr.bf16.mxu0 %v12897_v33  ;;  %v12963_v33 = vld [vmem:[#allocation11 + $0xa54] ss:$20 sps:$4 sm:$0xff]  }
 0x5b6   : > { %8564 = vmatpush1.bf16.msra.mxu1 %v12940_v21  ;;  %v13006_v21 = vld [vmem:[#allocation11 + $0xdf0] ss:$20 sps:$4 sm:$0xff]  }
 0x5b7   : > { %8222 = vmatpush1.bf16.msra.mxu0 %v12895_v35  ;;  %8565 = vmatprep.subr.bf16.mxu1 %v12948_v46  ;;  %v12961_v35 = vld [vmem:[#allocation11 + $0xa50] ss:$20 sps:$4 sm:$0xff]  }
 0x5b8   : > { %8223 = vmatprep.subr.bf16.mxu0 %v12903_v6  ;;  %v12969_v6 = vld [vmem:[#allocation11 + $0xa7c] ss:$20 sps:$4 sm:$0xff]  }
 0x5b9   : > { %v13014_v46 = vld [vmem:[#allocation11 + $0xe1c] ss:$20 sps:$4 sm:$0xff]  }
 0x5ba   : > { %8566 = vmatpush1.bf16.msra.mxu1 %v12946_v24  ;;  %v13017_v24 = vld [vmem:[#allocation11 + $0xbbc] ss:$20 sps:$4 sm:$0xff]  }
 0x5bb   : > { %8224 = vmatpush1.bf16.msra.mxu0 %v12901_v39  ;;  %8576 = vmatprep.subr.bf16.mxu1 %v12954_v57  ;;  %v12967_v39 = vld [vmem:[#allocation11 + $0xa78] ss:$20 sps:$4 sm:$0xff]  }
 0x5bc   : > { %8225 = vmatprep.subr.bf16.mxu0 %v12909_v43  ;;  %v12975_v43 = vld [vmem:[#allocation11 + $0xaa4] ss:$20 sps:$4 sm:$0xff]  }
 0x5bd   : > { %8568 = vmatmul.mubr.bf16.vlgmr.msra.gmra.mrb[0].mxu1 %v16447_v34  ;;  %v13015_v57 = vld [vmem:[#allocation11 + $0xbb8] ss:$20 sps:$4 sm:$0xff]  }
 0x5be   : > { %8577 = vmatpush1.bf16.msra.mxu1 %v12952_v14  ;;  %8608 = vmatprep.mubr.bf16.mxu1 %v16449_v40  ;;  %v13026_v14 = vld [vmem:[#allocation11 + $0xe6c] ss:$20 sps:$4 sm:$0xff]  }
 0x5bf   : > { %8226 = vmatpush1.bf16.msra.mxu0 %v12907_v32  ;;  %8578 = vmatprep.subr.bf16.mxu1 %v12960_v45  ;;  %v12973_v32 = vld [vmem:[#allocation11 + $0xaa0] ss:$20 sps:$4 sm:$0xff]   ;;  %v13024_v45 = vld [vmem:[#allocation11 + $0xe68] ss:$20 sps:$4 sm:$0xff]  }
 0x5c0   : > { %8227 = vmatprep.subr.bf16.mxu0 %v12915_v62  ;;  %v12981_v62 = vld [vmem:[#allocation11 + $0xacc] ss:$20 sps:$4 sm:$0xff]  }
 0x5c2   : > { %8579 = vmatpush1.bf16.msra.mxu1 %v12958_v37  ;;  %v13032_v37 = vld [vmem:[#allocation11 + $0xe94] ss:$20 sps:$4 sm:$0xff]  }
 0x5c3   : > { %8228 = vmatpush1.bf16.msra.mxu0 %v12913_v44  ;;  %8580 = vmatprep.subr.bf16.mxu1 %v12966_v26  ;;  %v12979_v44 = vld [vmem:[#allocation11 + $0xac8] ss:$20 sps:$4 sm:$0xff]   ;;  %v13030_v26 = vld [vmem:[#allocation11 + $0xe90] ss:$20 sps:$4 sm:$0xff]  }
 0x5c4   : > { %8229 = vmatprep.subr.bf16.mxu0 %v12921_v61  ;;  %v12987_v61 = vld [vmem:[#allocation11 + $0xaf4] ss:$20 sps:$4 sm:$0xff]  }
 0x5c6   : > { %8581 = vmatpush1.bf16.msra.mxu1 %v12964_v12  ;;  %v13038_v12 = vld [vmem:[#allocation11 + $0xebc] ss:$20 sps:$4 sm:$0xff]  }
 0x5c7   : > { %8230 = vmatpush1.bf16.msra.mxu0 %v12919_v42  ;;  %8582 = vmatprep.subr.bf16.mxu1 %v12972_v4  ;;  %v12985_v42 = vld [vmem:[#allocation11 + $0xaf0] ss:$20 sps:$4 sm:$0xff]   ;;  %v13036_v4 = vld [vmem:[#allocation11 + $0xeb8] ss:$20 sps:$4 sm:$0xff]  }
 0x5c8   : > { %8231 = vmatprep.subr.bf16.mxu0 %v12927_v59  ;;  %v12993_v59 = vld [vmem:[#allocation11 + $0xb1c] ss:$20 sps:$4 sm:$0xff]  }
 0x5ca   : > { %8583 = vmatpush1.bf16.msra.mxu1 %v12970_v49  ;;  %v13044_v49 = vld [vmem:[#allocation11 + $0xee4] ss:$20 sps:$4 sm:$0xff]  }
 0x5cb   : > { %8232 = vmatpush1.bf16.msra.mxu0 %v12925_v20  ;;  %8584 = vmatprep.subr.bf16.mxu1 %v12978_v11  ;;  %v12991_v20 = vld [vmem:[#allocation11 + $0xb18] ss:$20 sps:$4 sm:$0xff]   ;;  %v13042_v11 = vld [vmem:[#allocation11 + $0xee0] ss:$20 sps:$4 sm:$0xff]  }
 0x5cc   : > { %8233 = vmatprep.subr.bf16.mxu0 %v12933_v47  ;;  %v12999_v47 = vld [vmem:[#allocation11 + $0xb44] ss:$20 sps:$4 sm:$0xff]  }
 0x5ce   : > { %8585 = vmatpush1.bf16.msra.mxu1 %v12976_v27  ;;  %v13047_v27 = vld [vmem:[#allocation11 + $0xc84] ss:$20 sps:$4 sm:$0xff]  }
 0x5cf   : > { %8234 = vmatpush1.bf16.msra.mxu0 %v12931_v2  ;;  %8586 = vmatprep.subr.bf16.mxu1 %v12984_v10  ;;  %v12997_v2 = vld [vmem:[#allocation11 + $0xb40] ss:$20 sps:$4 sm:$0xff]  }
 0x5d0   : > { %8235 = vmatprep.subr.bf16.mxu0 %v12939_v5  ;;  %v13005_v5 = vld [vmem:[#allocation11 + $0xb6c] ss:$20 sps:$4 sm:$0xff]  }
 0x5d1   : > { %v13045_v10 = vld [vmem:[#allocation11 + $0xc80] ss:$20 sps:$4 sm:$0xff]  }
 0x5d2   : > { %8587 = vmatpush1.bf16.msra.mxu1 %v12982_v3  ;;  %v4444_v3 = vrot.slane %v16428_v7, %v16982_v52  ;;  %v13062_v52 = vld [vmem:[#allocation11 + $0xf5c] ss:$20 sps:$4 sm:$0xff]  }
 0x5d3   : > { %8236 = vmatpush1.bf16.msra.mxu0 %v12937_v30  ;;  %8588 = vmatprep.subr.bf16.mxu1 %v12990_v15  ;;  %v13003_v30 = vld [vmem:[#allocation11 + $0xb68] ss:$20 sps:$4 sm:$0xff]   ;;  %v13053_v15 = vld [vmem:[#allocation11 + $0xcac] ss:$20 sps:$4 sm:$0xff]  }
 0x5d4   : > { %8237 = vmatprep.subr.bf16.mxu0 %v12945_v48  ;;  %v13011_v48 = vld [vmem:[#allocation11 + $0xb94] ss:$20 sps:$4 sm:$0xff]  }
 0x5d6   : > { %8589 = vmatpush1.bf16.msra.mxu1 %v12988_v60  ;;  %v13051_v60 = vld [vmem:[#allocation11 + $0xca8] ss:$20 sps:$4 sm:$0xff]  }
 0x5d7   : > { %8238 = vmatpush1.bf16.msra.mxu0 %v12943_v63  ;;  %8590 = vmatprep.subr.bf16.mxu1 %v12996_v54  ;;  %v13012_v63 = vld [vmem:[#allocation11 + $0xe18] ss:$20 sps:$4 sm:$0xff]   ;;  %v16461_v54 = vpack.c.bf16 %v4444_v3, %v4444_v3 }
 0x5d8   : > { %8248 = vmatprep.subr.bf16.mxu0 %v12951_v16  ;;  %v13020_v16 = vld [vmem:[#allocation11 + $0xe44] ss:$20 sps:$4 sm:$0xff]  }
 0x5d9   : > { %v13119_v3 = vld [vmem:[#allocation11 + $0xe64] ss:$20 sps:$4 sm:$0xff]  }
 0x5da   : > { %8240 = vmatmul.mubr.bf16.vlgmr.msra.gmra.mrb[0].mxu0 %v16435_v1  ;;  %8591 = vmatpush1.bf16.msra.mxu1 %v12994_v51  ;;  %v13057_v51 = vld [vmem:[#allocation11 + $0xcd0] ss:$20 sps:$4 sm:$0xff]  }
 0x5db   : > { %8249 = vmatpush1.bf16.msra.mxu0 %v12949_v18  ;;  %8280 = vmatprep.mubr.bf16.mxu0 %v16437_v19  ;;  %v13023_v18 = vld [vmem:[#allocation11 + $0xbe4] ss:$20 sps:$4 sm:$0xff]  }
 0x5dc   : > { %8250 = vmatprep.subr.bf16.mxu0 %v12957_v0  ;;  %8592 = vmatprep.subr.bf16.mxu1 %v13002_v38  ;;  %v13021_v0 = vld [vmem:[#allocation11 + $0xbe0] ss:$20 sps:$4 sm:$0xff]   ;;  %v13065_v38 = vld [vmem:[#allocation11 + $0xcfc] ss:$20 sps:$4 sm:$0xff]  }
 0x5de   : > { %8593 = vmatpush1.bf16.msra.mxu1 %v13000_v13  ;;  %v13063_v13 = vld [vmem:[#allocation11 + $0xcf8] ss:$20 sps:$4 sm:$0xff]  }
 0x5df   : > { %8251 = vmatpush1.bf16.msra.mxu0 %v12955_v58  ;;  %8594 = vmatprep.subr.bf16.mxu1 %v13008_v55  ;;  %v13029_v58 = vld [vmem:[#allocation11 + $0xc0c] ss:$20 sps:$4 sm:$0xff]   ;;  %v13071_v55 = vld [vmem:[#allocation11 + $0xd24] ss:$20 sps:$4 sm:$0xff]  }
 0x5e0   : > { %8252 = vmatprep.subr.bf16.mxu0 %v12963_v33  ;;  %v13027_v33 = vld [vmem:[#allocation11 + $0xc08] ss:$20 sps:$4 sm:$0xff]  }
 0x5e2   : > { %8595 = vmatpush1.bf16.msra.mxu1 %v13006_v21  ;;  %v13069_v21 = vld [vmem:[#allocation11 + $0xd20] ss:$20 sps:$4 sm:$0xff]  }
 0x5e3   : > { %8253 = vmatpush1.bf16.msra.mxu0 %v12961_v35  ;;  %8596 = vmatprep.subr.bf16.mxu1 %v13014_v46  ;;  %v13035_v35 = vld [vmem:[#allocation11 + $0xc34] ss:$20 sps:$4 sm:$0xff]   ;;  %v13077_v46 = vld [vmem:[#allocation11 + $0xd4c] ss:$20 sps:$4 sm:$0xff]  }
 0x5e4   : > { %8254 = vmatprep.subr.bf16.mxu0 %v12969_v6  ;;  %v13033_v6 = vld [vmem:[#allocation11 + $0xc30] ss:$20 sps:$4 sm:$0xff]  }
 0x5e6   : > { %8597 = vmatpush1.bf16.msra.mxu1 %v13012_v63  ;;  %v13075_v63 = vld [vmem:[#allocation11 + $0xd48] ss:$20 sps:$4 sm:$0xff]  }
 0x5e7   : > { %8255 = vmatpush1.bf16.msra.mxu0 %v12967_v39  ;;  %8598 = vmatprep.subr.bf16.mxu1 %v13020_v16  ;;  %v13041_v39 = vld [vmem:[#allocation11 + $0xc5c] ss:$20 sps:$4 sm:$0xff]   ;;  %v13083_v16 = vld [vmem:[#allocation11 + $0xd74] ss:$20 sps:$4 sm:$0xff]  }
 0x5e8   : > { %8256 = vmatprep.subr.bf16.mxu0 %v12975_v43  ;;  %v13039_v43 = vld [vmem:[#allocation11 + $0xc58] ss:$20 sps:$4 sm:$0xff]  }
 0x5ea   : > { %8599 = vmatpush1.bf16.msra.mxu1 %v13018_v28  ;;  %v13081_v28 = vld [vmem:[#allocation11 + $0xd70] ss:$20 sps:$4 sm:$0xff]  }
 0x5eb   : > { %8257 = vmatpush1.bf16.msra.mxu0 %v12973_v32  ;;  %8600 = vmatprep.subr.bf16.mxu1 %v13026_v14  ;;  %v4432_v32 = vrot.slane %v16428_v7, %v16981_v8  ;;  %v13089_v14 = vld [vmem:[#allocation11 + $0xd9c] ss:$20 sps:$4 sm:$0xff]  }
 0x5ec   : > { %8258 = vmatprep.subr.bf16.mxu0 %v12981_v62  ;;  %v13050_v62 = vld [vmem:[#allocation11 + $0xf0c] ss:$20 sps:$4 sm:$0xff]  }
 0x5ee   : > { %8601 = vmatpush1.bf16.msra.mxu1 %v13024_v45  ;;  %v13087_v45 = vld [vmem:[#allocation11 + $0xd98] ss:$20 sps:$4 sm:$0xff]  }
 0x5ef   : > { %8259 = vmatpush1.bf16.msra.mxu0 %v12979_v44  ;;  %8602 = vmatprep.subr.bf16.mxu1 %v13032_v37  ;;  %v13048_v44 = vld [vmem:[#allocation11 + $0xf08] ss:$20 sps:$4 sm:$0xff]   ;;  %v13095_v37 = vld [vmem:[#allocation11 + $0xdc4] ss:$20 sps:$4 sm:$0xff]  }
 0x5f0   : > { %8260 = vmatprep.subr.bf16.mxu0 %v12987_v61  ;;  %v16459_v61 = vpack.c.bf16 %v4432_v32, %v4432_v32  ;;  %v13108_v32 = vld [vmem:[#allocation11 + $0x1098] ss:$20 sps:$4 sm:$0xff]  }
 0x5f2   : > { %8603 = vmatpush1.bf16.msra.mxu1 %v13030_v26  ;;  %v13093_v26 = vld [vmem:[#allocation11 + $0xdc0] ss:$20 sps:$4 sm:$0xff]  }
 0x5f3   : > { %8261 = vmatpush1.bf16.msra.mxu0 %v12985_v42  ;;  %8604 = vmatprep.subr.bf16.mxu1 %v13038_v12  ;;  %v13056_v42 = vld [vmem:[#allocation11 + $0xf34] ss:$20 sps:$4 sm:$0xff]   ;;  %v13101_v12 = vld [vmem:[#allocation11 + $0xdec] ss:$20 sps:$4 sm:$0xff]  }
 0x5f4   : > { %8262 = vmatprep.subr.bf16.mxu0 %v12993_v59  ;;  %v13054_v59 = vld [vmem:[#allocation11 + $0xf30] ss:$20 sps:$4 sm:$0xff]  }
 0x5f6   : > { %8605 = vmatpush1.bf16.msra.mxu1 %v13036_v4  ;;  %v13099_v4 = vld [vmem:[#allocation11 + $0xde8] ss:$20 sps:$4 sm:$0xff]  }
 0x5f7   : > { %8263 = vmatpush1.bf16.msra.mxu0 %v12991_v20  ;;  %8606 = vmatprep.subr.bf16.mxu1 %v13044_v49  ;;  %v13059_v20 = vld [vmem:[#allocation11 + $0xcd4] ss:$20 sps:$4 sm:$0xff]  }
 0x5f8   : > { %8264 = vmatprep.subr.bf16.mxu0 %v12999_v47  ;;  %v13060_v47 = vld [vmem:[#allocation11 + $0xf58] ss:$20 sps:$4 sm:$0xff]   ;;  %v13107_v49 = vld [vmem:[#allocation11 + $0xe14] ss:$20 sps:$4 sm:$0xff]  }
 0x5fa   : > { %8607 = vmatpush1.bf16.msra.mxu1 %v13042_v11  ;;  %v13105_v11 = vld [vmem:[#allocation11 + $0xe10] ss:$20 sps:$4 sm:$0xff]  }
 0x5fb   : > { %8265 = vmatpush1.bf16.msra.mxu0 %v12997_v2  ;;  %8617 = vmatprep.subr.bf16.mxu1 %v13050_v62  ;;  %v13068_v2 = vld [vmem:[#allocation11 + $0xf84] ss:$20 sps:$4 sm:$0xff]  }
 0x5fc   : > { %8266 = vmatprep.subr.bf16.mxu0 %v13005_v5  ;;  %v13066_v5 = vld [vmem:[#allocation11 + $0xf80] ss:$20 sps:$4 sm:$0xff]   ;;  %v13116_v62 = vld [vmem:[#allocation11 + $0x10c4] ss:$20 sps:$4 sm:$0xff]  }
 0x5fd   : > { %8609 = vmatmul.mubr.bf16.vlgmr.msra.gmra.mrb[0].mxu1 %v16459_v61 }
 0x5fe   : > { %8618 = vmatpush1.bf16.msra.mxu1 %v13048_v44  ;;  %8649 = vmatprep.mubr.bf16.mxu1 %v16461_v54  ;;  %v13114_v44 = vld [vmem:[#allocation11 + $0x10c0] ss:$20 sps:$4 sm:$0xff]  }
 0x5ff   : > { %8267 = vmatpush1.bf16.msra.mxu0 %v13003_v30  ;;  %8619 = vmatprep.subr.bf16.mxu1 %v13056_v42  ;;  %v13074_v30 = vld [vmem:[#allocation11 + $0xfac] ss:$20 sps:$4 sm:$0xff]  }
 0x600   : > { %8268 = vmatprep.subr.bf16.mxu0 %v13011_v48  ;;  %v13072_v48 = vld [vmem:[#allocation11 + $0xfa8] ss:$20 sps:$4 sm:$0xff]   ;;  %v13117_v42 = vld [vmem:[#allocation11 + $0xe60] ss:$20 sps:$4 sm:$0xff]  }
 0x602   : > { %8620 = vmatpush1.bf16.msra.mxu1 %v13054_v59  ;;  %v13125_v59 = vld [vmem:[#allocation11 + $0xe8c] ss:$20 sps:$4 sm:$0xff]  }
 0x603   : > { %8269 = vmatpush1.bf16.msra.mxu0 %v13009_v9  ;;  %8621 = vmatprep.subr.bf16.mxu1 %v13062_v52  ;;  %v13080_v9 = vld [vmem:[#allocation11 + $0xfd4] ss:$20 sps:$4 sm:$0xff]  }
 0x604   : > { %8270 = vmatprep.subr.bf16.mxu0 %v13017_v24  ;;  %v13078_v24 = vld [vmem:[#allocation11 + $0xfd0] ss:$20 sps:$4 sm:$0xff]   ;;  %v13123_v52 = vld [vmem:[#allocation11 + $0xe88] ss:$20 sps:$4 sm:$0xff]  }
 0x606   : > { %8622 = vmatpush1.bf16.msra.mxu1 %v13060_v47  ;;  %v13131_v47 = vld [vmem:[#allocation11 + $0xeb4] ss:$20 sps:$4 sm:$0xff]  }
 0x607   : > { %8271 = vmatpush1.bf16.msra.mxu0 %v13015_v57  ;;  %8623 = vmatprep.subr.bf16.mxu1 %v13068_v2  ;;  %v13086_v57 = vld [vmem:[#allocation11 + $0xffc] ss:$20 sps:$4 sm:$0xff]  }
 0x608   : > { %8272 = vmatprep.subr.bf16.mxu0 %v13023_v18  ;;  %v13084_v18 = vld [vmem:[#allocation11 + $0xff8] ss:$20 sps:$4 sm:$0xff]   ;;  %v13129_v2 = vld [vmem:[#allocation11 + $0xeb0] ss:$20 sps:$4 sm:$0xff]  }
 0x60a   : > { %8624 = vmatpush1.bf16.msra.mxu1 %v13066_v5  ;;  %v13137_v5 = vld [vmem:[#allocation11 + $0xedc] ss:$20 sps:$4 sm:$0xff]  }
 0x60b   : > { %8273 = vmatpush1.bf16.msra.mxu0 %v13021_v0  ;;  %8625 = vmatprep.subr.bf16.mxu1 %v13074_v30  ;;  %v13092_v0 = vld [vmem:[#allocation11 + $0x1024] ss:$20 sps:$4 sm:$0xff]  }
 0x60c   : > { %8274 = vmatprep.subr.bf16.mxu0 %v13029_v58  ;;  %v13090_v58 = vld [vmem:[#allocation11 + $0x1020] ss:$20 sps:$4 sm:$0xff]   ;;  %v13135_v30 = vld [vmem:[#allocation11 + $0xed8] ss:$20 sps:$4 sm:$0xff]  }
 0x60e   : > { %8626 = vmatpush1.bf16.msra.mxu1 %v13072_v48  ;;  %v13138_v48 = vld [vmem:[#allocation11 + $0x1160] ss:$20 sps:$4 sm:$0xff]  }
 0x60f   : > { %8275 = vmatpush1.bf16.msra.mxu0 %v13027_v33  ;;  %8627 = vmatprep.subr.bf16.mxu1 %v13080_v9  ;;  %v13098_v33 = vld [vmem:[#allocation11 + $0x104c] ss:$20 sps:$4 sm:$0xff]   ;;  %v13237_v9 = vld [vmem:[#allocation11 + $0x3d0] ss:$20 sps:$4 sm:$0xff]  }
 0x610   : > { %8276 = vmatprep.subr.bf16.mxu0 %v13035_v35  ;;  %v13096_v35 = vld [vmem:[#allocation11 + $0x1048] ss:$20 sps:$4 sm:$0xff]  }
 0x612   : > { %8628 = vmatpush1.bf16.msra.mxu1 %v13078_v24 }
 0x613   : > { %8277 = vmatpush1.bf16.msra.mxu0 %v13033_v6  ;;  %8629 = vmatprep.subr.bf16.mxu1 %v13086_v57  ;;  %v13104_v6 = vld [vmem:[#allocation11 + $0x1074] ss:$20 sps:$4 sm:$0xff]   ;;  %v13238_v57 = vld [vmem:[#allocation11 + $0x290] ss:$20 sps:$4 sm:$0xff]  }
 0x614   : > { %8278 = vmatprep.subr.bf16.mxu0 %v13041_v39  ;;  %v13102_v39 = vld [vmem:[#allocation11 + $0x1070] ss:$20 sps:$4 sm:$0xff]  }
 0x616   : > { %8630 = vmatpush1.bf16.msra.mxu1 %v13084_v18  ;;  %v13149_v18 = vld [vmem:[#allocation11 + $0xf54] ss:$20 sps:$4 sm:$0xff]  }
 0x617   : > { %8279 = vmatpush1.bf16.msra.mxu0 %v13039_v43  ;;  %8631 = vmatprep.subr.bf16.mxu1 %v13092_v0  ;;  %v13110_v43 = vld [vmem:[#allocation11 + $0x109c] ss:$20 sps:$4 sm:$0xff]   ;;  %v13244_v0 = vld [vmem:[#allocation11 + $0x420] ss:$20 sps:$4 sm:$0xff]  }
 0x618   : > { %8289 = vmatprep.subr.bf16.mxu0 %v13047_v27  ;;  %v13113_v27 = vld [vmem:[#allocation11 + $0xe3c] ss:$20 sps:$4 sm:$0xff]  }
 0x61a   : > { %8281 = vmatmul.mubr.bf16.vlgmr.msra.gmra.mrb[0].mxu0 %v16447_v34  ;;  %8632 = vmatpush1.bf16.msra.mxu1 %v13090_v58  ;;  %v13152_v58 = vld [vmem:[#allocation11 + $0xf7c] ss:$20 sps:$4 sm:$0xff]  }
 0x61b   : > { %8290 = vmatpush1.bf16.msra.mxu0 %v13045_v10  ;;  %8321 = vmatprep.mubr.bf16.mxu0 %v16449_v40  ;;  %v13111_v10 = vld [vmem:[#allocation11 + $0xe38] ss:$20 sps:$4 sm:$0xff]  }
 0x61c   : > { %8291 = vmatprep.subr.bf16.mxu0 %v13053_v15  ;;  %8633 = vmatprep.subr.bf16.mxu1 %v13098_v33  ;;  %v13122_v15 = vld [vmem:[#allocation11 + $0x10ec] ss:$20 sps:$4 sm:$0xff]   ;;  %v13248_v33 = vld [vmem:[#allocation11 + $0x448] ss:$20 sps:$4 sm:$0xff]  }
 0x61e   : > { %8634 = vmatpush1.bf16.msra.mxu1 %v13096_v35  ;;  %v13155_v35 = vld [vmem:[#allocation11 + $0xfa4] ss:$20 sps:$4 sm:$0xff]  }
 0x61f   : > { %8292 = vmatpush1.bf16.msra.mxu0 %v13051_v60  ;;  %8635 = vmatprep.subr.bf16.mxu1 %v13104_v6  ;;  %v13120_v60 = vld [vmem:[#allocation11 + $0x10e8] ss:$20 sps:$4 sm:$0xff]   ;;  %v13252_v6 = vld [vmem:[#allocation11 + $0x470] ss:$20 sps:$4 sm:$0xff]  }
 0x620   : > { %8293 = vmatprep.subr.bf16.mxu0 %v13059_v20  ;;  %v13128_v20 = vld [vmem:[#allocation11 + $0x1114] ss:$20 sps:$4 sm:$0xff]  }
 0x622   : > { %8636 = vmatpush1.bf16.msra.mxu1 %v13102_v39  ;;  %v13254_v39 = vld [vmem:[#allocation11 + $0x330] ss:$20 sps:$4 sm:$0xff]  }
 0x623   : > { %8294 = vmatpush1.bf16.msra.mxu0 %v13057_v51  ;;  %8637 = vmatprep.subr.bf16.mxu1 %v13110_v43  ;;  %v13126_v51 = vld [vmem:[#allocation11 + $0x1110] ss:$20 sps:$4 sm:$0xff]   ;;  %v13156_v43 = vld [vmem:[#allocation11 + $0xfc8] ss:$20 sps:$4 sm:$0xff]  }
 0x624   : > { %8295 = vmatprep.subr.bf16.mxu0 %v13065_v38  ;;  %v13134_v38 = vld [vmem:[#allocation11 + $0x113c] ss:$20 sps:$4 sm:$0xff]  }
 0x626   : > { %8638 = vmatpush1.bf16.msra.mxu1 %v13108_v32  ;;  %v13258_v32 = vld [vmem:[#allocation11 + $0x358] ss:$20 sps:$4 sm:$0xff]  }
 0x627   : > { %8296 = vmatpush1.bf16.msra.mxu0 %v13063_v13  ;;  %8639 = vmatprep.subr.bf16.mxu1 %v13116_v62  ;;  %v13132_v13 = vld [vmem:[#allocation11 + $0x1138] ss:$20 sps:$4 sm:$0xff]   ;;  %v13159_v62 = vld [vmem:[#allocation11 + $0xff0] ss:$20 sps:$4 sm:$0xff]  }
 0x628   : > { %8297 = vmatprep.subr.bf16.mxu0 %v13071_v55  ;;  %v13140_v55 = vld [vmem:[#allocation11 + $0x1164] ss:$20 sps:$4 sm:$0xff]  }
 0x62a   : > { %8640 = vmatpush1.bf16.msra.mxu1 %v13114_v44  ;;  %v13262_v44 = vld [vmem:[#allocation11 + $0x380] ss:$20 sps:$4 sm:$0xff]  }
 0x62b   : > { %8298 = vmatpush1.bf16.msra.mxu0 %v13069_v21  ;;  %8641 = vmatprep.subr.bf16.mxu1 %v13122_v15  ;;  %v4440_v21 = vrot.slane %v16428_v7, %v16983_v25  ;;  %v13144_v7 = vld [vmem:[#allocation11 + $0xf28] ss:$20 sps:$4 sm:$0xff]   ;;  %v13162_v15 = vld [vmem:[#allocation11 + $0x1018] ss:$20 sps:$4 sm:$0xff]  }
 0x62c   : > { %8299 = vmatprep.subr.bf16.mxu0 %v13077_v46  ;;  %v13143_v46 = vld [vmem:[#allocation11 + $0xf04] ss:$20 sps:$4 sm:$0xff]  }
 0x62d   : > { %v16469_v24 = vpack.c.bf16 %v4440_v21, %v4440_v21  ;;  %v13278_v21 = vld [vmem:[#allocation11 + $0x7e0] ss:$20 sps:$4 sm:$0xff]  }
 0x62e   : > { %8642 = vmatpush1.bf16.msra.mxu1 %v13120_v60  ;;  %v13266_v60 = vld [vmem:[#allocation11 + $0x3a8] ss:$20 sps:$4 sm:$0xff]  }
 0x62f   : > { %8300 = vmatpush1.bf16.msra.mxu0 %v13075_v63  ;;  %8643 = vmatprep.subr.bf16.mxu1 %v13128_v20  ;;  %v13141_v63 = vld [vmem:[#allocation11 + $0xf00] ss:$20 sps:$4 sm:$0xff]   ;;  %v13268_v20 = vld [vmem:[#allocation11 + $0x8d0] ss:$20 sps:$4 sm:$0xff]  }
 0x630   : > { %8301 = vmatprep.subr.bf16.mxu0 %v13083_v16  ;;  %v13146_v16 = vld [vmem:[#allocation11 + $0xf2c] ss:$20 sps:$4 sm:$0xff]  }
 0x632   : > { %8644 = vmatpush1.bf16.msra.mxu1 %v13126_v51  ;;  %v13270_v51 = vld [vmem:[#allocation11 + $0x790] ss:$20 sps:$4 sm:$0xff]  }
 0x633   : > { %8302 = vmatpush1.bf16.msra.mxu0 %v13081_v28  ;;  %8645 = vmatprep.subr.bf16.mxu1 %v13134_v38  ;;  %v13240_v28 = vld [vmem:[#allocation11 + $0x3f8] ss:$20 sps:$4 sm:$0xff]   ;;  %v13168_v38 = vld [vmem:[#allocation11 + $0x1068] ss:$20 sps:$4 sm:$0xff]  }
 0x634   : > { %8303 = vmatprep.subr.bf16.mxu0 %v13089_v14  ;;  %v13242_v14 = vld [vmem:[#allocation11 + $0x2b8] ss:$20 sps:$4 sm:$0xff]  }
 0x636   : > { %8646 = vmatpush1.bf16.msra.mxu1 %v13132_v13  ;;  %v13274_v13 = vld [vmem:[#allocation11 + $0x7b8] ss:$20 sps:$4 sm:$0xff]  }
 0x637   : > { %8304 = vmatpush1.bf16.msra.mxu0 %v13087_v45  ;;  %8647 = vmatprep.subr.bf16.mxu1 %v13140_v55  ;;  %v13147_v45 = vld [vmem:[#allocation11 + $0xf50] ss:$20 sps:$4 sm:$0xff]  }
 0x638   : > { %8305 = vmatprep.subr.bf16.mxu0 %v13095_v37  ;;  %v13246_v37 = vld [vmem:[#allocation11 + $0x2e0] ss:$20 sps:$4 sm:$0xff]   ;;  %v13171_v55 = vld [vmem:[#allocation11 + $0x1090] ss:$20 sps:$4 sm:$0xff]  }
 0x63a   : > { %8648 = vmatpush1.bf16.msra.mxu1 %v13138_v48  ;;  %v13280_v48 = vld [vmem:[#allocation11 + $0x948] ss:$20 sps:$4 sm:$0xff]  }
 0x63b   : > { %8306 = vmatpush1.bf16.msra.mxu0 %v13093_v26  ;;  %11001 = vmatprep.subr.bf16.mxu1 %v13237_v9  ;;  %v13150_v26 = vld [vmem:[#allocation11 + $0xf78] ss:$20 sps:$4 sm:$0xff]   ;;  %v13282_v9 = vld [vmem:[#allocation11 + $0x808] ss:$20 sps:$4 sm:$0xff]  }
 0x63c   : > { %8307 = vmatprep.subr.bf16.mxu0 %v13101_v12  ;;  %v13250_v12 = vld [vmem:[#allocation11 + $0x308] ss:$20 sps:$4 sm:$0xff]  }
 0x63d   : > { %8650 = vmatmul.mubr.bf16.vlgmr.msra.gmra.mrb[0].mxu1 %v16469_v24 }
 0x63e   : > { %11002 = vmatpush3.bf16.msra.mxu1 %v13238_v57  ;;  %8730 = vmatprep.mubr.bf16.mxu1 %v16395_v23  ;;  %v13158_v23 = vld [vmem:[#allocation11 + $0xfcc] ss:$20 sps:$4 sm:$0xff]   ;;  %v13286_v57 = vld [vmem:[#allocation11 + $0x830] ss:$20 sps:$4 sm:$0xff]  }
 0x63f   : > { %8308 = vmatpush1.bf16.msra.mxu0 %v13099_v4  ;;  %11003 = vmatprep.subr.bf16.mxu1 %v13240_v28  ;;  %v13153_v4 = vld [vmem:[#allocation11 + $0xfa0] ss:$20 sps:$4 sm:$0xff]   ;;  %v13288_v28 = vld [vmem:[#allocation11 + $0x998] ss:$20 sps:$4 sm:$0xff]  }
 0x640   : > { %8309 = vmatprep.subr.bf16.mxu0 %v13107_v49  ;;  %v13256_v49 = vld [vmem:[#allocation11 + $0x498] ss:$20 sps:$4 sm:$0xff]  }
 0x642   : > { %11004 = vmatpush3.bf16.msra.mxu1 %v13242_v14  ;;  %v13290_v14 = vld [vmem:[#allocation11 + $0x858] ss:$20 sps:$4 sm:$0xff]  }
 0x643   : > { %8310 = vmatpush1.bf16.msra.mxu0 %v13105_v11  ;;  %11005 = vmatprep.subr.bf16.mxu1 %v13244_v0  ;;  %v13161_v11 = vld [vmem:[#allocation11 + $0xff4] ss:$20 sps:$4 sm:$0xff]  }
 0x644   : > { %8311 = vmatprep.subr.bf16.mxu0 %v13113_v27  ;;  %v13260_v27 = vld [vmem:[#allocation11 + $0x4c0] ss:$20 sps:$4 sm:$0xff]  }
 0x645   : > { %v13292_v0 = vld [vmem:[#allocation11 + $0x9c0] ss:$20 sps:$4 sm:$0xff]  }
 0x646   : > { %11006 = vmatpush3.bf16.msra.mxu1 %v13246_v37  ;;  %v13294_v37 = vld [vmem:[#allocation11 + $0x880] ss:$20 sps:$4 sm:$0xff]  }
 0x647   : > { %8312 = vmatpush1.bf16.msra.mxu0 %v13111_v10  ;;  %11007 = vmatprep.subr.bf16.mxu1 %v13248_v33  ;;  %v13164_v10 = vld [vmem:[#allocation11 + $0x101c] ss:$20 sps:$4 sm:$0xff]  }
 0x648   : > { %8313 = vmatprep.subr.bf16.mxu0 %v13119_v3  ;;  %v13264_v3 = vld [vmem:[#allocation11 + $0x4e8] ss:$20 sps:$4 sm:$0xff]  }
 0x649   : > { %v13296_v33 = vld [vmem:[#allocation11 + $0x9e8] ss:$20 sps:$4 sm:$0xff]  }
 0x64a   : > { %11008 = vmatpush3.bf16.msra.mxu1 %v13250_v12  ;;  %v13298_v12 = vld [vmem:[#allocation11 + $0x8a8] ss:$20 sps:$4 sm:$0xff]  }
 0x64b   : > { %8314 = vmatpush1.bf16.msra.mxu0 %v13117_v42  ;;  %11009 = vmatprep.subr.bf16.mxu1 %v13252_v6  ;;  %v13167_v42 = vld [vmem:[#allocation11 + $0x1044] ss:$20 sps:$4 sm:$0xff]  }
 0x64c   : > { %8315 = vmatprep.subr.bf16.mxu0 %v13125_v59  ;;  %v13165_v59 = vld [vmem:[#allocation11 + $0x1040] ss:$20 sps:$4 sm:$0xff]   ;;  %v13300_v6 = vld [vmem:[#allocation11 + $0xdd0] ss:$20 sps:$4 sm:$0xff]  }
 0x64e   : > { %11010 = vmatpush3.bf16.msra.mxu1 %v13254_v39  ;;  %v13302_v39 = vld [vmem:[#allocation11 + $0xc90] ss:$20 sps:$4 sm:$0xff]  }
 0x64f   : > { %8316 = vmatpush1.bf16.msra.mxu0 %v13123_v52  ;;  %11011 = vmatprep.subr.bf16.mxu1 %v13256_v49  ;;  %v13170_v52 = vld [vmem:[#allocation11 + $0x106c] ss:$20 sps:$4 sm:$0xff]  }
 0x650   : > { %8317 = vmatprep.subr.bf16.mxu0 %v13131_v47  ;;  %v13272_v47 = vld [vmem:[#allocation11 + $0x8f8] ss:$20 sps:$4 sm:$0xff]  }
 0x651   : > { %v13304_v49 = vld [vmem:[#allocation11 + $0xdf8] ss:$20 sps:$4 sm:$0xff]  }
 0x652   : > { %11012 = vmatpush3.bf16.msra.mxu1 %v13258_v32  ;;  %v13306_v32 = vld [vmem:[#allocation11 + $0xcb8] ss:$20 sps:$4 sm:$0xff]  }
 0x653   : > { %8318 = vmatpush1.bf16.msra.mxu0 %v13129_v2  ;;  %11013 = vmatprep.subr.bf16.mxu1 %v13260_v27  ;;  %v13173_v2 = vld [vmem:[#allocation11 + $0x1094] ss:$20 sps:$4 sm:$0xff]  }
 0x654   : > { %8319 = vmatprep.subr.bf16.mxu0 %v13137_v5  ;;  %v13276_v5 = vld [vmem:[#allocation11 + $0x920] ss:$20 sps:$4 sm:$0xff]  }
 0x655   : > { %v13308_v27 = vld [vmem:[#allocation11 + $0xe20] ss:$20 sps:$4 sm:$0xff]  }
 0x656   : > { %11014 = vmatpush3.bf16.msra.mxu1 %v13262_v44  ;;  %v13310_v44 = vld [vmem:[#allocation11 + $0xce0] ss:$20 sps:$4 sm:$0xff]  }
 0x657   : > { %8320 = vmatpush1.bf16.msra.mxu0 %v13135_v30  ;;  %11015 = vmatprep.subr.bf16.mxu1 %v13264_v3  ;;  %v13176_v30 = vld [vmem:[#allocation11 + $0x10bc] ss:$20 sps:$4 sm:$0xff]  }
 0x658   : > { %8330 = vmatprep.subr.bf16.mxu0 %v13143_v46  ;;  %v13174_v46 = vld [vmem:[#allocation11 + $0x10b8] ss:$20 sps:$4 sm:$0xff]   ;;  %v13312_v3 = vld [vmem:[#allocation11 + $0xe48] ss:$20 sps:$4 sm:$0xff]  }
 0x65a   : > { %8322 = vmatmul.mubr.bf16.vlgmr.msra.gmra.mrb[0].mxu0 %v16459_v61  ;;  %11016 = vmatpush3.bf16.msra.mxu1 %v13266_v60  ;;  %v13316_v60 = vld [vmem:[#allocation11 + $0xe70] ss:$20 sps:$4 sm:$0xff]  }
 0x65b   : > { %8331 = vmatpush1.bf16.msra.mxu0 %v13141_v63  ;;  %8362 = vmatprep.mubr.bf16.mxu0 %v16461_v54  ;;  %v13284_v63 = vld [vmem:[#allocation11 + $0x970] ss:$20 sps:$4 sm:$0xff]  }
 0x65c   : > { %8332 = vmatprep.subr.bf16.mxu0 %v13146_v16  ;;  %11045 = vmatprep.subr.bf16.mxu1 %v13268_v20  ;;  %v13177_v16 = vld [vmem:[#allocation11 + $0x10e0] ss:$20 sps:$4 sm:$0xff]   ;;  %v13318_v20 = vld [vmem:[#allocation11 + $0xd30] ss:$20 sps:$4 sm:$0xff]  }
 0x65d   : > { %8731 = vmatmul.mubr.bf16.vlgmr.msra.gmra.mrb[4].mxu1 %v16407_v22  ;;  %v13179_v22 = vld [vmem:[#allocation11 + $0x10e4] ss:$20 sps:$4 sm:$0xff]  }
 0x65e   : > { %11046 = vmatpush3.bf16.msra.mxu1 %v13270_v51  ;;  %8810 = vmatprep.mubr.bf16.mxu1 %v16422_v31  ;;  %v13182_v31 = vld [vmem:[#allocation11 + $0x110c] ss:$20 sps:$4 sm:$0xff]   ;;  %v13204_v51 = vld [vmem:[#allocation11 + $0xd0] ss:$20 sps:$4 sm:$0xff]  }
 0x65f   : > { %8333 = vmatpush1.bf16.msra.mxu0 %v13144_v7  ;;  %11047 = vmatprep.subr.bf16.mxu1 %v13272_v47  ;;  %v13180_v7 = vld [vmem:[#allocation11 + $0x1108] ss:$20 sps:$4 sm:$0xff]  }
 0x660   : > { %8334 = vmatprep.subr.bf16.mxu0 %v13149_v18  ;;  %v13185_v18 = vld [vmem:[#allocation11 + $0x1134] ss:$20 sps:$4 sm:$0xff]   ;;  %v13209_v47 = vld [vmem:[#allocation11 + $0xfc] ss:$20 sps:$4 sm:$0xff]  }
 0x662   : > { %11048 = vmatpush3.bf16.msra.mxu1 %v13274_v13  ;;  %v13207_v13 = vld [vmem:[#allocation11 + $0xf8] ss:$20 sps:$4 sm:$0xff]  }
 0x663   : > { %8335 = vmatpush1.bf16.msra.mxu0 %v13147_v45  ;;  %11049 = vmatprep.subr.bf16.mxu1 %v13276_v5  ;;  %v13183_v45 = vld [vmem:[#allocation11 + $0x1130] ss:$20 sps:$4 sm:$0xff]  }
 0x664   : > { %8336 = vmatprep.subr.bf16.mxu0 %v13152_v58  ;;  %v13188_v58 = vld [vmem:[#allocation11 + $0x115c] ss:$20 sps:$4 sm:$0xff]   ;;  %v13212_v5 = vld [vmem:[#allocation11 + $0x124] ss:$20 sps:$4 sm:$0xff]  }
 0x666   : > { %11050 = vmatpush3.bf16.msra.mxu1 %v13278_v21  ;;  %v13210_v21 = vld [vmem:[#allocation11 + $0x120] ss:$20 sps:$4 sm:$0xff]  }
 0x667   : > { %8337 = vmatpush1.bf16.msra.mxu0 %v13150_v26  ;;  %11051 = vmatprep.subr.bf16.mxu1 %v13280_v48  ;;  %v13186_v26 = vld [vmem:[#allocation11 + $0x1158] ss:$20 sps:$4 sm:$0xff]  }
 0x668   : > { %8338 = vmatprep.subr.bf16.mxu0 %v13155_v35  ;;  %v13191_v35 = vld [vmem:[#allocation11 + $0xc] ss:$20 sps:$4 sm:$0xff]  }
 0x669   : > { %v13215_v48 = vld [vmem:[#allocation11 + $0x14c] ss:$20 sps:$4 sm:$0xff]  }
 0x66a   : > { %11052 = vmatpush3.bf16.msra.mxu1 %v13282_v9  ;;  %v13213_v9 = vld [vmem:[#allocation11 + $0x148] ss:$20 sps:$4 sm:$0xff]  }
 0x66b   : > { %8339 = vmatpush1.bf16.msra.mxu0 %v13153_v4  ;;  %11053 = vmatprep.subr.bf16.mxu1 %v13284_v63  ;;  %v13189_v4 = vld [vmem:[#allocation11 + $0x8] ss:$20 sps:$4 sm:$0xff]  }
 0x66c   : > { %8340 = vmatprep.subr.bf16.mxu0 %v13158_v23  ;;  %v13194_v23 = vld [vmem:[#allocation11 + $0x34] ss:$20 sps:$4 sm:$0xff]  }
 0x66d   : > { %v13218_v63 = vld [vmem:[#allocation11 + $0x174] ss:$20 sps:$4 sm:$0xff]  }
 0x66e   : > { %11054 = vmatpush3.bf16.msra.mxu1 %v13286_v57  ;;  %v13216_v57 = vld [vmem:[#allocation11 + $0x170] ss:$20 sps:$4 sm:$0xff]  }
 0x66f   : > { %8341 = vmatpush1.bf16.msra.mxu0 %v13156_v43  ;;  %11055 = vmatprep.subr.bf16.mxu1 %v13288_v28  ;;  %v13192_v43 = vld [vmem:[#allocation11 + $0x30] ss:$20 sps:$4 sm:$0xff]  }
 0x670   : > { %8342 = vmatprep.subr.bf16.mxu0 %v13161_v11  ;;  %v13197_v11 = vld [vmem:[#allocation11 + $0x5c] ss:$20 sps:$4 sm:$0xff]  }
 0x671   : > { %v13221_v28 = vld [vmem:[#allocation11 + $0x19c] ss:$20 sps:$4 sm:$0xff]  }
 0x672   : > { %11056 = vmatpush3.bf16.msra.mxu1 %v13290_v14  ;;  %v13219_v14 = vld [vmem:[#allocation11 + $0x198] ss:$20 sps:$4 sm:$0xff]  }
 0x673   : > { %8343 = vmatpush1.bf16.msra.mxu0 %v13159_v62  ;;  %11057 = vmatprep.subr.bf16.mxu1 %v13292_v0  ;;  %v13195_v62 = vld [vmem:[#allocation11 + $0x58] ss:$20 sps:$4 sm:$0xff]  }
 0x674   : > { %8344 = vmatprep.subr.bf16.mxu0 %v13164_v10  ;;  %v13200_v10 = vld [vmem:[#allocation11 + $0x84] ss:$20 sps:$4 sm:$0xff]  }
 0x675   : > { %v13224_v0 = vld [vmem:[#allocation11 + $0x1c4] ss:$20 sps:$4 sm:$0xff]  }
 0x676   : > { %11058 = vmatpush3.bf16.msra.mxu1 %v13294_v37  ;;  %v13222_v37 = vld [vmem:[#allocation11 + $0x1c0] ss:$20 sps:$4 sm:$0xff]  }
 0x677   : > { %8345 = vmatpush1.bf16.msra.mxu0 %v13162_v15  ;;  %11059 = vmatprep.subr.bf16.mxu1 %v13296_v33  ;;  %v13198_v15 = vld [vmem:[#allocation11 + $0x80] ss:$20 sps:$4 sm:$0xff]  }
 0x678   : > { %8346 = vmatprep.subr.bf16.mxu0 %v13167_v42  ;;  %v13203_v42 = vld [vmem:[#allocation11 + $0xac] ss:$20 sps:$4 sm:$0xff]  }
 0x679   : > { %v13227_v33 = vld [vmem:[#allocation11 + $0x1ec] ss:$20 sps:$4 sm:$0xff]  }
 0x67a   : > { %11060 = vmatpush3.bf16.msra.mxu1 %v13298_v12  ;;  %v13230_v12 = vld [vmem:[#allocation11 + $0x214] ss:$20 sps:$4 sm:$0xff]  }
 0x67b   : > { %8347 = vmatpush1.bf16.msra.mxu0 %v13165_v59  ;;  %11089 = vmatprep.subr.bf16.mxu1 %v13300_v6  ;;  %v13206_v59 = vld [vmem:[#allocation11 + $0xd4] ss:$20 sps:$4 sm:$0xff]  }
 0x67c   : > { %8348 = vmatprep.subr.bf16.mxu0 %v13170_v52  ;;  %v13320_v52 = vld [vmem:[#allocation11 + $0xe98] ss:$20 sps:$4 sm:$0xff]  }
 0x67d   : > { %8811 = vmatmul.mubr.bf16.vlgmr.msra.gmra.mrb[8].mxu1 %v16435_v1  ;;  %v13314_v1 = vld [vmem:[#allocation11 + $0xd08] ss:$20 sps:$4 sm:$0xff]  }
 0x67e   : > { %11090 = vmatpush3.bf16.msra.mxu1 %v13302_v39  ;;  %8890 = vmatprep.mubr.bf16.mxu1 %v16449_v40  ;;  %v13201_v40 = vld [vmem:[#allocation11 + $0xa8] ss:$20 sps:$4 sm:$0xff]  }
 0x67f   : > { %8349 = vmatpush1.bf16.msra.mxu0 %v13168_v38  ;;  %11091 = vmatprep.subr.bf16.mxu1 %v13304_v49  ;;  %v13322_v38 = vld [vmem:[#allocation11 + $0xd58] ss:$20 sps:$4 sm:$0xff]   ;;  %v13233_v39 = vld [vmem:[#allocation11 + $0x23c] ss:$20 sps:$4 sm:$0xff]  }
 0x680   : > { %8350 = vmatprep.subr.bf16.mxu0 %v13173_v2  ;;  %v13324_v2 = vld [vmem:[#allocation11 + $0xec0] ss:$20 sps:$4 sm:$0xff]   ;;  %v13352_v6 = vld [vmem:[#allocation14 + $0x40] ss:$8 sps:$4 sm:$0xff]  }
 0x681   : > { %v13357_v49 = vld [vmem:[#allocation14 + $0x50] ss:$8 sps:$4 sm:$0xff]  }
 0x682   : > { %11092 = vmatpush3.bf16.msra.mxu1 %v13306_v32  ;;  %v13236_v32 = vld [vmem:[#allocation11 + $0x264] ss:$20 sps:$4 sm:$0xff]  }
 0x683   : > { %8351 = vmatpush1.bf16.msra.mxu0 %v13171_v55  ;;  %11093 = vmatprep.subr.bf16.mxu1 %v13308_v27  ;;  %v13326_v55 = vld [vmem:[#allocation11 + $0xd80] ss:$20 sps:$4 sm:$0xff]   ;;  %v13362_v27 = vld [vmem:[#allocation14 + $0x60] ss:$8 sps:$4 sm:$0xff]  }
 0x684   : > { %8352 = vmatprep.subr.bf16.mxu0 %v13176_v30  ;;  %v13328_v30 = vld [vmem:[#allocation11 + $0xee8] ss:$20 sps:$4 sm:$0xff]  }
 0x686   : > { %11094 = vmatpush3.bf16.msra.mxu1 %v13310_v44  ;;  %v13239_v44 = vld [vmem:[#allocation11 + $0x150] ss:$20 sps:$4 sm:$0xff]  }
 0x687   : > { %8353 = vmatpush1.bf16.msra.mxu0 %v13174_v46  ;;  %11095 = vmatprep.subr.bf16.mxu1 %v13312_v3  ;;  %v13330_v46 = vld [vmem:[#allocation11 + $0xda8] ss:$20 sps:$4 sm:$0xff]  }
 0x688   : > { %8354 = vmatprep.subr.bf16.mxu0 %v13179_v22  ;;  %v13334_v22 = vld [vmem:[#allocation14 + $0x4] ss:$8 sps:$4 sm:$0xff]   ;;  %v13367_v3 = vld [vmem:[#allocation14 + $0x70] ss:$8 sps:$4 sm:$0xff]  }
 0x68a   : > { %11096 = vmatpush3.bf16.msra.mxu1 %v13314_v1  ;;  %v13243_v1 = vld [vmem:[#allocation11 + $0x178] ss:$20 sps:$4 sm:$0xff]  }
 0x68b   : > { %8355 = vmatpush1.bf16.msra.mxu0 %v13177_v16  ;;  %11097 = vmatprep.subr.bf16.mxu1 %v13316_v60  ;;  %v13332_v16 = vld [vmem:[#allocation14] ss:$8 sps:$4 sm:$0xff]  }
 0x68c   : > { %8356 = vmatprep.subr.bf16.mxu0 %v13182_v31  ;;  %v13339_v31 = vld [vmem:[#allocation14 + $0x14] ss:$8 sps:$4 sm:$0xff]   ;;  %v13372_v60 = vld [vmem:[#allocation14 + $0x80] ss:$8 sps:$4 sm:$0xff]  }
 0x68e   : > { %11098 = vmatpush3.bf16.msra.mxu1 %v13318_v20  ;;  %v13247_v20 = vld [vmem:[#allocation11 + $0x1a0] ss:$20 sps:$4 sm:$0xff]  }
 0x68f   : > { %8357 = vmatpush1.bf16.msra.mxu0 %v13180_v7  ;;  %11099 = vmatprep.subr.bf16.mxu1 %v13320_v52  ;;  %v13337_v7 = vld [vmem:[#allocation14 + $0x10] ss:$8 sps:$4 sm:$0xff]  }
 0x690   : > { %8358 = vmatprep.subr.bf16.mxu0 %v13185_v18  ;;  %v13344_v18 = vld [vmem:[#allocation14 + $0x24] ss:$8 sps:$4 sm:$0xff]   ;;  %v13376_v52 = vld [vmem:[#allocation14 + $0x90] ss:$8 sps:$4 sm:$0xff]  }
 0x692   : > { %11100 = vmatpush3.bf16.msra.mxu1 %v13322_v38  ;;  %v13251_v38 = vld [vmem:[#allocation11 + $0x1c8] ss:$20 sps:$4 sm:$0xff]  }
 0x693   : > { %8359 = vmatpush1.bf16.msra.mxu0 %v13183_v45  ;;  %11101 = vmatprep.subr.bf16.mxu1 %v13324_v2  ;;  %v13342_v45 = vld [vmem:[#allocation14 + $0x20] ss:$8 sps:$4 sm:$0xff]  }
 0x694   : > { %8360 = vmatprep.subr.bf16.mxu0 %v13188_v58  ;;  %v13349_v58 = vld [vmem:[#allocation14 + $0x34] ss:$8 sps:$4 sm:$0xff]   ;;  %v13379_v2 = vld [vmem:[#allocation14 + $0xa0] ss:$8 sps:$4 sm:$0xff]  }
 0x696   : > { %11102 = vmatpush3.bf16.msra.mxu1 %v13326_v55  ;;  %v13255_v55 = vld [vmem:[#allocation11 + $0x1f0] ss:$20 sps:$4 sm:$0xff]  }
 0x697   : > { %8361 = vmatpush1.bf16.msra.mxu0 %v13186_v26  ;;  %11103 = vmatprep.subr.bf16.mxu1 %v13328_v30  ;;  %v13347_v26 = vld [vmem:[#allocation14 + $0x30] ss:$8 sps:$4 sm:$0xff]   ;;  %v13387_v30 = vld [vmem:[#allocation14 + $0xc4] ss:$8 sps:$4 sm:$0xff]  }
 0x698   : > { %8371 = vmatprep.subr.bf16.mxu0 %v13191_v35  ;;  %v13225_v35 = vld [vmem:[#allocation11 + $0x1e8] ss:$20 sps:$4 sm:$0xff]  }
 0x69a   : > { %8363 = vmatmul.mubr.bf16.vlgmr.msra.gmra.mrb[0].mxu0 %v16469_v24  ;;  %11104 = vmatpush3.bf16.msra.mxu1 %v13330_v46  ;;  %v13385_v46 = vld [vmem:[#allocation14 + $0xc0] ss:$8 sps:$4 sm:$0xff]  }
 0x69b   : > { %8372 = vmatpush1.bf16.msra.mxu0 %v13189_v4  ;;  %8403 = vmatprep.mubr.bf16.mxu0 %v16393_v41  ;;  %v13359_v4 = vld [vmem:[#allocation14 + $0x54] ss:$8 sps:$4 sm:$0xff]  }
 0x69c   : > { %8373 = vmatprep.subr.bf16.mxu0 %v13194_v23  ;;  %9440 = vmatprep.subr.bf16.mxu1 %v13334_v22  ;;  %v13228_v23 = vld [vmem:[#allocation11 + $0x210] ss:$20 sps:$4 sm:$0xff]  }
 0x69d   : > { %8891 = vmatmul.mubr.bf16.vlgmr.msra.gmra.mrb[12].mxu1 %v16459_v61  ;;  %v13354_v61 = vld [vmem:[#allocation14 + $0x44] ss:$8 sps:$4 sm:$0xff]   ;;  %v13390_v22 = vld [vmem:[#allocation14 + $0xd4] ss:$8 sps:$4 sm:$0xff]  }
 0x69e   : > { %9441 = vmatpush1.bf16.msra.mxu1 %v13332_v16  ;;  %v13388_v16 = vld [vmem:[#allocation14 + $0xd0] ss:$8 sps:$4 sm:$0xff]  }
 0x69f   : > { %8374 = vmatpush1.bf16.msra.mxu0 %v13192_v43  ;;  %9442 = vmatprep.subr.bf16.mxu1 %v13339_v31  ;;  %v13364_v43 = vld [vmem:[#allocation14 + $0x64] ss:$8 sps:$4 sm:$0xff]  }
 0x6a0   : > { %8375 = vmatprep.subr.bf16.mxu0 %v13197_v11  ;;  %v13231_v11 = vld [vmem:[#allocation11 + $0x238] ss:$20 sps:$4 sm:$0xff]  }
 0x6a1   : > { %v13393_v31 = vld [vmem:[#allocation14 + $0xe4] ss:$8 sps:$4 sm:$0xff]  }
 0x6a2   : > { %9443 = vmatpush1.bf16.msra.mxu1 %v13337_v7  ;;  %v13391_v7 = vld [vmem:[#allocation14 + $0xe0] ss:$8 sps:$4 sm:$0xff]  }
 0x6a3   : > { %8376 = vmatpush1.bf16.msra.mxu0 %v13195_v62  ;;  %9444 = vmatprep.subr.bf16.mxu1 %v13344_v18  ;;  %v13369_v62 = vld [vmem:[#allocation14 + $0x74] ss:$8 sps:$4 sm:$0xff]  }
 0x6a4   : > { %8377 = vmatprep.subr.bf16.mxu0 %v13200_v10  ;;  %v13234_v10 = vld [vmem:[#allocation11 + $0x260] ss:$20 sps:$4 sm:$0xff]  }
 0x6a5   : > { %v13396_v18 = vld [vmem:[#allocation14 + $0xf4] ss:$8 sps:$4 sm:$0xff]  }
 0x6a6   : > { %9445 = vmatpush1.bf16.msra.mxu1 %v13342_v45  ;;  %v13394_v45 = vld [vmem:[#allocation14 + $0xf0] ss:$8 sps:$4 sm:$0xff]  }
 0x6a7   : > { %8378 = vmatpush1.bf16.msra.mxu0 %v13198_v15  ;;  %9446 = vmatprep.subr.bf16.mxu1 %v13349_v58  ;;  %v13374_v15 = vld [vmem:[#allocation14 + $0x84] ss:$8 sps:$4 sm:$0xff]  }
 0x6a8   : > { %8379 = vmatprep.subr.bf16.mxu0 %v13203_v42  ;;  %v13241_v42 = vld [vmem:[#allocation11 + $0x10] ss:$20 sps:$4 sm:$0xff]  }
 0x6a9   : > { %v13399_v58 = vld [vmem:[#allocation14 + $0x104] ss:$8 sps:$4 sm:$0xff]  }
 0x6aa   : > { %9447 = vmatpush1.bf16.msra.mxu1 %v13347_v26  ;;  %v13277_v26 = vld [vmem:[#allocation11 + $0x538] ss:$20 sps:$4 sm:$0xff]  }
 0x6ab   : > { %8380 = vmatpush1.bf16.msra.mxu0 %v13201_v40  ;;  %9448 = vmatprep.subr.bf16.mxu1 %v13354_v61  ;;  %v13378_v40 = vld [vmem:[#allocation14 + $0x94] ss:$8 sps:$4 sm:$0xff]  }
 0x6ac   : > { %8381 = vmatprep.subr.bf16.mxu0 %v13206_v59  ;;  %v13245_v59 = vld [vmem:[#allocation11 + $0x38] ss:$20 sps:$4 sm:$0xff]   ;;  %v13279_v61 = vld [vmem:[#allocation11 + $0x6a0] ss:$20 sps:$4 sm:$0xff]  }
 0x6ae   : > { %9449 = vmatpush1.bf16.msra.mxu1 %v13352_v6  ;;  %v13285_v6 = vld [vmem:[#allocation11 + $0x588] ss:$20 sps:$4 sm:$0xff]  }
 0x6af   : > { %8382 = vmatpush1.bf16.msra.mxu0 %v13204_v51  ;;  %9450 = vmatprep.subr.bf16.mxu1 %v13359_v4  ;;  %v13381_v51 = vld [vmem:[#allocation14 + $0xa4] ss:$8 sps:$4 sm:$0xff]  }
 0x6b0   : > { %8383 = vmatprep.subr.bf16.mxu0 %v13209_v47  ;;  %v13249_v47 = vld [vmem:[#allocation11 + $0x60] ss:$20 sps:$4 sm:$0xff]   ;;  %v13287_v4 = vld [vmem:[#allocation11 + $0x6f0] ss:$20 sps:$4 sm:$0xff]  }
 0x6b2   : > { %9451 = vmatpush1.bf16.msra.mxu1 %v13357_v49  ;;  %v13295_v49 = vld [vmem:[#allocation11 + $0x740] ss:$20 sps:$4 sm:$0xff]  }
 0x6b3   : > { %8384 = vmatpush1.bf16.msra.mxu0 %v13207_v13  ;;  %9452 = vmatprep.subr.bf16.mxu1 %v13364_v43  ;;  %v13384_v13 = vld [vmem:[#allocation14 + $0xb4] ss:$8 sps:$4 sm:$0xff]  }
 0x6b4   : > { %8385 = vmatprep.subr.bf16.mxu0 %v13212_v5  ;;  %v13253_v5 = vld [vmem:[#allocation11 + $0x88] ss:$20 sps:$4 sm:$0xff]  }
 0x6b5   : > { %v13299_v43 = vld [vmem:[#allocation11 + $0x768] ss:$20 sps:$4 sm:$0xff]  }
 0x6b6   : > { %9453 = vmatpush1.bf16.msra.mxu1 %v13362_v27  ;;  %v13305_v27 = vld [vmem:[#allocation11 + $0xa10] ss:$20 sps:$4 sm:$0xff]  }
 0x6b7   : > { %8386 = vmatpush1.bf16.msra.mxu0 %v13210_v21  ;;  %9454 = vmatprep.subr.bf16.mxu1 %v13369_v62  ;;  %v13257_v21 = vld [vmem:[#allocation11 + $0xb0] ss:$20 sps:$4 sm:$0xff]   ;;  %v13307_v62 = vld [vmem:[#allocation11 + $0xb78] ss:$20 sps:$4 sm:$0xff]  }
 0x6b8   : > { %8387 = vmatprep.subr.bf16.mxu0 %v13215_v48  ;;  %v13259_v48 = vld [vmem:[#allocation11 + $0x218] ss:$20 sps:$4 sm:$0xff]  }
 0x6ba   : > { %9455 = vmatpush1.bf16.msra.mxu1 %v13367_v3  ;;  %v13313_v3 = vld [vmem:[#allocation11 + $0xa60] ss:$20 sps:$4 sm:$0xff]  }
 0x6bb   : > { %8388 = vmatpush1.bf16.msra.mxu0 %v13213_v9  ;;  %9456 = vmatprep.subr.bf16.mxu1 %v13374_v15  ;;  %v13261_v9 = vld [vmem:[#allocation11 + $0xd8] ss:$20 sps:$4 sm:$0xff]   ;;  %v13315_v15 = vld [vmem:[#allocation11 + $0xbc8] ss:$20 sps:$4 sm:$0xff]  }
 0x6bc   : > { %8389 = vmatprep.subr.bf16.mxu0 %v13218_v63  ;;  %v13263_v63 = vld [vmem:[#allocation11 + $0x240] ss:$20 sps:$4 sm:$0xff]  }
 0x6be   : > { %9457 = vmatpush1.bf16.msra.mxu1 %v13372_v60  ;;  %v13321_v60 = vld [vmem:[#allocation11 + $0xab0] ss:$20 sps:$4 sm:$0xff]  }
 0x6bf   : > { %8390 = vmatpush1.bf16.msra.mxu0 %v13216_v57  ;;  %9458 = vmatprep.subr.bf16.mxu1 %v13378_v40  ;;  %v13265_v57 = vld [vmem:[#allocation11 + $0x100] ss:$20 sps:$4 sm:$0xff]   ;;  %v13323_v40 = vld [vmem:[#allocation11 + $0xc18] ss:$20 sps:$4 sm:$0xff]  }
 0x6c0   : > { %8391 = vmatprep.subr.bf16.mxu0 %v13221_v28  ;;  %v13267_v28 = vld [vmem:[#allocation11 + $0x268] ss:$20 sps:$4 sm:$0xff]  }
 0x6c2   : > { %9459 = vmatpush1.bf16.msra.mxu1 %v13376_v52 }
 0x6c3   : > { %8392 = vmatpush1.bf16.msra.mxu0 %v13219_v14  ;;  %9460 = vmatprep.subr.bf16.mxu1 %v13381_v51  ;;  %v13269_v14 = vld [vmem:[#allocation11 + $0x128] ss:$20 sps:$4 sm:$0xff]   ;;  %v13329_v51 = vld [vmem:[#allocation11 + $0xb00] ss:$20 sps:$4 sm:$0xff]  }
 0x6c4   : > { %8393 = vmatprep.subr.bf16.mxu0 %v13224_v0  ;;  %v13271_v0 = vld [vmem:[#allocation11 + $0x650] ss:$20 sps:$4 sm:$0xff]  }
 0x6c6   : > { %9461 = vmatpush1.bf16.msra.mxu1 %v13379_v2  ;;  %v13335_v2 = vld [vmem:[#allocation11 + $0xb28] ss:$20 sps:$4 sm:$0xff]  }
 0x6c7   : > { %8394 = vmatpush1.bf16.msra.mxu0 %v13222_v37  ;;  %9462 = vmatprep.subr.bf16.mxu1 %v13384_v13  ;;  %v13273_v37 = vld [vmem:[#allocation11 + $0x510] ss:$20 sps:$4 sm:$0xff]  }
 0x6c8   : > { %8395 = vmatprep.subr.bf16.mxu0 %v13227_v33  ;;  %v13275_v33 = vld [vmem:[#allocation11 + $0x678] ss:$20 sps:$4 sm:$0xff]   ;;  %v13336_v13 = vld [vmem:[#allocation11 + $0x1050] ss:$20 sps:$4 sm:$0xff]  }
 0x6cb   : > { %8396 = vmatpush1.bf16.msra.mxu0 %v13225_v35  ;;  %v13281_v35 = vld [vmem:[#allocation11 + $0x560] ss:$20 sps:$4 sm:$0xff]  }
 0x6cc   : > { %8397 = vmatprep.subr.bf16.mxu0 %v13230_v12  ;;  %v13283_v12 = vld [vmem:[#allocation11 + $0x6c8] ss:$20 sps:$4 sm:$0xff]  }
 0x6cf   : > { %8398 = vmatpush1.bf16.msra.mxu0 %v13228_v23  ;;  %v13289_v23 = vld [vmem:[#allocation11 + $0x5b0] ss:$20 sps:$4 sm:$0xff]  }
 0x6d0   : > { %8399 = vmatprep.subr.bf16.mxu0 %v13233_v39  ;;  %v13291_v39 = vld [vmem:[#allocation11 + $0x718] ss:$20 sps:$4 sm:$0xff]  }
 0x6d3   : > { %8400 = vmatpush1.bf16.msra.mxu0 %v13231_v11  ;;  %v13301_v11 = vld [vmem:[#allocation11 + $0x628] ss:$20 sps:$4 sm:$0xff]  }
 0x6d4   : > { %8401 = vmatprep.subr.bf16.mxu0 %v13236_v32  ;;  %v13303_v32 = vld [vmem:[#allocation11 + $0xb50] ss:$20 sps:$4 sm:$0xff]  }
 0x6d7   : > { %8402 = vmatpush1.bf16.msra.mxu0 %v13234_v10  ;;  %v13309_v10 = vld [vmem:[#allocation11 + $0xa38] ss:$20 sps:$4 sm:$0xff]  }
 0x6d8   : > { %10979 = vmatprep.subr.bf16.mxu0 %v13239_v44  ;;  %v13311_v44 = vld [vmem:[#allocation11 + $0xba0] ss:$20 sps:$4 sm:$0xff]  }
 0x6da   : > { %8404 = vmatmul.mubr.bf16.vlgmr.msra.gmra.mrb[4].mxu0 %v16405_v17 }
 0x6db   : > { %10980 = vmatpush3.bf16.msra.mxu0 %v13241_v42  ;;  %8690 = vmatprep.mubr.bf16.mxu0 %v16393_v41  ;;  %v13382_v41 = vld [vmem:[#allocation14 + $0xb0] ss:$8 sps:$4 sm:$0xff]  }
 0x6dc   : > { %10981 = vmatprep.subr.bf16.mxu0 %v13243_v1  ;;  %9463 = vmatpush1.bf16.msra.mxu1 %v13382_v41  ;;  %v13317_v42 = vld [vmem:[#allocation11 + $0xa88] ss:$20 sps:$4 sm:$0xff]   ;;  %v13319_v1 = vld [vmem:[#allocation11 + $0xbf0] ss:$20 sps:$4 sm:$0xff]   ;;  %v13345_v41 = vld [vmem:[#allocation11 + $0xf38] ss:$20 sps:$4 sm:$0xff]  }
 0x6dd   : > { %9464 = vmatprep.subr.bf16.mxu1 %v13387_v30  ;;  %v13346_v30 = vld [vmem:[#allocation11 + $0x10a0] ss:$20 sps:$4 sm:$0xff]  }
 0x6df   : > { %10982 = vmatpush3.bf16.msra.mxu0 %v13245_v59  ;;  %v13327_v59 = vld [vmem:[#allocation11 + $0xc40] ss:$20 sps:$4 sm:$0xff]  }
 0x6e0   : > { %10983 = vmatprep.subr.bf16.mxu0 %v13247_v20  ;;  %9465 = vmatpush1.bf16.msra.mxu1 %v13385_v46  ;;  %v13355_v46 = vld [vmem:[#allocation11 + $0xf88] ss:$20 sps:$4 sm:$0xff]  }
 0x6e1   : > { %9466 = vmatprep.subr.bf16.mxu1 %v13390_v22  ;;  %v13356_v22 = vld [vmem:[#allocation11 + $0x10f0] ss:$20 sps:$4 sm:$0xff]  }
 0x6e3   : > { %10984 = vmatpush3.bf16.msra.mxu0 %v13249_v47 }
 0x6e4   : > { %10985 = vmatprep.subr.bf16.mxu0 %v13251_v38  ;;  %9467 = vmatpush1.bf16.msra.mxu1 %v13388_v16  ;;  %v13331_v38 = vld [vmem:[#allocation11 + $0xc68] ss:$20 sps:$4 sm:$0xff]   ;;  %v13366_v16 = vld [vmem:[#allocation11 + $0x1140] ss:$20 sps:$4 sm:$0xff]  }
 0x6e5   : > { %9468 = vmatprep.subr.bf16.mxu1 %v13393_v31 }
 0x6e7   : > { %10986 = vmatpush3.bf16.msra.mxu0 %v13253_v5  ;;  %v13340_v5 = vld [vmem:[#allocation11 + $0xf10] ss:$20 sps:$4 sm:$0xff]  }
 0x6e8   : > { %10987 = vmatprep.subr.bf16.mxu0 %v13255_v55  ;;  %9469 = vmatpush1.bf16.msra.mxu1 %v13391_v7  ;;  %v13341_v55 = vld [vmem:[#allocation11 + $0x1078] ss:$20 sps:$4 sm:$0xff]  }
 0x6e9   : > { %9470 = vmatprep.subr.bf16.mxu1 %v13396_v18 }
 0x6eb   : > { %10988 = vmatpush3.bf16.msra.mxu0 %v13257_v21  ;;  %v13350_v21 = vld [vmem:[#allocation11 + $0xf60] ss:$20 sps:$4 sm:$0xff]  }
 0x6ec   : > { %10989 = vmatprep.subr.bf16.mxu0 %v13259_v48  ;;  %9471 = vmatpush1.bf16.msra.mxu1 %v13394_v45  ;;  %v13351_v48 = vld [vmem:[#allocation11 + $0x10c8] ss:$20 sps:$4 sm:$0xff]   ;;  %v16497_v45 = vld [vmem:[#allocation12] sm:$0x1f] }
 0x6ed   : > { %9481 = vmatprep.subr.bf16.mxu1 %v13399_v58  ;;  %v8062_v58 = vrot.slane %v16497_v45, %v16980_v29 }
 0x6ef   : > { %10990 = vmatpush3.bf16.msra.mxu0 %v13261_v9  ;;  %v13360_v9 = vld [vmem:[#allocation11 + $0xfb0] ss:$20 sps:$4 sm:$0xff]  }
 0x6f0   : > { %10991 = vmatprep.subr.bf16.mxu0 %v13263_v63  ;;  %v13361_v63 = vld [vmem:[#allocation11 + $0x1118] ss:$20 sps:$4 sm:$0xff]  }
 0x6f3   : > { %10992 = vmatpush3.bf16.msra.mxu0 %v13265_v57  ;;  %v13371_v57 = vld [vmem:[#allocation11 + $0x1168] ss:$20 sps:$4 sm:$0xff]  }
 0x6f4   : > { %10993 = vmatprep.subr.bf16.mxu0 %v13267_v28 }
 0x6f7   : > { %10994 = vmatpush3.bf16.msra.mxu0 %v13269_v14 }
 0x6f8   : > { %11023 = vmatprep.subr.bf16.mxu0 %v13271_v0  ;;  %v13375_v0 = vld [vmem:[#allocation11 + $0x1028] ss:$20 sps:$4 sm:$0xff]  }
 0x6fa   : > { %8691 = vmatmul.mubr.bf16.vlgmr.msra.gmra.mrb[8].mxu0 %v16405_v17  ;;  %v13293_v17 = vld [vmem:[#allocation11 + $0x5d8] ss:$20 sps:$4 sm:$0xff]  }
 0x6fb   : > { %11024 = vmatpush3.bf16.msra.mxu0 %v13273_v37  ;;  %8770 = vmatprep.mubr.bf16.mxu0 %v16409_v50  ;;  %v13297_v50 = vld [vmem:[#allocation11 + $0x600] ss:$20 sps:$4 sm:$0xff]   ;;  %v8066_v37 = vrot.slane %v16497_v45, %v16978_v53 }
 0x6fc   : > { %11025 = vmatprep.subr.bf16.mxu0 %v13275_v33 }
 0x6ff   : > { %11026 = vmatpush3.bf16.msra.mxu0 %v13277_v26 }
 0x700   : > { %11027 = vmatprep.subr.bf16.mxu0 %v13279_v61 }
 0x703   : > { %11028 = vmatpush3.bf16.msra.mxu0 %v13281_v35 }
 0x704   : > { %11029 = vmatprep.subr.bf16.mxu0 %v13283_v12 }
 0x707   : > { %11030 = vmatpush3.bf16.msra.mxu0 %v13285_v6 }
 0x708   : > { %11031 = vmatprep.subr.bf16.mxu0 %v13287_v4 }
 0x70b   : > { %11032 = vmatpush3.bf16.msra.mxu0 %v13289_v23 }
 0x70c   : > { %11033 = vmatprep.subr.bf16.mxu0 %v13291_v39 }
 0x70f   : > { %11034 = vmatpush3.bf16.msra.mxu0 %v13293_v17 }
 0x710   : > { %11035 = vmatprep.subr.bf16.mxu0 %v13295_v49  ;;  %v16488_v20 = vpop.f32.mrb[0].mxu1 }
 0x713   : > { %11036 = vmatpush3.bf16.msra.mxu0 %v13297_v50 }
 0x714   : > { %11037 = vmatprep.subr.bf16.mxu0 %v13299_v43 }
 0x717   : > { %11038 = vmatpush3.bf16.msra.mxu0 %v13301_v11  ;;  %v13397_v11 = vld [vmem:[#allocation14 + $0x100] ss:$8 sps:$4 sm:$0xff]  }
 0x718   : > { %11067 = vmatprep.subr.bf16.mxu0 %v13303_v32 }
 0x71a   : > { %8771 = vmatmul.mubr.bf16.vlgmr.msra.gmra.mrb[12].mxu0 %v16420_v56  ;;  %v13325_v56 = vld [vmem:[#allocation11 + $0xad8] ss:$20 sps:$4 sm:$0xff]  }
 0x71b   : > { %11068 = vmatpush3.bf16.msra.mxu0 %v13305_v27  ;;  %8850 = vmatprep.mubr.bf16.mxu0 %v16437_v19  ;;  %v16490_v19 = vpop.f32.mrb[1].mxu1  ;;  %v13402_v27 = vld [vmem:[#allocation14 + $0x114] ss:$8 sps:$4 sm:$0xff]  }
 0x71c   : > { %11069 = vmatprep.subr.bf16.mxu0 %v13307_v62  ;;  %v8655_v52 = vpop.f32.mrb[2].mxu1  ;;  %v13400_v62 = vld [vmem:[#allocation14 + $0x110] ss:$8 sps:$4 sm:$0xff]  }
 0x71d   : > { %v8656_v47 = vpop.f32.mrb[3].mxu1  ;;  %v13420_v52 = vld [vmem:[#allocation14 + $0x174] ss:$8 sps:$4 sm:$0xff]  }
 0x71f   : > { %11070 = vmatpush3.bf16.msra.mxu0 %v13309_v10  ;;  %v13405_v10 = vld [vmem:[#allocation14 + $0x124] ss:$8 sps:$4 sm:$0xff]  }
 0x720   : > { %11071 = vmatprep.subr.bf16.mxu0 %v13311_v44  ;;  %v13403_v44 = vld [vmem:[#allocation14 + $0x120] ss:$8 sps:$4 sm:$0xff]  }
 0x723   : > { %11072 = vmatpush3.bf16.msra.mxu0 %v13313_v3  ;;  %v13408_v3 = vld [vmem:[#allocation14 + $0x134] ss:$8 sps:$4 sm:$0xff]  }
 0x724   : > { %11073 = vmatprep.subr.bf16.mxu0 %v13315_v15  ;;  %v13406_v15 = vld [vmem:[#allocation14 + $0x130] ss:$8 sps:$4 sm:$0xff]  }
 0x727   : > { %11074 = vmatpush3.bf16.msra.mxu0 %v13317_v42  ;;  %v13411_v42 = vld [vmem:[#allocation14 + $0x144] ss:$8 sps:$4 sm:$0xff]  }
 0x728   : > { %11075 = vmatprep.subr.bf16.mxu0 %v13319_v1  ;;  %v13409_v1 = vld [vmem:[#allocation14 + $0x140] ss:$8 sps:$4 sm:$0xff]  }
 0x72b   : > { %11076 = vmatpush3.bf16.msra.mxu0 %v13321_v60  ;;  %v13414_v60 = vld [vmem:[#allocation14 + $0x154] ss:$8 sps:$4 sm:$0xff]  }
 0x72c   : > { %11077 = vmatprep.subr.bf16.mxu0 %v13323_v40  ;;  %v13412_v40 = vld [vmem:[#allocation14 + $0x150] ss:$8 sps:$4 sm:$0xff]  }
 0x72f   : > { %11078 = vmatpush3.bf16.msra.mxu0 %v13325_v56  ;;  %v13417_v56 = vld [vmem:[#allocation14 + $0x164] ss:$8 sps:$4 sm:$0xff]  }
 0x730   : > { %11079 = vmatprep.subr.bf16.mxu0 %v13327_v59  ;;  %v11017_v31 = vpop.f32.mrb[4].mxu1  ;;  %v13415_v59 = vld [vmem:[#allocation14 + $0x160] ss:$8 sps:$4 sm:$0xff]  }
 0x731   : > { %v11018_v28 = vpop.f32.mrb[5].mxu1 }
 0x732   : > { %v16494_v7 = vadd.f32 %v11018_v28, %v11017_v31  ;;  %v11020_v18 = vpop.f32.mrb[6].mxu1  ;;  %v13441_v31 = vld [vmem:[#allocation14 + $0x1e4] ss:$8 sps:$4 sm:$0xff]   ;;  %v8074_v28 = vrot.slane %v16497_v45, %v16979_v36 }
 0x733   : > { %11080 = vmatpush3.bf16.msra.mxu0 %v13329_v51  ;;  %v11021_v14 = vpop.f32.mrb[7].mxu1  ;;  %v13418_v51 = vld [vmem:[#allocation14 + $0x170] ss:$8 sps:$4 sm:$0xff]   ;;  %v13439_v18 = vld [vmem:[#allocation14 + $0x1e0] ss:$8 sps:$4 sm:$0xff]  }
 0x734   : > { %11081 = vmatprep.subr.bf16.mxu0 %v13331_v38  ;;  %v13423_v38 = vld [vmem:[#allocation14 + $0x184] ss:$8 sps:$4 sm:$0xff]   ;;  %v13444_v14 = vld [vmem:[#allocation14 + $0x1f4] ss:$8 sps:$4 sm:$0xff]  }
 0x737   : > { %11082 = vmatpush3.bf16.msra.mxu0 %v13335_v2 }
 0x738   : > { %11111 = vmatprep.subr.bf16.mxu0 %v13336_v13 }
 0x73a   : > { %8851 = vmatmul.mubr.bf16.vlgmr.msra.gmra.mrb[16].mxu0 %v16447_v34  ;;  %v13365_v34 = vld [vmem:[#allocation11 + $0xfd8] ss:$20 sps:$4 sm:$0xff]  }
 0x73b   : > { %11112 = vmatpush3.bf16.msra.mxu0 %v13340_v5  ;;  %8930 = vmatprep.mubr.bf16.mxu0 %v16461_v54  ;;  %v13370_v54 = vld [vmem:[#allocation11 + $0x1000] ss:$20 sps:$4 sm:$0xff]  }
 0x73c   : > { %11113 = vmatprep.subr.bf16.mxu0 %v13341_v55 }
 0x73f   : > { %11114 = vmatpush3.bf16.msra.mxu0 %v13345_v41  ;;  %v13421_v41 = vld [vmem:[#allocation14 + $0x180] ss:$8 sps:$4 sm:$0xff]  }
 0x740   : > { %11115 = vmatprep.subr.bf16.mxu0 %v13346_v30  ;;  %v13426_v30 = vld [vmem:[#allocation14 + $0x194] ss:$8 sps:$4 sm:$0xff]  }
 0x743   : > { %11116 = vmatpush3.bf16.msra.mxu0 %v13350_v21  ;;  %v13424_v21 = vld [vmem:[#allocation14 + $0x190] ss:$8 sps:$4 sm:$0xff]  }
 0x744   : > { %11117 = vmatprep.subr.bf16.mxu0 %v13351_v48  ;;  %v13429_v48 = vld [vmem:[#allocation14 + $0x1a4] ss:$8 sps:$4 sm:$0xff]  }
 0x747   : > { %11118 = vmatpush3.bf16.msra.mxu0 %v13355_v46  ;;  %v13427_v46 = vld [vmem:[#allocation14 + $0x1a0] ss:$8 sps:$4 sm:$0xff]  }
 0x748   : > { %11119 = vmatprep.subr.bf16.mxu0 %v13356_v22  ;;  %v13432_v22 = vld [vmem:[#allocation14 + $0x1b4] ss:$8 sps:$4 sm:$0xff]  }
 0x74b   : > { %11120 = vmatpush3.bf16.msra.mxu0 %v13360_v9  ;;  %v13430_v9 = vld [vmem:[#allocation14 + $0x1b0] ss:$8 sps:$4 sm:$0xff]  }
 0x74c   : > { %11121 = vmatprep.subr.bf16.mxu0 %v13361_v63  ;;  %v13435_v63 = vld [vmem:[#allocation14 + $0x1c4] ss:$8 sps:$4 sm:$0xff]  }
 0x74f   : > { %11122 = vmatpush3.bf16.msra.mxu0 %v13365_v34  ;;  %v13433_v34 = vld [vmem:[#allocation14 + $0x1c0] ss:$8 sps:$4 sm:$0xff]  }
 0x750   : > { %11123 = vmatprep.subr.bf16.mxu0 %v13366_v16  ;;  %v11061_v6 = vpop.f32.mrb[8].mxu1  ;;  %v13438_v16 = vld [vmem:[#allocation14 + $0x1d4] ss:$8 sps:$4 sm:$0xff]  }
 0x751   : > { %v11062_v39 = vpop.f32.mrb[9].mxu1 }
 0x752   : > { %v16503_v49 = vadd.f32 %v11062_v39, %v11061_v6  ;;  %v13447_v6 = vld [vmem:[#allocation14 + $0x204] ss:$8 sps:$4 sm:$0xff]   ;;  %v13445_v39 = vld [vmem:[#allocation14 + $0x200] ss:$8 sps:$4 sm:$0xff]  }
 0x753   : > { %11124 = vmatpush3.bf16.msra.mxu0 %v13370_v54  ;;  %v13436_v54 = vld [vmem:[#allocation14 + $0x1d0] ss:$8 sps:$4 sm:$0xff]  }
 0x754   : > { %11125 = vmatprep.subr.bf16.mxu0 %v13371_v57  ;;  %v8070_v57 = vrot.slane %v16497_v45, %v16981_v8 }
 0x757   : > { %11126 = vmatpush3.bf16.msra.mxu0 %v13375_v0 }
 0x75a   : > { %8931 = vmatmul.mubr.bf16.vlgmr.msra.gmra.mrb[20].mxu0 %v16469_v24  ;;  %v11064_v24 = vpop.f32.mrb[10].mxu1 }
 0x75b   : > { %v11065_v50 = vpop.f32.mrb[11].mxu1  ;;  %v13450_v24 = vld [vmem:[#allocation14 + $0x214] ss:$8 sps:$4 sm:$0xff]  }
 0x75c   : > { %v13469_v50 = vld [vmem:[%s16632_s9 + $0x40] sm:$0xff]  }
 0x75d   : > { %11133 = vmatprep.subr.bf16.mxu0 %v13469_v50 }
 0x76d   : > { %v8364_v33 = vpop.f32.mrb[0].mxu0 }
 0x76e   : > { %v11191_v26 = vadd.f32 %v8364_v33, %v8062_v58  ;;  %v8366_v61 = vpop.f32.mrb[1].mxu0 }
 0x76f   : > { %v11192_v35 = vadd.f32 %v8366_v61, %v8066_v37  ;;  %v8368_v12 = vpop.f32.mrb[2].mxu0  ;;  %v13442_v61 = vld [vmem:[#allocation14 + $0x1f0] ss:$8 sps:$4 sm:$0xff]  }
 0x770   : > { %v8938_v4 = vmax.f32 %v11191_v26, 0.0  ;;  %v8369_v23 = vpop.f32.mrb[3].mxu0  ;;  %v11105_v47 = vpop.f32.mrb[12].mxu1 }
 0x771   : > { %v8939_v17 = vmax.f32 %v11192_v35, 0.0  ;;  %v11106_v2 = vpop.f32.mrb[13].mxu1 }
 0x772   : > { %v8943_v32 = vpack.c.bf16 %v8938_v4, %v8938_v4  ;;  %v16505_v13 = vadd.f32 %v11106_v2, %v11105_v47  ;;  %v11108_v5 = vpop.f32.mrb[14].mxu1  ;;  %v13460_v47 = vld [vmem:[#allocation14 + $0x250] ss:$8 sps:$4 sm:$0xff]  }
 0x773   : > { %v8944_v43 = vpack.c.bf16 %v8939_v17, %v8939_v17  ;;  %v11109_v55 = vpop.f32.mrb[15].mxu1  ;;  %v13480_v2 = vld [vmem:[%s16632_s9 + $0x28] sm:$0xff]  }
 0x774   : > { %v8078_v55 = vrot.slane %v16497_v45, %v16983_v25 }
 0x775   : > { %9472 = vmatprep.mubr.bf16.mxu1 %v8944_v43  ;;  %v13448_v43 = vld [vmem:[#allocation14 + $0x210] ss:$8 sps:$4 sm:$0xff]  }
 0x776   : > { %9473 = vmatmul.mubr.bf16.vlgmr.msra.gmra.mrb[16].mxu1 %v8943_v32  ;;  %v13453_v32 = vld [vmem:[#allocation14 + $0x224] ss:$8 sps:$4 sm:$0xff]  }
 0x777   : > { %9482 = vmatpush1.bf16.msra.mxu1 %v13397_v11  ;;  %v13873_v11 = vmov 0  }
 0x778   : > { %9483 = vmatprep.subr.bf16.mxu1 %v13402_v27  ;;  %v13472_v27 = vld [vmem:[%s16632_s9 + $0x8] sm:$0xff]  }
 0x77b   : > { %9484 = vmatpush1.bf16.msra.mxu1 %v13400_v62  ;;  %v13473_v62 = vld [vmem:[%s16632_s9 + $0x50] sm:$0xff]  }
 0x77c   : > { %9485 = vmatprep.subr.bf16.mxu1 %v13405_v10  ;;  %v13451_v10 = vld [vmem:[#allocation14 + $0x220] ss:$8 sps:$4 sm:$0xff]  }
 0x77f   : > { %9486 = vmatpush1.bf16.msra.mxu1 %v13403_v44  ;;  %v13456_v44 = vld [vmem:[#allocation14 + $0x234] ss:$8 sps:$4 sm:$0xff]  }
 0x780   : > { %9487 = vmatprep.subr.bf16.mxu1 %v13408_v3  ;;  %v13474_v3 = vld [vmem:[%s16632_s9 + $0x10] sm:$0xff]  }
 0x783   : > { %9488 = vmatpush1.bf16.msra.mxu1 %v13406_v15  ;;  %v13475_v15 = vld [vmem:[%s16632_s9 + $0x58] sm:$0xff]  }
 0x784   : > { %9489 = vmatprep.subr.bf16.mxu1 %v13411_v42  ;;  %v13454_v42 = vld [vmem:[#allocation14 + $0x230] ss:$8 sps:$4 sm:$0xff]  }
 0x787   : > { %9490 = vmatpush1.bf16.msra.mxu1 %v13409_v1  ;;  %v13459_v1 = vld [vmem:[#allocation14 + $0x244] ss:$8 sps:$4 sm:$0xff]  }
 0x788   : > { %9491 = vmatprep.subr.bf16.mxu1 %v13414_v60  ;;  %v13476_v60 = vld [vmem:[%s16632_s9 + $0x18] sm:$0xff]  }
 0x78b   : > { %9492 = vmatpush1.bf16.msra.mxu1 %v13412_v40  ;;  %v13477_v40 = vld [vmem:[%s16632_s9 + $0x60] sm:$0xff]  }
 0x78c   : > { %9493 = vmatprep.subr.bf16.mxu1 %v13417_v56  ;;  %v13457_v56 = vld [vmem:[#allocation14 + $0x240] ss:$8 sps:$4 sm:$0xff]  }
 0x78f   : > { %9494 = vmatpush1.bf16.msra.mxu1 %v13415_v59  ;;  %v13462_v59 = vld [vmem:[#allocation14 + $0x254] ss:$8 sps:$4 sm:$0xff]  }
 0x790   : > { %9495 = vmatprep.subr.bf16.mxu1 %v13420_v52  ;;  %v13478_v52 = vld [vmem:[%s16632_s9 + $0x20] sm:$0xff]  }
 0x793   : > { %9496 = vmatpush1.bf16.msra.mxu1 %v13418_v51  ;;  %v13479_v51 = vld [vmem:[%s16632_s9 + $0x68] sm:$0xff]  }
 0x794   : > { %9497 = vmatprep.subr.bf16.mxu1 %v13423_v38  ;;  %v13465_v38 = vld [vmem:[#allocation14 + $0x264] ss:$8 sps:$4 sm:$0xff]  }
 0x797   : > { %9498 = vmatpush1.bf16.msra.mxu1 %v13421_v41  ;;  %v13463_v41 = vld [vmem:[#allocation14 + $0x260] ss:$8 sps:$4 sm:$0xff]  }
 0x798   : > { %9499 = vmatprep.subr.bf16.mxu1 %v13426_v30 }
 0x79b   : > { %9500 = vmatpush1.bf16.msra.mxu1 %v13424_v21  ;;  %v13468_v21 = vld [vmem:[#allocation14 + $0x274] ss:$8 sps:$4 sm:$0xff]  }
 0x79c   : > { %9501 = vmatprep.subr.bf16.mxu1 %v13429_v48 }
 0x79f   : > { %9502 = vmatpush1.bf16.msra.mxu1 %v13427_v46 }
 0x7a0   : > { %9503 = vmatprep.subr.bf16.mxu1 %v13432_v22 }
 0x7a3   : > { %9504 = vmatpush1.bf16.msra.mxu1 %v13430_v9 }
 0x7a4   : > { %9505 = vmatprep.subr.bf16.mxu1 %v13435_v63  ;;  %v13466_v63 = vld [vmem:[#allocation14 + $0x270] ss:$8 sps:$4 sm:$0xff]  }
 0x7a7   : > { %9506 = vmatpush1.bf16.msra.mxu1 %v13433_v34 }
 0x7a8   : > { %9507 = vmatprep.subr.bf16.mxu1 %v13438_v16 }
 0x7ab   : > { %9508 = vmatpush1.bf16.msra.mxu1 %v13436_v54 }
 0x7ac   : > { %9509 = vmatprep.subr.bf16.mxu1 %v13441_v31 }
 0x7ad   : > { %v8405_v0 = vpop.f32.mrb[4].mxu0 }
 0x7ae   : > { %v8406_v58 = vadd.f32 %v8405_v0, %v8070_v57  ;;  %v8407_v37 = vpop.f32.mrb[5].mxu0 }
 0x7af   : > { %v8408_v33 = vadd.f32 %v8407_v37, %v8074_v28  ;;  %v8409_v26 = vpop.f32.mrb[6].mxu0  ;;  %9510 = vmatpush1.bf16.msra.mxu1 %v13439_v18 }
 0x7b0   : > { %v11194_v35 = vadd.f32 %v16488_v20, %v8406_v58  ;;  %v8410_v12 = vpop.f32.mrb[7].mxu0  ;;  %9511 = vmatprep.subr.bf16.mxu1 %v13444_v14  ;;  %v13470_v20 = vld [vmem:[%s16632_s9] sm:$0xff]  }
 0x7b1   : > { %v11196_v8 = vadd.f32 %v16490_v19, %v8408_v33  ;;  %v13471_v19 = vld [vmem:[%s16632_s9 + $0x48] sm:$0xff]   ;;  %11134 = vmatpush3.bf16.msra.mxu0 %v13470_v20 }
 0x7b2   : > { %v8940_v4 = vmax.f32 %v11194_v35, 0.0  ;;  %11135 = vmatprep.subr.bf16.mxu0 %v13471_v19 }
 0x7b3   : > { %v8941_v23 = vmax.f32 %v11196_v8, 0.0  ;;  %9512 = vmatpush1.bf16.msra.mxu1 %v13442_v61 }
 0x7b4   : > { %9522 = vmatprep.subr.bf16.mxu1 %v13447_v6  ;;  %v8945_v17 = vpack.c.bf16 %v8940_v4, %v8940_v4 }
 0x7b5   : > { %v8946_v36 = vpack.c.bf16 %v8941_v23, %v8941_v23  ;;  %11136 = vmatpush3.bf16.msra.mxu0 %v13472_v27 }
 0x7b6   : > { %11137 = vmatprep.subr.bf16.mxu0 %v13473_v62 }
 0x7b7   : > { %9513 = vmatprep.mubr.bf16.mxu1 %v8946_v36  ;;  %v13482_v36 = vld [vmem:[%s16632_s9 + $0x30] sm:$0xff]  }
 0x7b8   : > { %9514 = vmatmul.mubr.bf16.vlgmr.msra.gmra.mrb[16].mxu1 %v8945_v17  ;;  %v9028_v17 = vld [vmem:[#allocation15] sm:$0x3] }
 0x7b9   : > { %9523 = vmatpush1.bf16.msra.mxu1 %v13445_v39  ;;  %9554 = vmatprep.mubr.bf16.mxu1 %v13873_v11  ;;  %v13484_v39 = vld [vmem:[%s16632_s9 + $0x38] sm:$0xff]   ;;  %v9437_v50 = vrot.slane %v9028_v17, %v16978_v53 }
 0x7ba   : > { %9524 = vmatprep.subr.bf16.mxu1 %v13450_v24  ;;  %11138 = vmatpush3.bf16.msra.mxu0 %v13474_v3  ;;  %v9433_v24 = vrot.slane %v9028_v17, %v16980_v29 }
 0x7bb   : > { %11139 = vmatprep.subr.bf16.mxu0 %v13475_v15 }
 0x7bd   : > { %9525 = vmatpush1.bf16.msra.mxu1 %v13448_v43 }
 0x7be   : > { %9526 = vmatprep.subr.bf16.mxu1 %v13453_v32  ;;  %11140 = vmatpush3.bf16.msra.mxu0 %v13476_v60 }
 0x7bf   : > { %11141 = vmatprep.subr.bf16.mxu0 %v13477_v40 }
 0x7c1   : > { %9527 = vmatpush1.bf16.msra.mxu1 %v13451_v10 }
 0x7c2   : > { %9528 = vmatprep.subr.bf16.mxu1 %v13456_v44  ;;  %11142 = vmatpush3.bf16.msra.mxu0 %v13478_v52 }
 0x7c3   : > { %11143 = vmatprep.subr.bf16.mxu0 %v13479_v51 }
 0x7c5   : > { %9529 = vmatpush1.bf16.msra.mxu1 %v13454_v42  ;;  %v9599_v42 = vld [vmem:[#allocation17] sm:$0x1] }
 0x7c6   : > { %9530 = vmatprep.subr.bf16.mxu1 %v13459_v1  ;;  %11144 = vmatpush3.bf16.msra.mxu0 %v13480_v2 }
 0x7c9   : > { %9531 = vmatpush1.bf16.msra.mxu1 %v13457_v56 }
 0x7ca   : > { %9532 = vmatprep.subr.bf16.mxu1 %v13462_v59 }
 0x7cd   : > { %v10995_v5 = vpop.f32.mrb[8].mxu0  ;;  %9533 = vmatpush1.bf16.msra.mxu1 %v13460_v47 }
 0x7ce   : > { %v10996_v30 = vpop.f32.mrb[9].mxu0  ;;  %9534 = vmatprep.subr.bf16.mxu1 %v13465_v38 }
 0x7cf   : > { %v10997_v48 = vadd.f32 %v10996_v30, %v10995_v5  ;;  %v10998_v46 = vpop.f32.mrb[10].mxu0 }
 0x7d0   : > { %v10999_v22 = vpop.f32.mrb[11].mxu0 }
 0x7d1   : > { %v8693_v9 = vadd.f32 %v10997_v48, %v8078_v55  ;;  %9535 = vmatpush1.bf16.msra.mxu1 %v13463_v41 }
 0x7d2   : > { %9536 = vmatprep.subr.bf16.mxu1 %v13468_v21 }
 0x7d3   : > { %v8733_v34 = vadd.f32 %v16494_v7, %v8693_v9 }
 0x7d5   : > { %9537 = vmatpush1.bf16.msra.mxu1 %v13466_v63 }
 0x7ed   : > { %v11039_v16 = vpop.f32.mrb[12].mxu0 }
 0x7ee   : > { %v11040_v54 = vpop.f32.mrb[13].mxu0 }
 0x7ef   : > { %v11041_v31 = vadd.f32 %v11040_v54, %v11039_v16  ;;  %v11042_v25 = vpop.f32.mrb[14].mxu0 }
 0x7f0   : > { %v11043_v45 = vpop.f32.mrb[15].mxu0 }
 0x7f1   : > { %v8773_v57 = vadd.f32 %v11041_v31, %v8733_v34 }
 0x7f3   : > { %v8813_v28 = vadd.f32 %v16503_v49, %v8773_v57  ;;  %v13481_v49 = vld [vmem:[%s16632_s9 + $0x70] sm:$0xff]  }
 0x7f4   : > { %11145 = vmatprep.subr.bf16.mxu0 %v13481_v49 }
 0x7f5   : > { %11146 = vmatpush3.bf16.msra.mxu0 %v13482_v36 }
 0x80d   : > { %v11083_v18 = vpop.f32.mrb[16].mxu0 }
 0x80e   : > { %v11084_v14 = vpop.f32.mrb[17].mxu0 }
 0x80f   : > { %v11085_v0 = vadd.f32 %v11084_v14, %v11083_v18  ;;  %v11086_v58 = vpop.f32.mrb[18].mxu0 }
 0x810   : > { %v11087_v37 = vpop.f32.mrb[19].mxu0 }
 0x811   : > { %v8853_v33 = vadd.f32 %v11085_v0, %v8813_v28 }
 0x813   : > { %v8893_v26 = vadd.f32 %v16505_v13, %v8853_v33  ;;  %v13483_v13 = vld [vmem:[%s16632_s9 + $0x78] sm:$0xff]  }
 0x814   : > { %11147 = vmatprep.subr.bf16.mxu0 %v13483_v13 }
 0x815   : > { %11148 = vmatpush3.bf16.msra.mxu0 %v13484_v39 }
 0x82d   : > { %v11127_v61 = vpop.f32.mrb[20].mxu0 }
 0x82e   : > { %v11128_v35 = vpop.f32.mrb[21].mxu0 }
 0x82f   : > { %v11129_v7 = vadd.f32 %v11128_v35, %v11127_v61  ;;  %v11130_v12 = vpop.f32.mrb[22].mxu0 }
 0x830   : > { %v11131_v6 = vpop.f32.mrb[23].mxu0 }
 0x831   : > { %v8933_v8 = vadd.f32 %v11129_v7, %v8893_v26 }
 0x833   : > { %v8942_v4 = vmax.f32 %v8933_v8, 0.0 }
 0x835   : > { %v8947_v23 = vpack.c.bf16 %v8942_v4, %v8942_v4 }
 0x837   : > { %9555 = vmatmul.mubr.bf16.vlgmr.msra.gmra.mrb[16].mxu1 %v8947_v23 }
 0x90a   : > { %v9556_v20 = vpop.f32.mrb[16].mxu1 }
 0x90b   : > { %v11197_v19 = vadd.f32 %v9556_v20, %v9433_v24  ;;  %v9558_v43 = vpop.f32.mrb[17].mxu1 }
 0x90c   : > { %v11198_v11 = vadd.f32 %v9558_v43, %v9437_v50  ;;  %v9560_v32 = vpop.f32.mrb[18].mxu1 }
 0x90d   : > { %v9563_v27 = vmax.f32 %v11197_v19, 0.0  ;;  %v9561_v62 = vpop.f32.mrb[19].mxu1 }
 0x90e   : > { %v9564_v10 = vmax.f32 %v11198_v11, 0.0 }
 0x90f   : > { %v9565_v3 = vpack.c.bf16 %v9563_v27, %v9563_v27 }
 0x910   : > { %v9566_v44 = vpack.c.bf16 %v9564_v10, %v9564_v10 }
 0x912   : > { %9728 = vmatprep.mubr.bf16.mxu0 %v9566_v44 }
 0x913   : > { %9729 = vmatmul.mubr.bf16.vlgmr.msra.gmra.mrb[24].mxu0 %v9565_v3 }
 0x9e6   : > { %v11149_v15 = vpop.f32.mrb[24].mxu0 }
 0x9e7   : > { %v11150_v1 = vpop.f32.mrb[25].mxu0 }
 0x9e8   : > { %v11151_v60 = vadd.f32 %v11150_v1, %v11149_v15  ;;  %v11152_v29 = vpop.f32.mrb[26].mxu0 }
 0x9e9   : > { %v11153_v53 = vpop.f32.mrb[27].mxu0 }
 0x9ea   : > { %v9731_v40 = vadd.f32 %v11151_v60, %v9599_v42 }
 0x9ec   : > { %9737 = vst.msk [vmem:[%s14221_s15] sm:$0x1] %vm9736_vm3, %v9731_v40 }
 0x9ed PF: > { %s10966_s24 = sshll.u32 %s13839_s21, 4  ;;  %s16987_s25 = sld [smem:[#allocation99_spill]] }
 0x9ee   : > { %s9751_s16 = sshll.u32 %s14221_s15, 4  ;;  %s9739_s11 = scalar_lea.sflag [#allocation5], %s521_s13  ;;  %s9752_s16 = int_to_ptr.vmem [resolvable:$true] %s9751_s16 }
 0x9ef   : > { %s13737_s27 = scalar_lea.vmem %s9752_s16, 16  ;;  %p16988_p4 = scmp.ne.s32.totalorder %s16674_s30, 0 }
 0x9f0   : > { %p13738_p13 = scmp.ne.s32.totalorder %s9752_s16, %s13737_s27  ;;  %s13874_s14 = smov [#allocation18]  }
 0x9f1   : > { %s13741_s12 = sshll.u32 %s13874_s14, 4  ;;  %s13742_s12 = int_to_ptr.vmem [resolvable:$false] %s13741_s12 }
 0x9f2   : > { %p13739_p5 = pnand %p13738_p13, %p16988_p4  ;;  %s13743_s4 = scalar_lea.vmem %s13742_s12, 32 }
 0x9f3   : > { %s16573_s28 = scalar_lea.hbm %s16987_s25, %s10966_s24  ;;  %p13744_p7 = scmp.lt.s32.totalorder %s9752_s16, %s13742_s12 }
 0x9f4   : > { %p13740_p6 = pneg %p13739_p5  ;;  %p13745_p8 = scmp.lt.s32.totalorder %s13743_s4, %s13737_s27 }
 0x9f6   : > { %p13746_p11 = por %p13745_p8, %p13744_p7 }
 0x9f8   : > { %p13747_p12 = pnand %p13746_p11, %p13740_p6 }
 0x9fa   : > { %13750 = shalt.err (!%p13747_p12)
}
 0x9fb   : > { %s13751_s21 = scalar_lea.hbm %s16573_s28, 16  ;;  %s13755_s26 = scalar_lea.hbm %s16987_s25, 32 }
 0x9fc   : > { %p13752_p1 = scmp.ne.s32.totalorder %s16573_s28, %s13751_s21  ;;  %p13756_p2 = scmp.lt.u32.totalorder %s16573_s28, %s16987_s25 }
 0x9fd   : > { %p13757_p9 = scmp.lt.u32.totalorder %s13755_s26, %s13751_s21  ;;  %p13759_p13 = scmp.lt.u32.totalorder %s13751_s21, %s16573_s28 }
 0x9fe   : > { %p13753_p3 = pnand %p13752_p1, %p16988_p4 }
 0x9ff   : > { %p13758_p10 = por %p13757_p9, %p13756_p2 }
 0xa00   : > { %p13754_p0 = pneg %p13753_p3 }
 0xa01   : > { %p13760_p5 = por %p13759_p13, %p13758_p10 }
 0xa03   : > { %p13761_p6 = pnand %p13760_p5, %p13754_p0 }
 0xa05   : > { %13764 = shalt.err (!%p13761_p6)
}
 0xa06   : > { %11287 = dma.vmem_to_hbm [thread:$0]  (%p16988_p4), %s9752_s16, 16, %s16573_s28, %s9739_s11  }
 0xa07 PF: > { %s16989_s2 = sld [smem:[#allocation29_spill]]  ;;  %s16990_s23 = sld [smem:[#allocation25_spill]] }
 0xa08   : > { %s16991_s17 = sld [smem:[#allocation32_spill]] }
 0xa0d   : > { %p11339_p7 = scmp.ge.s32.totalorder %s16989_s2, 2  ;;  %s9763_s24 = sand.u32 1, %s16990_s23  }
 0xa0e   : > { %p16992_p8 = scmp.ne.s32.totalorder %s16991_s17, 0  ;;  %s9764_s19 = scalar_lea.sflag [#allocation5], %s9763_s24 }
 0xa10   : > { %p11318_p11 = pnand %p11339_p7, %p16992_p8 }
 0xa12   : > { %13818 = dma.done.wait (!%p11318_p11), %s9764_s19, 16  }
 0xa13   : > { %13820 = vsyncadd (!%p11318_p11), %s9764_s19, 4294967280  ;;  %s29_s24 = sadd.s32 1, %s16989_s2   ;;  %s16993_s20 = sld [smem:[#allocation26_spill]] }
 0xa14   : > { %p26_p12 = scmp.ge.s32.totalorder %s29_s24, 6   ;;  %s16994_s19 = sld [smem:[#allocation33_spill]] }
 0xa15   : > { %s16995_s30 = sld [smem:[#allocation27_spill]]  ;;  %s16996_s21 = sld [smem:[#allocation28_spill]] }
 0xa16   : > { %s16997_s22 = sld [smem:[#allocation30_spill]]  ;;  %s16998_s23 = sld [smem:[#allocation31_spill]] }
 0xa17   : > { %s16999_s17 = smov %s13827_s18  ;;  %28 = sbr.rel (!%p26_p12) target bundleno = 14 (0xe), region = 144 }
 0xa19   : > { %s17000_s18 = smov %s16993_s20 }
 0xa1b   : > { %s17001_s20 = smov %s16995_s30 }
 0xa1e   :  { %9768 = vsyncpa [#allocation4], 1 }
 0xa1f   :  { %9770 = vsyncpa [#allocation4 + $0x1], 1 }
 0xa20   :  { %9771 = vsyncpa [#allocation7], 1 }
 0xa21   :  { %9772 = vsyncpa [#allocation10], 1 }
 0xa22   :  { %9773 = vsyncpa [#allocation13], 1 }
 0xa23   :  { %9774 = vsyncpa [#allocation16], 1 }
 0xa24   :  { %9775 = vsyncpa [#allocation5], 1 }
 0xa25   :  { %9777 = vsyncpa [#allocation5 + $0x1], 1 }

</bundles_post_ra>
